<compile_context>
chip_gen: v7x
topology: tpu7x:2x2x1
jax: 0.10.0
libtpu: 0.0.40
codegen_flags: <defaults>
</compile_context>

<pallas_src>
import functools

import jax
import jax.numpy as jnp
import numpy as np
from jax.experimental import pallas as pl
from jax.experimental.pallas import tpu as pltpu

SLOPE = 0.01


# ---------------------------------------------------------------------------
# Pallas kernel
# ---------------------------------------------------------------------------
def _powerful_layer_kernel(num_layers, xt_ref, x_ref, mask_ref, *refs):
    """One grid step == `bt` batch elements.

    refs = [W1_0, b1_0, ..., W1_{L-1}, b1_{L-1},    # m1 MLP (applied to x^T)
            W2_0, b2_0, ..., W2_{L-1}, b2_{L-1},    # m2 MLP (applied to x)
            W4h, W4x, b4,                           # m4 Linear (split)
            out_ref]
    """
    out_ref = refs[-1]
    wrefs = refs[:-1]
    L = num_layers
    m1_params = [(wrefs[2 * i], wrefs[2 * i + 1]) for i in range(L)]
    m2_params = [(wrefs[2 * L + 2 * i], wrefs[2 * L + 2 * i + 1]) for i in range(L)]
    w4h_ref, w4x_ref, b4_ref = wrefs[4 * L], wrefs[4 * L + 1], wrefs[4 * L + 2]

    bt, NN, Fin = x_ref.shape
    N = mask_ref.shape[1]
    C = w4h_ref.shape[0]

    def mlp(z_bf16, params):
        """Pointwise MLP over the feature dim; bf16 MXU inputs, f32 accumulation."""
        h = z_bf16
        for li, (w_ref, b_ref) in enumerate(params):
            h = jnp.dot(h, w_ref[...], preferred_element_type=jnp.float32)
            h = h + b_ref[...]
            if li < len(params) - 1:                    # LeakyReLU between Linears
                h = jnp.where(h >= 0, h, SLOPE * h)     # f32 elementwise
                h = h.astype(jnp.bfloat16)              # re-pack for the next MXU dot
        return h                                        # f32 [rows, C]

    xt2d = xt_ref[...].reshape(bt * NN, Fin)            # rows = k*N + i   (bf16)
    x2d = x_ref[...].reshape(bt * NN, Fin)              # rows = i*N + j   (bf16)

    # h1t[b, k, i, c] = m1(x)[b, i, k, c];  h2[b, k, j, c] = m2(x)[b, k, j, c]
    h1t = mlp(xt2d, m1_params).reshape(bt, N, N, C)
    h2 = mlp(x2d, m2_params).reshape(bt, N, N, C)

    maskf = mask_ref[...]                                       # [bt, N, 1] f32
    inv_norm = jax.lax.rsqrt(jnp.sum(maskf, axis=1, keepdims=True))  # [bt, 1, 1]

    # Mask the k rows of h2 inside the sum; the i-row mask (and 1/norm) factor out
    # of the contraction and are applied once to acc below.
    h2 = h2 * maskf[:, :, None, :]                              # broadcast over (j, c)

    # Channel-wise contraction: acc[b, i, j, c] = sum_k h1t[b,k,i,c] * h2[b,k,j,c]
    # Both per-k slices are major-axis slices (cheap); broadcasts are sublane /
    # major-dim broadcasts.  N is small, so the loop is statically unrolled.
    acc = jnp.zeros((bt, N, N, C), jnp.float32)
    for k in range(N):
        a = h1t[:, k, :, :]                                     # [bt, N(i), C]
        v = h2[:, k, :, :]                                      # [bt, N(j), C]
        acc = acc + a[:, :, None, :] * v[:, None, :, :]

    # Row mask over i and the 1/sqrt(sum(mask)) factor, folded into one multiply.
    acc = acc * (maskf * inv_norm)[:, :, None, :]

    # m4(cat(out, x)) == out @ W4h + x @ W4x + b4
    acc2d = acc.reshape(bt * NN, C).astype(jnp.bfloat16)
    y = (jnp.dot(acc2d, w4h_ref[...], preferred_element_type=jnp.float32)
         + jnp.dot(x2d, w4x_ref[...], preferred_element_type=jnp.float32)
         + b4_ref[...])
    out_ref[...] = y.reshape(bt, NN, C).astype(out_ref.dtype)


# ---------------------------------------------------------------------------
# Wrapper
# ---------------------------------------------------------------------------
def _choose_bt(B, max_bt=8):
    """Largest divisor of B keeping >= 2 grid steps (feeds both TCs on v7x)."""
    best = 1
    for cand in range(1, min(B, max_bt) + 1):
        if B % cand == 0 and (B // cand) >= 2:
            best = cand
    return best


def powerful_layer(x, mask, params, num_layers, bt=None):
    """x: [B, N, N, in_feat], mask: [B, N, 1] (bool/float) -> [B, N, N, out_feat]."""
    B, N, N2, Fin = x.shape
    assert N == N2
    C = params["W4h"].shape[0]
    NN = N * N
    if bt is None:
        bt = _choose_bt(B)
    assert B % bt == 0

    x_bf = x.astype(jnp.bfloat16)
    x2d = x_bf.reshape(B, NN, Fin)                           # rows = i*N + j
    xt2d = jnp.swapaxes(x_bf, 1, 2).reshape(B, NN, Fin)      # rows = k*N + i
    maskf = mask.astype(jnp.float32).reshape(B, N, 1)

    flat_w = []
    for (W, b) in params["m1"]:
        flat_w += [W.astype(jnp.bfloat16), b.astype(jnp.float32)]
    for (W, b) in params["m2"]:
        flat_w += [W.astype(jnp.bfloat16), b.astype(jnp.float32)]
    flat_w += [params["W4h"].astype(jnp.bfloat16),
               params["W4x"].astype(jnp.bfloat16),
               params["b4"].astype(jnp.float32)]

    in_specs = [
        pl.BlockSpec((bt, NN, Fin), lambda b: (b, 0, 0)),    # x^T (node axes swapped)
        pl.BlockSpec((bt, NN, Fin), lambda b: (b, 0, 0)),    # x
        pl.BlockSpec((bt, N, 1), lambda b: (b, 0, 0)),       # mask
    ]
    for w in flat_w:                                         # weights: full, resident
        in_specs.append(pl.BlockSpec(w.shape, lambda b, nd=w.ndim: (0,) * nd))

    kernel = functools.partial(_powerful_layer_kernel, num_layers)

    out2d = pl.pallas_call(
        kernel,
        out_shape=jax.ShapeDtypeStruct((B, NN, C), jnp.float32),
        grid=(B // bt,),
        in_specs=in_specs,
        out_specs=pl.BlockSpec((bt, NN, C), lambda b: (b, 0, 0)),
        compiler_params=pltpu.CompilerParams(dimension_semantics=("parallel",)),
    )(xt2d, x2d, maskf, *flat_w)

    return out2d.reshape(B, N, N, C)


# ---------------------------------------------------------------------------
# Pure-JAX reference (mirrors the PyTorch forward).
# match_kernel_precision=True applies the same bf16 rounding at matmul inputs
# that the kernel uses (f32 accumulation in both cases).
# ---------------------------------------------------------------------------
def reference_forward(x, mask, params, match_kernel_precision=True):
    B, N, _, Fin = x.shape
    maskf = mask.astype(jnp.float32)                              # [B, N, 1]
    norm = jnp.sqrt(jnp.sum(maskf[..., 0], axis=-1)).reshape(B, 1, 1, 1)
    m = maskf[:, :, 0]                                            # [B, N]

    if match_kernel_precision:
        cast = lambda a: a.astype(jnp.bfloat16)
    else:
        cast = lambda a: a

    def dot(a, w):
        return jnp.dot(cast(a), cast(w), preferred_element_type=jnp.float32,
                       precision=jax.lax.Precision.HIGHEST)

    def mlp(z, ws):
        for i, (W, b) in enumerate(ws):
            z = dot(z, W) + b
            if i < len(ws) - 1:
                z = jnp.where(z >= 0, z, SLOPE * z)
        return z

    h1 = mlp(x, params["m1"]) * m[:, :, None, None]
    h2 = mlp(x, params["m2"]) * m[:, :, None, None]
    out = jnp.einsum("bikc,bkjc->bijc", h1, h2,
                     precision=jax.lax.Precision.HIGHEST) / norm   # NCHW out1 @ out2
    return dot(out, params["W4h"]) + dot(x, params["W4x"]) + params["b4"]


# ---------------------------------------------------------------------------
# Deterministic parameter init (shapes match the PyTorch module)
# ---------------------------------------------------------------------------
def _linear_init(key, fan_in, fan_out):
    kw, kb = jax.random.split(key)
    lim = 1.0 / np.sqrt(fan_in)
    W = jax.random.uniform(kw, (fan_in, fan_out), jnp.float32, -lim, lim)
    b = jax.random.uniform(kb, (1, fan_out), jnp.float32, -lim, lim)
    return W, b


def init_params(key, in_feat, out_feat, num_layers):
    keys = jax.random.split(key, 2 * num_layers + 1)
    m1, m2 = [], []
    for i in range(num_layers):
        fin = in_feat if i == 0 else out_feat
        m1.append(_linear_init(keys[2 * i], fin, out_feat))
        m2.append(_linear_init(keys[2 * i + 1], fin, out_feat))
    W4, b4 = _linear_init(keys[-1], in_feat + out_feat, out_feat)
    # cat order in forward is (out, x): first out_feat rows hit the matmul output.
    return {
        "m1": m1,
        "m2": m2,
        "W4h": W4[:out_feat],   # [out_feat, out_feat]
        "W4x": W4[out_feat:],   # [in_feat,  out_feat]
        "b4": b4,               # [1, out_feat]
    }


# ---------------------------------------------------------------------------
if __name__ == "__main__":
    B, N = 4, 16
    in_feat, out_feat, num_layers = 16, 32, 2

    key = jax.random.PRNGKey(0)
    kx, kp = jax.random.split(key)
    x = jax.random.normal(kx, (B, N, N, in_feat), jnp.float32)

    # mask: [B, N, 1] with a different number of valid nodes per graph.
    n_valid = jnp.array([12, 16, 9, 14], dtype=jnp.int32)
    mask = (jnp.arange(N)[None, :] < n_valid[:, None]).reshape(B, N, 1)

    params = init_params(kp, in_feat, out_feat, num_layers)

    out = jax.block_until_ready(powerful_layer(x, mask, params, num_layers))
    assert out.shape == (B, N, N, out_feat)

    # Tight check against a reference that applies the same bf16-input / f32-accum
    # matmul rounding as the kernel.
    ref_matched = jax.block_until_ready(
        reference_forward(x, mask, params, match_kernel_precision=True))
    np.testing.assert_allclose(np.asarray(out), np.asarray(ref_matched),
                               rtol=5e-3, atol=5e-3)

    # Loose sanity check against the pure-f32 module math.
    ref_f32 = jax.block_until_ready(
        reference_forward(x, mask, params, match_kernel_precision=False))
    np.testing.assert_allclose(np.asarray(out), np.asarray(ref_f32),
                               rtol=1e-1, atol=1e-1)

    print("KERNEL_OK")
</pallas_src>

<mosaic_0001>
module attributes {stable_mosaic.version = 11 : i64} {
  func.func @_powerful_layer_kernel(%arg0: i32, %arg1: memref<2x256x16xbf16, #tpu.memory_space<vmem>>, %arg2: memref<2x256x16xbf16, #tpu.memory_space<vmem>>, %arg3: memref<2x16x1xf32, #tpu.memory_space<vmem>>, %arg4: memref<16x32xbf16, #tpu.memory_space<vmem>>, %arg5: memref<1x32xf32, #tpu.memory_space<vmem>>, %arg6: memref<32x32xbf16, #tpu.memory_space<vmem>>, %arg7: memref<1x32xf32, #tpu.memory_space<vmem>>, %arg8: memref<16x32xbf16, #tpu.memory_space<vmem>>, %arg9: memref<1x32xf32, #tpu.memory_space<vmem>>, %arg10: memref<32x32xbf16, #tpu.memory_space<vmem>>, %arg11: memref<1x32xf32, #tpu.memory_space<vmem>>, %arg12: memref<32x32xbf16, #tpu.memory_space<vmem>>, %arg13: memref<16x32xbf16, #tpu.memory_space<vmem>>, %arg14: memref<1x32xf32, #tpu.memory_space<vmem>>, %arg15: memref<2x256x32xf32, #tpu.memory_space<vmem>>) attributes {dimension_semantics = [#tpu.dimension_semantics<parallel>], iteration_bounds = array<i64: 2>, scalar_prefetch = 0 : i64, scratch_operands = 0 : i64, tpu.core_type = #tpu.core_type<tc>, window_params = [{transform_indices = @transform_0, window_bounds = array<i64: 2, 256, 16>}, {transform_indices = @transform_1, window_bounds = array<i64: 2, 256, 16>}, {transform_indices = @transform_2, window_bounds = array<i64: 2, 16, 1>}, {pipeline_mode = #tpu.pipeline_mode<synchronous>, transform_indices = @transform_3, window_bounds = array<i64: 16, 32>}, {pipeline_mode = #tpu.pipeline_mode<synchronous>, transform_indices = @transform_4, window_bounds = array<i64: 1, 32>}, {pipeline_mode = #tpu.pipeline_mode<synchronous>, transform_indices = @transform_5, window_bounds = array<i64: 32, 32>}, {pipeline_mode = #tpu.pipeline_mode<synchronous>, transform_indices = @transform_6, window_bounds = array<i64: 1, 32>}, {pipeline_mode = #tpu.pipeline_mode<synchronous>, transform_indices = @transform_7, window_bounds = array<i64: 16, 32>}, {pipeline_mode = #tpu.pipeline_mode<synchronous>, transform_indices = @transform_8, window_bounds = array<i64: 1, 32>}, {pipeline_mode = #tpu.pipeline_mode<synchronous>, transform_indices = @transform_9, window_bounds = array<i64: 32, 32>}, {pipeline_mode = #tpu.pipeline_mode<synchronous>, transform_indices = @transform_10, window_bounds = array<i64: 1, 32>}, {pipeline_mode = #tpu.pipeline_mode<synchronous>, transform_indices = @transform_11, window_bounds = array<i64: 32, 32>}, {pipeline_mode = #tpu.pipeline_mode<synchronous>, transform_indices = @transform_12, window_bounds = array<i64: 16, 32>}, {pipeline_mode = #tpu.pipeline_mode<synchronous>, transform_indices = @transform_13, window_bounds = array<i64: 1, 32>}, {transform_indices = @transform_14, window_bounds = array<i64: 2, 256, 32>}]} {
    %c0 = arith.constant 0 : index
    %c0_0 = arith.constant 0 : index
    %c0_1 = arith.constant 0 : index
    %0 = vector.load %arg1[%c0, %c0_0, %c0_1] : memref<2x256x16xbf16, #tpu.memory_space<vmem>>, vector<2x256x16xbf16>
    %1 = vector.shape_cast %0 : vector<2x256x16xbf16> to vector<512x16xbf16>
    %c0_2 = arith.constant 0 : index
    %c0_3 = arith.constant 0 : index
    %c0_4 = arith.constant 0 : index
    %2 = vector.load %arg2[%c0_2, %c0_3, %c0_4] : memref<2x256x16xbf16, #tpu.memory_space<vmem>>, vector<2x256x16xbf16>
    %3 = vector.shape_cast %2 : vector<2x256x16xbf16> to vector<512x16xbf16>
    %c0_5 = arith.constant 0 : index
    %c0_6 = arith.constant 0 : index
    %4 = vector.load %arg4[%c0_5, %c0_6] : memref<16x32xbf16, #tpu.memory_space<vmem>>, vector<16x32xbf16>
    %cst = arith.constant dense<0.000000e+00> : vector<512x32xf32>
    %5 = tpu.matmul %1, %4, %cst {dimension_numbers = #tpu.dot_dimension_numbers<[1], [0], [0], [1], [0, 0, 1, 1], [], []>} : vector<512x16xbf16>, vector<16x32xbf16>, vector<512x32xf32> -> vector<512x32xf32>
    %c0_7 = arith.constant 0 : index
    %c0_8 = arith.constant 0 : index
    %6 = vector.load %arg5[%c0_7, %c0_8] : memref<1x32xf32, #tpu.memory_space<vmem>>, vector<1x32xf32>
    %7 = vector.broadcast %6 : vector<1x32xf32> to vector<512x32xf32>
    %8 = arith.addf %5, %7 : vector<512x32xf32>
    %cst_9 = arith.constant 0.000000e+00 : f32
    %9 = vector.broadcast %cst_9 : f32 to vector<512x32xf32>
    %10 = arith.cmpf oge, %8, %9 : vector<512x32xf32>
    %cst_10 = arith.constant 0.00999999977 : f32
    %11 = vector.broadcast %cst_10 : f32 to vector<512x32xf32>
    %12 = arith.mulf %11, %8 : vector<512x32xf32>
    %13 = arith.select %10, %8, %12 : vector<512x32xi1>, vector<512x32xf32>
    %14 = arith.truncf %13 : vector<512x32xf32> to vector<512x32xbf16>
    %c0_11 = arith.constant 0 : index
    %c0_12 = arith.constant 0 : index
    %15 = vector.load %arg6[%c0_11, %c0_12] : memref<32x32xbf16, #tpu.memory_space<vmem>>, vector<32x32xbf16>
    %cst_13 = arith.constant dense<0.000000e+00> : vector<512x32xf32>
    %16 = tpu.matmul %14, %15, %cst_13 {dimension_numbers = #tpu.dot_dimension_numbers<[1], [0], [0], [1], [0, 0, 1, 1], [], []>} : vector<512x32xbf16>, vector<32x32xbf16>, vector<512x32xf32> -> vector<512x32xf32>
    %c0_14 = arith.constant 0 : index
    %c0_15 = arith.constant 0 : index
    %17 = vector.load %arg7[%c0_14, %c0_15] : memref<1x32xf32, #tpu.memory_space<vmem>>, vector<1x32xf32>
    %18 = vector.broadcast %17 : vector<1x32xf32> to vector<512x32xf32>
    %19 = arith.addf %16, %18 : vector<512x32xf32>
    %20 = vector.shape_cast %19 : vector<512x32xf32> to vector<2x16x16x32xf32>
    %c0_16 = arith.constant 0 : index
    %c0_17 = arith.constant 0 : index
    %21 = vector.load %arg8[%c0_16, %c0_17] : memref<16x32xbf16, #tpu.memory_space<vmem>>, vector<16x32xbf16>
    %cst_18 = arith.constant dense<0.000000e+00> : vector<512x32xf32>
    %22 = tpu.matmul %3, %21, %cst_18 {dimension_numbers = #tpu.dot_dimension_numbers<[1], [0], [0], [1], [0, 0, 1, 1], [], []>} : vector<512x16xbf16>, vector<16x32xbf16>, vector<512x32xf32> -> vector<512x32xf32>
    %c0_19 = arith.constant 0 : index
    %c0_20 = arith.constant 0 : index
    %23 = vector.load %arg9[%c0_19, %c0_20] : memref<1x32xf32, #tpu.memory_space<vmem>>, vector<1x32xf32>
    %24 = vector.broadcast %23 : vector<1x32xf32> to vector<512x32xf32>
    %25 = arith.addf %22, %24 : vector<512x32xf32>
    %cst_21 = arith.constant 0.000000e+00 : f32
    %26 = vector.broadcast %cst_21 : f32 to vector<512x32xf32>
    %27 = arith.cmpf oge, %25, %26 : vector<512x32xf32>
    %cst_22 = arith.constant 0.00999999977 : f32
    %28 = vector.broadcast %cst_22 : f32 to vector<512x32xf32>
    %29 = arith.mulf %28, %25 : vector<512x32xf32>
    %30 = arith.select %27, %25, %29 : vector<512x32xi1>, vector<512x32xf32>
    %31 = arith.truncf %30 : vector<512x32xf32> to vector<512x32xbf16>
    %c0_23 = arith.constant 0 : index
    %c0_24 = arith.constant 0 : index
    %32 = vector.load %arg10[%c0_23, %c0_24] : memref<32x32xbf16, #tpu.memory_space<vmem>>, vector<32x32xbf16>
    %cst_25 = arith.constant dense<0.000000e+00> : vector<512x32xf32>
    %33 = tpu.matmul %31, %32, %cst_25 {dimension_numbers = #tpu.dot_dimension_numbers<[1], [0], [0], [1], [0, 0, 1, 1], [], []>} : vector<512x32xbf16>, vector<32x32xbf16>, vector<512x32xf32> -> vector<512x32xf32>
    %c0_26 = arith.constant 0 : index
    %c0_27 = arith.constant 0 : index
    %34 = vector.load %arg11[%c0_26, %c0_27] : memref<1x32xf32, #tpu.memory_space<vmem>>, vector<1x32xf32>
    %35 = vector.broadcast %34 : vector<1x32xf32> to vector<512x32xf32>
    %36 = arith.addf %33, %35 : vector<512x32xf32>
    %37 = vector.shape_cast %36 : vector<512x32xf32> to vector<2x16x16x32xf32>
    %c0_28 = arith.constant 0 : index
    %c0_29 = arith.constant 0 : index
    %c0_30 = arith.constant 0 : index
    %38 = vector.load %arg3[%c0_28, %c0_29, %c0_30] : memref<2x16x1xf32, #tpu.memory_space<vmem>>, vector<2x16x1xf32>
    %cst_31 = arith.constant dense<0.000000e+00> : vector<2x1xf32>
    %39 = vector.multi_reduction <add>, %38, %cst_31 [1] : vector<2x16x1xf32> to vector<2x1xf32>
    %40 = vector.shape_cast %39 : vector<2x1xf32> to vector<2x1x1xf32>
    %41 = math.rsqrt %40 : vector<2x1x1xf32>
    %42 = vector.shape_cast %38 : vector<2x16x1xf32> to vector<2x16x1x1xf32>
    %43 = vector.broadcast %42 : vector<2x16x1x1xf32> to vector<2x16x16x32xf32>
    %44 = arith.mulf %37, %43 : vector<2x16x16x32xf32>
    %cst_32 = arith.constant 0.000000e+00 : f32
    %45 = vector.broadcast %cst_32 : f32 to vector<2x16x16x32xf32>
    %46 = vector.extract_strided_slice %20 {offsets = [0, 0, 0, 0], sizes = [2, 1, 16, 32], strides = [1, 1, 1, 1]} : vector<2x16x16x32xf32> to vector<2x1x16x32xf32>
    %47 = vector.shape_cast %46 : vector<2x1x16x32xf32> to vector<2x16x32xf32>
    %48 = vector.extract_strided_slice %44 {offsets = [0, 0, 0, 0], sizes = [2, 1, 16, 32], strides = [1, 1, 1, 1]} : vector<2x16x16x32xf32> to vector<2x1x16x32xf32>
    %49 = vector.shape_cast %48 : vector<2x1x16x32xf32> to vector<2x16x32xf32>
    %50 = vector.shape_cast %47 : vector<2x16x32xf32> to vector<2x16x1x32xf32>
    %51 = vector.shape_cast %49 : vector<2x16x32xf32> to vector<2x1x16x32xf32>
    %52 = vector.broadcast %50 : vector<2x16x1x32xf32> to vector<2x16x16x32xf32>
    %53 = vector.broadcast %51 : vector<2x1x16x32xf32> to vector<2x16x16x32xf32>
    %54 = arith.mulf %52, %53 : vector<2x16x16x32xf32>
    %55 = arith.addf %45, %54 : vector<2x16x16x32xf32>
    %56 = vector.extract_strided_slice %20 {offsets = [0, 1, 0, 0], sizes = [2, 1, 16, 32], strides = [1, 1, 1, 1]} : vector<2x16x16x32xf32> to vector<2x1x16x32xf32>
    %57 = vector.shape_cast %56 : vector<2x1x16x32xf32> to vector<2x16x32xf32>
    %58 = vector.extract_strided_slice %44 {offsets = [0, 1, 0, 0], sizes = [2, 1, 16, 32], strides = [1, 1, 1, 1]} : vector<2x16x16x32xf32> to vector<2x1x16x32xf32>
    %59 = vector.shape_cast %58 : vector<2x1x16x32xf32> to vector<2x16x32xf32>
    %60 = vector.shape_cast %57 : vector<2x16x32xf32> to vector<2x16x1x32xf32>
    %61 = vector.shape_cast %59 : vector<2x16x32xf32> to vector<2x1x16x32xf32>
    %62 = vector.broadcast %60 : vector<2x16x1x32xf32> to vector<2x16x16x32xf32>
    %63 = vector.broadcast %61 : vector<2x1x16x32xf32> to vector<2x16x16x32xf32>
    %64 = arith.mulf %62, %63 : vector<2x16x16x32xf32>
    %65 = arith.addf %55, %64 : vector<2x16x16x32xf32>
    %66 = vector.extract_strided_slice %20 {offsets = [0, 2, 0, 0], sizes = [2, 1, 16, 32], strides = [1, 1, 1, 1]} : vector<2x16x16x32xf32> to vector<2x1x16x32xf32>
    %67 = vector.shape_cast %66 : vector<2x1x16x32xf32> to vector<2x16x32xf32>
    %68 = vector.extract_strided_slice %44 {offsets = [0, 2, 0, 0], sizes = [2, 1, 16, 32], strides = [1, 1, 1, 1]} : vector<2x16x16x32xf32> to vector<2x1x16x32xf32>
    %69 = vector.shape_cast %68 : vector<2x1x16x32xf32> to vector<2x16x32xf32>
    %70 = vector.shape_cast %67 : vector<2x16x32xf32> to vector<2x16x1x32xf32>
    %71 = vector.shape_cast %69 : vector<2x16x32xf32> to vector<2x1x16x32xf32>
    %72 = vector.broadcast %70 : vector<2x16x1x32xf32> to vector<2x16x16x32xf32>
    %73 = vector.broadcast %71 : vector<2x1x16x32xf32> to vector<2x16x16x32xf32>
    %74 = arith.mulf %72, %73 : vector<2x16x16x32xf32>
    %75 = arith.addf %65, %74 : vector<2x16x16x32xf32>
    %76 = vector.extract_strided_slice %20 {offsets = [0, 3, 0, 0], sizes = [2, 1, 16, 32], strides = [1, 1, 1, 1]} : vector<2x16x16x32xf32> to vector<2x1x16x32xf32>
    %77 = vector.shape_cast %76 : vector<2x1x16x32xf32> to vector<2x16x32xf32>
    %78 = vector.extract_strided_slice %44 {offsets = [0, 3, 0, 0], sizes = [2, 1, 16, 32], strides = [1, 1, 1, 1]} : vector<2x16x16x32xf32> to vector<2x1x16x32xf32>
    %79 = vector.shape_cast %78 : vector<2x1x16x32xf32> to vector<2x16x32xf32>
    %80 = vector.shape_cast %77 : vector<2x16x32xf32> to vector<2x16x1x32xf32>
    %81 = vector.shape_cast %79 : vector<2x16x32xf32> to vector<2x1x16x32xf32>
    %82 = vector.broadcast %80 : vector<2x16x1x32xf32> to vector<2x16x16x32xf32>
    %83 = vector.broadcast %81 : vector<2x1x16x32xf32> to vector<2x16x16x32xf32>
    %84 = arith.mulf %82, %83 : vector<2x16x16x32xf32>
    %85 = arith.addf %75, %84 : vector<2x16x16x32xf32>
    %86 = vector.extract_strided_slice %20 {offsets = [0, 4, 0, 0], sizes = [2, 1, 16, 32], strides = [1, 1, 1, 1]} : vector<2x16x16x32xf32> to vector<2x1x16x32xf32>
    %87 = vector.shape_cast %86 : vector<2x1x16x32xf32> to vector<2x16x32xf32>
    %88 = vector.extract_strided_slice %44 {offsets = [0, 4, 0, 0], sizes = [2, 1, 16, 32], strides = [1, 1, 1, 1]} : vector<2x16x16x32xf32> to vector<2x1x16x32xf32>
    %89 = vector.shape_cast %88 : vector<2x1x16x32xf32> to vector<2x16x32xf32>
    %90 = vector.shape_cast %87 : vector<2x16x32xf32> to vector<2x16x1x32xf32>
    %91 = vector.shape_cast %89 : vector<2x16x32xf32> to vector<2x1x16x32xf32>
    %92 = vector.broadcast %90 : vector<2x16x1x32xf32> to vector<2x16x16x32xf32>
    %93 = vector.broadcast %91 : vector<2x1x16x32xf32> to vector<2x16x16x32xf32>
    %94 = arith.mulf %92, %93 : vector<2x16x16x32xf32>
    %95 = arith.addf %85, %94 : vector<2x16x16x32xf32>
    %96 = vector.extract_strided_slice %20 {offsets = [0, 5, 0, 0], sizes = [2, 1, 16, 32], strides = [1, 1, 1, 1]} : vector<2x16x16x32xf32> to vector<2x1x16x32xf32>
    %97 = vector.shape_cast %96 : vector<2x1x16x32xf32> to vector<2x16x32xf32>
    %98 = vector.extract_strided_slice %44 {offsets = [0, 5, 0, 0], sizes = [2, 1, 16, 32], strides = [1, 1, 1, 1]} : vector<2x16x16x32xf32> to vector<2x1x16x32xf32>
    %99 = vector.shape_cast %98 : vector<2x1x16x32xf32> to vector<2x16x32xf32>
    %100 = vector.shape_cast %97 : vector<2x16x32xf32> to vector<2x16x1x32xf32>
    %101 = vector.shape_cast %99 : vector<2x16x32xf32> to vector<2x1x16x32xf32>
    %102 = vector.broadcast %100 : vector<2x16x1x32xf32> to vector<2x16x16x32xf32>
    %103 = vector.broadcast %101 : vector<2x1x16x32xf32> to vector<2x16x16x32xf32>
    %104 = arith.mulf %102, %103 : vector<2x16x16x32xf32>
    %105 = arith.addf %95, %104 : vector<2x16x16x32xf32>
    %106 = vector.extract_strided_slice %20 {offsets = [0, 6, 0, 0], sizes = [2, 1, 16, 32], strides = [1, 1, 1, 1]} : vector<2x16x16x32xf32> to vector<2x1x16x32xf32>
    %107 = vector.shape_cast %106 : vector<2x1x16x32xf32> to vector<2x16x32xf32>
    %108 = vector.extract_strided_slice %44 {offsets = [0, 6, 0, 0], sizes = [2, 1, 16, 32], strides = [1, 1, 1, 1]} : vector<2x16x16x32xf32> to vector<2x1x16x32xf32>
    %109 = vector.shape_cast %108 : vector<2x1x16x32xf32> to vector<2x16x32xf32>
    %110 = vector.shape_cast %107 : vector<2x16x32xf32> to vector<2x16x1x32xf32>
    %111 = vector.shape_cast %109 : vector<2x16x32xf32> to vector<2x1x16x32xf32>
    %112 = vector.broadcast %110 : vector<2x16x1x32xf32> to vector<2x16x16x32xf32>
    %113 = vector.broadcast %111 : vector<2x1x16x32xf32> to vector<2x16x16x32xf32>
    %114 = arith.mulf %112, %113 : vector<2x16x16x32xf32>
    %115 = arith.addf %105, %114 : vector<2x16x16x32xf32>
    %116 = vector.extract_strided_slice %20 {offsets = [0, 7, 0, 0], sizes = [2, 1, 16, 32], strides = [1, 1, 1, 1]} : vector<2x16x16x32xf32> to vector<2x1x16x32xf32>
    %117 = vector.shape_cast %116 : vector<2x1x16x32xf32> to vector<2x16x32xf32>
    %118 = vector.extract_strided_slice %44 {offsets = [0, 7, 0, 0], sizes = [2, 1, 16, 32], strides = [1, 1, 1, 1]} : vector<2x16x16x32xf32> to vector<2x1x16x32xf32>
    %119 = vector.shape_cast %118 : vector<2x1x16x32xf32> to vector<2x16x32xf32>
    %120 = vector.shape_cast %117 : vector<2x16x32xf32> to vector<2x16x1x32xf32>
    %121 = vector.shape_cast %119 : vector<2x16x32xf32> to vector<2x1x16x32xf32>
    %122 = vector.broadcast %120 : vector<2x16x1x32xf32> to vector<2x16x16x32xf32>
    %123 = vector.broadcast %121 : vector<2x1x16x32xf32> to vector<2x16x16x32xf32>
    %124 = arith.mulf %122, %123 : vector<2x16x16x32xf32>
    %125 = arith.addf %115, %124 : vector<2x16x16x32xf32>
    %126 = vector.extract_strided_slice %20 {offsets = [0, 8, 0, 0], sizes = [2, 1, 16, 32], strides = [1, 1, 1, 1]} : vector<2x16x16x32xf32> to vector<2x1x16x32xf32>
    %127 = vector.shape_cast %126 : vector<2x1x16x32xf32> to vector<2x16x32xf32>
    %128 = vector.extract_strided_slice %44 {offsets = [0, 8, 0, 0], sizes = [2, 1, 16, 32], strides = [1, 1, 1, 1]} : vector<2x16x16x32xf32> to vector<2x1x16x32xf32>
    %129 = vector.shape_cast %128 : vector<2x1x16x32xf32> to vector<2x16x32xf32>
    %130 = vector.shape_cast %127 : vector<2x16x32xf32> to vector<2x16x1x32xf32>
    %131 = vector.shape_cast %129 : vector<2x16x32xf32> to vector<2x1x16x32xf32>
    %132 = vector.broadcast %130 : vector<2x16x1x32xf32> to vector<2x16x16x32xf32>
    %133 = vector.broadcast %131 : vector<2x1x16x32xf32> to vector<2x16x16x32xf32>
    %134 = arith.mulf %132, %133 : vector<2x16x16x32xf32>
    %135 = arith.addf %125, %134 : vector<2x16x16x32xf32>
    %136 = vector.extract_strided_slice %20 {offsets = [0, 9, 0, 0], sizes = [2, 1, 16, 32], strides = [1, 1, 1, 1]} : vector<2x16x16x32xf32> to vector<2x1x16x32xf32>
    %137 = vector.shape_cast %136 : vector<2x1x16x32xf32> to vector<2x16x32xf32>
    %138 = vector.extract_strided_slice %44 {offsets = [0, 9, 0, 0], sizes = [2, 1, 16, 32], strides = [1, 1, 1, 1]} : vector<2x16x16x32xf32> to vector<2x1x16x32xf32>
    %139 = vector.shape_cast %138 : vector<2x1x16x32xf32> to vector<2x16x32xf32>
    %140 = vector.shape_cast %137 : vector<2x16x32xf32> to vector<2x16x1x32xf32>
    %141 = vector.shape_cast %139 : vector<2x16x32xf32> to vector<2x1x16x32xf32>
    %142 = vector.broadcast %140 : vector<2x16x1x32xf32> to vector<2x16x16x32xf32>
    %143 = vector.broadcast %141 : vector<2x1x16x32xf32> to vector<2x16x16x32xf32>
    %144 = arith.mulf %142, %143 : vector<2x16x16x32xf32>
    %145 = arith.addf %135, %144 : vector<2x16x16x32xf32>
    %146 = vector.extract_strided_slice %20 {offsets = [0, 10, 0, 0], sizes = [2, 1, 16, 32], strides = [1, 1, 1, 1]} : vector<2x16x16x32xf32> to vector<2x1x16x32xf32>
    %147 = vector.shape_cast %146 : vector<2x1x16x32xf32> to vector<2x16x32xf32>
    %148 = vector.extract_strided_slice %44 {offsets = [0, 10, 0, 0], sizes = [2, 1, 16, 32], strides = [1, 1, 1, 1]} : vector<2x16x16x32xf32> to vector<2x1x16x32xf32>
    %149 = vector.shape_cast %148 : vector<2x1x16x32xf32> to vector<2x16x32xf32>
    %150 = vector.shape_cast %147 : vector<2x16x32xf32> to vector<2x16x1x32xf32>
    %151 = vector.shape_cast %149 : vector<2x16x32xf32> to vector<2x1x16x32xf32>
    %152 = vector.broadcast %150 : vector<2x16x1x32xf32> to vector<2x16x16x32xf32>
    %153 = vector.broadcast %151 : vector<2x1x16x32xf32> to vector<2x16x16x32xf32>
    %154 = arith.mulf %152, %153 : vector<2x16x16x32xf32>
    %155 = arith.addf %145, %154 : vector<2x16x16x32xf32>
    %156 = vector.extract_strided_slice %20 {offsets = [0, 11, 0, 0], sizes = [2, 1, 16, 32], strides = [1, 1, 1, 1]} : vector<2x16x16x32xf32> to vector<2x1x16x32xf32>
    %157 = vector.shape_cast %156 : vector<2x1x16x32xf32> to vector<2x16x32xf32>
    %158 = vector.extract_strided_slice %44 {offsets = [0, 11, 0, 0], sizes = [2, 1, 16, 32], strides = [1, 1, 1, 1]} : vector<2x16x16x32xf32> to vector<2x1x16x32xf32>
    %159 = vector.shape_cast %158 : vector<2x1x16x32xf32> to vector<2x16x32xf32>
    %160 = vector.shape_cast %157 : vector<2x16x32xf32> to vector<2x16x1x32xf32>
    %161 = vector.shape_cast %159 : vector<2x16x32xf32> to vector<2x1x16x32xf32>
    %162 = vector.broadcast %160 : vector<2x16x1x32xf32> to vector<2x16x16x32xf32>
    %163 = vector.broadcast %161 : vector<2x1x16x32xf32> to vector<2x16x16x32xf32>
    %164 = arith.mulf %162, %163 : vector<2x16x16x32xf32>
    %165 = arith.addf %155, %164 : vector<2x16x16x32xf32>
    %166 = vector.extract_strided_slice %20 {offsets = [0, 12, 0, 0], sizes = [2, 1, 16, 32], strides = [1, 1, 1, 1]} : vector<2x16x16x32xf32> to vector<2x1x16x32xf32>
    %167 = vector.shape_cast %166 : vector<2x1x16x32xf32> to vector<2x16x32xf32>
    %168 = vector.extract_strided_slice %44 {offsets = [0, 12, 0, 0], sizes = [2, 1, 16, 32], strides = [1, 1, 1, 1]} : vector<2x16x16x32xf32> to vector<2x1x16x32xf32>
    %169 = vector.shape_cast %168 : vector<2x1x16x32xf32> to vector<2x16x32xf32>
    %170 = vector.shape_cast %167 : vector<2x16x32xf32> to vector<2x16x1x32xf32>
    %171 = vector.shape_cast %169 : vector<2x16x32xf32> to vector<2x1x16x32xf32>
    %172 = vector.broadcast %170 : vector<2x16x1x32xf32> to vector<2x16x16x32xf32>
    %173 = vector.broadcast %171 : vector<2x1x16x32xf32> to vector<2x16x16x32xf32>
    %174 = arith.mulf %172, %173 : vector<2x16x16x32xf32>
    %175 = arith.addf %165, %174 : vector<2x16x16x32xf32>
    %176 = vector.extract_strided_slice %20 {offsets = [0, 13, 0, 0], sizes = [2, 1, 16, 32], strides = [1, 1, 1, 1]} : vector<2x16x16x32xf32> to vector<2x1x16x32xf32>
    %177 = vector.shape_cast %176 : vector<2x1x16x32xf32> to vector<2x16x32xf32>
    %178 = vector.extract_strided_slice %44 {offsets = [0, 13, 0, 0], sizes = [2, 1, 16, 32], strides = [1, 1, 1, 1]} : vector<2x16x16x32xf32> to vector<2x1x16x32xf32>
    %179 = vector.shape_cast %178 : vector<2x1x16x32xf32> to vector<2x16x32xf32>
    %180 = vector.shape_cast %177 : vector<2x16x32xf32> to vector<2x16x1x32xf32>
    %181 = vector.shape_cast %179 : vector<2x16x32xf32> to vector<2x1x16x32xf32>
    %182 = vector.broadcast %180 : vector<2x16x1x32xf32> to vector<2x16x16x32xf32>
    %183 = vector.broadcast %181 : vector<2x1x16x32xf32> to vector<2x16x16x32xf32>
    %184 = arith.mulf %182, %183 : vector<2x16x16x32xf32>
    %185 = arith.addf %175, %184 : vector<2x16x16x32xf32>
    %186 = vector.extract_strided_slice %20 {offsets = [0, 14, 0, 0], sizes = [2, 1, 16, 32], strides = [1, 1, 1, 1]} : vector<2x16x16x32xf32> to vector<2x1x16x32xf32>
    %187 = vector.shape_cast %186 : vector<2x1x16x32xf32> to vector<2x16x32xf32>
    %188 = vector.extract_strided_slice %44 {offsets = [0, 14, 0, 0], sizes = [2, 1, 16, 32], strides = [1, 1, 1, 1]} : vector<2x16x16x32xf32> to vector<2x1x16x32xf32>
    %189 = vector.shape_cast %188 : vector<2x1x16x32xf32> to vector<2x16x32xf32>
    %190 = vector.shape_cast %187 : vector<2x16x32xf32> to vector<2x16x1x32xf32>
    %191 = vector.shape_cast %189 : vector<2x16x32xf32> to vector<2x1x16x32xf32>
    %192 = vector.broadcast %190 : vector<2x16x1x32xf32> to vector<2x16x16x32xf32>
    %193 = vector.broadcast %191 : vector<2x1x16x32xf32> to vector<2x16x16x32xf32>
    %194 = arith.mulf %192, %193 : vector<2x16x16x32xf32>
    %195 = arith.addf %185, %194 : vector<2x16x16x32xf32>
    %196 = vector.extract_strided_slice %20 {offsets = [0, 15, 0, 0], sizes = [2, 1, 16, 32], strides = [1, 1, 1, 1]} : vector<2x16x16x32xf32> to vector<2x1x16x32xf32>
    %197 = vector.shape_cast %196 : vector<2x1x16x32xf32> to vector<2x16x32xf32>
    %198 = vector.extract_strided_slice %44 {offsets = [0, 15, 0, 0], sizes = [2, 1, 16, 32], strides = [1, 1, 1, 1]} : vector<2x16x16x32xf32> to vector<2x1x16x32xf32>
    %199 = vector.shape_cast %198 : vector<2x1x16x32xf32> to vector<2x16x32xf32>
    %200 = vector.shape_cast %197 : vector<2x16x32xf32> to vector<2x16x1x32xf32>
    %201 = vector.shape_cast %199 : vector<2x16x32xf32> to vector<2x1x16x32xf32>
    %202 = vector.broadcast %200 : vector<2x16x1x32xf32> to vector<2x16x16x32xf32>
    %203 = vector.broadcast %201 : vector<2x1x16x32xf32> to vector<2x16x16x32xf32>
    %204 = arith.mulf %202, %203 : vector<2x16x16x32xf32>
    %205 = arith.addf %195, %204 : vector<2x16x16x32xf32>
    %206 = vector.broadcast %41 : vector<2x1x1xf32> to vector<2x16x1xf32>
    %207 = arith.mulf %38, %206 : vector<2x16x1xf32>
    %208 = vector.shape_cast %207 : vector<2x16x1xf32> to vector<2x16x1x1xf32>
    %209 = vector.broadcast %208 : vector<2x16x1x1xf32> to vector<2x16x16x32xf32>
    %210 = arith.mulf %205, %209 : vector<2x16x16x32xf32>
    %211 = vector.shape_cast %210 : vector<2x16x16x32xf32> to vector<512x32xf32>
    %212 = arith.truncf %211 : vector<512x32xf32> to vector<512x32xbf16>
    %c0_33 = arith.constant 0 : index
    %c0_34 = arith.constant 0 : index
    %213 = vector.load %arg12[%c0_33, %c0_34] : memref<32x32xbf16, #tpu.memory_space<vmem>>, vector<32x32xbf16>
    %cst_35 = arith.constant dense<0.000000e+00> : vector<512x32xf32>
    %214 = tpu.matmul %212, %213, %cst_35 {dimension_numbers = #tpu.dot_dimension_numbers<[1], [0], [0], [1], [0, 0, 1, 1], [], []>} : vector<512x32xbf16>, vector<32x32xbf16>, vector<512x32xf32> -> vector<512x32xf32>
    %c0_36 = arith.constant 0 : index
    %c0_37 = arith.constant 0 : index
    %215 = vector.load %arg13[%c0_36, %c0_37] : memref<16x32xbf16, #tpu.memory_space<vmem>>, vector<16x32xbf16>
    %cst_38 = arith.constant dense<0.000000e+00> : vector<512x32xf32>
    %216 = tpu.matmul %3, %215, %cst_38 {dimension_numbers = #tpu.dot_dimension_numbers<[1], [0], [0], [1], [0, 0, 1, 1], [], []>} : vector<512x16xbf16>, vector<16x32xbf16>, vector<512x32xf32> -> vector<512x32xf32>
    %217 = arith.addf %214, %216 : vector<512x32xf32>
    %c0_39 = arith.constant 0 : index
    %c0_40 = arith.constant 0 : index
    %218 = vector.load %arg14[%c0_39, %c0_40] : memref<1x32xf32, #tpu.memory_space<vmem>>, vector<1x32xf32>
    %219 = vector.broadcast %218 : vector<1x32xf32> to vector<512x32xf32>
    %220 = arith.addf %217, %219 : vector<512x32xf32>
    %221 = vector.shape_cast %220 : vector<512x32xf32> to vector<2x256x32xf32>
    %c0_41 = arith.constant 0 : index
    %c0_42 = arith.constant 0 : index
    %c0_43 = arith.constant 0 : index
    %222 = vector.load %arg15[%c0_41, %c0_42, %c0_43] : memref<2x256x32xf32, #tpu.memory_space<vmem>>, vector<2x256x32xf32>
    tpu.vector_store %arg15[%c0_41, %c0_42, %c0_43], %221 {strides = array<i32>} : memref<2x256x32xf32, #tpu.memory_space<vmem>>, vector<2x256x32xf32>,
    return
  }
  func.func @transform_0(%arg0: i32) -> (i32, i32, i32) {
    %c0_i32 = arith.constant 0 : i32
    %c0_i32_0 = arith.constant 0 : i32
    %c0_i32_1 = arith.constant 0 : i32
    return %arg0, %c0_i32, %c0_i32_0 : i32, i32, i32
  }
  func.func @transform_1(%arg0: i32) -> (i32, i32, i32) {
    %c0_i32 = arith.constant 0 : i32
    %c0_i32_0 = arith.constant 0 : i32
    %c0_i32_1 = arith.constant 0 : i32
    return %arg0, %c0_i32, %c0_i32_0 : i32, i32, i32
  }
  func.func @transform_2(%arg0: i32) -> (i32, i32, i32) {
    %c0_i32 = arith.constant 0 : i32
    %c0_i32_0 = arith.constant 0 : i32
    %c0_i32_1 = arith.constant 0 : i32
    return %arg0, %c0_i32, %c0_i32_0 : i32, i32, i32
  }
  func.func @transform_3(%arg0: i32) -> (i32, i32) {
    %c0_i32 = arith.constant 0 : i32
    %c0_i32_0 = arith.constant 0 : i32
    %c0_i32_1 = arith.constant 0 : i32
    return %c0_i32, %c0_i32_0 : i32, i32
  }
  func.func @transform_4(%arg0: i32) -> (i32, i32) {
    %c0_i32 = arith.constant 0 : i32
    %c0_i32_0 = arith.constant 0 : i32
    %c0_i32_1 = arith.constant 0 : i32
    return %c0_i32, %c0_i32_0 : i32, i32
  }
  func.func @transform_5(%arg0: i32) -> (i32, i32) {
    %c0_i32 = arith.constant 0 : i32
    %c0_i32_0 = arith.constant 0 : i32
    %c0_i32_1 = arith.constant 0 : i32
    return %c0_i32, %c0_i32_0 : i32, i32
  }
  func.func @transform_6(%arg0: i32) -> (i32, i32) {
    %c0_i32 = arith.constant 0 : i32
    %c0_i32_0 = arith.constant 0 : i32
    %c0_i32_1 = arith.constant 0 : i32
    return %c0_i32, %c0_i32_0 : i32, i32
  }
  func.func @transform_7(%arg0: i32) -> (i32, i32) {
    %c0_i32 = arith.constant 0 : i32
    %c0_i32_0 = arith.constant 0 : i32
    %c0_i32_1 = arith.constant 0 : i32
    return %c0_i32, %c0_i32_0 : i32, i32
  }
  func.func @transform_8(%arg0: i32) -> (i32, i32) {
    %c0_i32 = arith.constant 0 : i32
    %c0_i32_0 = arith.constant 0 : i32
    %c0_i32_1 = arith.constant 0 : i32
    return %c0_i32, %c0_i32_0 : i32, i32
  }
  func.func @transform_9(%arg0: i32) -> (i32, i32) {
    %c0_i32 = arith.constant 0 : i32
    %c0_i32_0 = arith.constant 0 : i32
    %c0_i32_1 = arith.constant 0 : i32
    return %c0_i32, %c0_i32_0 : i32, i32
  }
  func.func @transform_10(%arg0: i32) -> (i32, i32) {
    %c0_i32 = arith.constant 0 : i32
    %c0_i32_0 = arith.constant 0 : i32
    %c0_i32_1 = arith.constant 0 : i32
    return %c0_i32, %c0_i32_0 : i32, i32
  }
  func.func @transform_11(%arg0: i32) -> (i32, i32) {
    %c0_i32 = arith.constant 0 : i32
    %c0_i32_0 = arith.constant 0 : i32
    %c0_i32_1 = arith.constant 0 : i32
    return %c0_i32, %c0_i32_0 : i32, i32
  }
  func.func @transform_12(%arg0: i32) -> (i32, i32) {
    %c0_i32 = arith.constant 0 : i32
    %c0_i32_0 = arith.constant 0 : i32
    %c0_i32_1 = arith.constant 0 : i32
    return %c0_i32, %c0_i32_0 : i32, i32
  }
  func.func @transform_13(%arg0: i32) -> (i32, i32) {
    %c0_i32 = arith.constant 0 : i32
    %c0_i32_0 = arith.constant 0 : i32
    %c0_i32_1 = arith.constant 0 : i32
    return %c0_i32, %c0_i32_0 : i32, i32
  }
  func.func @transform_14(%arg0: i32) -> (i32, i32, i32) {
    %c0_i32 = arith.constant 0 : i32
    %c0_i32_0 = arith.constant 0 : i32
    %c0_i32_1 = arith.constant 0 : i32
    return %arg0, %c0_i32, %c0_i32_0 : i32, i32, i32
  }
}

</mosaic_0001>

<bundles_post_ra>
// kernel: tpu_custom_call.1
= control target key start
LH: loop header
LB: loop body
LE: loop exit
PB: predicated region body
PF: predicated region fallthrough
CT: control target
= control target key end

     0   :  { %s14030_s29 = smov 0   ;;  %s20389_s0 = inlined_call_operand.vmem [shape: bf16[4,256,16], index: 0, kind: input, shape index: {}]   ;;  %s20390_s1 = inlined_call_operand.vmem [shape: bf16[4,256,16], index: 1, kind: input, shape index: {}]   ;;  %s20391_s2 = inlined_call_operand.vmem [shape: f32[4,16,1], index: 2, kind: input, shape index: {}]   ;;  %s20392_s3 = inlined_call_operand.vmem [shape: bf16[16,32], index: 3, kind: input, shape index: {}]   ;;  %s20393_s4 = inlined_call_operand.vmem [shape: f32[1,32], index: 4, kind: input, shape index: {}]   ;;  %s20394_s5 = inlined_call_operand.vmem [shape: bf16[32,32], index: 5, kind: input, shape index: {}]   ;;  %s20395_s6 = inlined_call_operand.vmem [shape: f32[1,32], index: 6, kind: input, shape index: {}]   ;;  %s20396_s7 = inlined_call_operand.vmem [shape: bf16[16,32], index: 7, kind: input, shape index: {}]   ;;  %s20397_s8 = inlined_call_operand.vmem [shape: f32[1,32], index: 8, kind: input, shape index: {}]   ;;  %s20398_s9 = inlined_call_operand.vmem [shape: bf16[32,32], index: 9, kind: input, shape index: {}]   ;;  %s20399_s10 = inlined_call_operand.vmem [shape: f32[1,32], index: 10, kind: input, shape index: {}]   ;;  %s20400_s11 = inlined_call_operand.vmem [shape: bf16[32,32], index: 11, kind: input, shape index: {}]   ;;  %s20401_s12 = inlined_call_operand.vmem [shape: bf16[16,32], index: 12, kind: input, shape index: {}]   ;;  %s20402_s13 = inlined_call_operand.vmem [shape: f32[1,32], index: 13, kind: input, shape index: {}]   ;;  %s20403_s14 = inlined_call_operand.vmem [shape: f32[4,256,32], index: 14, kind: output, shape index: {}]  }
   0x1 LB: > { %s12865_s30 = sadd.s32 4294967295, %s13951_s29   ;;  %p12869_p0 = scmp.ge.s32.totalorder %s13951_s29, 1  ;;  %s13951_s29 = sphi %s14030_s29, %s24_s29  }
   0x2   : > { %p438_p1 = scmp.lt.s32.totalorder %s13951_s29, 3 }
   0x4   : > { %p439_p2 = pnand %p12869_p0, %p438_p1 }
   0x6   : > { %442 = sbr.rel (%p439_p2) target bundleno = 1662 (0x67e), region = 76 }
   0xd   : > { %v13837_v0 = vld [vmem:[%s20392_s3] sm:$0xff]   ;;  %s12870_s17 = sshll.u32 %s12865_s30, 1  ;;  %vm830_vm0 = vcmask 130048   ;;  %v13882_v3 = vld [vmem:[%s20394_s5 + $0x8] sm:$0xff]   ;;  %vm3045_vm1 = vcmask 7168   ;;  %vm1463_vm6 = vcmask 261120  }
   0xe   : > { %p499_p3 = scmp.lt.s32.totalorder %s12870_s17, 3  ;;  %13359 = vmatprep.subr.bf16.mxu1 %v13837_v0  ;;  %v13862_v1 = vld [vmem:[%s20394_s5] sm:$0xff]  }
   0xf   : > { %13360 = vmatpush3.bf16.msra.mxu1 %v13837_v0  ;;  %v13870_v2 = vld [vmem:[%s20396_s7] sm:$0xff]  }
  0x10   : > { %s22514_s17 = smov (!%p499_p3, %s12870_s17), 3  ;;  %13425 = vmatprep.subr.bf16.mxu1 %v13862_v1  ;;  %13493 = vmatprep.subr.bf16.mxu0 %v13870_v2  ;;  %v14193_v52 = vld [vmem:[%s20398_s9] sm:$0xff]  }
  0x11   : > { %s13154_s22 = sshll.u32 %s22514_s17, 7  ;;  %13494 = vmatpush3.bf16.msra.mxu0 %v13870_v2  ;;  %s13156_s19 = sshll.u32 %s22514_s17, 4 }
  0x12   : > { %s14053_s25 = scalar_lea.vmem %s20389_s0, %s13154_s22  ;;  %s14079_s15 = scalar_lea.vmem %s20390_s1, %s13154_s22 }
  0x13   : > { %v13838_v4 = vld [vmem:[%s14053_s25] sm:$0xff]   ;;  %v13839_v5 = vld [vmem:[%s14053_s25 + $0x8] sm:$0xff]   ;;  %v13840_v6 = vld [vmem:[%s14053_s25 + $0x10] sm:$0xff]   ;;  %s14236_s22 = scalar_lea.vmem %s20391_s2, %s13156_s19 }
  0x14   : > { %13361 = vmatprep.mubr.msk.bf16.mxu1 %vm830_vm0, %v13838_v4  ;;  %v13841_v7 = vld [vmem:[%s14053_s25 + $0x18] sm:$0xff]   ;;  %v13842_v8 = vld [vmem:[%s14053_s25 + $0x20] sm:$0xff]   ;;  %v13843_v9 = vld [vmem:[%s14053_s25 + $0x28] sm:$0xff]  }
  0x15   : > { %13362 = vmatmul.mubr.msk.bf16.vlgmr.msra.gmra.mrb[0].mxu1 %vm830_vm0, %v13839_v5  ;;  %v13844_v10 = vld [vmem:[%s14053_s25 + $0x30] sm:$0xff]   ;;  %v13845_v11 = vld [vmem:[%s14053_s25 + $0x38] sm:$0xff]   ;;  %v13846_v12 = vld [vmem:[%s14053_s25 + $0x40] sm:$0xff]   ;;  %v13953_v5 = vmov 1966171168  }
  0x16   : > { %13365 = vmatprep.mubr.msk.bf16.mxu1 %vm830_vm0, %v13840_v6  ;;  %13426 = vmatpush3.bf16.msra.mxu1 %v13862_v1  ;;  %v13847_v13 = vld [vmem:[%s14053_s25 + $0x48] sm:$0xff]   ;;  %v13848_v14 = vld [vmem:[%s14053_s25 + $0x50] sm:$0xff]   ;;  %v14084_v15 = vld [vmem:[%s14079_s15] sm:$0xff]   ;;  %v3072_v6 = vunpack.c.l.s4 %v13953_v5 }
  0x17   : > { %13427 = vmatprep.subr.bf16.mxu1 %v13882_v3  ;;  %v14087_v16 = vld [vmem:[%s14079_s15 + $0x8] sm:$0xff]   ;;  %13495 = vmatprep.mubr.msk.bf16.mxu0 %vm830_vm0, %v14084_v15  ;;  %v14092_v17 = vld [vmem:[%s14079_s15 + $0x10] sm:$0xff]   ;;  %v13849_v18 = vld [vmem:[%s14053_s25 + $0x58] sm:$0xff]  }
  0x18   : > { %13496 = vmatmul.mubr.msk.bf16.vlgmr.msra.gmra.mrb[0].mxu0 %vm830_vm0, %v14087_v16  ;;  %v13850_v19 = vld [vmem:[%s14053_s25 + $0x60] sm:$0xff]   ;;  %v14103_v20 = vld [vmem:[%s14079_s15 + $0x18] sm:$0xff]   ;;  %v13851_v22 = vld [vmem:[%s14053_s25 + $0x68] sm:$0xff]  }
  0x19   : > { %13499 = vmatprep.mubr.msk.bf16.mxu0 %vm830_vm0, %v14092_v17  ;;  %v14106_v21 = vld [vmem:[%s14079_s15 + $0x20] sm:$0xff]   ;;  %v13852_v23 = vld [vmem:[%s14053_s25 + $0x70] sm:$0xff]   ;;  %v14117_v24 = vld [vmem:[%s14079_s15 + $0x28] sm:$0xff]  }
  0x1a   : > { %13428 = vmatpush3.bf16.msra.mxu1 %v13882_v3  ;;  %v14120_v25 = vld [vmem:[%s14079_s15 + $0x30] sm:$0xff]   ;;  %v13853_v26 = vld [vmem:[%s14053_s25 + $0x78] sm:$0xff]   ;;  %v13854_v28 = vld [vmem:[%s14053_s25 + $0x80] sm:$0xff]  }
  0x1b   : > { %v14130_v27 = vld [vmem:[%s14079_s15 + $0x38] sm:$0xff]   ;;  %v14134_v29 = vld [vmem:[%s14079_s15 + $0x40] sm:$0xff]   ;;  %v13855_v30 = vld [vmem:[%s14053_s25 + $0x88] sm:$0xff]   ;;  %13559 = vmatprep.subr.bf16.mxu1 %v14193_v52 }
  0x1c   : > { %v14144_v31 = vld [vmem:[%s14079_s15 + $0x48] sm:$0xff]   ;;  %v13856_v32 = vld [vmem:[%s14053_s25 + $0x90] sm:$0xff]   ;;  %v13857_v34 = vld [vmem:[%s14053_s25 + $0x98] sm:$0xff]  }
  0x1d   : > { %13366 = vmatmul.mubr.msk.bf16.gmra.mrb[4].mxu1 %vm830_vm0, %v13841_v7  ;;  %v14148_v33 = vld [vmem:[%s14079_s15 + $0x50] sm:$0xff]   ;;  %v13884_v35 = vld [vmem:[%s14079_s15 + $0x58] sm:$0xff]   ;;  %v13858_v36 = vld [vmem:[%s14053_s25 + $0xa0] sm:$0xff]   ;;  %v3074_v7 = vlaneseq }
  0x1e   : > { %13369 = vmatprep.mubr.msk.bf16.mxu1 %vm830_vm0, %v13842_v8  ;;  %v13885_v37 = vld [vmem:[%s14079_s15 + $0x60] sm:$0xff]   ;;  %v13859_v38 = vld [vmem:[%s14053_s25 + $0xa8] sm:$0xff]   ;;  %v13860_v40 = vld [vmem:[%s14053_s25 + $0xb0] sm:$0xff]   ;;  %v3073_v8 = vunpack.c.0.s8 %v3072_v6 }
  0x1f   : > { %v13886_v39 = vld [vmem:[%s14079_s15 + $0x68] sm:$0xff]   ;;  %v13887_v41 = vld [vmem:[%s14079_s15 + $0x70] sm:$0xff]   ;;  %v13861_v42 = vld [vmem:[%s14053_s25 + $0xb8] sm:$0xff]  }
  0x20   : > { %13500 = vmatmul.mubr.msk.bf16.gmra.mrb[4].mxu0 %vm830_vm0, %v14103_v20  ;;  %v13888_v43 = vld [vmem:[%s14079_s15 + $0x78] sm:$0xff]   ;;  %v13863_v44 = vld [vmem:[%s14053_s25 + $0xc0] sm:$0xff]   ;;  %v13864_v46 = vld [vmem:[%s14053_s25 + $0xc8] sm:$0xff]  }
  0x21   : > { %13503 = vmatprep.mubr.msk.bf16.mxu0 %vm830_vm0, %v14106_v21  ;;  %v13889_v45 = vld [vmem:[%s14079_s15 + $0x80] sm:$0xff]   ;;  %v13890_v47 = vld [vmem:[%s14079_s15 + $0x88] sm:$0xff]   ;;  %v13865_v48 = vld [vmem:[%s14053_s25 + $0xd0] sm:$0xff]  }
  0x22   : > { %v13891_v49 = vld [vmem:[%s14079_s15 + $0x90] sm:$0xff]   ;;  %v13866_v50 = vld [vmem:[%s14053_s25 + $0xd8] sm:$0xff]   ;;  %v13867_v53 = vld [vmem:[%s14053_s25 + $0xe0] sm:$0xff]  }
  0x23   : > { %v13892_v51 = vld [vmem:[%s14079_s15 + $0x98] sm:$0xff]   ;;  %v13893_v54 = vld [vmem:[%s14079_s15 + $0xa0] sm:$0xff]   ;;  %v13868_v55 = vld [vmem:[%s14053_s25 + $0xe8] sm:$0xff]  }
  0x24   : > { %v13894_v56 = vld [vmem:[%s14079_s15 + $0xa8] sm:$0xff]   ;;  %v13869_v57 = vld [vmem:[%s14053_s25 + $0xf0] sm:$0xff]   ;;  %v13871_v59 = vld [vmem:[%s14053_s25 + $0xf8] sm:$0xff]  }
  0x25   : > { %13370 = vmatmul.mubr.msk.bf16.gmra.mrb[8].mxu1 %vm830_vm0, %v13843_v9  ;;  %v13895_v58 = vld [vmem:[%s14079_s15 + $0xb0] sm:$0xff]   ;;  %v13896_v60 = vld [vmem:[%s14079_s15 + $0xb8] sm:$0xff]   ;;  %v13897_v61 = vld [vmem:[%s14079_s15 + $0xc0] sm:$0xff]   ;;  %v3075_v9 = vshrl.u32 %v3074_v7, 7 }
  0x26   : > { %13373 = vmatprep.mubr.msk.bf16.mxu1 %vm830_vm0, %v13844_v10  ;;  %v13898_v62 = vld [vmem:[%s14079_s15 + $0xc8] sm:$0xff]   ;;  %v13900_v63 = vld [vmem:[%s14079_s15 + $0xd0] sm:$0xff]   ;;  %v13901_v0 = vld [vmem:[%s14079_s15 + $0xd8] sm:$0xff]  }
  0x27   : > { %v13902_v1 = vld [vmem:[%s14079_s15 + $0xe0] sm:$0xff]   ;;  %v13903_v2 = vld [vmem:[%s14079_s15 + $0xe8] sm:$0xff]   ;;  %v13904_v3 = vld [vmem:[%s14079_s15 + $0xf0] sm:$0xff]   ;;  %v14238_v10 = vsub.s32 %v3073_v8, %v3075_v9 }
  0x28   : > { %13504 = vmatmul.mubr.msk.bf16.gmra.mrb[8].mxu0 %vm830_vm0, %v14117_v24  ;;  %v13905_v4 = vld [vmem:[%s14079_s15 + $0xf8] sm:$0xff]  }
  0x29   : > { %13507 = vmatprep.mubr.msk.bf16.mxu0 %vm830_vm0, %v14120_v25 }
  0x2d   : > { %13374 = vmatmul.mubr.msk.bf16.gmra.mrb[12].mxu1 %vm830_vm0, %v13845_v11  ;;  %v14241_v11 = vld [vmem:[%s14236_s22] sm:$0xff] }
  0x2e   : > { %13377 = vmatprep.mubr.msk.bf16.mxu1 %vm830_vm0, %v13846_v12  ;;  %v3077_v12 = vrot.slane %v14241_v11, %v14238_v10 }
  0x30   : > { %13508 = vmatmul.mubr.msk.bf16.gmra.mrb[12].mxu0 %vm830_vm0, %v14130_v27 }
  0x31   : > { %13511 = vmatprep.mubr.msk.bf16.mxu0 %vm830_vm0, %v14134_v29 }
  0x35   : > { %13378 = vmatmul.mubr.msk.bf16.gmra.mrb[16].mxu1 %vm830_vm0, %v13847_v13  ;;  %v14248_v13 = vld [vmem:[%s20393_s4] ss:$0 sm:$0xff] }
  0x36   : > { %13381 = vmatprep.mubr.msk.bf16.mxu1 %vm830_vm0, %v13848_v14  ;;  %v3093_v14 = vrot.slane %v3077_v12, %v14238_v10 }
  0x38   : > { %13512 = vmatmul.mubr.msk.bf16.gmra.mrb[16].mxu0 %vm830_vm0, %v14144_v31 }
  0x39   : > { %13515 = vmatprep.mubr.msk.bf16.mxu0 %vm830_vm0, %v14148_v33 }
  0x3d   : > { %13382 = vmatmul.mubr.msk.bf16.gmra.mrb[20].mxu1 %vm830_vm0, %v13849_v18 }
  0x3e   : > { %13385 = vmatprep.mubr.msk.bf16.mxu1 %vm830_vm0, %v13850_v19 }
  0x40   : > { %13516 = vmatmul.mubr.msk.bf16.gmra.mrb[20].mxu0 %vm830_vm0, %v13884_v35  ;;  %v3085_v35 = vcombine.high %v3077_v12, %v3077_v12 }
  0x41   : > { %13519 = vmatprep.mubr.msk.bf16.mxu0 %vm830_vm0, %v13885_v37 }
  0x45   : > { %13386 = vmatmul.mubr.msk.bf16.gmra.mrb[24].mxu1 %vm830_vm0, %v13851_v22 }
  0x46   : > { %13389 = vmatprep.mubr.msk.bf16.mxu1 %vm830_vm0, %v13852_v23 }
  0x48   : > { %13520 = vmatmul.mubr.msk.bf16.gmra.mrb[24].mxu0 %vm830_vm0, %v13886_v39  ;;  %v3115_v39 = vcombine.high %v3093_v14, %v3093_v14 }
  0x49   : > { %13523 = vmatprep.mubr.msk.bf16.mxu0 %vm830_vm0, %v13887_v41 }
  0x4d   : > { %13390 = vmatmul.mubr.msk.bf16.gmra.mrb[28].mxu1 %vm830_vm0, %v13853_v26  ;;  %v14256_v26 = vld [vmem:[%s14236_s22 + $0x8] sm:$0xff] }
  0x4e   : > { %13393 = vmatprep.mubr.msk.bf16.mxu1 %vm830_vm0, %v13854_v28 }
  0x50   : > { %13524 = vmatmul.mubr.msk.bf16.gmra.mrb[28].mxu0 %vm830_vm0, %v13888_v43  ;;  %v3047_v43 = vsel %vm3045_vm1, %v14256_v26, 0.0 }
  0x51   : > { %13527 = vmatprep.mubr.msk.bf16.mxu0 %vm830_vm0, %v13889_v45 }
  0x55   : > { %13394 = vmatmul.mubr.msk.bf16.gmra.mrb[32].mxu1 %vm830_vm0, %v13855_v30 }
  0x56   : > { %13397 = vmatprep.mubr.msk.bf16.mxu1 %vm830_vm0, %v13856_v32  ;;  %v13954_v32 = vmov 0  }
  0x57   : > { %13835 = vset.pattern.permute.xlu0 %v13954_v32  ;;  %13836 = vset.pattern.permute.xlu1 %v13954_v32 }
  0x58   : > { %13528 = vmatmul.mubr.msk.bf16.gmra.mrb[32].mxu0 %vm830_vm0, %v13890_v47 }
  0x59   : > { %13531 = vmatprep.mubr.msk.bf16.mxu0 %vm830_vm0, %v13891_v49 }
  0x5d   : > { %13398 = vmatmul.mubr.msk.bf16.gmra.mrb[36].mxu1 %vm830_vm0, %v13857_v34  ;;  %v3046_v34 = vsel %vm3045_vm1, %v14241_v11, 0.0 }
  0x5e   : > { %13401 = vmatprep.mubr.msk.bf16.mxu1 %vm830_vm0, %v13858_v36 }
  0x60   : > { %13532 = vmatmul.mubr.msk.bf16.gmra.mrb[36].mxu0 %vm830_vm0, %v13892_v51  ;;  %v3070_v51 = vcombine.high %v14241_v11, %v14241_v11 }
  0x61   : > { %13535 = vmatprep.mubr.msk.bf16.mxu0 %vm830_vm0, %v13893_v54 }
  0x65   : > { %13402 = vmatmul.mubr.msk.bf16.gmra.mrb[40].mxu1 %vm830_vm0, %v13859_v38 }
  0x66   : > { %13405 = vmatprep.mubr.msk.bf16.mxu1 %vm830_vm0, %v13860_v40 }
  0x68   : > { %13536 = vmatmul.mubr.msk.bf16.gmra.mrb[40].mxu0 %vm830_vm0, %v13894_v56 }
  0x69   : > { %13539 = vmatprep.mubr.msk.bf16.mxu0 %vm830_vm0, %v13895_v58 }
  0x6d   : > { %13406 = vmatmul.mubr.msk.bf16.gmra.mrb[44].mxu1 %vm830_vm0, %v13861_v42  ;;  %v3107_v42 = vrot.slane %v3085_v35, %v14238_v10 }
  0x6e   : > { %13409 = vmatprep.mubr.msk.bf16.mxu1 %vm830_vm0, %v13863_v44 }
  0x70   : > { %13540 = vmatmul.mubr.msk.bf16.gmra.mrb[44].mxu0 %vm830_vm0, %v13896_v60 }
  0x71   : > { %13543 = vmatprep.mubr.msk.bf16.mxu0 %vm830_vm0, %v13897_v61 }
  0x75   : > { %13410 = vmatmul.mubr.msk.bf16.gmra.mrb[48].mxu1 %vm830_vm0, %v13864_v46 }
  0x76   : > { %13413 = vmatprep.mubr.msk.bf16.mxu1 %vm830_vm0, %v13865_v48 }
  0x78   : > { %13544 = vmatmul.mubr.msk.bf16.gmra.mrb[48].mxu0 %vm830_vm0, %v13898_v62  ;;  %v3084_v62 = vrot.slane %v3070_v51, %v14238_v10 }
  0x79   : > { %13547 = vmatprep.mubr.msk.bf16.mxu0 %vm830_vm0, %v13900_v63 }
  0x7a   : > { %v3100_v6 = vrot.slane %v3084_v62, %v14238_v10 }
  0x7d   : > { %13414 = vmatmul.mubr.msk.bf16.gmra.mrb[52].mxu1 %vm830_vm0, %v13866_v50  ;;  %v3117_v50 = vcombine.high %v3107_v42, %v3107_v42 }
  0x7e   : > { %13417 = vmatprep.mubr.msk.bf16.mxu1 %vm830_vm0, %v13867_v53  ;;  %v3048_v53 = vadd.f32 %v3047_v43, %v3046_v34 }
  0x80   : > { %13548 = vmatmul.mubr.msk.bf16.gmra.mrb[52].mxu0 %vm830_vm0, %v13901_v0 }
  0x81   : > { %13551 = vmatprep.mubr.msk.bf16.mxu0 %vm830_vm0, %v13902_v1  ;;  %v13906_v1 = vld [vmem:[%s20398_s9 + $0x8] sm:$0xff]  }
  0x85   : > { %13418 = vmatmul.mubr.msk.bf16.gmra.mrb[56].mxu1 %vm830_vm0, %v13868_v55 }
  0x86   : > { %13421 = vmatprep.mubr.msk.bf16.mxu1 %vm830_vm0, %v13869_v57 }
  0x88   : > { %13552 = vmatmul.mubr.msk.bf16.gmra.mrb[56].mxu0 %vm830_vm0, %v13903_v2  ;;  %v3049_v2 = vrot.slane %v3048_v53, 4 }
  0x89   : > { %13555 = vmatprep.mubr.msk.bf16.mxu0 %vm830_vm0, %v13904_v3 }
  0x8a   : > { %v3050_v32 = vadd.f32 %v3049_v2, %v3048_v53 }
  0x8d   : > { %13422 = vmatmul.mubr.msk.bf16.gmra.mrb[60].mxu1 %vm830_vm0, %v13871_v59 }
  0x90   : > { %13556 = vmatmul.mubr.msk.bf16.gmra.mrb[60].mxu0 %vm830_vm0, %v13905_v4 }
  0x91   : > { %13629 = vmatprep.mubr.msk.bf16.mxu0 %vm830_vm0, %v14084_v15  ;;  %v14251_v15 = vsub.s32 0, %v3075_v9  ;;  %v3086_v9 = vcombine.high %v3084_v62, %v3084_v62 }
  0x93   : > { %v3269_v23 = vrot.slane %v3093_v14, %v14251_v15  ;;  %v3277_v45 = vrot.slane %v3115_v39, %v14251_v15  ;;  %v3273_v48 = vrot.slane %v3107_v42, %v14251_v15  ;;  %v3281_v61 = vrot.slane %v3117_v50, %v14251_v15 }
  0x94   : > { %v3285_v14 = vrot.slane %v3100_v6, %v14251_v15 }
  0x95   : > { %3395 = vperm.xlu0 %13835, %v3269_v23   ;;  %3403 = vperm.xlu1 %13836, %v3277_v45   ;;  %v3051_v45 = vrot.slane %v3050_v32, 2 }
  0x99   : > { %3399 = vperm.xlu0 %13835, %v3273_v48   ;;  %3407 = vperm.xlu1 %13836, %v3281_v61  }
  0x9d   : > { %3411 = vperm.xlu0 %13835, %v3285_v14  }
  0xe8   : > { %v13363_v18 = vpop.f32.mrb[0].mxu1 }
  0xe9   : > { %v970_v19 = vadd.f32 %v13363_v18, %v14248_v13  ;;  %v961_v22 = vpop.f32.mrb[1].mxu1 }
  0xea   : > { %v962_v28 = vadd.f32 %v14248_v13, %v961_v22  ;;  %v13364_v30 = vpop.f32.mrb[2].mxu1  ;;  %v3116_v22 = vcombine.high %v3100_v6, %v3100_v6 }
  0xeb   : > { %vm1218_vm2 = vcmp.ge.f32.partialorder %v970_v19, 0.0  ;;  %v1282_v36 = vmul.f32 0.01, %v970_v19  ;;  %v973_v37 = vadd.f32 %v13364_v30, %v14248_v13  ;;  %v964_v38 = vpop.f32.mrb[3].mxu1  ;;  %v3126_v30 = vrot.slane %v14256_v26, %v14238_v10 }
  0xec   : > { %v1280_v40 = vmul.f32 0.01, %v962_v28  ;;  %v965_v41 = vadd.f32 %v14248_v13, %v964_v38  ;;  %vm1216_vm3 = vcmp.ge.f32.partialorder %v962_v28, 0.0 }
  0xed   : > { %vm1219_vm4 = vcmp.ge.f32.partialorder %v973_v37, 0.0  ;;  %v1283_v44 = vmul.f32 0.01, %v973_v37  ;;  %v1346_v46 = vsel %vm1218_vm2, %v970_v19, %v1282_v36  ;;  %v3142_v42 = vrot.slane %v3126_v30, %v14238_v10 }
  0xee   : > { %vm1217_vm5 = vcmp.ge.f32.partialorder %v965_v41, 0.0  ;;  %v1281_v47 = vmul.f32 0.01, %v965_v41  ;;  %v1344_v54 = vsel %vm1216_vm3, %v962_v28, %v1280_v40  ;;  %v3114_v28 = vrot.slane %v3086_v9, %v14238_v10 }
  0xef   : > { %v1347_v49 = vsel %vm1219_vm4, %v973_v37, %v1283_v44  ;;  %v3293_v37 = vrot.slane %v3116_v22, %v14251_v15  ;;  %v3301_v51 = vrot.slane %v3142_v42, %v14251_v15  ;;  %v3164_v61 = vcombine.high %v3142_v42, %v3142_v42 }
  0xf0   : > { %v1409_v55 = vpack.c.bf16 %v1347_v49, %v1346_v46  ;;  %v1345_v56 = vsel %vm1217_vm5, %v965_v41, %v1281_v47  ;;  %v13367_v57 = vpop.f32.mrb[4].mxu1  ;;  %v3289_v41 = vrot.slane %v3114_v28, %v14251_v15  ;;  %v3118_v46 = vcombine.high %v3114_v28, %v3114_v28 }
  0xf1   : > { %v1408_v58 = vpack.c.bf16 %v1345_v56, %v1344_v54  ;;  %v986_v59 = vadd.f32 %v13367_v57, %v14248_v13  ;;  %v977_v60 = vpop.f32.mrb[5].mxu1  ;;  %v3134_v47 = vcombine.high %v3126_v30, %v3126_v30  ;;  %3419 = vperm.xlu0 %13835, %v3293_v37  }
  0xf2   : > { %v978_v63 = vadd.f32 %v14248_v13, %v977_v60  ;;  %v13368_v0 = vpop.f32.mrb[6].mxu1  ;;  %3415 = vperm.xlu1 %13836, %v3289_v41   ;;  %v3297_v56 = vrot.slane %v3118_v46, %v14251_v15 }
  0xf3   : > { %vm1222_vm7 = vcmp.ge.f32.partialorder %v986_v59, 0.0  ;;  %v1286_v3 = vmul.f32 0.01, %v986_v59  ;;  %v989_v4 = vadd.f32 %v13368_v0, %v14248_v13  ;;  %v980_v5 = vpop.f32.mrb[7].mxu1  ;;  %13429 = vmatprep.mubr.msk.bf16.mxu1 %vm1463_vm6, %v1408_v58  ;;  %v3156_v62 = vrot.slane %v3134_v47, %v14238_v10  ;;  %v13497_v47 = vpop.f32.mrb[0].mxu0 }
  0xf4   : > { %v1284_v7 = vmul.f32 0.01, %v978_v63  ;;  %v981_v8 = vadd.f32 %v14248_v13, %v980_v5  ;;  %13430 = vmatmul.mubr.msk.bf16.vlgmr.msra.gmra.mrb[64].mxu1 %vm1463_vm6, %v1409_v55  ;;  %vm1220_vm8 = vcmp.ge.f32.partialorder %v978_v63, 0.0 }
  0xf5   : > { %vm1223_vm9 = vcmp.ge.f32.partialorder %v989_v4, 0.0  ;;  %v1287_v12 = vmul.f32 0.01, %v989_v4  ;;  %13560 = vmatpush3.bf16.msra.mxu1 %v14193_v52  ;;  %v1350_v18 = vsel %vm1222_vm7, %v986_v59, %v1286_v3  ;;  %v3052_v59 = vadd.f32 %v3051_v45, %v3050_v32  ;;  %3427 = vperm.xlu0 %13835, %v3301_v51  }
  0xf6   : > { %vm1221_vm10 = vcmp.ge.f32.partialorder %v981_v8, 0.0  ;;  %v1285_v19 = vmul.f32 0.01, %v981_v8  ;;  %13561 = vmatprep.subr.bf16.mxu1 %v13906_v1  ;;  %v1348_v34 = vsel %vm1220_vm8, %v978_v63, %v1284_v7  ;;  %v3119_v63 = vcombine.high %v14256_v26, %v14256_v26  ;;  %3423 = vperm.xlu1 %13836, %v3297_v56  }
  0xf7   : > { %v1351_v23 = vsel %vm1223_vm9, %v989_v4, %v1287_v12  ;;  %v3309_v7 = vrot.slane %v3164_v61, %v14251_v15  ;;  %v3053_v14 = vrot.slane %v3052_v59, 1  ;;  %v3166_v26 = vcombine.high %v3156_v62, %v3156_v62 }
  0xf8   : > { %v1411_v35 = vpack.c.bf16 %v1351_v23, %v1350_v18  ;;  %v1349_v36 = vsel %vm1221_vm10, %v981_v8, %v1285_v19  ;;  %v13371_v52 = vpop.f32.mrb[8].mxu1  ;;  %v3305_v8 = vrot.slane %v3156_v62, %v14251_v15  ;;  %v3133_v18 = vrot.slane %v3119_v63, %v14238_v10 }
  0xf9   : > { %v1410_v38 = vpack.c.bf16 %v1349_v36, %v1348_v34  ;;  %v1002_v39 = vadd.f32 %v13371_v52, %v14248_v13  ;;  %v993_v40 = vpop.f32.mrb[9].mxu1  ;;  %13562 = vmatpush3.bf16.msra.mxu1 %v13906_v1  ;;  %3435 = vperm.xlu0 %13835, %v3309_v7   ;;  %v14316_v52 = vld [vmem:[%s20397_s8] ss:$0 sm:$0xff] }
  0xfa   : > { %v994_v43 = vadd.f32 %v14248_v13, %v993_v40  ;;  %v13372_v44 = vpop.f32.mrb[10].mxu1  ;;  %3431 = vperm.xlu1 %13836, %v3305_v8   ;;  %v3149_v32 = vrot.slane %v3133_v18, %v14238_v10  ;;  %v3135_v42 = vcombine.high %v3133_v18, %v3133_v18  ;;  %v2163_v51 = vadd.f32 %v13497_v47, %v14316_v52 }
  0xfb   : > { %vm1226_vm11 = vcmp.ge.f32.partialorder %v1002_v39, 0.0  ;;  %v1290_v48 = vmul.f32 0.01, %v1002_v39  ;;  %v1005_v49 = vadd.f32 %v13372_v44, %v14248_v13  ;;  %v996_v50 = vpop.f32.mrb[11].mxu1  ;;  %13433 = vmatprep.mubr.msk.bf16.mxu1 %vm1463_vm6, %v1410_v38  ;;  %v3054_v38 = vadd.f32 %v3053_v14, %v3052_v59 }
  0xfc   : > { %v1288_v53 = vmul.f32 0.01, %v994_v43  ;;  %v997_v54 = vadd.f32 %v14248_v13, %v996_v50  ;;  %13434 = vmatmul.mubr.msk.bf16.gmra.mrb[68].mxu1 %vm1463_vm6, %v1411_v35  ;;  %vm1224_vm12 = vcmp.ge.f32.partialorder %v994_v43, 0.0  ;;  %v3313_v35 = vrot.slane %v3166_v26, %v14251_v15 }
  0xfd   : > { %vm1227_vm13 = vcmp.ge.f32.partialorder %v1005_v49, 0.0  ;;  %v1291_v55 = vmul.f32 0.01, %v1005_v49  ;;  %v1354_v57 = vsel %vm1226_vm11, %v1002_v39, %v1290_v48  ;;  %v3317_v37 = vrot.slane %v3149_v32, %v14251_v15 }
  0xfe   : > { %vm1225_vm14 = vcmp.ge.f32.partialorder %v997_v54, 0.0  ;;  %v1289_v58 = vmul.f32 0.01, %v997_v54  ;;  %v1352_v0 = vsel %vm1224_vm12, %v994_v43, %v1288_v53  ;;  %v3165_v41 = vcombine.high %v3149_v32, %v3149_v32  ;;  %3439 = vperm.xlu1 %13836, %v3313_v35   ;;  %v2154_v53 = vpop.f32.mrb[1].mxu0 }
  0xff   : > { %v1355_v60 = vsel %vm1227_vm13, %v1005_v49, %v1291_v55  ;;  %3443 = vperm.xlu0 %13835, %v3317_v37   ;;  %v14325_v59 = vrot.slane %v3135_v42, %v14238_v10  ;;  %13914 = vrsqrt.f32 %v3054_v38  ;;  %vm2411_vm7 = vcmp.ge.f32.partialorder %v2163_v51, 0.0 }
 0x100   : > { %v1413_v1 = vpack.c.bf16 %v1355_v60, %v1354_v57  ;;  %v1353_v2 = vsel %vm1225_vm14, %v997_v54, %v1289_v58  ;;  %v13375_v3 = vpop.f32.mrb[12].mxu1  ;;  %v3325_v54 = vrot.slane %v3165_v41, %v14251_v15  ;;  %v2155_v57 = vadd.f32 %v14316_v52, %v2154_v53  ;;  %v13498_v58 = vpop.f32.mrb[2].mxu0 }
 0x101   : > { %v1412_v4 = vpack.c.bf16 %v1353_v2, %v1352_v0  ;;  %v1018_v5 = vadd.f32 %v13375_v3, %v14248_v13  ;;  %v1009_v6 = vpop.f32.mrb[13].mxu1  ;;  %v2157_v63 = vpop.f32.mrb[3].mxu0  ;;  %v2475_v2 = vmul.f32 0.01, %v2163_v51  ;;  %v2166_v14 = vadd.f32 %v13498_v58, %v14316_v52 }
 0x102   : > { %v1010_v9 = vadd.f32 %v14248_v13, %v1009_v6  ;;  %v13376_v12 = vpop.f32.mrb[14].mxu1  ;;  %vm2409_vm10 = vcmp.ge.f32.partialorder %v2155_v57, 0.0  ;;  %v2158_v18 = vadd.f32 %v14316_v52, %v2157_v63 }
 0x103   : > { %v1294_v19 = vmul.f32 0.01, %v1018_v5  ;;  %v1021_v22 = vadd.f32 %v13376_v12, %v14248_v13  ;;  %v1012_v23 = vpop.f32.mrb[15].mxu1  ;;  %13437 = vmatprep.mubr.msk.bf16.mxu1 %vm1463_vm6, %v1412_v4  ;;  %vm1230_vm15 = vcmp.ge.f32.partialorder %v1018_v5, 0.0  ;;  %3451 = vperm.xlu0 %13835, %v3325_v54   ;;  %v14335_v8 = vsel %vm2411_vm7, %v2163_v51, %v2475_v2 }
 0x104   : > { %v1292_v28 = vmul.f32 0.01, %v1010_v9  ;;  %v1013_v30 = vadd.f32 %v14248_v13, %v1012_v23  ;;  %13438 = vmatmul.mubr.msk.bf16.gmra.mrb[72].mxu1 %vm1463_vm6, %v1413_v1  ;;  %vm1228_vm2 = vcmp.ge.f32.partialorder %v1010_v9, 0.0  ;;  %v2473_v12 = vmul.f32 0.01, %v2155_v57  ;;  %v13501_v23 = vpop.f32.mrb[4].mxu0 }
 0x105   : > { %vm1231_vm3 = vcmp.ge.f32.partialorder %v1021_v22, 0.0  ;;  %v1295_v34 = vmul.f32 0.01, %v1021_v22  ;;  %v1358_v39 = vsel %vm1230_vm15, %v1018_v5, %v1294_v19  ;;  %v13909_v5 = vld [vmem:[%s20401_s12] sm:$0xff]   ;;  %vm2412_vm12 = vcmp.ge.f32.partialorder %v2166_v14, 0.0  ;;  %v2170_v37 = vpop.f32.mrb[5].mxu0 }
 0x106   : > { %vm1229_vm4 = vcmp.ge.f32.partialorder %v1013_v30, 0.0  ;;  %v1293_v36 = vmul.f32 0.01, %v1013_v30  ;;  %v1356_v43 = vsel %vm1228_vm2, %v1010_v9, %v1292_v28  ;;  %13627 = vmatprep.subr.bf16.mxu0 %v13909_v5  ;;  %v3321_v28 = vrot.slane %v14325_v59, %v14251_v15 }
 0x107   : > { %v1359_v40 = vsel %vm1231_vm3, %v1021_v22, %v1295_v34  ;;  %13628 = vmatpush3.bf16.msra.mxu0 %v13909_v5  ;;  %vm2410_vm13 = vcmp.ge.f32.partialorder %v2158_v18, 0.0  ;;  %v2474_v41 = vmul.f32 0.01, %v2158_v18 }
 0x108   : > { %v1415_v44 = vpack.c.bf16 %v1359_v40, %v1358_v39  ;;  %v1357_v45 = vsel %vm1229_vm4, %v1013_v30, %v1293_v36  ;;  %v13379_v46 = vpop.f32.mrb[16].mxu1  ;;  %v3167_v30 = vcombine.high %v14325_v59, %v14325_v59  ;;  %v14345_v36 = vsel %vm2409_vm10, %v2155_v57, %v2473_v12  ;;  %3447 = vperm.xlu1 %13836, %v3321_v28  }
 0x109   : > { %v1414_v48 = vpack.c.bf16 %v1357_v45, %v1356_v43  ;;  %v1034_v49 = vadd.f32 %v13379_v46, %v14248_v13  ;;  %v1025_v50 = vpop.f32.mrb[17].mxu1  ;;  %v2476_v40 = vmul.f32 0.01, %v2166_v14  ;;  %v2179_v45 = vadd.f32 %v13501_v23, %v14316_v52  ;;  %v13502_v46 = vpop.f32.mrb[6].mxu0 }
 0x10a   : > { %v1026_v55 = vadd.f32 %v14248_v13, %v1025_v50  ;;  %v13380_v56 = vpop.f32.mrb[18].mxu1  ;;  %13630 = vmatmul.mubr.msk.bf16.vlgmr.msra.gmra.mrb[64].mxu0 %vm830_vm0, %v14087_v16  ;;  %v14353_v47 = vpop.eup %13914  ;;  %v14366_v57 = vsel %vm2410_vm13, %v2158_v18, %v2474_v41 }
 0x10b   : > { %vm1234_vm5 = vcmp.ge.f32.partialorder %v1034_v49, 0.0  ;;  %v1298_v60 = vmul.f32 0.01, %v1034_v49  ;;  %v1037_v61 = vadd.f32 %v13380_v56, %v14248_v13  ;;  %v1028_v62 = vpop.f32.mrb[19].mxu1  ;;  %13441 = vmatprep.mubr.msk.bf16.mxu1 %vm1463_vm6, %v1414_v48  ;;  %v14358_v50 = vsel %vm2412_vm12, %v2166_v14, %v2476_v40  ;;  %v2173_v51 = vpop.f32.mrb[7].mxu0  ;;  %13633 = vmatprep.mubr.msk.bf16.mxu0 %vm830_vm0, %v14092_v17 }
 0x10c   : > { %vm1232_vm8 = vcmp.ge.f32.partialorder %v1026_v55, 0.0  ;;  %v1296_v0 = vmul.f32 0.01, %v1026_v55  ;;  %v1029_v1 = vadd.f32 %v14248_v13, %v1028_v62  ;;  %13442 = vmatmul.mubr.msk.bf16.gmra.mrb[76].mxu1 %vm1463_vm6, %v1415_v44  ;;  %vm2415_vm4 = vcmp.ge.f32.partialorder %v2179_v45, 0.0  ;;  %v13505_v2 = vpop.f32.mrb[8].mxu0 }
 0x10d   : > { %v1362_v3 = vsel %vm1234_vm5, %v1034_v49, %v1298_v60  ;;  %vm1235_vm9 = vcmp.ge.f32.partialorder %v1037_v61, 0.0  ;;  %v1299_v4 = vmul.f32 0.01, %v1037_v61  ;;  %v13926_v60 = vld [vmem:[%s14079_s15 + $0x90] sm:$0xff]  }
 0x10e   : > { %v1360_v6 = vsel %vm1232_vm8, %v1026_v55, %v1296_v0  ;;  %vm1233_vm11 = vcmp.ge.f32.partialorder %v1029_v1, 0.0  ;;  %v1297_v7 = vmul.f32 0.01, %v1029_v1  ;;  %v2171_v0 = vadd.f32 %v14316_v52, %v2170_v37 }
 0x10f   : > { %v1363_v9 = vsel %vm1235_vm9, %v1037_v61, %v1299_v4  ;;  %v2479_v61 = vmul.f32 0.01, %v2179_v45 }
 0x110   : > { %v1417_v26 = vpack.c.bf16 %v1363_v9, %v1362_v3  ;;  %v1361_v19 = vsel %vm1233_vm11, %v1029_v1, %v1297_v7  ;;  %v13383_v22 = vpop.f32.mrb[20].mxu1  ;;  %v2182_v1 = vadd.f32 %v13502_v46, %v14316_v52  ;;  %v2174_v7 = vadd.f32 %v14316_v52, %v2173_v51  ;;  %v2186_v9 = vpop.f32.mrb[9].mxu0 }
 0x111   : > { %v1416_v32 = vpack.c.bf16 %v1361_v19, %v1360_v6  ;;  %v1050_v34 = vadd.f32 %v13383_v22, %v14248_v13  ;;  %v1041_v35 = vpop.f32.mrb[21].mxu1  ;;  %v14373_v6 = vsel %vm2415_vm4, %v2179_v45, %v2479_v61  ;;  %vm2413_vm5 = vcmp.ge.f32.partialorder %v2171_v0, 0.0 }
 0x112   : > { %v1042_v38 = vadd.f32 %v14248_v13, %v1041_v35  ;;  %v13384_v39 = vpop.f32.mrb[22].mxu1  ;;  %v2477_v18 = vmul.f32 0.01, %v2171_v0  ;;  %vm2416_vm7 = vcmp.ge.f32.partialorder %v2182_v1, 0.0  ;;  %v2480_v28 = vmul.f32 0.01, %v2182_v1  ;;  %13634 = vmatmul.mubr.msk.bf16.gmra.mrb[68].mxu0 %vm830_vm0, %v14103_v20 }
 0x113   : > { %vm1238_vm14 = vcmp.ge.f32.partialorder %v1050_v34, 0.0  ;;  %v1302_v42 = vmul.f32 0.01, %v1050_v34  ;;  %v1053_v43 = vadd.f32 %v13384_v39, %v14248_v13  ;;  %v1044_v44 = vpop.f32.mrb[23].mxu1  ;;  %13445 = vmatprep.mubr.msk.bf16.mxu1 %vm1463_vm6, %v1416_v32  ;;  %13637 = vmatprep.mubr.msk.bf16.mxu0 %vm830_vm0, %v14106_v21  ;;  %vm2414_vm12 = vcmp.ge.f32.partialorder %v2174_v7, 0.0 }
 0x114   : > { %vm1236_vm15 = vcmp.ge.f32.partialorder %v1042_v38, 0.0  ;;  %v1300_v48 = vmul.f32 0.01, %v1042_v38  ;;  %v1045_v49 = vadd.f32 %v14248_v13, %v1044_v44  ;;  %13446 = vmatmul.mubr.msk.bf16.gmra.mrb[80].mxu1 %vm1463_vm6, %v1417_v26  ;;  %v13506_v26 = vpop.f32.mrb[10].mxu0  ;;  %v14383_v35 = vsel %vm2413_vm5, %v2171_v0, %v2477_v18 }
 0x115   : > { %v1366_v53 = vsel %vm1238_vm14, %v1050_v34, %v1302_v42  ;;  %vm1239_vm2 = vcmp.ge.f32.partialorder %v1053_v43, 0.0  ;;  %v1303_v54 = vmul.f32 0.01, %v1053_v43  ;;  %v2189_v37 = vpop.f32.mrb[11].mxu0  ;;  %v14388_v40 = vsel %vm2416_vm7, %v2182_v1, %v2480_v28 }
 0x116   : > { %v1364_v55 = vsel %vm1236_vm15, %v1042_v38, %v1300_v48  ;;  %vm1237_vm3 = vcmp.ge.f32.partialorder %v1045_v49, 0.0  ;;  %v1301_v56 = vmul.f32 0.01, %v1045_v49  ;;  %v2478_v44 = vmul.f32 0.01, %v2174_v7 }
 0x117   : > { %v1367_v58 = vsel %vm1239_vm2, %v1053_v43, %v1303_v54  ;;  %v2195_v45 = vadd.f32 %v13505_v2, %v14316_v52  ;;  %v2198_v51 = vadd.f32 %v13506_v26, %v14316_v52 }
 0x118   : > { %v1419_v17 = vpack.c.bf16 %v1367_v58, %v1366_v53  ;;  %v1365_v62 = vsel %vm1237_vm3, %v1045_v49, %v1301_v56  ;;  %v13387_v63 = vpop.f32.mrb[24].mxu1  ;;  %v2187_v49 = vadd.f32 %v14316_v52, %v2186_v9  ;;  %v13509_v53 = vpop.f32.mrb[12].mxu0  ;;  %v14396_v58 = vsel %vm2414_vm12, %v2174_v7, %v2478_v44 }
 0x119   : > { %v1418_v3 = vpack.c.bf16 %v1365_v62, %v1364_v55  ;;  %v1066_v4 = vadd.f32 %v13387_v63, %v14248_v13  ;;  %v1057_v5 = vpop.f32.mrb[25].mxu1  ;;  %vm2419_vm13 = vcmp.ge.f32.partialorder %v2195_v45, 0.0  ;;  %v2202_v61 = vpop.f32.mrb[13].mxu0  ;;  %v2483_v0 = vmul.f32 0.01, %v2195_v45 }
 0x11a   : > { %v1058_v12 = vadd.f32 %v14248_v13, %v1057_v5  ;;  %v13388_v14 = vpop.f32.mrb[26].mxu1  ;;  %vm2417_vm14 = vcmp.ge.f32.partialorder %v2187_v49, 0.0  ;;  %v13510_v1 = vpop.f32.mrb[14].mxu0  ;;  %v2481_v5 = vmul.f32 0.01, %v2187_v49  ;;  %13638 = vmatmul.mubr.msk.bf16.gmra.mrb[72].mxu0 %vm830_vm0, %v14117_v24  ;;  %vm2420_vm5 = vcmp.ge.f32.partialorder %v2198_v51, 0.0 }
 0x11b   : > { %vm1242_vm8 = vcmp.ge.f32.partialorder %v1066_v4, 0.0  ;;  %v1306_v19 = vmul.f32 0.01, %v1066_v4  ;;  %v1069_v22 = vadd.f32 %v13388_v14, %v14248_v13  ;;  %v1060_v23 = vpop.f32.mrb[27].mxu1  ;;  %13449 = vmatprep.mubr.msk.bf16.mxu1 %vm1463_vm6, %v1418_v3  ;;  %v2205_v14 = vpop.f32.mrb[15].mxu0  ;;  %13641 = vmatprep.mubr.msk.bf16.mxu0 %vm830_vm0, %v14120_v25  ;;  %v2203_v25 = vadd.f32 %v14316_v52, %v2202_v61 }
 0x11c   : > { %vm1240_vm9 = vcmp.ge.f32.partialorder %v1058_v12, 0.0  ;;  %v1304_v32 = vmul.f32 0.01, %v1058_v12  ;;  %v1061_v34 = vadd.f32 %v14248_v13, %v1060_v23  ;;  %13450 = vmatmul.mubr.msk.bf16.gmra.mrb[84].mxu1 %vm1463_vm6, %v1419_v17  ;;  %v2484_v28 = vmul.f32 0.01, %v2198_v51 }
 0x11d   : > { %v1370_v38 = vsel %vm1242_vm8, %v1066_v4, %v1306_v19  ;;  %vm1243_vm10 = vcmp.ge.f32.partialorder %v1069_v22, 0.0  ;;  %v1307_v39 = vmul.f32 0.01, %v1069_v22  ;;  %v14413_v19 = vsel %vm2417_vm14, %v2187_v49, %v2481_v5 }
 0x11e   : > { %v1368_v41 = vsel %vm1240_vm9, %v1058_v12, %v1304_v32  ;;  %vm1241_vm11 = vcmp.ge.f32.partialorder %v1061_v34, 0.0  ;;  %v1305_v20 = vmul.f32 0.01, %v1061_v34  ;;  %v14408_v12 = vsel %vm2419_vm13, %v2195_v45, %v2483_v0 }
 0x11f   : > { %v1371_v43 = vsel %vm1243_vm10, %v1069_v22, %v1307_v39  ;;  %v2190_v32 = vadd.f32 %v14316_v52, %v2189_v37  ;;  %vm2421_vm13 = vcmp.ge.f32.partialorder %v2203_v25, 0.0 }
 0x120   : > { %v1421_v46 = vpack.c.bf16 %v1371_v43, %v1370_v38  ;;  %v1369_v48 = vsel %vm1241_vm11, %v1061_v34, %v1305_v20  ;;  %v13391_v21 = vpop.f32.mrb[28].mxu1  ;;  %v2211_v34 = vadd.f32 %v13509_v53, %v14316_v52  ;;  %v2214_v20 = vadd.f32 %v13510_v1, %v14316_v52  ;;  %v13513_v43 = vpop.f32.mrb[16].mxu0 }
 0x121   : > { %v1420_v54 = vpack.c.bf16 %v1369_v48, %v1368_v41  ;;  %v1082_v55 = vadd.f32 %v13391_v21, %v14248_v13  ;;  %v1073_v56 = vpop.f32.mrb[29].mxu1  ;;  %v14420_v48 = vsel %vm2420_vm5, %v2198_v51, %v2484_v28  ;;  %vm2418_vm7 = vcmp.ge.f32.partialorder %v2190_v32, 0.0  ;;  %v14422_v21 = vpop.f32.mrb[17].mxu0 }
 0x122   : > { %v1074_v17 = vadd.f32 %v14248_v13, %v1073_v56  ;;  %v13392_v62 = vpop.f32.mrb[30].mxu1  ;;  %vm2423_vm8 = vcmp.ge.f32.partialorder %v2211_v34, 0.0  ;;  %v2487_v51 = vmul.f32 0.01, %v2211_v34  ;;  %13642 = vmatmul.mubr.msk.bf16.gmra.mrb[76].mxu0 %vm830_vm0, %v14130_v27  ;;  %vm2424_vm14 = vcmp.ge.f32.partialorder %v2214_v20, 0.0 }
 0x123   : > { %vm1246_vm15 = vcmp.ge.f32.partialorder %v1082_v55, 0.0  ;;  %v1310_v2 = vmul.f32 0.01, %v1082_v55  ;;  %v1085_v3 = vadd.f32 %v13392_v62, %v14248_v13  ;;  %v1076_v4 = vpop.f32.mrb[31].mxu1  ;;  %13453 = vmatprep.mubr.msk.bf16.mxu1 %vm1463_vm6, %v1420_v54  ;;  %v2482_v54 = vmul.f32 0.01, %v2190_v32  ;;  %13645 = vmatprep.mubr.msk.bf16.mxu0 %vm830_vm0, %v14134_v29 }
 0x124   : > { %vm1244_vm2 = vcmp.ge.f32.partialorder %v1074_v17, 0.0  ;;  %v1308_v7 = vmul.f32 0.01, %v1074_v17  ;;  %v1077_v9 = vadd.f32 %v14248_v13, %v1076_v4  ;;  %13454 = vmatmul.mubr.msk.bf16.gmra.mrb[88].mxu1 %vm1463_vm6, %v1421_v46  ;;  %v2488_v29 = vmul.f32 0.01, %v2214_v20 }
 0x125   : > { %v1374_v18 = vsel %vm1246_vm15, %v1082_v55, %v1310_v2  ;;  %vm1247_vm3 = vcmp.ge.f32.partialorder %v1085_v3, 0.0  ;;  %v1311_v26 = vmul.f32 0.01, %v1085_v3  ;;  %v14427_v55 = vpop.f32.mrb[18].mxu0  ;;  %v14436_v1 = vsel %vm2418_vm7, %v2190_v32, %v2482_v54 }
 0x126   : > { %v1372_v24 = vsel %vm1244_vm2, %v1074_v17, %v1308_v7  ;;  %vm1245_vm4 = vcmp.ge.f32.partialorder %v1077_v9, 0.0  ;;  %v1309_v22 = vmul.f32 0.01, %v1077_v9  ;;  %v2221_v2 = vpop.f32.mrb[19].mxu0  ;;  %v2206_v28 = vadd.f32 %v14316_v52, %v2205_v14 }
 0x127   : > { %v1375_v23 = vsel %vm1247_vm3, %v1085_v3, %v1311_v26  ;;  %v2485_v26 = vmul.f32 0.01, %v2203_v25  ;;  %v14446_v32 = vpop.f32.mrb[20].mxu0 }
 0x128   : > { %v1423_v38 = vpack.c.bf16 %v1375_v23, %v1374_v18  ;;  %v1373_v39 = vsel %vm1245_vm4, %v1077_v9, %v1309_v22  ;;  %v13395_v41 = vpop.f32.mrb[32].mxu1  ;;  %v14443_v9 = vsel %vm2423_vm8, %v2211_v34, %v2487_v51  ;;  %v2227_v34 = vadd.f32 %v13513_v43, %v14316_v52 }
 0x129   : > { %v1422_v44 = vpack.c.bf16 %v1373_v39, %v1372_v24  ;;  %v1098_v45 = vadd.f32 %v13395_v41, %v14248_v13  ;;  %v1089_v46 = vpop.f32.mrb[33].mxu1  ;;  %vm2422_vm15 = vcmp.ge.f32.partialorder %v2206_v28, 0.0  ;;  %v2486_v54 = vmul.f32 0.01, %v2206_v28 }
 0x12a   : > { %v1090_v37 = vadd.f32 %v14248_v13, %v1089_v46  ;;  %v13396_v49 = vpop.f32.mrb[34].mxu1  ;;  %13646 = vmatmul.mubr.msk.bf16.gmra.mrb[80].mxu0 %vm830_vm0, %v14144_v31  ;;  %vm2427_vm7 = vcmp.ge.f32.partialorder %v2227_v34, 0.0 }
 0x12b   : > { %vm1250_vm9 = vcmp.ge.f32.partialorder %v1098_v45, 0.0  ;;  %v1314_v56 = vmul.f32 0.01, %v1098_v45  ;;  %v1101_v61 = vadd.f32 %v13396_v49, %v14248_v13  ;;  %v1092_v17 = vpop.f32.mrb[35].mxu1  ;;  %13457 = vmatprep.mubr.msk.bf16.mxu1 %vm1463_vm6, %v1422_v44  ;;  %v14449_v44 = vsel %vm2421_vm13, %v2203_v25, %v2485_v26  ;;  %13649 = vmatprep.mubr.msk.bf16.mxu0 %vm830_vm0, %v14148_v33 }
 0x12c   : > { %vm1248_vm10 = vcmp.ge.f32.partialorder %v1090_v37, 0.0  ;;  %v1312_v62 = vmul.f32 0.01, %v1090_v37  ;;  %v1093_v0 = vadd.f32 %v14248_v13, %v1092_v17  ;;  %13458 = vmatmul.mubr.msk.bf16.gmra.mrb[92].mxu1 %vm1463_vm6, %v1423_v38  ;;  %v14455_v49 = vsel %vm2424_vm14, %v2214_v20, %v2488_v29 }
 0x12d   : > { %v1378_v3 = vsel %vm1250_vm9, %v1098_v45, %v1314_v56  ;;  %vm1251_vm11 = vcmp.ge.f32.partialorder %v1101_v61, 0.0  ;;  %v1315_v4 = vmul.f32 0.01, %v1101_v61  ;;  %v14452_v45 = vpop.f32.mrb[21].mxu0  ;;  %v2219_v26 = vadd.f32 %v14316_v52, %v14422_v21 }
 0x12e   : > { %v1376_v27 = vsel %vm1248_vm10, %v1090_v37, %v1312_v62  ;;  %vm1249_vm12 = vcmp.ge.f32.partialorder %v1093_v0, 0.0  ;;  %v1313_v7 = vmul.f32 0.01, %v1093_v0  ;;  %v14457_v14 = vpop.f32.mrb[22].mxu0  ;;  %v14469_v62 = vsel %vm2422_vm15, %v2206_v28, %v2486_v54 }
 0x12f   : > { %v1379_v18 = vsel %vm1251_vm11, %v1101_v61, %v1315_v4  ;;  %v14463_v43 = vpop.f32.mrb[23].mxu0  ;;  %v2222_v29 = vadd.f32 %v14316_v52, %v2221_v2  ;;  %v3329_v28 = vrot.slane %v3167_v30, %v14251_v15  ;;  %vm2425_vm8 = vcmp.ge.f32.partialorder %v2219_v26, 0.0 }
 0x130   : > { %v1425_v24 = vpack.c.bf16 %v1379_v18, %v1378_v3  ;;  %v1377_v22 = vsel %vm1249_vm12, %v1093_v0, %v1313_v7  ;;  %v13399_v23 = vpop.f32.mrb[36].mxu1  ;;  %v2491_v18 = vmul.f32 0.01, %v2227_v34  ;;  %v2489_v54 = vmul.f32 0.01, %v2219_v26 }
 0x131   : > { %v1424_v38 = vpack.c.bf16 %v1377_v22, %v1376_v27  ;;  %v1114_v39 = vadd.f32 %v13399_v23, %v14248_v13  ;;  %v1105_v41 = vpop.f32.mrb[37].mxu1  ;;  %3455 = vperm.xlu1 %13836, %v3329_v28   ;;  %vm2426_vm11 = vcmp.ge.f32.partialorder %v2222_v29, 0.0  ;;  %v2490_v28 = vmul.f32 0.01, %v2222_v29 }
 0x132   : > { %v1106_v46 = vadd.f32 %v14248_v13, %v1105_v41  ;;  %v13400_v37 = vpop.f32.mrb[38].mxu1  ;;  %v14487_v21 = vsel %vm2427_vm7, %v2227_v34, %v2491_v18 }
 0x133   : > { %vm1254_vm2 = vcmp.ge.f32.partialorder %v1114_v39, 0.0  ;;  %v1318_v56 = vmul.f32 0.01, %v1114_v39  ;;  %v1117_v61 = vadd.f32 %v13400_v37, %v14248_v13  ;;  %v1108_v17 = vpop.f32.mrb[39].mxu1  ;;  %13461 = vmatprep.mubr.msk.bf16.mxu1 %vm1463_vm6, %v1424_v38  ;;  %v14484_v38 = vpop.f32.mrb[24].mxu0  ;;  %21070 = vst [vmem:[#allocation2_spill] sm:$0xff] %v14487_v21 }
 0x134   : > { %vm1252_vm3 = vcmp.ge.f32.partialorder %v1106_v46, 0.0  ;;  %v1316_v20 = vmul.f32 0.01, %v1106_v46  ;;  %v1109_v51 = vadd.f32 %v14248_v13, %v1108_v17  ;;  %13462 = vmatmul.mubr.msk.bf16.gmra.mrb[96].mxu1 %vm1463_vm6, %v1425_v24  ;;  %v2230_v24 = vadd.f32 %v14427_v55, %v14316_v52  ;;  %v14489_v55 = vpop.f32.mrb[25].mxu0  ;;  %v13918_v17 = vld [vmem:[%s14079_s15 + $0x58] sm:$0xff]  }
 0x135   : > { %v1382_v0 = vsel %vm1254_vm2, %v1114_v39, %v1318_v56  ;;  %vm1255_vm4 = vcmp.ge.f32.partialorder %v1117_v61, 0.0  ;;  %v1319_v3 = vmul.f32 0.01, %v1117_v61  ;;  %v14494_v34 = vpop.f32.mrb[26].mxu0  ;;  %13650 = vmatmul.mubr.msk.bf16.gmra.mrb[84].mxu0 %vm830_vm0, %v13918_v17 }
 0x136   : > { %v1380_v27 = vsel %vm1252_vm3, %v1106_v46, %v1316_v20  ;;  %vm1253_vm5 = vcmp.ge.f32.partialorder %v1109_v51, 0.0  ;;  %v1317_v31 = vmul.f32 0.01, %v1109_v51  ;;  %vm2428_vm9 = vcmp.ge.f32.partialorder %v2230_v24, 0.0 }
 0x137   : > { %v1383_v7 = vsel %vm1255_vm4, %v1117_v61, %v1319_v3  ;;  %v2492_v56 = vmul.f32 0.01, %v2230_v24  ;;  %v14503_v3 = vpop.f32.mrb[27].mxu0 }
 0x138   : > { %v1427_v22 = vpack.c.bf16 %v1383_v7, %v1382_v0  ;;  %v1381_v33 = vsel %vm1253_vm5, %v1109_v51, %v1317_v31  ;;  %v13403_v23 = vpop.f32.mrb[40].mxu1  ;;  %v14501_v0 = vsel %vm2425_vm8, %v2219_v26, %v2489_v54 }
 0x139   : > { %v1426_v39 = vpack.c.bf16 %v1381_v33, %v1380_v27  ;;  %v1130_v41 = vadd.f32 %v13403_v23, %v14248_v13  ;;  %v1121_v46 = vpop.f32.mrb[41].mxu1  ;;  %v13919_v27 = vld [vmem:[%s14079_s15 + $0x60] sm:$0xff]   ;;  %v14509_v18 = vsel %vm2428_vm9, %v2230_v24, %v2492_v56  ;;  %v2235_v24 = vadd.f32 %v14316_v52, %v14452_v45  ;;  %v14523_v56 = vpop.f32.mrb[28].mxu0 }
 0x13a   : > { %v1122_v37 = vadd.f32 %v14248_v13, %v1121_v46  ;;  %v13404_v2 = vpop.f32.mrb[42].mxu1  ;;  %13653 = vmatprep.mubr.msk.bf16.mxu0 %vm830_vm0, %v13919_v27  ;;  %21071 = vst [vmem:[#allocation3_spill] sm:$0xff] %v14509_v18  ;;  %v14533_v17 = vpop.f32.mrb[29].mxu0 }
 0x13b   : > { %vm1258_vm10 = vcmp.ge.f32.partialorder %v1130_v41, 0.0  ;;  %v1322_v59 = vmul.f32 0.01, %v1130_v41  ;;  %v1133_v30 = vadd.f32 %v13404_v2, %v14248_v13  ;;  %v1124_v61 = vpop.f32.mrb[43].mxu1  ;;  %13465 = vmatprep.mubr.msk.bf16.mxu1 %vm1463_vm6, %v1426_v39  ;;  %v14515_v39 = vmul.f32 %v14353_v47, %v14241_v11  ;;  %v14538_v27 = vpop.f32.mrb[30].mxu0 }
 0x13c   : > { %vm1256_vm12 = vcmp.ge.f32.partialorder %v1122_v37, 0.0  ;;  %v1320_v20 = vmul.f32 0.01, %v1122_v37  ;;  %v1125_v51 = vadd.f32 %v14248_v13, %v1124_v61  ;;  %13466 = vmatmul.mubr.msk.bf16.gmra.mrb[100].mxu1 %vm1463_vm6, %v1427_v22  ;;  %v14527_v11 = vsel %vm2426_vm11, %v2222_v29, %v2490_v28 }
 0x13d   : > { %v1386_v31 = vsel %vm1258_vm10, %v1130_v41, %v1322_v59  ;;  %vm1259_vm13 = vcmp.ge.f32.partialorder %v1133_v30, 0.0  ;;  %v1323_v7 = vmul.f32 0.01, %v1133_v30  ;;  %v2243_v41 = vadd.f32 %v14446_v32, %v14316_v52 }
 0x13e   : > { %v1384_v33 = vsel %vm1256_vm12, %v1122_v37, %v1320_v20  ;;  %vm1257_vm14 = vcmp.ge.f32.partialorder %v1125_v51, 0.0  ;;  %v1321_v23 = vmul.f32 0.01, %v1125_v51  ;;  %v2246_v37 = vadd.f32 %v14457_v14, %v14316_v52 }
 0x13f   : > { %v1387_v26 = vsel %vm1259_vm13, %v1133_v30, %v1323_v7  ;;  %v14531_v32 = vrot.slane %v14515_v39, %v14238_v10  ;;  %vm2431_vm15 = vcmp.ge.f32.partialorder %v2243_v41, 0.0  ;;  %vm2429_vm7 = vcmp.ge.f32.partialorder %v2235_v24, 0.0 }
 0x140   : > { %v1429_v46 = vpack.c.bf16 %v1387_v26, %v1386_v31  ;;  %v1385_v2 = vsel %vm1257_vm14, %v1125_v51, %v1321_v23  ;;  %v13407_v54 = vpop.f32.mrb[44].mxu1  ;;  %v2495_v51 = vmul.f32 0.01, %v2243_v41  ;;  %v14544_v23 = vpop.f32.mrb[31].mxu0  ;;  %v13920_v26 = vld [vmem:[%s14079_s15 + $0x68] sm:$0xff]   ;;  %vm2432_vm8 = vcmp.ge.f32.partialorder %v2246_v37, 0.0 }
 0x141   : > { %v1428_v59 = vpack.c.bf16 %v1385_v2, %v1384_v33  ;;  %v1146_v30 = vadd.f32 %v13407_v54, %v14248_v13  ;;  %v1137_v61 = vpop.f32.mrb[45].mxu1  ;;  %v11425_v33 = vrot.slane %v14531_v32, %v14238_v10  ;;  %13654 = vmatmul.mubr.msk.bf16.gmra.mrb[88].mxu0 %vm830_vm0, %v13920_v26 }
 0x142   : > { %v1138_v45 = vadd.f32 %v14248_v13, %v1137_v61  ;;  %v13408_v20 = vpop.f32.mrb[46].mxu1  ;;  %v14551_v54 = vsel %vm2431_vm15, %v2243_v41, %v2495_v51  ;;  %v13921_v61 = vld [vmem:[%s14079_s15 + $0x70] sm:$0xff]  }
 0x143   : > { %vm1262_vm2 = vcmp.ge.f32.partialorder %v1146_v30, 0.0  ;;  %v1326_v29 = vmul.f32 0.01, %v1146_v30  ;;  %v1149_v31 = vadd.f32 %v13408_v20, %v14248_v13  ;;  %v1140_v7 = vpop.f32.mrb[47].mxu1  ;;  %13469 = vmatprep.mubr.msk.bf16.mxu1 %vm1463_vm6, %v1428_v59  ;;  %21072 = vst [vmem:[#allocation4_spill] sm:$0xff] %v14551_v54  ;;  %13657 = vmatprep.mubr.msk.bf16.mxu0 %vm830_vm0, %v13921_v61  ;;  %v11601_v22 = vrot.slane %v11425_v33, %v14251_v15 }
 0x144   : > { %vm1260_vm3 = vcmp.ge.f32.partialorder %v1138_v45, 0.0  ;;  %v1324_v28 = vmul.f32 0.01, %v1138_v45  ;;  %v1141_v2 = vadd.f32 %v14248_v13, %v1140_v7  ;;  %13470 = vmatmul.mubr.msk.bf16.gmra.mrb[104].mxu1 %vm1463_vm6, %v1429_v46  ;;  %v2493_v13 = vmul.f32 0.01, %v2235_v24 }
 0x145   : > { %v1390_v59 = vsel %vm1262_vm2, %v1146_v30, %v1326_v29  ;;  %vm1263_vm4 = vcmp.ge.f32.partialorder %v1149_v31, 0.0  ;;  %v1327_v20 = vmul.f32 0.01, %v1149_v31  ;;  %11727 = vperm.xlu0 %13835, %v11601_v22   ;;  %v2496_v46 = vmul.f32 0.01, %v2246_v37  ;;  %v14559_v29 = vpop.f32.mrb[32].mxu0 }
 0x146   : > { %v1388_v14 = vsel %vm1260_vm3, %v1138_v45, %v1324_v28  ;;  %vm1261_vm5 = vcmp.ge.f32.partialorder %v1141_v2, 0.0  ;;  %v1325_v26 = vmul.f32 0.01, %v1141_v2  ;;  %v2238_v61 = vadd.f32 %v14316_v52, %v14463_v43  ;;  %v14564_v45 = vld [vmem:[%s20393_s4] ss:$0 sm:$0xff] }
 0x147   : > { %v1391_v25 = vsel %vm1263_vm4, %v1149_v31, %v1327_v20  ;;  %v11447_v30 = vcombine.high %v11425_v33, %v11425_v33  ;;  %v14568_v28 = vsel %vm2429_vm7, %v2235_v24, %v2493_v13 }
 0x148   : > { %v1431_v41 = vpack.c.bf16 %v1391_v25, %v1390_v59  ;;  %v1389_v51 = vsel %vm1261_vm5, %v1141_v2, %v1325_v26  ;;  %v13411_v7 = vpop.f32.mrb[48].mxu1  ;;  %21073 = vst [vmem:[#allocation5_spill] sm:$0xff] %v14568_v28  ;;  %v14570_v25 = vsel %vm2432_vm8, %v2246_v37, %v2496_v46  ;;  %v14572_v2 = vpop.f32.mrb[33].mxu0  ;;  %vm2430_vm9 = vcmp.ge.f32.partialorder %v2238_v61, 0.0 }
 0x149   : > { %v1430_v4 = vpack.c.bf16 %v1389_v51, %v1388_v14  ;;  %v1162_v22 = vadd.f32 %v14564_v45, %v13411_v7  ;;  %v1153_v31 = vpop.f32.mrb[49].mxu1  ;;  %21074 = vst [vmem:[#allocation6_spill] sm:$0xff] %v14570_v25  ;;  %v2494_v59 = vmul.f32 0.01, %v2238_v61  ;;  %v14577_v20 = vpop.f32.mrb[34].mxu0  ;;  %v11609_v37 = vrot.slane %v11447_v30, %v14251_v15  ;;  %v13923_v51 = vld [vmem:[%s14079_s15 + $0x78] sm:$0xff]  }
 0x14a   : > { %v1154_v43 = vadd.f32 %v14564_v45, %v1153_v31  ;;  %v13412_v33 = vpop.f32.mrb[50].mxu1  ;;  %v14582_v46 = vpop.f32.mrb[35].mxu0  ;;  %13658 = vmatmul.mubr.msk.bf16.gmra.mrb[92].mxu0 %vm830_vm0, %v13923_v51  ;;  %v2254_v28 = vadd.f32 %v14316_v52, %v14503_v3 }
 0x14b   : > { %vm1266_vm10 = vcmp.ge.f32.partialorder %v1162_v22, 0.0  ;;  %v1330_v26 = vmul.f32 0.01, %v1162_v22  ;;  %v1165_v24 = vadd.f32 %v14564_v45, %v13412_v33  ;;  %v1156_v13 = vpop.f32.mrb[51].mxu1  ;;  %13473 = vmatprep.mubr.msk.bf16.mxu1 %vm1463_vm6, %v1430_v4  ;;  %v14589_v14 = vsel %vm2430_vm9, %v2238_v61, %v2494_v59  ;;  %v13924_v33 = vld [vmem:[%s14079_s15 + $0x80] sm:$0xff]   ;;  %11735 = vperm.xlu0 %13835, %v11609_v37  }
 0x14c   : > { %vm1264_vm11 = vcmp.ge.f32.partialorder %v1154_v43, 0.0  ;;  %v1328_v7 = vmul.f32 0.01, %v1154_v43  ;;  %v1157_v31 = vadd.f32 %v14564_v45, %v1156_v13  ;;  %13474 = vmatmul.mubr.msk.bf16.gmra.mrb[108].mxu1 %vm1463_vm6, %v1431_v41  ;;  %21075 = vst [vmem:[#allocation7_spill] sm:$0xff] %v14589_v14  ;;  %13661 = vmatprep.mubr.msk.bf16.mxu0 %vm830_vm0, %v13924_v33  ;;  %v11417_v41 = vcombine.high %v14531_v32, %v14531_v32  ;;  %v13930_v14 = vld [vmem:[%s14079_s15 + $0xb0] sm:$0xff]  }
 0x14d   : > { %v1394_v4 = vsel %vm1266_vm10, %v1162_v22, %v1330_v26  ;;  %vm1267_vm12 = vcmp.ge.f32.partialorder %v1165_v24, 0.0  ;;  %v1331_v30 = vmul.f32 0.01, %v1165_v24  ;;  %v11402_v61 = vcombine.high %v14515_v39, %v14515_v39 }
 0x14e   : > { %v1392_v51 = vsel %vm1264_vm11, %v1154_v43, %v1328_v7  ;;  %vm1265_vm13 = vcmp.ge.f32.partialorder %v1157_v31, 0.0  ;;  %v1329_v5 = vmul.f32 0.01, %v1157_v31  ;;  %v2259_v59 = vadd.f32 %v14484_v38, %v14316_v52  ;;  %v14607_v7 = vpop.f32.mrb[36].mxu0 }
 0x14f   : > { %v1395_v13 = vsel %vm1267_vm12, %v1165_v24, %v1331_v30  ;;  %v2251_v22 = vadd.f32 %v14316_v52, %v14489_v55  ;;  %v11439_v43 = vrot.slane %v11417_v41, %v14238_v10  ;;  %v2262_v37 = vadd.f32 %v14494_v34, %v14316_v52  ;;  %v14613_v38 = vpop.f32.mrb[37].mxu0 }
 0x150   : > { %v1433_v26 = vpack.c.bf16 %v1395_v13, %v1394_v4  ;;  %v1393_v33 = vsel %vm1265_vm13, %v1157_v31, %v1329_v5  ;;  %v13415_v53 = vpop.f32.mrb[52].mxu1  ;;  %v14611_v30 = vrot.slane %v11402_v61, %v14238_v10  ;;  %vm2435_vm14 = vcmp.ge.f32.partialorder %v2259_v59, 0.0  ;;  %v14617_v41 = vpop.f32.mrb[38].mxu0 }
 0x151   : > { %v1432_v32 = vpack.c.bf16 %v1393_v33, %v1392_v51  ;;  %v1178_v24 = vadd.f32 %v14564_v45, %v13415_v53  ;;  %v1169_v39 = vpop.f32.mrb[53].mxu1  ;;  %v11605_v31 = vrot.slane %v11439_v43, %v14251_v15  ;;  %v11449_v4 = vcombine.high %v11439_v43, %v11439_v43  ;;  %v14625_v33 = vpop.f32.mrb[39].mxu0 }
 0x152   : > { %v1170_v5 = vadd.f32 %v14564_v45, %v1169_v39  ;;  %v13416_v55 = vpop.f32.mrb[54].mxu1  ;;  %v2499_v34 = vmul.f32 0.01, %v2259_v59  ;;  %v14623_v61 = vrot.slane %v14611_v30, %v14238_v10  ;;  %v13925_v39 = vld [vmem:[%s14079_s15 + $0x88] sm:$0xff]   ;;  %vm2433_vm5 = vcmp.ge.f32.partialorder %v2251_v22, 0.0 }
 0x153   : > { %vm1270_vm15 = vcmp.ge.f32.partialorder %v1178_v24, 0.0  ;;  %v1334_v51 = vmul.f32 0.01, %v1178_v24  ;;  %v1181_v53 = vadd.f32 %v14564_v45, %v13416_v55  ;;  %v1172_v13 = vpop.f32.mrb[55].mxu1  ;;  %13477 = vmatprep.mubr.msk.bf16.mxu1 %vm1463_vm6, %v1432_v32  ;;  %13662 = vmatmul.mubr.msk.bf16.gmra.mrb[96].mxu0 %vm830_vm0, %v13925_v39  ;;  %v11613_v55 = vrot.slane %v11449_v4, %v14251_v15 }
 0x154   : > { %vm1268_vm2 = vcmp.ge.f32.partialorder %v1170_v5, 0.0  ;;  %v1332_v43 = vmul.f32 0.01, %v1170_v5  ;;  %v1173_v42 = vadd.f32 %v14564_v45, %v1172_v13  ;;  %13478 = vmatmul.mubr.msk.bf16.gmra.mrb[112].mxu1 %vm1463_vm6, %v1433_v26  ;;  %11731 = vperm.xlu1 %13836, %v11605_v31   ;;  %v11617_v16 = vrot.slane %v14623_v61, %v14251_v15 }
 0x155   : > { %v1398_v63 = vsel %vm1270_vm15, %v1178_v24, %v1334_v51  ;;  %vm1271_vm3 = vcmp.ge.f32.partialorder %v1181_v53, 0.0  ;;  %v1335_v32 = vmul.f32 0.01, %v1181_v53  ;;  %13665 = vmatprep.mubr.msk.bf16.mxu0 %vm830_vm0, %v13926_v60  ;;  %v14637_v25 = vsel %vm2435_vm14, %v2259_v59, %v2499_v34  ;;  %v14641_v60 = vpop.f32.mrb[40].mxu0 }
 0x156   : > { %v1396_v54 = vsel %vm1268_vm2, %v1170_v5, %v1332_v43  ;;  %vm1269_vm4 = vcmp.ge.f32.partialorder %v1173_v42, 0.0  ;;  %v1333_v39 = vmul.f32 0.01, %v1173_v42  ;;  %21076 = vst [vmem:[#allocation8_spill] sm:$0xff] %v14637_v25  ;;  %11743 = vperm.xlu0 %13835, %v11617_v16   ;;  %v2497_v26 = vmul.f32 0.01, %v2251_v22 }
 0x157   : > { %v1399_v13 = vsel %vm1271_vm3, %v1181_v53, %v1335_v32  ;;  %vm2436_vm7 = vcmp.ge.f32.partialorder %v2262_v37, 0.0  ;;  %v2500_v51 = vmul.f32 0.01, %v2262_v37  ;;  %v11448_v16 = vcombine.high %v14623_v61, %v14623_v61 }
 0x158   : > { %v1435_v24 = vpack.c.bf16 %v1399_v13, %v1398_v63  ;;  %v1397_v31 = vsel %vm1269_vm4, %v1173_v42, %v1333_v39  ;;  %v13419_v4 = vpop.f32.mrb[56].mxu1  ;;  %11739 = vperm.xlu1 %13836, %v11613_v55   ;;  %v14644_v34 = vsel %vm2433_vm5, %v2251_v22, %v2497_v26  ;;  %v14648_v63 = vpop.f32.mrb[41].mxu0  ;;  %vm2434_vm8 = vcmp.ge.f32.partialorder %v2254_v28, 0.0 }
 0x159   : > { %v1434_v5 = vpack.c.bf16 %v1397_v31, %v1396_v54  ;;  %v1194_v43 = vadd.f32 %v14564_v45, %v13419_v4  ;;  %v1185_v59 = vpop.f32.mrb[57].mxu1  ;;  %21077 = vst [vmem:[#allocation9_spill] sm:$0xff] %v14644_v34  ;;  %v14652_v55 = vsel %vm2436_vm7, %v2262_v37, %v2500_v51  ;;  %v2498_v3 = vmul.f32 0.01, %v2254_v28  ;;  %v14654_v54 = vpop.f32.mrb[42].mxu0  ;;  %v13927_v37 = vld [vmem:[%s14079_s15 + $0x98] sm:$0xff]  }
 0x15a   : > { %v1186_v42 = vadd.f32 %v14564_v45, %v1185_v59  ;;  %v13420_v53 = vpop.f32.mrb[58].mxu1  ;;  %21078 = vst [vmem:[#allocation10_spill] sm:$0xff] %v14652_v55  ;;  %v14660_v13 = vpop.f32.mrb[43].mxu0  ;;  %v14670_v51 = vld [vmem:[%s14236_s22 + $0x10] sm:$0xff]  ;;  %v13929_v34 = vld [vmem:[%s14079_s15 + $0xa8] sm:$0xff]  }
 0x15b   : > { %vm1274_vm9 = vcmp.ge.f32.partialorder %v1194_v43, 0.0  ;;  %v1338_v22 = vmul.f32 0.01, %v1194_v43  ;;  %v1197_v32 = vadd.f32 %v14564_v45, %v13420_v53  ;;  %v1188_v39 = vpop.f32.mrb[59].mxu1  ;;  %13481 = vmatprep.mubr.msk.bf16.mxu1 %vm1463_vm6, %v1434_v5  ;;  %13666 = vmatmul.mubr.msk.bf16.gmra.mrb[100].mxu0 %vm830_vm0, %v13927_v37  ;;  %v14667_v4 = vsel %vm2434_vm8, %v2254_v28, %v2498_v3  ;;  %v13928_v5 = vld [vmem:[%s14079_s15 + $0xa0] sm:$0xff]  }
 0x15c   : > { %vm1272_vm10 = vcmp.ge.f32.partialorder %v1186_v42, 0.0  ;;  %v1336_v26 = vmul.f32 0.01, %v1186_v42  ;;  %v1189_v31 = vadd.f32 %v14564_v45, %v1188_v39  ;;  %13482 = vmatmul.mubr.msk.bf16.gmra.mrb[116].mxu1 %vm1463_vm6, %v1435_v24  ;;  %21079 = vst [vmem:[#allocation11_spill] sm:$0xff] %v14667_v4  ;;  %13669 = vmatprep.mubr.msk.bf16.mxu0 %vm830_vm0, %v13928_v5  ;;  %v11625_v24 = vrot.slane %v11448_v16, %v14251_v15 }
 0x15d   : > { %v1402_v59 = vsel %vm1274_vm9, %v1194_v43, %v1338_v22  ;;  %vm1275_vm11 = vcmp.ge.f32.partialorder %v1197_v32, 0.0  ;;  %v1339_v53 = vmul.f32 0.01, %v1197_v32  ;;  %v11418_v28 = vcombine.high %v14611_v30, %v14611_v30 }
 0x15e   : > { %v1400_v61 = vsel %vm1272_vm10, %v1186_v42, %v1336_v26  ;;  %vm1273_vm12 = vcmp.ge.f32.partialorder %v1189_v31, 0.0  ;;  %v1337_v39 = vmul.f32 0.01, %v1189_v31  ;;  %v14682_v3 = vsel %vm3045_vm1, %v14670_v51, 0.0  ;;  %11751 = vperm.xlu0 %13835, %v11625_v24  }
 0x15f   : > { %v1403_v25 = vsel %vm1275_vm11, %v1197_v32, %v1339_v53  ;;  %v3175_v43 = vrot.slane %v14670_v51, %v14238_v10  ;;  %v2275_v42 = vadd.f32 %v14523_v56, %v14316_v52  ;;  %v2267_v16 = vadd.f32 %v14316_v52, %v14533_v17  ;;  %v14690_v32 = vpop.f32.mrb[44].mxu0 }
 0x160   : > { %v1437_v22 = vpack.c.bf16 %v1403_v25, %v1402_v59  ;;  %v1401_v5 = vsel %vm1273_vm12, %v1189_v31, %v1337_v39  ;;  %v13423_v55 = vpop.f32.mrb[60].mxu1  ;;  %v11446_v37 = vrot.slane %v11418_v28, %v14238_v10  ;;  %v14695_v31 = vpop.f32.mrb[45].mxu0 }
 0x161   : > { %v1436_v30 = vpack.c.bf16 %v1401_v5, %v1400_v61  ;;  %v1210_v26 = vadd.f32 %v14564_v45, %v13423_v55  ;;  %v1201_v53 = vpop.f32.mrb[61].mxu1  ;;  %v3191_v25 = vrot.slane %v3175_v43, %v14238_v10  ;;  %v3183_v56 = vcombine.high %v3175_v43, %v3175_v43  ;;  %v14698_v52 = vpop.f32.mrb[46].mxu0 }
 0x162   : > { %v1202_v59 = vadd.f32 %v14564_v45, %v1201_v53  ;;  %v13424_v39 = vpop.f32.mrb[62].mxu1  ;;  %vm2439_vm13 = vcmp.ge.f32.partialorder %v2275_v42, 0.0  ;;  %v2503_v24 = vmul.f32 0.01, %v2275_v42  ;;  %v11621_v28 = vrot.slane %v11446_v37, %v14251_v15  ;;  %v14703_v5 = vpop.f32.mrb[47].mxu0 }
 0x163   : > { %vm1278_vm14 = vcmp.ge.f32.partialorder %v1210_v26, 0.0  ;;  %v1342_v17 = vmul.f32 0.01, %v1210_v26  ;;  %v1213_v55 = vadd.f32 %v14564_v45, %v13424_v39  ;;  %v1204_v61 = vpop.f32.mrb[63].mxu1  ;;  %13485 = vmatprep.mubr.msk.bf16.mxu1 %vm1463_vm6, %v1436_v30  ;;  %13670 = vmatmul.mubr.msk.bf16.gmra.mrb[104].mxu0 %vm830_vm0, %v13929_v34  ;;  %v3333_v4 = vrot.slane %v3191_v25, %v14251_v15 }
 0x164   : > { %vm1276_vm15 = vcmp.ge.f32.partialorder %v1202_v59, 0.0  ;;  %v1340_v43 = vmul.f32 0.01, %v1202_v59  ;;  %v1205_v53 = vadd.f32 %v14564_v45, %v1204_v61  ;;  %13486 = vmatmul.mubr.msk.bf16.gmra.mrb[120].mxu1 %vm1463_vm6, %v1437_v22  ;;  %13673 = vmatprep.mubr.msk.bf16.mxu0 %vm830_vm0, %v13930_v14  ;;  %v14714_v21 = vrot.slane %v3183_v56, %v14238_v10  ;;  %v14724_v56 = vld [vmem:[%s20397_s8] ss:$0 sm:$0xff] }
 0x165   : > { %v1406_v30 = vsel %vm1278_vm14, %v1210_v26, %v1342_v17  ;;  %vm1279_vm2 = vcmp.ge.f32.partialorder %v1213_v55, 0.0  ;;  %v1343_v39 = vmul.f32 0.01, %v1213_v55  ;;  %11747 = vperm.xlu1 %13836, %v11621_v28   ;;  %3459 = vperm.xlu0 %13835, %v3333_v4   ;;  %v14717_v45 = vsel %vm2439_vm13, %v2275_v42, %v2503_v24  ;;  %v14730_v42 = vpop.f32.mrb[48].mxu0 }
 0x166   : > { %v1404_v34 = vsel %vm1276_vm15, %v1202_v59, %v1340_v43  ;;  %vm1277_vm3 = vcmp.ge.f32.partialorder %v1205_v53, 0.0  ;;  %v1341_v18 = vmul.f32 0.01, %v1205_v53  ;;  %v3337_v61 = vrot.slane %v14714_v21, %v14251_v15  ;;  %v14734_v43 = vpop.f32.mrb[49].mxu0 }
 0x167   : > { %v1407_v22 = vsel %vm1279_vm2, %v1213_v55, %v1343_v39  ;;  %vm2437_vm4 = vcmp.ge.f32.partialorder %v2267_v16, 0.0  ;;  %v2501_v14 = vmul.f32 0.01, %v2267_v16  ;;  %v2278_v59 = vadd.f32 %v14724_v56, %v14538_v27  ;;  %v13932_v39 = vld [vmem:[%s14236_s22 + $0x8] sm:$0xff] }
 0x168   : > { %v1439_v26 = vpack.c.bf16 %v1407_v22, %v1406_v30  ;;  %v1405_v17 = vsel %vm1277_vm3, %v1205_v53, %v1341_v18  ;;  %v2270_v4 = vadd.f32 %v14724_v56, %v14544_v23  ;;  %v3213_v28 = vcombine.high %v3191_v25, %v3191_v25 }
 0x169   : > { %v1438_v24 = vpack.c.bf16 %v1405_v17, %v1404_v34  ;;  %3463 = vperm.xlu1 %13836, %v3337_v61   ;;  %v14732_v55 = vsel %vm2437_vm4, %v2267_v16, %v2501_v14  ;;  %v11450_v18 = vcombine.high %v11446_v37, %v11446_v37  ;;  %vm2440_vm5 = vcmp.ge.f32.partialorder %v2278_v59, 0.0  ;;  %v14745_v37 = vpop.f32.mrb[50].mxu0 }
 0x16a   : > { %v2504_v53 = vmul.f32 0.01, %v2278_v59  ;;  %vm2438_vm7 = vcmp.ge.f32.partialorder %v2270_v4, 0.0  ;;  %v2502_v30 = vmul.f32 0.01, %v2270_v4  ;;  %v3341_v27 = vrot.slane %v3213_v28, %v14251_v15 }
 0x16b   : > { %13489 = vmatprep.mubr.msk.bf16.mxu1 %vm1463_vm6, %v1438_v24  ;;  %v11629_v23 = vrot.slane %v11450_v18, %v14251_v15  ;;  %v14741_v34 = vmul.f32 %v13932_v39, %v14353_v47  ;;  %v2291_v16 = vadd.f32 %v14724_v56, %v14559_v29  ;;  %v2283_v61 = vadd.f32 %v14724_v56, %v14572_v2  ;;  %v14756_v47 = vpop.f32.mrb[51].mxu0  ;;  %v13934_v18 = vld [vmem:[%s14079_s15 + $0xc0] sm:$0xff]  }
 0x16c   : > { %13490 = vmatmul.mubr.msk.bf16.gmra.mrb[124].mxu1 %vm1463_vm6, %v1439_v26  ;;  %v14748_v25 = vsel %vm2440_vm5, %v2278_v59, %v2504_v53  ;;  %v14750_v22 = vsel %vm2438_vm7, %v2270_v4, %v2502_v30  ;;  %v2294_v14 = vadd.f32 %v14724_v56, %v14577_v20  ;;  %v21080_v29 = vpack.c.bf16 %v14366_v57, %v14345_v36  ;;  %v13933_v36 = vld [vmem:[%s14079_s15 + $0xb8] sm:$0xff]   ;;  %v14785_v39 = vpop.f32.mrb[52].mxu0  ;;  %v13935_v26 = vld [vmem:[%s14079_s15 + $0xc8] sm:$0xff]  }
 0x16d   : > { %3467 = vperm.xlu0 %13835, %v3341_v27   ;;  %v11458_v2 = vrot.slane %v14741_v34, %v14238_v10  ;;  %vm2443_vm8 = vcmp.ge.f32.partialorder %v2291_v16, 0.0  ;;  %11755 = vperm.xlu1 %13836, %v11629_v23   ;;  %v2507_v20 = vmul.f32 0.01, %v2291_v16  ;;  %vm2441_vm9 = vcmp.ge.f32.partialorder %v2283_v61, 0.0 }
 0x16e   : > { %13563 = vmatprep.mubr.msk.bf16.mxu1 %vm1463_vm6, %v21080_v29  ;;  %v2505_v59 = vmul.f32 0.01, %v2283_v61  ;;  %vm2444_vm10 = vcmp.ge.f32.partialorder %v2294_v14, 0.0  ;;  %13674 = vmatmul.mubr.msk.bf16.gmra.mrb[108].mxu0 %vm830_vm0, %v13933_v36  ;;  %v2508_v24 = vmul.f32 0.01, %v2294_v14  ;;  %v2286_v28 = vadd.f32 %v14724_v56, %v14582_v46 }
 0x16f   : > { %v11466_v57 = vcombine.high %v11458_v2, %v11458_v2  ;;  %v14771_v4 = vrot.slane %v11458_v2, %v14238_v10  ;;  %13677 = vmatprep.mubr.msk.bf16.mxu0 %vm830_vm0, %v13934_v18  ;;  %v14777_v53 = vsel %vm2443_vm8, %v2291_v16, %v2507_v20  ;;  %v3168_v27 = vcombine.high %v14670_v51, %v14670_v51  ;;  %v14793_v16 = vpop.f32.mrb[53].mxu0 }
 0x170   : > { %21081 = vst [vmem:[#allocation12_spill] sm:$0xff] %v14777_v53  ;;  %v14779_v30 = vsel %vm2441_vm9, %v2283_v61, %v2505_v59  ;;  %v3215_v23 = vcombine.high %v14714_v21, %v14714_v21  ;;  %v14791_v2 = vsel %vm2444_vm10, %v2294_v14, %v2508_v24  ;;  %vm2442_vm11 = vcmp.ge.f32.partialorder %v2286_v28, 0.0  ;;  %v14799_v36 = vpop.f32.mrb[54].mxu0 }
 0x171   : > { %v11488_v29 = vrot.slane %v11466_v57, %v14238_v10  ;;  %v11633_v46 = vrot.slane %v14771_v4, %v14251_v15  ;;  %v2506_v20 = vmul.f32 0.01, %v2286_v28  ;;  %v3182_v59 = vrot.slane %v3168_v27, %v14238_v10  ;;  %v14808_v61 = vpop.f32.mrb[55].mxu0 }
 0x172   : > { %v3345_v21 = vrot.slane %v3215_v23, %v14251_v15  ;;  %v2307_v14 = vadd.f32 %v14724_v56, %v14607_v7  ;;  %v2299_v24 = vadd.f32 %v14724_v56, %v14613_v38  ;;  %v2310_v18 = vadd.f32 %v14724_v56, %v14617_v41  ;;  %v14841_v17 = vpop.f32.mrb[56].mxu0 }
 0x173   : > { %v11637_v57 = vrot.slane %v11488_v29, %v14251_v15  ;;  %11759 = vperm.xlu1 %13836, %v11633_v46   ;;  %v21082_v27 = vpack.c.bf16 %v14358_v50, %v14335_v8  ;;  %v14814_v23 = vsel %vm2442_vm11, %v2286_v28, %v2506_v20  ;;  %v3198_v46 = vrot.slane %v3182_v59, %v14238_v10 }
 0x174   : > { %v3184_v7 = vcombine.high %v3182_v59, %v3182_v59  ;;  %v2302_v38 = vadd.f32 %v14724_v56, %v14625_v33  ;;  %v21083_v41 = vpack.c.bf16 %v14396_v58, %v14383_v35  ;;  %vm2447_vm12 = vcmp.ge.f32.partialorder %v2307_v14, 0.0  ;;  %v14828_v33 = vld [vmem:[%s14236_s22 + $0x18] sm:$0xff] }
 0x175   : > { %13564 = vmatmul.mubr.msk.bf16.vlgmr.msra.gmra.mrb[128].mxu1 %vm1463_vm6, %v21082_v27  ;;  %11763 = vperm.xlu0 %13835, %v11637_v57   ;;  %v2511_v50 = vmul.f32 0.01, %v2307_v14  ;;  %vm2445_vm13 = vcmp.ge.f32.partialorder %v2299_v24, 0.0  ;;  %v3349_v28 = vrot.slane %v3198_v46, %v14251_v15  ;;  %v3214_v20 = vcombine.high %v3198_v46, %v3198_v46  ;;  %v13936_v57 = vld [vmem:[%s14079_s15 + $0xd0] sm:$0xff]  }
 0x176   : > { %13567 = vmatprep.mubr.msk.bf16.mxu1 %vm1463_vm6, %v21083_v41  ;;  %v3212_v59 = vrot.slane %v3184_v7, %v14238_v10  ;;  %v2509_v27 = vmul.f32 0.01, %v2299_v24  ;;  %13678 = vmatmul.mubr.msk.bf16.gmra.mrb[112].mxu0 %vm830_vm0, %v13935_v26  ;;  %vm2448_vm14 = vcmp.ge.f32.partialorder %v2310_v18, 0.0  ;;  %v2512_v58 = vmul.f32 0.01, %v2310_v18 }
 0x177   : > { %3471 = vperm.xlu1 %13836, %v3345_v21   ;;  %v14832_v35 = vsel %vm2447_vm12, %v2307_v14, %v2511_v50  ;;  %vm2446_vm15 = vcmp.ge.f32.partialorder %v2302_v38, 0.0  ;;  %13681 = vmatprep.mubr.msk.bf16.mxu0 %vm830_vm0, %v13936_v57  ;;  %v3357_v41 = vrot.slane %v3214_v20, %v14251_v15  ;;  %v2510_v8 = vmul.f32 0.01, %v2302_v38  ;;  %v14849_v57 = vpop.f32.mrb[57].mxu0 }
 0x178   : > { %21084 = vst [vmem:[#allocation13_spill] sm:$0xff] %v14832_v35  ;;  %v3353_v46 = vrot.slane %v3212_v59, %v14251_v15  ;;  %v14839_v7 = vsel %vm2445_vm13, %v2299_v24, %v2509_v27  ;;  %v14843_v26 = vsel %vm2448_vm14, %v2310_v18, %v2512_v58  ;;  %v11498_v21 = vcombine.high %v11488_v29, %v11488_v29 }
 0x179   : > { %3475 = vperm.xlu0 %13835, %v3349_v28   ;;  %v11496_v14 = vcombine.high %v14771_v4, %v14771_v4  ;;  %v3056_v50 = vsel %vm3045_vm1, %v14828_v33, 0.0  ;;  %v14853_v24 = vsel %vm2446_vm15, %v2302_v38, %v2510_v8  ;;  %v3224_v18 = vrot.slane %v14828_v33, %v14238_v10  ;;  %v14858_v28 = vpop.f32.mrb[58].mxu0 }
 0x17a   : > { %v3057_v27 = vadd.f32 %v3056_v50, %v14682_v3  ;;  %v11645_v29 = vrot.slane %v11498_v21, %v14251_v15  ;;  %v3216_v53 = vcombine.high %v3212_v59, %v3212_v59  ;;  %v14864_v20 = vpop.f32.mrb[59].mxu0  ;;  %v21085_v3 = vpack.c.bf16 %v14388_v40, %v14373_v6 }
 0x17b   : > { %3479 = vperm.xlu1 %13836, %v3353_v46   ;;  %v11641_v58 = vrot.slane %v11496_v14, %v14251_v15  ;;  %v3240_v8 = vrot.slane %v3224_v18, %v14238_v10  ;;  %v2323_v46 = vadd.f32 %v14724_v56, %v14641_v60  ;;  %v2315_v21 = vadd.f32 %v14724_v56, %v14648_v63 }
 0x17c   : > { %v3058_v38 = vrot.slane %v3057_v27, 4  ;;  %v21086_v59 = vpack.c.bf16 %v14436_v1, %v14413_v19  ;;  %v3361_v6 = vrot.slane %v3216_v53, %v14251_v15  ;;  %v2326_v40 = vadd.f32 %v14724_v56, %v14654_v54  ;;  %v13938_v53 = vld [vmem:[%s14079_s15 + $0xe0] sm:$0xff]  }
 0x17d   : > { %13568 = vmatmul.mubr.msk.bf16.gmra.mrb[132].mxu1 %vm1463_vm6, %v21085_v3  ;;  %3483 = vperm.xlu0 %13835, %v3357_v41   ;;  %v2318_v14 = vadd.f32 %v14724_v56, %v14660_v13  ;;  %v3365_v60 = vrot.slane %v3240_v8, %v14251_v15  ;;  %vm2451_vm1 = vcmp.ge.f32.partialorder %v2323_v46, 0.0  ;;  %v2515_v63 = vmul.f32 0.01, %v2323_v46  ;;  %v13937_v3 = vld [vmem:[%s14079_s15 + $0xd8] sm:$0xff]  }
 0x17e   : > { %13571 = vmatprep.mubr.msk.bf16.mxu1 %vm1463_vm6, %v21086_v59  ;;  %v3059_v50 = vadd.f32 %v3058_v38, %v3057_v27  ;;  %13682 = vmatmul.mubr.msk.bf16.gmra.mrb[116].mxu0 %vm830_vm0, %v13937_v3  ;;  %vm2449_vm2 = vcmp.ge.f32.partialorder %v2315_v21, 0.0  ;;  %v2513_v19 = vmul.f32 0.01, %v2315_v21  ;;  %vm2452_vm3 = vcmp.ge.f32.partialorder %v2326_v40, 0.0 }
 0x17f   : > { %11767 = vperm.xlu1 %13836, %v11641_v58   ;;  %v2516_v1 = vmul.f32 0.01, %v2326_v40  ;;  %13685 = vmatprep.mubr.msk.bf16.mxu0 %vm830_vm0, %v13938_v53  ;;  %v14889_v41 = vsel %vm2451_vm1, %v2323_v46, %v2515_v63  ;;  %vm2450_vm4 = vcmp.ge.f32.partialorder %v2318_v14, 0.0  ;;  %v2514_v13 = vmul.f32 0.01, %v2318_v14 }
 0x180   : > { %v3060_v54 = vrot.slane %v3059_v50, 2  ;;  %v14891_v27 = vsel %vm2449_vm2, %v2315_v21, %v2513_v19  ;;  %v3262_v59 = vcombine.high %v3240_v8, %v3240_v8  ;;  %v3232_v3 = vcombine.high %v3224_v18, %v3224_v18 }
 0x181   : > { %11771 = vperm.xlu0 %13835, %v11645_v29   ;;  %v14893_v38 = vsel %vm2452_vm3, %v2326_v40, %v2516_v1  ;;  %v14897_v4 = vsel %vm2450_vm4, %v2318_v14, %v2514_v13  ;;  %v11451_v53 = vcombine.high %v14741_v34, %v14741_v34  ;;  %v2339_v8 = vadd.f32 %v14724_v56, %v14690_v32  ;;  %v13940_v1 = vld [vmem:[%s14079_s15 + $0xf0] sm:$0xff]  }
 0x182   : > { %v2622_v58 = vpack.c.bf16 %v14893_v38, %v14889_v41  ;;  %v14901_v35 = vadd.f32 %v3060_v54, %v3059_v50  ;;  %v2621_v29 = vpack.c.bf16 %v14897_v4, %v14891_v27  ;;  %v3254_v46 = vrot.slane %v3232_v3, %v14238_v10  ;;  %v14925_v50 = vpop.f32.mrb[60].mxu0 }
 0x183   : > { %3487 = vperm.xlu1 %13836, %v3361_v6   ;;  %v21087_v18 = vpack.c.bf16 %v14420_v48, %v14408_v12  ;;  %v3373_v21 = vrot.slane %v3262_v59, %v14251_v15  ;;  %v11465_v34 = vrot.slane %v11451_v53, %v14238_v10  ;;  %v2331_v6 = vadd.f32 %v14724_v56, %v14695_v31 }
 0x184   : > { %v2342_v40 = vadd.f32 %v14724_v56, %v14698_v52  ;;  %v21088_v14 = vpack.c.bf16 %v14469_v62, %v14449_v44  ;;  %v3369_v12 = vrot.slane %v3254_v46, %v14251_v15  ;;  %vm2455_vm5 = vcmp.ge.f32.partialorder %v2339_v8, 0.0  ;;  %v14930_v44 = vpop.f32.mrb[61].mxu0  ;;  %v13939_v62 = vld [vmem:[%s14079_s15 + $0xe8] sm:$0xff]  }
 0x185   : > { %13572 = vmatmul.mubr.msk.bf16.gmra.mrb[136].mxu1 %vm1463_vm6, %v21087_v18  ;;  %3491 = vperm.xlu0 %13835, %v3365_v60   ;;  %v2519_v48 = vmul.f32 0.01, %v2339_v8  ;;  %v2334_v32 = vadd.f32 %v14724_v56, %v14703_v5  ;;  %v11467_v31 = vcombine.high %v11465_v34, %v11465_v34  ;;  %v14928_v63 = vrot.slane %v11465_v34, %v14238_v10  ;;  %v14936_v5 = vpop.f32.mrb[62].mxu0 }
 0x186   : > { %13575 = vmatprep.mubr.msk.bf16.mxu1 %vm1463_vm6, %v21088_v14  ;;  %vm2453_vm7 = vcmp.ge.f32.partialorder %v2331_v6, 0.0  ;;  %v2517_v52 = vmul.f32 0.01, %v2331_v6  ;;  %13686 = vmatmul.mubr.msk.bf16.gmra.mrb[120].mxu0 %vm830_vm0, %v13939_v62  ;;  %vm2456_vm8 = vcmp.ge.f32.partialorder %v2342_v40, 0.0  ;;  %v2520_v19 = vmul.f32 0.01, %v2342_v40 }
 0x187   : > { %3495 = vperm.xlu1 %13836, %v3369_v12   ;;  %v14934_v60 = vsel %vm2455_vm5, %v2339_v8, %v2519_v48  ;;  %vm2454_vm9 = vcmp.ge.f32.partialorder %v2334_v32, 0.0  ;;  %13689 = vmatprep.mubr.msk.bf16.mxu0 %vm830_vm0, %v13940_v1  ;;  %v11495_v54 = vrot.slane %v11467_v31, %v14238_v10  ;;  %v11649_v13 = vrot.slane %v14928_v63, %v14251_v15  ;;  %v14945_v53 = vpop.f32.mrb[63].mxu0 }
 0x188   : > { %v14943_v59 = vsel %vm2453_vm7, %v2331_v6, %v2517_v52  ;;  %v2518_v3 = vmul.f32 0.01, %v2334_v32  ;;  %v14947_v8 = vsel %vm2456_vm8, %v2342_v40, %v2520_v19  ;;  %v3217_v18 = vcombine.high %v14828_v33, %v14828_v33 }
 0x189   : > { %3499 = vperm.xlu0 %13835, %v3373_v21   ;;  %v3264_v34 = vcombine.high %v3254_v46, %v3254_v46  ;;  %v2355_v14 = vadd.f32 %v14724_v56, %v14730_v42  ;;  %v11653_v12 = vrot.slane %v11495_v54, %v14251_v15  ;;  %v2624_v48 = vpack.c.bf16 %v14947_v8, %v14934_v60 }
 0x18a   : > { %v14957_v6 = vsel %vm2454_vm9, %v2334_v32, %v2518_v3  ;;  %v2347_v21 = vadd.f32 %v14724_v56, %v14734_v43  ;;  %v3231_v46 = vrot.slane %v3217_v18, %v14238_v10  ;;  %v21089_v42 = vpack.c.bf16 %v14455_v49, %v14443_v9  ;;  %v13941_v18 = vld [vmem:[%s14079_s15 + $0xf8] sm:$0xff]   ;;  %s13157_s15 = sshll.u32 %s22514_s17, 8 }
 0x18b   : > { %11775 = vperm.xlu1 %13836, %v11649_v13   ;;  %v2623_v40 = vpack.c.bf16 %v14957_v6, %v14943_v59  ;;  %v3377_v31 = vrot.slane %v3264_v34, %v14251_v15  ;;  %vm2459_vm10 = vcmp.ge.f32.partialorder %v2355_v14, 0.0  ;;  %v2523_v32 = vmul.f32 0.01, %v2355_v14  ;;  %s20143_s25 = scalar_lea.vmem %s20403_s14, %s13157_s15 }
 0x18c   : > { %vm2457_vm11 = vcmp.ge.f32.partialorder %v2347_v21, 0.0  ;;  %v2521_v52 = vmul.f32 0.01, %v2347_v21  ;;  %v2358_v43 = vadd.f32 %v14724_v56, %v14745_v37  ;;  %v21090_v62 = vpack.c.bf16 %v14527_v11, %v14501_v0 }
 0x18d   : > { %13576 = vmatmul.mubr.msk.bf16.gmra.mrb[140].mxu1 %vm1463_vm6, %v21089_v42  ;;  %v3062_v19 = vrot.slane %v14901_v35, 1  ;;  %11779 = vperm.xlu0 %13835, %v11653_v12   ;;  %v3247_v1 = vrot.slane %v3231_v46, %v14238_v10  ;;  %v3233_v9 = vcombine.high %v3231_v46, %v3231_v46  ;;  %v2350_v49 = vadd.f32 %v14724_v56, %v14756_v47 }
 0x18e   : > { %13579 = vmatprep.mubr.msk.bf16.mxu1 %vm1463_vm6, %v21090_v62  ;;  %v14979_v13 = vsel %vm2459_vm10, %v2355_v14, %v2523_v32  ;;  %v14981_v3 = vsel %vm2457_vm11, %v2347_v21, %v2521_v52  ;;  %vm2460_vm12 = vcmp.ge.f32.partialorder %v2358_v43, 0.0  ;;  %v2524_v37 = vmul.f32 0.01, %v2358_v43  ;;  %13690 = vmatmul.mubr.msk.bf16.gmra.mrb[124].mxu0 %vm830_vm0, %v13941_v18 }
 0x18f   : > { %v3381_v0 = vrot.slane %v3247_v1, %v14251_v15  ;;  %3503 = vperm.xlu1 %13836, %v3377_v31   ;;  %v3263_v11 = vcombine.high %v3247_v1, %v3247_v1  ;;  %v3261_v34 = vrot.slane %v3233_v9, %v14238_v10  ;;  %vm2458_vm13 = vcmp.ge.f32.partialorder %v2350_v49, 0.0 }
 0x190   : > { %v14987_v12 = vsel %vm2460_vm12, %v2358_v43, %v2524_v37  ;;  %v2522_v46 = vmul.f32 0.01, %v2350_v49  ;;  %v11499_v47 = vcombine.high %v11495_v54, %v11495_v54  ;;  %v11497_v14 = vcombine.high %v14928_v63, %v14928_v63  ;;  %v21091_v37 = vld [vmem:[#allocation3_spill] sm:$0xff] }
 0x191   : > { %3507 = vperm.xlu0 %13835, %v3381_v0   ;;  %v3389_v21 = vrot.slane %v3263_v11, %v14251_v15  ;;  %v3385_v42 = vrot.slane %v3261_v34, %v14251_v15  ;;  %v2626_v32 = vpack.c.bf16 %v14987_v12, %v14979_v13  ;;  %v3063_v31 = vadd.f32 %v3062_v19, %v14901_v35  ;;  %v21092_v35 = vld [vmem:[#allocation2_spill] sm:$0xff] }
 0x192   : > { %v14996_v52 = vsel %vm2458_vm13, %v2350_v49, %v2522_v46  ;;  %v11661_v43 = vrot.slane %v11499_v47, %v14251_v15  ;;  %v11657_v62 = vrot.slane %v11497_v14, %v14251_v15  ;;  %v3265_v54 = vcombine.high %v3261_v34, %v3261_v34  ;;  %v21095_v34 = vld [vmem:[#allocation5_spill] sm:$0xff] }
 0x193   : > { %3511 = vperm.xlu1 %13836, %v3385_v42   ;;  %v2625_v63 = vpack.c.bf16 %v14996_v52, %v14981_v3  ;;  %13916 = vrsqrt.f32 %v3063_v31  ;;  %v2371_v1 = vadd.f32 %v14724_v56, %v14785_v39  ;;  %v2363_v9 = vadd.f32 %v14724_v56, %v14793_v16  ;;  %v21094_v39 = vld [vmem:[#allocation7_spill] sm:$0xff] }
 0x194   : > { %v21093_v19 = vpack.c.bf16 %v21091_v37, %v21092_v35  ;;  %v3393_v49 = vrot.slane %v3265_v54, %v14251_v15  ;;  %v2374_v18 = vadd.f32 %v14724_v56, %v14799_v36  ;;  %v2366_v0 = vadd.f32 %v14724_v56, %v14808_v61 }
 0x195   : > { %v2387_v11 = vadd.f32 %v14724_v56, %v14841_v17  ;;  %v21096_v46 = vpack.c.bf16 %v21094_v39, %v21095_v34  ;;  %3515 = vperm.xlu0 %13835, %v3389_v21   ;;  %vm2463_vm0 = vcmp.ge.f32.partialorder %v2371_v1, 0.0  ;;  %v2527_v16 = vmul.f32 0.01, %v2371_v1  ;;  %v21098_v39 = vld [vmem:[#allocation4_spill] sm:$0xff] }
 0x196   : > { %13580 = vmatmul.mubr.msk.bf16.gmra.mrb[144].mxu1 %vm1463_vm6, %v21093_v19  ;;  %vm2461_vm14 = vcmp.ge.f32.partialorder %v2363_v9, 0.0  ;;  %v2525_v47 = vmul.f32 0.01, %v2363_v9  ;;  %vm2464_vm15 = vcmp.ge.f32.partialorder %v2374_v18, 0.0  ;;  %v2528_v14 = vmul.f32 0.01, %v2374_v18 }
 0x197   : > { %13583 = vmatprep.mubr.msk.bf16.mxu1 %vm1463_vm6, %v21096_v46  ;;  %vm2462_vm1 = vcmp.ge.f32.partialorder %v2366_v0, 0.0  ;;  %v2526_v36 = vmul.f32 0.01, %v2366_v0  ;;  %11783 = vperm.xlu1 %13836, %v11657_v62   ;;  %v15021_v42 = vsel %vm2463_vm0, %v2371_v1, %v2527_v16  ;;  %vm2467_vm2 = vcmp.ge.f32.partialorder %v2387_v11, 0.0 }
 0x198   : > { %v15023_v61 = vsel %vm2461_vm14, %v2363_v9, %v2525_v47  ;;  %v2531_v17 = vmul.f32 0.01, %v2387_v11  ;;  %v15025_v31 = vsel %vm2464_vm15, %v2374_v18, %v2528_v14  ;;  %v2379_v21 = vadd.f32 %v14724_v56, %v14849_v57  ;;  %v21101_v47 = vld [vmem:[#allocation9_spill] sm:$0xff] }
 0x199   : > { %v15027_v54 = vsel %vm2462_vm1, %v2366_v0, %v2526_v36  ;;  %v2390_v37 = vadd.f32 %v14724_v56, %v14858_v28  ;;  %11787 = vperm.xlu0 %13835, %v11661_v43   ;;  %v2628_v62 = vpack.c.bf16 %v15025_v31, %v15021_v42  ;;  %v2382_v35 = vadd.f32 %v14724_v56, %v14864_v20  ;;  %v21097_v0 = vld [vmem:[#allocation6_spill] sm:$0xff] }
 0x19a   : > { %v2627_v1 = vpack.c.bf16 %v15027_v54, %v15023_v61  ;;  %v15037_v9 = vsel %vm2467_vm2, %v2387_v11, %v2531_v17  ;;  %vm2465_vm3 = vcmp.ge.f32.partialorder %v2379_v21, 0.0  ;;  %v2529_v19 = vmul.f32 0.01, %v2379_v21 }
 0x19b   : > { %vm2468_vm4 = vcmp.ge.f32.partialorder %v2390_v37, 0.0  ;;  %v2532_v18 = vmul.f32 0.01, %v2390_v37  ;;  %3519 = vperm.xlu1 %13836, %v3393_v49   ;;  %vm2466_vm5 = vcmp.ge.f32.partialorder %v2382_v35, 0.0  ;;  %v2530_v57 = vmul.f32 0.01, %v2382_v35 }
 0x19c   : > { %v2403_v28 = vadd.f32 %v14724_v56, %v14925_v50  ;;  %v2395_v43 = vadd.f32 %v14724_v56, %v14930_v44  ;;  %v21099_v11 = vpack.c.bf16 %v21097_v0, %v21098_v39  ;;  %v15049_v34 = vsel %vm2465_vm3, %v2379_v21, %v2529_v19  ;;  %v21100_v50 = vld [vmem:[#allocation11_spill] sm:$0xff] }
 0x19d   : > { %v15051_v20 = vsel %vm2468_vm4, %v2390_v37, %v2532_v18  ;;  %v2406_v49 = vadd.f32 %v14724_v56, %v14936_v5  ;;  %v2398_v46 = vadd.f32 %v14724_v56, %v14945_v53  ;;  %v13917_v16 = vpop.eup %13916  ;;  %v21102_v14 = vpack.c.bf16 %v21100_v50, %v21101_v47 }
 0x19e   : > { %13584 = vmatmul.mubr.msk.bf16.gmra.mrb[148].mxu1 %vm1463_vm6, %v21099_v11  ;;  %v15063_v36 = vsel %vm2466_vm5, %v2382_v35, %v2530_v57  ;;  %vm2471_vm7 = vcmp.ge.f32.partialorder %v2403_v28, 0.0  ;;  %v2535_v17 = vmul.f32 0.01, %v2403_v28  ;;  %v11396_v21 = vmul.f32 %v13917_v16, %v14670_v51 }
 0x19f   : > { %13587 = vmatprep.mubr.msk.bf16.mxu1 %vm1463_vm6, %v21102_v14  ;;  %v2629_v5 = vpack.c.bf16 %v15063_v36, %v15049_v34  ;;  %vm2469_vm8 = vcmp.ge.f32.partialorder %v2395_v43, 0.0  ;;  %v2533_v56 = vmul.f32 0.01, %v2395_v43  ;;  %vm2472_vm9 = vcmp.ge.f32.partialorder %v2406_v49, 0.0  ;;  %v21103_v14 = vld [vmem:[#allocation10_spill] sm:$0xff] }
 0x1a0   : > { %v2536_v53 = vmul.f32 0.01, %v2406_v49  ;;  %v11507_v37 = vrot.slane %v11396_v21, %v14238_v10  ;;  %v11500_v19 = vcombine.high %v11396_v21, %v11396_v21  ;;  %v15069_v18 = vsel %vm2471_vm7, %v2403_v28, %v2535_v17  ;;  %v21104_v21 = vld [vmem:[#allocation8_spill] sm:$0xff] }
 0x1a1   : > { %vm2470_vm10 = vcmp.ge.f32.partialorder %v2398_v46, 0.0  ;;  %v2534_v35 = vmul.f32 0.01, %v2398_v46  ;;  %v15075_v11 = vsel %vm2469_vm8, %v2395_v43, %v2533_v56  ;;  %v21105_v28 = vpack.c.bf16 %v21103_v14, %v21104_v21 }
 0x1a2   : > { %v15071_v0 = vsel %vm2472_vm9, %v2406_v49, %v2536_v53  ;;  %v11523_v57 = vrot.slane %v11507_v37, %v14238_v10  ;;  %v11515_v39 = vcombine.high %v11507_v37, %v11507_v37  ;;  %v11514_v51 = vrot.slane %v11500_v19, %v14238_v10 }
 0x1a3   : > { %v15079_v47 = vsel %vm2470_vm10, %v2398_v46, %v2534_v35  ;;  %v21106_v37 = vpack.c.bf16 %v14750_v22, %v14732_v55  ;;  %v11397_v56 = vmul.f32 %v13917_v16, %v14828_v33  ;;  %v21107_v21 = vpack.c.bf16 %v14748_v25, %v14717_v45 }
 0x1a4   : > { %v11665_v49 = vrot.slane %v11523_v57, %v14251_v15  ;;  %v11545_v17 = vcombine.high %v11523_v57, %v11523_v57  ;;  %v11537_v53 = vrot.slane %v11515_v39, %v14238_v10  ;;  %v11516_v43 = vcombine.high %v11514_v51, %v11514_v51 }
 0x1a5   : > { %v11530_v57 = vrot.slane %v11514_v51, %v14238_v10  ;;  %v11556_v16 = vrot.slane %v11397_v56, %v14238_v10 }
 0x1a6   : > { %13588 = vmatmul.mubr.msk.bf16.gmra.mrb[152].mxu1 %vm1463_vm6, %v21105_v28  ;;  %11791 = vperm.xlu0 %13835, %v11665_v49   ;;  %v11673_v19 = vrot.slane %v11545_v17, %v14251_v15  ;;  %v11669_v35 = vrot.slane %v11537_v53, %v14251_v15  ;;  %v11547_v14 = vcombine.high %v11537_v53, %v11537_v53 }
 0x1a7   : > { %13591 = vmatprep.mubr.msk.bf16.mxu1 %vm1463_vm6, %v21106_v37  ;;  %v11544_v55 = vrot.slane %v11516_v43, %v14238_v10  ;;  %v11681_v22 = vrot.slane %v11530_v57, %v14251_v15  ;;  %v11546_v33 = vcombine.high %v11530_v57, %v11530_v57  ;;  %v11564_v49 = vcombine.high %v11556_v16, %v11556_v16 }
 0x1a8   : > { %11795 = vperm.xlu1 %13836, %v11669_v35   ;;  %v11677_v39 = vrot.slane %v11547_v14, %v14251_v15  ;;  %v21108_v17 = vpack.c.bf16 %v14814_v23, %v14779_v30  ;;  %v11572_v37 = vrot.slane %v11556_v16, %v14238_v10  ;;  %v11549_v43 = vcombine.high %v11397_v56, %v11397_v56  ;;  %v21109_v30 = vld [vmem:[#allocation12_spill] sm:$0xff] }
 0x1a9   : > { %v11685_v51 = vrot.slane %v11544_v55, %v14251_v15  ;;  %v11548_v28 = vcombine.high %v11544_v55, %v11544_v55  ;;  %v11689_v53 = vrot.slane %v11546_v33, %v14251_v15  ;;  %v11586_v25 = vrot.slane %v11564_v49, %v14238_v10 }
 0x1aa   : > { %11799 = vperm.xlu0 %13835, %v11673_v19   ;;  %v11697_v19 = vrot.slane %v11572_v37, %v14251_v15  ;;  %v11594_v35 = vcombine.high %v11572_v37, %v11572_v37  ;;  %v11563_v57 = vrot.slane %v11549_v43, %v14238_v10  ;;  %v21110_v23 = vpack.c.bf16 %v14791_v2, %v21109_v30 }
 0x1ab   : > { %v11693_v45 = vrot.slane %v11548_v28, %v14251_v15  ;;  %v11701_v14 = vrot.slane %v11586_v25, %v14251_v15  ;;  %v11596_v56 = vcombine.high %v11586_v25, %v11586_v25  ;;  %v21111_v55 = vpack.c.bf16 %v14853_v24, %v14839_v7  ;;  %v21112_v28 = vld [vmem:[#allocation13_spill] sm:$0xff] }
 0x1ac   : > { %11803 = vperm.xlu1 %13836, %v11677_v39   ;;  %v11565_v39 = vcombine.high %v11563_v57, %v11563_v57  ;;  %v11579_v33 = vrot.slane %v11563_v57, %v14238_v10  ;;  %v21113_v49 = vpack.c.bf16 %v14843_v26, %v21112_v28  ;;  %v15152_v26 = vld [vmem:[%s20395_s6] ss:$0 sm:$0xff] }
 0x1ad   : > { %v11709_v2 = vrot.slane %v11596_v56, %v14251_v15 }
 0x1ae   : > { %13592 = vmatmul.mubr.msk.bf16.gmra.mrb[156].mxu1 %vm1463_vm6, %v21107_v21  ;;  %11807 = vperm.xlu0 %13835, %v11681_v22   ;;  %v11705_v22 = vrot.slane %v11594_v35, %v14251_v15  ;;  %v11593_v16 = vrot.slane %v11565_v39, %v14238_v10  ;;  %v11713_v21 = vrot.slane %v11579_v33, %v14251_v15 }
 0x1af   : > { %13595 = vmatprep.mubr.msk.bf16.mxu1 %vm1463_vm6, %v21108_v17 }
 0x1b0   : > { %11811 = vperm.xlu1 %13836, %v11685_v51   ;;  %v11595_v51 = vcombine.high %v11579_v33, %v11579_v33  ;;  %v11717_v7 = vrot.slane %v11593_v16, %v14251_v15  ;;  %v11597_v24 = vcombine.high %v11593_v16, %v11593_v16 }
 0x1b2   : > { %11815 = vperm.xlu0 %13835, %v11689_v53   ;;  %v11721_v17 = vrot.slane %v11595_v51, %v14251_v15  ;;  %v11725_v53 = vrot.slane %v11597_v24, %v14251_v15 }
 0x1b4   : > { %11819 = vperm.xlu1 %13836, %v11693_v45  }
 0x1b6   : > { %13596 = vmatmul.mubr.msk.bf16.gmra.mrb[160].mxu1 %vm1463_vm6, %v21110_v23  ;;  %11823 = vperm.xlu0 %13835, %v11697_v19  }
 0x1b7   : > { %13599 = vmatprep.mubr.msk.bf16.mxu1 %vm1463_vm6, %v21111_v55 }
 0x1b8   : > { %11827 = vperm.xlu1 %13836, %v11701_v14  }
 0x1ba   : > { %11831 = vperm.xlu0 %13835, %v11705_v22  }
 0x1bc   : > { %11835 = vperm.xlu1 %13836, %v11709_v2  }
 0x1be   : > { %13600 = vmatmul.mubr.msk.bf16.gmra.mrb[164].mxu1 %vm1463_vm6, %v21113_v49  ;;  %11839 = vperm.xlu0 %13835, %v11713_v21  }
 0x1bf   : > { %13603 = vmatprep.mubr.msk.bf16.mxu1 %vm1463_vm6, %v2621_v29 }
 0x1c0   : > { %11843 = vperm.xlu1 %13836, %v11717_v7  }
 0x1c2   : > { %11847 = vperm.xlu0 %13835, %v11721_v17  }
 0x1c4   : > { %11851 = vperm.xlu1 %13836, %v11725_v53  }
 0x1c6   : > { %13604 = vmatmul.mubr.msk.bf16.gmra.mrb[168].mxu1 %vm1463_vm6, %v2622_v58 }
 0x1c7   : > { %13607 = vmatprep.mubr.msk.bf16.mxu1 %vm1463_vm6, %v2623_v40  ;;  %v13431_v4 = vpop.f32.mrb[64].mxu1 }
 0x1c8   : > { %v1603_v27 = vadd.f32 %v13431_v4, %v15152_v26  ;;  %v1594_v29 = vpop.f32.mrb[65].mxu1 }
 0x1c9   : > { %v1595_v37 = vadd.f32 %v15152_v26, %v1594_v29  ;;  %v13432_v41 = vpop.f32.mrb[66].mxu1 }
 0x1ca   : > { %v4078_v38 = vcombine.high %v1603_v27, %v1603_v27  ;;  %v4085_v58 = vrot.slane %v1603_v27, %v14238_v10  ;;  %v1597_v43 = vpop.f32.mrb[67].mxu1  ;;  %v1606_v6 = vadd.f32 %v13432_v41, %v15152_v26 }
 0x1cb   : > { %v3590_v45 = vcombine.high %v1595_v37, %v1595_v37  ;;  %v3597_v59 = vrot.slane %v1595_v37, %v14238_v10  ;;  %v1598_v23 = vadd.f32 %v15152_v26, %v1597_v43 }
 0x1cc   : > { %v4092_v40 = vrot.slane %v4078_v38, %v14238_v10  ;;  %v4093_v25 = vcombine.high %v4085_v58, %v4085_v58  ;;  %v4101_v19 = vrot.slane %v4085_v58, %v14238_v10  ;;  %v4127_v22 = vcombine.high %v1606_v6, %v1606_v6 }
 0x1cd   : > { %v3604_v35 = vrot.slane %v3590_v45, %v14238_v10  ;;  %v3605_v57 = vcombine.high %v3597_v59, %v3597_v59  ;;  %v3613_v30 = vrot.slane %v3597_v59, %v14238_v10  ;;  %v4134_v3 = vrot.slane %v1606_v6, %v14238_v10 }
 0x1ce   : > { %13608 = vmatmul.mubr.msk.bf16.gmra.mrb[172].mxu1 %vm1463_vm6, %v2624_v48  ;;  %v4094_v14 = vcombine.high %v4092_v40, %v4092_v40  ;;  %v4108_v56 = vrot.slane %v4092_v40, %v14238_v10  ;;  %v4115_v39 = vrot.slane %v4093_v25, %v14238_v10  ;;  %v4123_v60 = vcombine.high %v4101_v19, %v4101_v19 }
 0x1cf   : > { %13611 = vmatprep.mubr.msk.bf16.mxu1 %vm1463_vm6, %v2625_v63  ;;  %v3606_v8 = vcombine.high %v3604_v35, %v3604_v35  ;;  %v3620_v48 = vrot.slane %v3604_v35, %v14238_v10  ;;  %v3627_v55 = vrot.slane %v3605_v57, %v14238_v10  ;;  %v13435_v33 = vpop.f32.mrb[68].mxu1  ;;  %v15179_v63 = vrot.slane %v4101_v19, %v14251_v15 }
 0x1d0   : > { %v4122_v2 = vrot.slane %v4094_v14, %v14238_v10  ;;  %v4124_v16 = vcombine.high %v4108_v56, %v4108_v56  ;;  %v4125_v21 = vcombine.high %v4115_v39, %v4115_v39  ;;  %v1610_v52 = vpop.f32.mrb[69].mxu1  ;;  %v15182_v51 = vrot.slane %v4115_v39, %v14251_v15 }
 0x1d1   : > { %21114 = vst [vmem:[#allocation3_spill] sm:$0xff] %v15179_v63  ;;  %v3634_v28 = vrot.slane %v3606_v8, %v14238_v10  ;;  %v3635_v49 = vcombine.high %v3613_v30, %v3613_v30  ;;  %v13436_v7 = vpop.f32.mrb[70].mxu1  ;;  %v15186_v17 = vrot.slane %v4123_v60, %v14251_v15  ;;  %v15192_v4 = vrot.slane %v4108_v56, %v14251_v15 }
 0x1d2   : > { %21115 = vst [vmem:[#allocation2_spill] sm:$0xff] %v15182_v51  ;;  %v4126_v24 = vcombine.high %v4122_v2, %v4122_v2  ;;  %v15189_v53 = vrot.slane %v4125_v21, %v14251_v15  ;;  %v15194_v27 = vpop.f32.mrb[71].mxu1  ;;  %v15197_v29 = vrot.slane %v4122_v2, %v14251_v15  ;;  %v3636_v37 = vcombine.high %v3620_v48, %v3620_v48 }
 0x1d3   : > { %21116 = vst [vmem:[#allocation7_spill] sm:$0xff] %v15186_v17  ;;  %21118 = vst [vmem:[#allocation6_spill] sm:$0xff] %v15192_v4  ;;  %v3637_v41 = vcombine.high %v3627_v55, %v3627_v55  ;;  %v3638_v38 = vcombine.high %v3634_v28, %v3634_v28  ;;  %v15200_v58 = vrot.slane %v4124_v16, %v14251_v15 }
 0x1d4   : > { %21117 = vst [vmem:[#allocation5_spill] sm:$0xff] %v15189_v53  ;;  %21119 = vst [vmem:[#allocation4_spill] sm:$0xff] %v15197_v29  ;;  %v15203_v43 = vrot.slane %v4126_v24, %v14251_v15  ;;  %v15206_v45 = vrot.slane %v3613_v30, %v14251_v15  ;;  %v15209_v59 = vrot.slane %v3627_v55, %v14251_v15 }
 0x1d5   : > { %21120 = vst [vmem:[#allocation11_spill] sm:$0xff] %v15200_v58  ;;  %v15216_v6 = vrot.slane %v3635_v49, %v14251_v15  ;;  %v15219_v40 = vrot.slane %v3637_v41, %v14251_v15  ;;  %v15222_v25 = vrot.slane %v3620_v48, %v14251_v15  ;;  %v15225_v19 = vrot.slane %v3634_v28, %v14251_v15 }
 0x1d6   : > { %21121 = vst [vmem:[#allocation9_spill] sm:$0xff] %v15203_v43  ;;  %21122 = vst [vmem:[#allocation10_spill] sm:$0xff] %v15206_v45  ;;  %13612 = vmatmul.mubr.msk.bf16.gmra.mrb[176].mxu1 %vm1463_vm6, %v2626_v32  ;;  %v4141_v13 = vrot.slane %v4127_v22, %v14238_v10  ;;  %v4142_v12 = vcombine.high %v4134_v3, %v4134_v3  ;;  %v4150_v32 = vrot.slane %v4134_v3, %v14238_v10 }
 0x1d7   : > { %21123 = vst [vmem:[#allocation8_spill] sm:$0xff] %v15209_v59  ;;  %21124 = vst [vmem:[#allocation12_spill] sm:$0xff] %v15216_v6  ;;  %13615 = vmatprep.mubr.msk.bf16.mxu1 %vm1463_vm6, %v2627_v1  ;;  %v3639_v35 = vcombine.high %v1598_v23, %v1598_v23  ;;  %v15234_v57 = vrot.slane %v3636_v37, %v14251_v15  ;;  %v15237_v30 = vrot.slane %v3638_v38, %v14251_v15  ;;  %v15241_v39 = vpop.f32.mrb[72].mxu1 }
 0x1d8   : > { %21125 = vst [vmem:[#allocation13_spill] sm:$0xff] %v15219_v40  ;;  %21126 = vst [vmem:[#allocation14_spill] sm:$0xff] %v15222_v25  ;;  %v3646_v14 = vrot.slane %v1598_v23, %v14238_v10  ;;  %v1619_v56 = vadd.f32 %v13435_v33, %v15152_v26  ;;  %v4143_v61 = vcombine.high %v4141_v13, %v4141_v13  ;;  %v15245_v8 = vpop.f32.mrb[73].mxu1 }
 0x1d9   : > { %21127 = vst [vmem:[#allocation15_spill] sm:$0xff] %v15225_v19  ;;  %21128 = vst [vmem:[#allocation16_spill] sm:$0xff] %v15234_v57  ;;  %v4157_v54 = vrot.slane %v4141_v13, %v14238_v10  ;;  %v4164_v1 = vrot.slane %v4142_v12, %v14238_v10  ;;  %v4172_v60 = vcombine.high %v4150_v32, %v4150_v32  ;;  %v15250_v23 = vpop.f32.mrb[74].mxu1 }
 0x1da   : > { %21129 = vst [vmem:[#allocation17_spill] sm:$0xff] %v15237_v30  ;;  %v3653_v48 = vrot.slane %v3639_v35, %v14238_v10  ;;  %v3654_v55 = vcombine.high %v3646_v14, %v3646_v14  ;;  %v3662_v22 = vrot.slane %v3646_v14, %v14238_v10  ;;  %v1611_v2 = vadd.f32 %v15152_v26, %v1610_v52  ;;  %v15256_v28 = vpop.f32.mrb[75].mxu1 }
 0x1db   : > { %v4171_v33 = vrot.slane %v4143_v61, %v14238_v10  ;;  %v4173_v16 = vcombine.high %v4157_v54, %v4157_v54  ;;  %v4174_v21 = vcombine.high %v4164_v1, %v4164_v1  ;;  %v15254_v3 = vadd.f32 %v13436_v7, %v15152_v26 }
 0x1dc   : > { %v15259_v49 = vrot.slane %v4150_v32, %v14251_v15  ;;  %v15262_v24 = vrot.slane %v4164_v1, %v14251_v15  ;;  %v3655_v37 = vcombine.high %v3653_v48, %v3653_v48  ;;  %v3669_v52 = vrot.slane %v3653_v48, %v14238_v10 }
 0x1dd   : > { %v4175_v41 = vcombine.high %v4171_v33, %v4171_v33  ;;  %v15266_v38 = vrot.slane %v4172_v60, %v14251_v15  ;;  %v15269_v13 = vrot.slane %v4174_v21, %v14251_v15  ;;  %v15272_v7 = vrot.slane %v4157_v54, %v14251_v15 }
 0x1de   : > { %21130 = vst [vmem:[#allocation18_spill] sm:$0xff] %v15259_v49  ;;  %21131 = vst [vmem:[#allocation19_spill] sm:$0xff] %v15262_v24  ;;  %13616 = vmatmul.mubr.msk.bf16.gmra.mrb[180].mxu1 %vm1463_vm6, %v2628_v62  ;;  %v3676_v12 = vrot.slane %v3654_v55, %v14238_v10  ;;  %v3683_v32 = vrot.slane %v3655_v37, %v14238_v10  ;;  %v3684_v35 = vcombine.high %v3662_v22, %v3662_v22 }
 0x1df   : > { %21132 = vst [vmem:[#allocation20_spill] sm:$0xff] %v15266_v38  ;;  %21133 = vst [vmem:[#allocation21_spill] sm:$0xff] %v15269_v13  ;;  %v3685_v14 = vcombine.high %v3669_v52, %v3669_v52  ;;  %13619 = vmatprep.mubr.msk.bf16.mxu1 %vm1463_vm6, %v2629_v5  ;;  %v15285_v61 = vrot.slane %v4171_v33, %v14251_v15  ;;  %v15288_v54 = vrot.slane %v4173_v16, %v14251_v15  ;;  %v15299_v34 = vpop.f32.mrb[76].mxu1 }
 0x1e0   : > { %21134 = vst [vmem:[#allocation22_spill] sm:$0xff] %v15272_v7  ;;  %v15291_v42 = vrot.slane %v4175_v41, %v14251_v15  ;;  %v5054_v31 = vcombine.high %v1619_v56, %v1619_v56  ;;  %v3686_v62 = vcombine.high %v3676_v12, %v3676_v12  ;;  %v3687_v1 = vcombine.high %v3683_v32, %v3683_v32  ;;  %v15309_v16 = vpop.f32.mrb[77].mxu1 }
 0x1e1   : > { %21135 = vst [vmem:[#allocation23_spill] sm:$0xff] %v15285_v61  ;;  %21136 = vst [vmem:[#allocation24_spill] sm:$0xff] %v15288_v54  ;;  %v15294_v60 = vrot.slane %v3662_v22, %v14251_v15  ;;  %v15297_v48 = vrot.slane %v3669_v52, %v14251_v15  ;;  %v15302_v36 = vrot.slane %v3676_v12, %v14251_v15  ;;  %v15318_v41 = vpop.f32.mrb[78].mxu1 }
 0x1e2   : > { %21137 = vst [vmem:[#allocation25_spill] sm:$0xff] %v15291_v42  ;;  %v15305_v5 = vrot.slane %v3684_v35, %v14251_v15  ;;  %v5061_v55 = vrot.slane %v1619_v56, %v14238_v10  ;;  %v5068_v33 = vrot.slane %v5054_v31, %v14238_v10  ;;  %v15312_v22 = vrot.slane %v3683_v32, %v14251_v15  ;;  %v15322_v31 = vpop.f32.mrb[79].mxu1 }
 0x1e3   : > { %21138 = vst [vmem:[#allocation26_spill] sm:$0xff] %v15294_v60  ;;  %21139 = vst [vmem:[#allocation27_spill] sm:$0xff] %v15297_v48  ;;  %v15315_v21 = vrot.slane %v3685_v14, %v14251_v15  ;;  %v4566_v37 = vcombine.high %v1611_v2, %v1611_v2  ;;  %v4573_v52 = vrot.slane %v1611_v2, %v14238_v10 }
 0x1e4   : > { %21140 = vst [vmem:[#allocation28_spill] sm:$0xff] %v15302_v36  ;;  %21141 = vst [vmem:[#allocation29_spill] sm:$0xff] %v15305_v5  ;;  %v5069_v12 = vcombine.high %v5061_v55, %v5061_v55  ;;  %v5070_v35 = vcombine.high %v5068_v33, %v5068_v33  ;;  %v5077_v50 = vrot.slane %v5061_v55, %v14238_v10 }
 0x1e5   : > { %21142 = vst [vmem:[#allocation30_spill] sm:$0xff] %v15312_v22  ;;  %21143 = vst [vmem:[#allocation31_spill] sm:$0xff] %v15315_v21  ;;  %v5084_v56 = vrot.slane %v5068_v33, %v14238_v10  ;;  %v15325_v46 = vrot.slane %v3686_v62, %v14251_v15  ;;  %v4580_v32 = vrot.slane %v4566_v37, %v14238_v10 }
 0x1e6   : > { %v4581_v14 = vcombine.high %v4573_v52, %v4573_v52  ;;  %v4589_v44 = vrot.slane %v4573_v52, %v14238_v10  ;;  %v5091_v2 = vrot.slane %v5069_v12, %v14238_v10  ;;  %v5098_v42 = vrot.slane %v5070_v35, %v14238_v10 }
 0x1e7   : > { %21144 = vst [vmem:[#allocation32_spill] sm:$0xff] %v15325_v46  ;;  %v5099_v54 = vcombine.high %v5077_v50, %v5077_v50  ;;  %v5100_v21 = vcombine.high %v5084_v56, %v5084_v56  ;;  %v21145_v55 = vpack.c.bf16 %v15051_v20, %v15037_v9  ;;  %v15336_v33 = vrot.slane %v3687_v1, %v14251_v15 }
 0x1e8   : > { %v4582_v62 = vcombine.high %v4580_v32, %v4580_v32  ;;  %v4596_v37 = vrot.slane %v4580_v32, %v14238_v10  ;;  %v5103_v52 = vcombine.high %v15254_v3, %v15254_v3  ;;  %v21147_v12 = vpack.c.bf16 %v15079_v47, %v15075_v11  ;;  %v15359_v47 = vpop.f32.mrb[80].mxu1 }
 0x1e9   : > { %13620 = vmatmul.mubr.msk.bf16.gmra.mrb[184].mxu1 %vm1463_vm6, %v21145_v55  ;;  %21146 = vst [vmem:[#allocation33_spill] sm:$0xff] %v15336_v33  ;;  %v5101_v35 = vcombine.high %v5091_v2, %v5091_v2  ;;  %v5102_v61 = vcombine.high %v5098_v42, %v5098_v42  ;;  %v15346_v9 = vrot.slane %v5077_v50, %v14251_v15  ;;  %v15367_v22 = vpop.f32.mrb[81].mxu1 }
 0x1ea   : > { %13623 = vmatprep.mubr.msk.bf16.mxu1 %vm1463_vm6, %v21147_v12  ;;  %v15349_v20 = vrot.slane %v5084_v56, %v14251_v15  ;;  %v15352_v1 = vrot.slane %v5091_v2, %v14251_v15  ;;  %v15355_v32 = vrot.slane %v5099_v54, %v14251_v15  ;;  %v4603_v55 = vrot.slane %v4581_v14, %v14238_v10  ;;  %v15375_v7 = vpop.f32.mrb[82].mxu1 }
 0x1eb   : > { %21148 = vst [vmem:[#allocation34_spill] sm:$0xff] %v15346_v9  ;;  %v4610_v11 = vrot.slane %v4582_v62, %v14238_v10  ;;  %v15362_v12 = vrot.slane %v5098_v42, %v14251_v15  ;;  %v15365_v50 = vrot.slane %v5100_v21, %v14251_v15  ;;  %v4611_v56 = vcombine.high %v4589_v44, %v4589_v44 }
 0x1ec   : > { %21149 = vst [vmem:[#allocation35_spill] sm:$0xff] %v15349_v20  ;;  %21150 = vst [vmem:[#allocation36_spill] sm:$0xff] %v15352_v1  ;;  %v4612_v33 = vcombine.high %v4596_v37, %v4596_v37  ;;  %v15370_v2 = vrot.slane %v5101_v35, %v14251_v15  ;;  %v15373_v54 = vrot.slane %v5102_v61, %v14251_v15  ;;  %v15389_v35 = vpop.f32.mrb[83].mxu1 }
 0x1ed   : > { %21151 = vst [vmem:[#allocation37_spill] sm:$0xff] %v15355_v32  ;;  %21152 = vst [vmem:[#allocation38_spill] sm:$0xff] %v15362_v12  ;;  %v4613_v14 = vcombine.high %v4603_v55, %v4603_v55  ;;  %v4614_v62 = vcombine.high %v4610_v11, %v4610_v11  ;;  %v15378_v42 = vrot.slane %v4589_v44, %v14251_v15 }
 0x1ee   : > { %21153 = vst [vmem:[#allocation39_spill] sm:$0xff] %v15365_v50  ;;  %21154 = vst [vmem:[#allocation40_spill] sm:$0xff] %v15370_v2  ;;  %v15381_v21 = vrot.slane %v4603_v55, %v14251_v15  ;;  %v15384_v48 = vrot.slane %v4611_v56, %v14251_v15  ;;  %v15387_v13 = vrot.slane %v4596_v37, %v14251_v15 }
 0x1ef   : > { %21155 = vst [vmem:[#allocation41_spill] sm:$0xff] %v15373_v54  ;;  %21156 = vst [vmem:[#allocation42_spill] sm:$0xff] %v15378_v42  ;;  %v15392_v61 = vrot.slane %v4610_v11, %v14251_v15  ;;  %v15395_v46 = vrot.slane %v4612_v33, %v14251_v15  ;;  %v5110_v44 = vrot.slane %v15254_v3, %v14238_v10  ;;  %v15425_v49 = vpop.f32.mrb[84].mxu1 }
 0x1f0   : > { %21157 = vst [vmem:[#allocation43_spill] sm:$0xff] %v15381_v21  ;;  %21158 = vst [vmem:[#allocation44_spill] sm:$0xff] %v15384_v48  ;;  %v5117_v55 = vrot.slane %v5103_v52, %v14238_v10  ;;  %v15401_v38 = vrot.slane %v4613_v14, %v14251_v15  ;;  %v15404_v56 = vrot.slane %v4614_v62, %v14251_v15  ;;  %v15429_v54 = vpop.f32.mrb[85].mxu1 }
 0x1f1   : > { %21159 = vst [vmem:[#allocation45_spill] sm:$0xff] %v15387_v13  ;;  %21160 = vst [vmem:[#allocation46_spill] sm:$0xff] %v15392_v61  ;;  %v1614_v37 = vadd.f32 %v15152_v26, %v15194_v27  ;;  %v1635_v11 = vadd.f32 %v15241_v39, %v15152_v26  ;;  %v21164_v33 = vpack.c.bf16 %v15071_v0, %v15069_v18 }
 0x1f2   : > { %21161 = vst [vmem:[#allocation47_spill] sm:$0xff] %v15395_v46  ;;  %21162 = vst [vmem:[#allocation48_spill] sm:$0xff] %v15401_v38  ;;  %v5118_v3 = vcombine.high %v5110_v44, %v5110_v44  ;;  %v5119_v5 = vcombine.high %v5117_v55, %v5117_v55  ;;  %v5126_v52 = vrot.slane %v5110_v44, %v14238_v10 }
 0x1f3   : > { %21163 = vst [vmem:[#allocation49_spill] sm:$0xff] %v15404_v56  ;;  %13624 = vmatmul.mubr.msk.bf16.gmra.mrb[188].mxu1 %vm1463_vm6, %v21164_v33  ;;  %v5133_v14 = vrot.slane %v5117_v55, %v14238_v10  ;;  %v4615_v24 = vcombine.high %v1614_v37, %v1614_v37  ;;  %v4622_v62 = vrot.slane %v1614_v37, %v14238_v10 }
 0x1f4   : > { %v1627_v27 = vadd.f32 %v15152_v26, %v15245_v8  ;;  %v15421_v39 = vadd.f32 %v15250_v23, %v15152_v26  ;;  %v5140_v18 = vrot.slane %v5118_v3, %v14238_v10  ;;  %v5147_v0 = vrot.slane %v5119_v5, %v14238_v10  ;;  %v15437_v5 = vpop.f32.mrb[86].mxu1 }
 0x1f5   : > { %v5148_v33 = vcombine.high %v5126_v52, %v5126_v52  ;;  %v5149_v36 = vcombine.high %v5133_v14, %v5133_v14  ;;  %v4629_v44 = vrot.slane %v4615_v24, %v14238_v10  ;;  %v4630_v55 = vcombine.high %v4622_v62, %v4622_v62  ;;  %v15446_v50 = vpop.f32.mrb[87].mxu1 }
 0x1f6   : > { %v6030_v60 = vcombine.high %v1635_v11, %v1635_v11  ;;  %v6037_v37 = vrot.slane %v1635_v11, %v14238_v10  ;;  %v5150_v8 = vcombine.high %v5140_v18, %v5140_v18  ;;  %v5151_v56 = vcombine.high %v5147_v0, %v5147_v0 }
 0x1f7   : > { %v15432_v23 = vrot.slane %v5126_v52, %v14251_v15  ;;  %v15435_v3 = vrot.slane %v5133_v14, %v14251_v15  ;;  %v15440_v43 = vrot.slane %v5140_v18, %v14251_v15  ;;  %v15443_v24 = vrot.slane %v5148_v33, %v14251_v15 }
 0x1f8   : > { %v4631_v30 = vcombine.high %v4629_v44, %v4629_v44  ;;  %v4638_v11 = vrot.slane %v4622_v62, %v14238_v10  ;;  %v15449_v46 = vrot.slane %v5147_v0, %v14251_v15  ;;  %v15452_v52 = vrot.slane %v5149_v36, %v14251_v15 }
 0x1f9   : > { %21165 = vst [vmem:[#allocation50_spill] sm:$0xff] %v15432_v23  ;;  %21166 = vst [vmem:[#allocation51_spill] sm:$0xff] %v15435_v3  ;;  %v4645_v14 = vrot.slane %v4629_v44, %v14238_v10  ;;  %v4652_v3 = vrot.slane %v4630_v55, %v14238_v10  ;;  %v15457_v18 = vrot.slane %v5150_v8, %v14251_v15 }
 0x1fa   : > { %21167 = vst [vmem:[#allocation52_spill] sm:$0xff] %v15440_v43  ;;  %21168 = vst [vmem:[#allocation53_spill] sm:$0xff] %v15443_v24  ;;  %v4659_v33 = vrot.slane %v4631_v30, %v14238_v10  ;;  %v4660_v24 = vcombine.high %v4638_v11, %v4638_v11  ;;  %v6044_v62 = vrot.slane %v6030_v60, %v14238_v10 }
 0x1fb   : > { %21169 = vst [vmem:[#allocation54_spill] sm:$0xff] %v15449_v46  ;;  %21170 = vst [vmem:[#allocation55_spill] sm:$0xff] %v15452_v52  ;;  %v15462_v43 = vrot.slane %v5151_v56, %v14251_v15  ;;  %v4661_v0 = vcombine.high %v4645_v14, %v4645_v14  ;;  %v4662_v46 = vcombine.high %v4652_v3, %v4652_v3 }
 0x1fc   : > { %21171 = vst [vmem:[#allocation56_spill] sm:$0xff] %v15457_v18  ;;  %v15465_v36 = vrot.slane %v4638_v11, %v14251_v15  ;;  %v4663_v52 = vcombine.high %v4659_v33, %v4659_v33  ;;  %v15468_v44 = vrot.slane %v4652_v3, %v14251_v15  ;;  %v15471_v55 = vrot.slane %v4645_v14, %v14251_v15  ;;  %v15480_v18 = vpop.f32.mrb[88].mxu1 }
 0x1fd   : > { %21172 = vst [vmem:[#allocation57_spill] sm:$0xff] %v15462_v43  ;;  %v6045_v8 = vcombine.high %v6037_v37, %v6037_v37  ;;  %v15474_v30 = vrot.slane %v4660_v24, %v14251_v15  ;;  %v15477_v60 = vrot.slane %v4659_v33, %v14251_v15  ;;  %v6046_v56 = vcombine.high %v6044_v62, %v6044_v62 }
 0x1fe   : > { %21173 = vst [vmem:[#allocation58_spill] sm:$0xff] %v15465_v36  ;;  %21174 = vst [vmem:[#allocation59_spill] sm:$0xff] %v15468_v44  ;;  %v6053_v43 = vrot.slane %v6037_v37, %v14238_v10  ;;  %v15483_v11 = vrot.slane %v4662_v46, %v14251_v15  ;;  %v6060_v3 = vrot.slane %v6044_v62, %v14238_v10  ;;  %v15487_v44 = vpop.f32.mrb[89].mxu1 }
 0x1ff   : > { %21175 = vst [vmem:[#allocation60_spill] sm:$0xff] %v15471_v55  ;;  %21176 = vst [vmem:[#allocation61_spill] sm:$0xff] %v15474_v30  ;;  %v6067_v14 = vrot.slane %v6045_v8, %v14238_v10  ;;  %v5542_v55 = vcombine.high %v1627_v27, %v1627_v27  ;;  %v15490_v24 = vrot.slane %v4661_v0, %v14251_v15  ;;  %v15494_v30 = vpop.f32.mrb[90].mxu1 }
 0x200   : > { %21177 = vst [vmem:[#allocation62_spill] sm:$0xff] %v15477_v60  ;;  %21178 = vst [vmem:[#allocation63_spill] sm:$0xff] %v15483_v11  ;;  %v6074_v33 = vrot.slane %v6046_v56, %v14238_v10  ;;  %v6075_v60 = vcombine.high %v6053_v43, %v6053_v43  ;;  %v5549_v37 = vrot.slane %v1627_v27, %v14238_v10  ;;  %v15502_v23 = vpop.f32.mrb[91].mxu1 }
 0x201   : > { %21179 = vst [vmem:[#allocation64_spill] sm:$0xff] %v15490_v24  ;;  %v15497_v46 = vrot.slane %v4663_v52, %v14251_v15  ;;  %v6076_v11 = vcombine.high %v6060_v3, %v6060_v3  ;;  %v6077_v62 = vcombine.high %v6067_v14, %v6067_v14  ;;  %v15500_v8 = vrot.slane %v6053_v43, %v14251_v15  ;;  %v15535_v61 = vpop.f32.mrb[92].mxu1 }
 0x202   : > { %v6078_v36 = vcombine.high %v6074_v33, %v6074_v33  ;;  %v15505_v0 = vrot.slane %v6067_v14, %v14251_v15  ;;  %v15508_v56 = vrot.slane %v6060_v3, %v14251_v15  ;;  %v5556_v27 = vrot.slane %v5542_v55, %v14238_v10  ;;  %v15543_v19 = vpop.f32.mrb[93].mxu1 }
 0x203   : > { %21180 = vst [vmem:[#allocation65_spill] sm:$0xff] %v15497_v46  ;;  %21181 = vst [vmem:[#allocation66_spill] sm:$0xff] %v15500_v8  ;;  %v15512_v24 = vrot.slane %v6075_v60, %v14251_v15  ;;  %v15515_v52 = vrot.slane %v6074_v33, %v14251_v15  ;;  %v5557_v46 = vcombine.high %v5549_v37, %v5549_v37 }
 0x204   : > { %21182 = vst [vmem:[#allocation67_spill] sm:$0xff] %v15505_v0  ;;  %21183 = vst [vmem:[#allocation68_spill] sm:$0xff] %v15508_v56  ;;  %v5565_v43 = vrot.slane %v5549_v37, %v14238_v10  ;;  %v15519_v58 = vrot.slane %v6077_v62, %v14251_v15  ;;  %v5558_v57 = vcombine.high %v5556_v27, %v5556_v27 }
 0x205   : > { %21184 = vst [vmem:[#allocation69_spill] sm:$0xff] %v15512_v24  ;;  %21185 = vst [vmem:[#allocation70_spill] sm:$0xff] %v15515_v52  ;;  %v5572_v14 = vrot.slane %v5556_v27, %v14238_v10  ;;  %v6079_v3 = vcombine.high %v15421_v39, %v15421_v39  ;;  %v15525_v55 = vrot.slane %v6076_v11, %v14251_v15 }
 0x206   : > { %21186 = vst [vmem:[#allocation71_spill] sm:$0xff] %v15519_v58  ;;  %v5579_v60 = vrot.slane %v5557_v46, %v14238_v10  ;;  %v5587_v12 = vcombine.high %v5565_v43, %v5565_v43  ;;  %v6086_v33 = vrot.slane %v15421_v39, %v14238_v10  ;;  %v15531_v37 = vrot.slane %v6078_v36, %v14251_v15 }
 0x207   : > { %21187 = vst [vmem:[#allocation72_spill] sm:$0xff] %v15525_v55  ;;  %v5586_v62 = vrot.slane %v5558_v57, %v14238_v10  ;;  %v5588_v52 = vcombine.high %v5572_v14, %v5572_v14  ;;  %v6093_v27 = vrot.slane %v6079_v3, %v14238_v10  ;;  %v15538_v11 = vrot.slane %v5565_v43, %v14251_v15 }
 0x208   : > { %21188 = vst [vmem:[#allocation73_spill] sm:$0xff] %v15531_v37  ;;  %v5589_v29 = vcombine.high %v5579_v60, %v5579_v60  ;;  %v15541_v46 = vrot.slane %v5572_v14, %v14251_v15  ;;  %v6094_v55 = vcombine.high %v6086_v33, %v6086_v33  ;;  %v15546_v36 = vrot.slane %v5579_v60, %v14251_v15  ;;  %v15551_v37 = vpop.f32.mrb[94].mxu1 }
 0x209   : > { %21189 = vst [vmem:[#allocation74_spill] sm:$0xff] %v15538_v11  ;;  %v5590_v39 = vcombine.high %v5586_v62, %v5586_v62  ;;  %v15549_v57 = vrot.slane %v5587_v12, %v14251_v15  ;;  %v6095_v3 = vcombine.high %v6093_v27, %v6093_v27  ;;  %v15554_v56 = vrot.slane %v5586_v62, %v14251_v15  ;;  %v15559_v20 = vpop.f32.mrb[95].mxu1 }
 0x20a   : > { %21190 = vst [vmem:[#allocation75_spill] sm:$0xff] %v15541_v46  ;;  %21191 = vst [vmem:[#allocation76_spill] sm:$0xff] %v15546_v36  ;;  %v6102_v43 = vrot.slane %v6086_v33, %v14238_v10  ;;  %v6109_v14 = vrot.slane %v6093_v27, %v14238_v10  ;;  %v6116_v46 = vrot.slane %v6094_v55, %v14238_v10 }
 0x20b   : > { %21192 = vst [vmem:[#allocation77_spill] sm:$0xff] %v15549_v57  ;;  %21193 = vst [vmem:[#allocation78_spill] sm:$0xff] %v15554_v56  ;;  %v15562_v60 = vrot.slane %v5588_v52, %v14251_v15  ;;  %v6123_v12 = vrot.slane %v6095_v3, %v14238_v10  ;;  %v1630_v13 = vadd.f32 %v15152_v26, %v15256_v28 }
 0x20c   : > { %v1651_v62 = vadd.f32 %v15299_v34, %v15152_v26  ;;  %v15570_v56 = vrot.slane %v5589_v29, %v14251_v15  ;;  %v6124_v33 = vcombine.high %v6102_v43, %v6102_v43  ;;  %v6125_v27 = vcombine.high %v6109_v14, %v6109_v14 }
 0x20d   : > { %21194 = vst [vmem:[#allocation79_spill] sm:$0xff] %v15562_v60  ;;  %v6126_v4 = vcombine.high %v6116_v46, %v6116_v46  ;;  %v15573_v55 = vrot.slane %v5590_v39, %v14251_v15  ;;  %v6127_v25 = vcombine.high %v6123_v12, %v6123_v12  ;;  %v15576_v52 = vrot.slane %v6102_v43, %v14251_v15 }
 0x20e   : > { %21195 = vst [vmem:[#allocation80_spill] sm:$0xff] %v15570_v56  ;;  %v15579_v3 = vrot.slane %v6116_v46, %v14251_v15  ;;  %v15582_v28 = vrot.slane %v6124_v33, %v14251_v15  ;;  %v15585_v34 = vrot.slane %v6109_v14, %v14251_v15  ;;  %v15588_v29 = vrot.slane %v6123_v12, %v14251_v15  ;;  %v15595_v46 = vpop.f32.mrb[96].mxu1 }
 0x20f   : > { %21196 = vst [vmem:[#allocation81_spill] sm:$0xff] %v15573_v55  ;;  %21197 = vst [vmem:[#allocation82_spill] sm:$0xff] %v15576_v52  ;;  %v5591_v60 = vcombine.high %v1630_v13, %v1630_v13  ;;  %v15591_v39 = vrot.slane %v6126_v4, %v14251_v15  ;;  %v5598_v55 = vrot.slane %v1630_v13, %v14238_v10  ;;  %v15606_v4 = vpop.f32.mrb[97].mxu1 }
 0x210   : > { %21198 = vst [vmem:[#allocation83_spill] sm:$0xff] %v15579_v3  ;;  %21199 = vst [vmem:[#allocation84_spill] sm:$0xff] %v15582_v28  ;;  %v7006_v43 = vcombine.high %v1651_v62, %v1651_v62  ;;  %v7013_v52 = vrot.slane %v1651_v62, %v14238_v10  ;;  %v15598_v33 = vrot.slane %v6125_v27, %v14251_v15  ;;  %v15610_v28 = vpop.f32.mrb[98].mxu1 }
 0x211   : > { %21200 = vst [vmem:[#allocation85_spill] sm:$0xff] %v15585_v34  ;;  %21201 = vst [vmem:[#allocation86_spill] sm:$0xff] %v15588_v29  ;;  %v15601_v14 = vrot.slane %v6127_v25, %v14251_v15  ;;  %v5605_v12 = vrot.slane %v5591_v60, %v14238_v10  ;;  %v1643_v29 = vadd.f32 %v15152_v26, %v15309_v16  ;;  %v15617_v16 = vpop.f32.mrb[99].mxu1 }
 0x212   : > { %21202 = vst [vmem:[#allocation87_spill] sm:$0xff] %v15591_v39  ;;  %21203 = vst [vmem:[#allocation88_spill] sm:$0xff] %v15598_v33  ;;  %v5606_v34 = vcombine.high %v5598_v55, %v5598_v55  ;;  %v5614_v13 = vrot.slane %v5598_v55, %v14238_v10  ;;  %v7020_v62 = vrot.slane %v7006_v43, %v14238_v10  ;;  %v15640_v57 = vpop.f32.mrb[100].mxu1 }
 0x213   : > { %21204 = vst [vmem:[#allocation89_spill] sm:$0xff] %v15601_v14  ;;  %v7021_v39 = vcombine.high %v7013_v52, %v7013_v52  ;;  %v5607_v27 = vcombine.high %v5605_v12, %v5605_v12  ;;  %v5621_v33 = vrot.slane %v5605_v12, %v14238_v10  ;;  %v1654_v25 = vadd.f32 %v15318_v41, %v15152_v26 }
 0x214   : > { %v1646_v60 = vadd.f32 %v15152_v26, %v15322_v31  ;;  %v5628_v14 = vrot.slane %v5606_v34, %v14238_v10  ;;  %v5636_v3 = vcombine.high %v5614_v13, %v5614_v13  ;;  %v7022_v55 = vcombine.high %v7020_v62, %v7020_v62 }
 0x215   : > { %v7029_v43 = vrot.slane %v7013_v52, %v14238_v10  ;;  %v5635_v58 = vrot.slane %v5607_v27, %v14238_v10  ;;  %v5637_v56 = vcombine.high %v5621_v33, %v5621_v33  ;;  %v7036_v2 = vrot.slane %v7020_v62, %v14238_v10 }
 0x216   : > { %v6518_v12 = vcombine.high %v1643_v29, %v1643_v29  ;;  %v5638_v38 = vcombine.high %v5628_v14, %v5628_v14  ;;  %v15624_v41 = vrot.slane %v5614_v13, %v14251_v15  ;;  %v15627_v31 = vrot.slane %v5621_v33, %v14251_v15 }
 0x217   : > { %v7043_v53 = vrot.slane %v7021_v39, %v14238_v10  ;;  %v5639_v34 = vcombine.high %v5635_v58, %v5635_v58  ;;  %v15631_v40 = vrot.slane %v5628_v14, %v14251_v15  ;;  %v15634_v52 = vrot.slane %v5636_v3, %v14251_v15 }
 0x218   : > { %21205 = vst [vmem:[#allocation90_spill] sm:$0xff] %v15624_v41  ;;  %21206 = vst [vmem:[#allocation91_spill] sm:$0xff] %v15627_v31  ;;  %v7050_v27 = vrot.slane %v7022_v55, %v14238_v10  ;;  %v15638_v62 = vrot.slane %v5635_v58, %v14251_v15  ;;  %v7051_v24 = vcombine.high %v7029_v43, %v7029_v43  ;;  %v15651_v31 = vpop.f32.mrb[101].mxu1 }
 0x219   : > { %21207 = vst [vmem:[#allocation92_spill] sm:$0xff] %v15631_v40  ;;  %21208 = vst [vmem:[#allocation93_spill] sm:$0xff] %v15634_v52  ;;  %v7052_v13 = vcombine.high %v7036_v2, %v7036_v2  ;;  %v7053_v41 = vcombine.high %v7043_v53, %v7043_v53  ;;  %v15643_v33 = vrot.slane %v5638_v38, %v14251_v15  ;;  %v15677_v52 = vpop.f32.mrb[102].mxu1 }
 0x21a   : > { %21209 = vst [vmem:[#allocation94_spill] sm:$0xff] %v15638_v62  ;;  %v15646_v39 = vrot.slane %v5637_v56, %v14251_v15  ;;  %v15649_v14 = vrot.slane %v5639_v34, %v14251_v15  ;;  %v7054_v3 = vcombine.high %v7050_v27, %v7050_v27  ;;  %v15654_v58 = vrot.slane %v7029_v43, %v14251_v15 }
 0x21b   : > { %21210 = vst [vmem:[#allocation95_spill] sm:$0xff] %v15643_v33  ;;  %v15657_v55 = vrot.slane %v7043_v53, %v14251_v15  ;;  %v15660_v62 = vrot.slane %v7051_v24, %v14251_v15  ;;  %v15663_v38 = vrot.slane %v7053_v41, %v14251_v15  ;;  %v15666_v56 = vrot.slane %v7036_v2, %v14251_v15 }
 0x21c   : > { %21211 = vst [vmem:[#allocation96_spill] sm:$0xff] %v15646_v39  ;;  %21212 = vst [vmem:[#allocation97_spill] sm:$0xff] %v15649_v14  ;;  %v15669_v34 = vrot.slane %v7050_v27, %v14251_v15  ;;  %v6525_v14 = vrot.slane %v1643_v29, %v14238_v10  ;;  %v6532_v43 = vrot.slane %v6518_v12, %v14238_v10 }
 0x21d   : > { %21213 = vst [vmem:[#allocation98_spill] sm:$0xff] %v15654_v58  ;;  %21214 = vst [vmem:[#allocation99_spill] sm:$0xff] %v15657_v55  ;;  %v15674_v39 = vrot.slane %v7052_v13, %v14251_v15  ;;  %v7055_v53 = vcombine.high %v1654_v25, %v1654_v25  ;;  %v7062_v24 = vrot.slane %v1654_v25, %v14238_v10 }
 0x21e   : > { %21215 = vst [vmem:[#allocation100_spill] sm:$0xff] %v15660_v62  ;;  %21216 = vst [vmem:[#allocation101_spill] sm:$0xff] %v15663_v38  ;;  %v6567_v33 = vcombine.high %v1646_v60, %v1646_v60  ;;  %v6533_v41 = vcombine.high %v6525_v14, %v6525_v14  ;;  %v6534_v40 = vcombine.high %v6532_v43, %v6532_v43 }
 0x21f   : > { %21217 = vst [vmem:[#allocation102_spill] sm:$0xff] %v15666_v56  ;;  %21218 = vst [vmem:[#allocation103_spill] sm:$0xff] %v15669_v34  ;;  %v6541_v2 = vrot.slane %v6525_v14, %v14238_v10  ;;  %v6548_v27 = vrot.slane %v6532_v43, %v14238_v10  ;;  %v15682_v34 = vrot.slane %v7054_v3, %v14251_v15 }
 0x220   : > { %21219 = vst [vmem:[#allocation104_spill] sm:$0xff] %v15674_v39  ;;  %v7069_v29 = vrot.slane %v7055_v53, %v14238_v10  ;;  %v7070_v12 = vcombine.high %v7062_v24, %v7062_v24  ;;  %v7078_v13 = vrot.slane %v7062_v24, %v14238_v10  ;;  %v6555_v39 = vrot.slane %v6533_v41, %v14238_v10 }
 0x221   : > { %21220 = vst [vmem:[#allocation105_spill] sm:$0xff] %v15682_v34  ;;  %v6562_v25 = vrot.slane %v6534_v40, %v14238_v10  ;;  %v6563_v56 = vcombine.high %v6541_v2, %v6541_v2  ;;  %v6564_v38 = vcombine.high %v6548_v27, %v6548_v27  ;;  %v6574_v14 = vrot.slane %v1646_v60, %v14238_v10 }
 0x222   : > { %v7071_v62 = vcombine.high %v7069_v29, %v7069_v29  ;;  %v7085_v32 = vrot.slane %v7069_v29, %v14238_v10  ;;  %v6581_v43 = vrot.slane %v6567_v33, %v14238_v10  ;;  %v6565_v3 = vcombine.high %v6555_v39, %v6555_v39 }
 0x223   : > { %v6566_v34 = vcombine.high %v6562_v25, %v6562_v25  ;;  %v15692_v53 = vrot.slane %v6541_v2, %v14251_v15  ;;  %v15695_v24 = vrot.slane %v6548_v27, %v14251_v15  ;;  %v15698_v41 = vrot.slane %v6555_v39, %v14251_v15 }
 0x224   : > { %v15701_v40 = vrot.slane %v6563_v56, %v14251_v15  ;;  %v7092_v29 = vrot.slane %v7070_v12, %v14238_v10  ;;  %v7099_v60 = vrot.slane %v7071_v62, %v14238_v10  ;;  %v15706_v33 = vrot.slane %v6562_v25, %v14251_v15 }
 0x225   : > { %21221 = vst [vmem:[#allocation106_spill] sm:$0xff] %v15692_v53  ;;  %21222 = vst [vmem:[#allocation107_spill] sm:$0xff] %v15695_v24  ;;  %v15709_v48 = vrot.slane %v6564_v38, %v14251_v15  ;;  %v7100_v2 = vcombine.high %v7078_v13, %v7078_v13  ;;  %v7101_v17 = vcombine.high %v7085_v32, %v7085_v32 }
 0x226   : > { %21223 = vst [vmem:[#allocation108_spill] sm:$0xff] %v15698_v41  ;;  %21224 = vst [vmem:[#allocation109_spill] sm:$0xff] %v15701_v40  ;;  %v15712_v27 = vrot.slane %v6565_v3, %v14251_v15  ;;  %v15715_v39 = vrot.slane %v6566_v34, %v14251_v15  ;;  %v7102_v56 = vcombine.high %v7092_v29, %v7092_v29  ;;  %v15717_v40 = vpop.f32.mrb[103].mxu1 }
 0x227   : > { %21225 = vst [vmem:[#allocation110_spill] sm:$0xff] %v15706_v33  ;;  %21226 = vst [vmem:[#allocation111_spill] sm:$0xff] %v15709_v48  ;;  %v7103_v24 = vcombine.high %v7099_v60, %v7099_v60  ;;  %v15720_v62 = vrot.slane %v7078_v13, %v14251_v15  ;;  %v15723_v12 = vrot.slane %v7092_v29, %v14251_v15 }
 0x228   : > { %21227 = vst [vmem:[#allocation112_spill] sm:$0xff] %v15712_v27  ;;  %21228 = vst [vmem:[#allocation113_spill] sm:$0xff] %v15715_v39  ;;  %v15726_v38 = vrot.slane %v7100_v2, %v14251_v15  ;;  %v15729_v25 = vrot.slane %v7085_v32, %v14251_v15  ;;  %v15732_v3 = vrot.slane %v7099_v60, %v14251_v15 }
 0x229   : > { %21229 = vst [vmem:[#allocation114_spill] sm:$0xff] %v15720_v62  ;;  %21230 = vst [vmem:[#allocation115_spill] sm:$0xff] %v15723_v12  ;;  %v15735_v34 = vrot.slane %v7101_v17, %v14251_v15  ;;  %v6582_v39 = vcombine.high %v6574_v14, %v6574_v14  ;;  %v6583_v48 = vcombine.high %v6581_v43, %v6581_v43 }
 0x22a   : > { %21231 = vst [vmem:[#allocation116_spill] sm:$0xff] %v15726_v38  ;;  %21232 = vst [vmem:[#allocation117_spill] sm:$0xff] %v15729_v25  ;;  %v15738_v13 = vrot.slane %v7102_v56, %v14251_v15  ;;  %v6590_v29 = vrot.slane %v6574_v14, %v14238_v10  ;;  %v6597_v12 = vrot.slane %v6581_v43, %v14238_v10 }
 0x22b   : > { %21233 = vst [vmem:[#allocation118_spill] sm:$0xff] %v15732_v3  ;;  %21234 = vst [vmem:[#allocation119_spill] sm:$0xff] %v15735_v34  ;;  %v1667_v2 = vadd.f32 %v15359_v47, %v15152_v26  ;;  %v15745_v32 = vrot.slane %v7103_v24, %v14251_v15  ;;  %v6604_v60 = vrot.slane %v6582_v39, %v14238_v10 }
 0x22c   : > { %21235 = vst [vmem:[#allocation120_spill] sm:$0xff] %v15738_v13  ;;  %v6611_v17 = vrot.slane %v6583_v48, %v14238_v10  ;;  %v1659_v34 = vadd.f32 %v15152_v26, %v15367_v22  ;;  %v6612_v3 = vcombine.high %v6590_v29, %v6590_v29  ;;  %v6613_v56 = vcombine.high %v6597_v12, %v6597_v12  ;;  %v15770_v13 = vpop.f32.mrb[104].mxu1 }
 0x22d   : > { %21236 = vst [vmem:[#allocation121_spill] sm:$0xff] %v15745_v32  ;;  %v1670_v14 = vadd.f32 %v15375_v7, %v15152_v26  ;;  %v15755_v43 = vadd.f32 %v15152_v26, %v15389_v35  ;;  %v6614_v47 = vcombine.high %v6604_v60, %v6604_v60  ;;  %v15758_v24 = vrot.slane %v6590_v29, %v14251_v15 }
 0x22e   : > { %v6615_v25 = vcombine.high %v6611_v17, %v6611_v17  ;;  %v15761_v39 = vrot.slane %v6597_v12, %v14251_v15  ;;  %v15764_v48 = vrot.slane %v6604_v60, %v14251_v15  ;;  %v15767_v22 = vrot.slane %v6611_v17, %v14251_v15  ;;  %v13912_v60 = vld [vmem:[%s20400_s11] sm:$0xff]   ;;  %v15782_v17 = vpop.f32.mrb[105].mxu1 }
 0x22f   : > { %21237 = vst [vmem:[#allocation122_spill] sm:$0xff] %v15758_v24  ;;  %v7982_v32 = vcombine.high %v1667_v2, %v1667_v2  ;;  %v7989_v7 = vrot.slane %v1667_v2, %v14238_v10  ;;  %v15773_v35 = vrot.slane %v6612_v3, %v14251_v15  ;;  %v15776_v29 = vrot.slane %v6613_v56, %v14251_v15  ;;  %v15800_v27 = vpop.f32.mrb[106].mxu1 }
 0x230   : > { %21238 = vst [vmem:[#allocation123_spill] sm:$0xff] %v15761_v39  ;;  %21239 = vst [vmem:[#allocation124_spill] sm:$0xff] %v15764_v48  ;;  %v7494_v38 = vcombine.high %v1659_v34, %v1659_v34  ;;  %v7501_v12 = vrot.slane %v1659_v34, %v14238_v10  ;;  %v15790_v56 = vrot.slane %v6615_v25, %v14251_v15  ;;  %13693 = vmatprep.subr.bf16.mxu0 %v13912_v60 }
 0x231   : > { %21240 = vst [vmem:[#allocation125_spill] sm:$0xff] %v15767_v22  ;;  %21241 = vst [vmem:[#allocation126_spill] sm:$0xff] %v15773_v35  ;;  %v15785_v22 = vrot.slane %v6614_v47, %v14251_v15  ;;  %v7996_v2 = vrot.slane %v7982_v32, %v14238_v10  ;;  %v7997_v39 = vcombine.high %v7989_v7, %v7989_v7  ;;  %13694 = vmatpush3.bf16.msra.mxu0 %v13912_v60 }
 0x232   : > { %21242 = vst [vmem:[#allocation127_spill] sm:$0xff] %v15776_v29  ;;  %v8005_v3 = vrot.slane %v7989_v7, %v14238_v10  ;;  %21244 = vst [vmem:[#allocation129_spill] sm:$0xff] %v15790_v56  ;;  %v7508_v29 = vrot.slane %v7494_v38, %v14238_v10  ;;  %v7509_v34 = vcombine.high %v7501_v12, %v7501_v12 }
 0x233   : > { %21243 = vst [vmem:[#allocation128_spill] sm:$0xff] %v15785_v22  ;;  %v7517_v35 = vrot.slane %v7501_v12, %v14238_v10  ;;  %v7998_v48 = vcombine.high %v7996_v2, %v7996_v2  ;;  %v8012_v62 = vrot.slane %v7996_v2, %v14238_v10  ;;  %v8019_v47 = vrot.slane %v7997_v39, %v14238_v10 }
 0x234   : > { %v8027_v22 = vcombine.high %v8005_v3, %v8005_v3  ;;  %v7510_v32 = vcombine.high %v7508_v29, %v7508_v29  ;;  %v7524_v24 = vrot.slane %v7508_v29, %v14238_v10  ;;  %v7531_v7 = vrot.slane %v7509_v34, %v14238_v10 }
 0x235   : > { %v8031_v25 = vcombine.high %v1670_v14, %v1670_v14  ;;  %v8026_v56 = vrot.slane %v7998_v48, %v14238_v10  ;;  %v8028_v38 = vcombine.high %v8012_v62, %v8012_v62  ;;  %v8029_v33 = vcombine.high %v8019_v47, %v8019_v47 }
 0x236   : > { %v8038_v12 = vrot.slane %v1670_v14, %v14238_v10  ;;  %v15803_v2 = vrot.slane %v8005_v3, %v14251_v15  ;;  %v15806_v39 = vrot.slane %v8019_v47, %v14251_v15  ;;  %v7538_v60 = vrot.slane %v7510_v32, %v14238_v10 }
 0x237   : > { %v7539_v29 = vcombine.high %v7517_v35, %v7517_v35  ;;  %v8030_v6 = vcombine.high %v8026_v56, %v8026_v56  ;;  %v15810_v34 = vrot.slane %v8027_v22, %v14251_v15  ;;  %v15813_v48 = vrot.slane %v8029_v33, %v14251_v15 }
 0x238   : > { %21245 = vst [vmem:[#allocation130_spill] sm:$0xff] %v15803_v2  ;;  %21246 = vst [vmem:[#allocation131_spill] sm:$0xff] %v15806_v39  ;;  %v15816_v14 = vrot.slane %v8012_v62, %v14251_v15  ;;  %v15819_v55 = vrot.slane %v8026_v56, %v14251_v15  ;;  %v7540_v3 = vcombine.high %v7524_v24, %v7524_v24 }
 0x239   : > { %21247 = vst [vmem:[#allocation132_spill] sm:$0xff] %v15810_v34  ;;  %21248 = vst [vmem:[#allocation133_spill] sm:$0xff] %v15813_v48  ;;  %v7541_v41 = vcombine.high %v7531_v7, %v7531_v7  ;;  %v7542_v47 = vcombine.high %v7538_v60, %v7538_v60  ;;  %v15822_v39 = vrot.slane %v8028_v38, %v14251_v15 }
 0x23a   : > { %21249 = vst [vmem:[#allocation134_spill] sm:$0xff] %v15816_v14  ;;  %21250 = vst [vmem:[#allocation135_spill] sm:$0xff] %v15819_v55  ;;  %v15825_v32 = vrot.slane %v8030_v6, %v14251_v15  ;;  %v15828_v22 = vrot.slane %v7517_v35, %v14251_v15  ;;  %v15831_v33 = vrot.slane %v7531_v7, %v14251_v15 }
 0x23b   : > { %21251 = vst [vmem:[#allocation136_spill] sm:$0xff] %v15822_v39  ;;  %v15834_v62 = vrot.slane %v7539_v29, %v14251_v15  ;;  %v15837_v56 = vrot.slane %v7541_v41, %v14251_v15  ;;  %v15840_v55 = vrot.slane %v7524_v24, %v14251_v15  ;;  %v15843_v38 = vrot.slane %v7538_v60, %v14251_v15  ;;  %v15859_v39 = vpop.f32.mrb[107].mxu1 }
 0x23c   : > { %21252 = vst [vmem:[#allocation137_spill] sm:$0xff] %v15825_v32  ;;  %21253 = vst [vmem:[#allocation138_spill] sm:$0xff] %v15828_v22  ;;  %v8045_v6 = vrot.slane %v8031_v25, %v14238_v10  ;;  %v8046_v32 = vcombine.high %v8038_v12, %v8038_v12  ;;  %v8054_v35 = vrot.slane %v8038_v12, %v14238_v10 }
 0x23d   : > { %21254 = vst [vmem:[#allocation139_spill] sm:$0xff] %v15831_v33  ;;  %21255 = vst [vmem:[#allocation140_spill] sm:$0xff] %v15834_v62  ;;  %v7543_v7 = vcombine.high %v15755_v43, %v15755_v43  ;;  %v15850_v29 = vrot.slane %v7540_v3, %v14251_v15  ;;  %v15853_v41 = vrot.slane %v7542_v47, %v14251_v15 }
 0x23e   : > { %21256 = vst [vmem:[#allocation141_spill] sm:$0xff] %v15837_v56  ;;  %21257 = vst [vmem:[#allocation142_spill] sm:$0xff] %v15840_v55  ;;  %v7550_v24 = vrot.slane %v15755_v43, %v14238_v10  ;;  %v1683_v60 = vadd.f32 %v15425_v49, %v15152_v26  ;;  %v8047_v25 = vcombine.high %v8045_v6, %v8045_v6 }
 0x23f   : > { %21258 = vst [vmem:[#allocation143_spill] sm:$0xff] %v15843_v38  ;;  %21259 = vst [vmem:[#allocation144_spill] sm:$0xff] %v15850_v29  ;;  %v8061_v12 = vrot.slane %v8045_v6, %v14238_v10  ;;  %v8068_v38 = vrot.slane %v8046_v32, %v14238_v10  ;;  %v8076_v14 = vcombine.high %v8054_v35, %v8054_v35 }
 0x240   : > { %21260 = vst [vmem:[#allocation145_spill] sm:$0xff] %v15853_v41  ;;  %v7557_v3 = vrot.slane %v7543_v7, %v14238_v10  ;;  %v7558_v29 = vcombine.high %v7550_v24, %v7550_v24  ;;  %v7566_v47 = vrot.slane %v7550_v24, %v14238_v10  ;;  %v1675_v41 = vadd.f32 %v15152_v26, %v15429_v54 }
 0x241   : > { %v8075_v43 = vrot.slane %v8047_v25, %v14238_v10  ;;  %v8077_v55 = vcombine.high %v8061_v12, %v8061_v12  ;;  %v8078_v49 = vcombine.high %v8068_v38, %v8068_v38  ;;  %v15870_v48 = vadd.f32 %v15437_v5, %v15152_v26 }
 0x242   : > { %v15873_v6 = vrot.slane %v8054_v35, %v14251_v15  ;;  %v15876_v32 = vrot.slane %v8068_v38, %v14251_v15  ;;  %v7559_v7 = vcombine.high %v7557_v3, %v7557_v3  ;;  %v7573_v24 = vrot.slane %v7557_v3, %v14238_v10 }
 0x243   : > { %v8079_v56 = vcombine.high %v8075_v43, %v8075_v43  ;;  %v15880_v54 = vrot.slane %v8076_v14, %v14251_v15  ;;  %v15883_v25 = vrot.slane %v8078_v49, %v14251_v15  ;;  %v15886_v34 = vrot.slane %v8061_v12, %v14251_v15 }
 0x244   : > { %21261 = vst [vmem:[#allocation146_spill] sm:$0xff] %v15873_v6  ;;  %21262 = vst [vmem:[#allocation147_spill] sm:$0xff] %v15876_v32  ;;  %v7580_v26 = vrot.slane %v7558_v29, %v14238_v10  ;;  %v7587_v5 = vrot.slane %v7559_v7, %v14238_v10  ;;  %v7588_v35 = vcombine.high %v7566_v47, %v7566_v47 }
 0x245   : > { %21263 = vst [vmem:[#allocation148_spill] sm:$0xff] %v15880_v54  ;;  %21264 = vst [vmem:[#allocation149_spill] sm:$0xff] %v15883_v25  ;;  %v7589_v38 = vcombine.high %v7573_v24, %v7573_v24  ;;  %v15891_v32 = vrot.slane %v8075_v43, %v14251_v15  ;;  %v15894_v3 = vrot.slane %v8077_v55, %v14251_v15 }
 0x246   : > { %21265 = vst [vmem:[#allocation150_spill] sm:$0xff] %v15886_v34  ;;  %v15897_v14 = vrot.slane %v8079_v56, %v14251_v15  ;;  %v8958_v49 = vcombine.high %v1683_v60, %v1683_v60  ;;  %v7590_v25 = vcombine.high %v7580_v26, %v7580_v26  ;;  %v7591_v54 = vcombine.high %v7587_v5, %v7587_v5 }
 0x247   : > { %21266 = vst [vmem:[#allocation151_spill] sm:$0xff] %v15891_v32  ;;  %21267 = vst [vmem:[#allocation152_spill] sm:$0xff] %v15894_v3  ;;  %v15900_v12 = vrot.slane %v7566_v47, %v14251_v15  ;;  %v15903_v29 = vrot.slane %v7573_v24, %v14251_v15  ;;  %v15906_v7 = vrot.slane %v7580_v26, %v14251_v15  ;;  %v15920_v32 = vpop.f32.mrb[108].mxu1 }
 0x248   : > { %21268 = vst [vmem:[#allocation153_spill] sm:$0xff] %v15897_v14  ;;  %v15909_v43 = vrot.slane %v7588_v35, %v14251_v15  ;;  %v8965_v55 = vrot.slane %v1683_v60, %v14238_v10  ;;  %v8972_v56 = vrot.slane %v8958_v49, %v14238_v10  ;;  %v15914_v14 = vrot.slane %v7587_v5, %v14251_v15  ;;  %v15924_v60 = vpop.f32.mrb[109].mxu1 }
 0x249   : > { %21269 = vst [vmem:[#allocation154_spill] sm:$0xff] %v15900_v12  ;;  %21270 = vst [vmem:[#allocation155_spill] sm:$0xff] %v15903_v29  ;;  %v15917_v3 = vrot.slane %v7589_v38, %v14251_v15  ;;  %v8470_v47 = vcombine.high %v1675_v41, %v1675_v41  ;;  %v8477_v24 = vrot.slane %v1675_v41, %v14238_v10 }
 0x24a   : > { %21271 = vst [vmem:[#allocation156_spill] sm:$0xff] %v15906_v7  ;;  %21272 = vst [vmem:[#allocation157_spill] sm:$0xff] %v15909_v43  ;;  %v8973_v26 = vcombine.high %v8965_v55, %v8965_v55  ;;  %v8974_v34 = vcombine.high %v8972_v56, %v8972_v56  ;;  %v8981_v35 = vrot.slane %v8965_v55, %v14238_v10 }
 0x24b   : > { %21273 = vst [vmem:[#allocation158_spill] sm:$0xff] %v15914_v14  ;;  %21274 = vst [vmem:[#allocation159_spill] sm:$0xff] %v15917_v3  ;;  %v8988_v29 = vrot.slane %v8972_v56, %v14238_v10  ;;  %v15927_v49 = vrot.slane %v7590_v25, %v14251_v15  ;;  %v8484_v5 = vrot.slane %v8470_v47, %v14238_v10 }
 0x24c   : > { %v8485_v38 = vcombine.high %v8477_v24, %v8477_v24  ;;  %v8493_v3 = vrot.slane %v8477_v24, %v14238_v10  ;;  %v8995_v41 = vrot.slane %v8973_v26, %v14238_v10  ;;  %v9002_v14 = vrot.slane %v8974_v34, %v14238_v10 }
 0x24d   : > { %21275 = vst [vmem:[#allocation160_spill] sm:$0xff] %v15927_v49  ;;  %v9003_v43 = vcombine.high %v8981_v35, %v8981_v35  ;;  %v9004_v7 = vcombine.high %v8988_v29, %v8988_v29  ;;  %v15934_v55 = vrot.slane %v7591_v54, %v14251_v15  ;;  %v8486_v56 = vcombine.high %v8484_v5, %v8484_v5 }
 0x24e   : > { %v8500_v6 = vrot.slane %v8484_v5, %v14238_v10  ;;  %v9007_v25 = vcombine.high %v15870_v48, %v15870_v48  ;;  %v9005_v49 = vcombine.high %v8995_v41, %v8995_v41  ;;  %v9006_v47 = vcombine.high %v9002_v14, %v9002_v14 }
 0x24f   : > { %21276 = vst [vmem:[#allocation161_spill] sm:$0xff] %v15934_v55  ;;  %v15940_v12 = vrot.slane %v8981_v35, %v14251_v15  ;;  %v15943_v24 = vrot.slane %v8988_v29, %v14251_v15  ;;  %v15946_v34 = vrot.slane %v8995_v41, %v14251_v15  ;;  %v15949_v54 = vrot.slane %v9003_v43, %v14251_v15 }
 0x250   : > { %v8507_v26 = vrot.slane %v8485_v38, %v14238_v10  ;;  %v8514_v5 = vrot.slane %v8486_v56, %v14238_v10  ;;  %v15954_v55 = vrot.slane %v9002_v14, %v14251_v15  ;;  %v15957_v62 = vrot.slane %v9004_v7, %v14251_v15 }
 0x251   : > { %21277 = vst [vmem:[#allocation162_spill] sm:$0xff] %v15940_v12  ;;  %21278 = vst [vmem:[#allocation163_spill] sm:$0xff] %v15943_v24  ;;  %v8515_v35 = vcombine.high %v8493_v3, %v8493_v3  ;;  %v8516_v33 = vcombine.high %v8500_v6, %v8500_v6  ;;  %v15960_v29 = vrot.slane %v9005_v49, %v14251_v15 }
 0x252   : > { %21279 = vst [vmem:[#allocation164_spill] sm:$0xff] %v15946_v34  ;;  %21280 = vst [vmem:[#allocation165_spill] sm:$0xff] %v15949_v54  ;;  %v15963_v41 = vrot.slane %v9006_v47, %v14251_v15  ;;  %v8517_v43 = vcombine.high %v8507_v26, %v8507_v26  ;;  %v8518_v24 = vcombine.high %v8514_v5, %v8514_v5  ;;  %v15965_v54 = vpop.f32.mrb[110].mxu1 }
 0x253   : > { %21281 = vst [vmem:[#allocation166_spill] sm:$0xff] %v15954_v55  ;;  %21282 = vst [vmem:[#allocation167_spill] sm:$0xff] %v15957_v62  ;;  %v15968_v38 = vrot.slane %v8493_v3, %v14251_v15  ;;  %v15971_v14 = vrot.slane %v8507_v26, %v14251_v15  ;;  %v15974_v7 = vrot.slane %v8515_v35, %v14251_v15 }
 0x254   : > { %21283 = vst [vmem:[#allocation168_spill] sm:$0xff] %v15960_v29  ;;  %21284 = vst [vmem:[#allocation169_spill] sm:$0xff] %v15963_v41  ;;  %v15977_v56 = vrot.slane %v8500_v6, %v14251_v15  ;;  %v15980_v49 = vrot.slane %v8514_v5, %v14251_v15  ;;  %v15983_v47 = vrot.slane %v8516_v33, %v14251_v15  ;;  %v15997_v6 = vld [vmem:[%s20395_s6] ss:$0 sm:$0xff] }
 0x255   : > { %21285 = vst [vmem:[#allocation170_spill] sm:$0xff] %v15968_v38  ;;  %21286 = vst [vmem:[#allocation171_spill] sm:$0xff] %v15971_v14  ;;  %v9014_v41 = vrot.slane %v15870_v48, %v14238_v10  ;;  %v9021_v3 = vrot.slane %v9007_v25, %v14238_v10  ;;  %v15989_v26 = vrot.slane %v8517_v43, %v14251_v15 }
 0x256   : > { %21287 = vst [vmem:[#allocation172_spill] sm:$0xff] %v15974_v7  ;;  %21288 = vst [vmem:[#allocation173_spill] sm:$0xff] %v15977_v56  ;;  %v15992_v35 = vrot.slane %v8518_v24, %v14251_v15  ;;  %v1678_v33 = vadd.f32 %v15997_v6, %v15446_v50  ;;  %v1699_v5 = vadd.f32 %v15997_v6, %v15480_v18  ;;  %v16012_v50 = vpop.f32.mrb[111].mxu1 }
 0x257   : > { %21289 = vst [vmem:[#allocation174_spill] sm:$0xff] %v15980_v49  ;;  %21290 = vst [vmem:[#allocation175_spill] sm:$0xff] %v15983_v47  ;;  %v9022_v48 = vcombine.high %v9014_v41, %v9014_v41  ;;  %v9023_v62 = vcombine.high %v9021_v3, %v9021_v3  ;;  %v9030_v25 = vrot.slane %v9014_v41, %v14238_v10 }
 0x258   : > { %21291 = vst [vmem:[#allocation176_spill] sm:$0xff] %v15989_v26  ;;  %21292 = vst [vmem:[#allocation177_spill] sm:$0xff] %v15992_v35  ;;  %v9037_v43 = vrot.slane %v9021_v3, %v14238_v10  ;;  %v8519_v47 = vcombine.high %v1678_v33, %v1678_v33  ;;  %v8526_v24 = vrot.slane %v1678_v33, %v14238_v10 }
 0x259   : > { %v1691_v35 = vadd.f32 %v15997_v6, %v15487_v44  ;;  %v16010_v55 = vadd.f32 %v15997_v6, %v15494_v30  ;;  %v9044_v18 = vrot.slane %v9022_v48, %v14238_v10  ;;  %v9051_v49 = vrot.slane %v9023_v62, %v14238_v10 }
 0x25a   : > { %v9052_v56 = vcombine.high %v9030_v25, %v9030_v25  ;;  %v9053_v41 = vcombine.high %v9037_v43, %v9037_v43  ;;  %v8533_v3 = vrot.slane %v8519_v47, %v14238_v10  ;;  %v8534_v29 = vcombine.high %v8526_v24, %v8526_v24 }
 0x25b   : > { %v9934_v26 = vcombine.high %v1699_v5, %v1699_v5  ;;  %v9941_v33 = vrot.slane %v1699_v5, %v14238_v10  ;;  %v9054_v7 = vcombine.high %v9044_v18, %v9044_v18  ;;  %v9055_v44 = vcombine.high %v9051_v49, %v9051_v49 }
 0x25c   : > { %v16019_v34 = vrot.slane %v9030_v25, %v14251_v15  ;;  %v16022_v30 = vrot.slane %v9037_v43, %v14251_v15  ;;  %v16025_v48 = vrot.slane %v9044_v18, %v14251_v15  ;;  %v16028_v62 = vrot.slane %v9052_v56, %v14251_v15 }
 0x25d   : > { %v8535_v14 = vcombine.high %v8533_v3, %v8533_v3  ;;  %v8542_v47 = vrot.slane %v8526_v24, %v14238_v10  ;;  %v16032_v0 = vrot.slane %v9051_v49, %v14251_v15  ;;  %v16035_v5 = vrot.slane %v9053_v41, %v14251_v15 }
 0x25e   : > { %21293 = vst [vmem:[#allocation178_spill] sm:$0xff] %v16019_v34  ;;  %21294 = vst [vmem:[#allocation179_spill] sm:$0xff] %v16022_v30  ;;  %v8549_v25 = vrot.slane %v8533_v3, %v14238_v10  ;;  %v8556_v43 = vrot.slane %v8534_v29, %v14238_v10  ;;  %v16040_v30 = vrot.slane %v9054_v7, %v14251_v15 }
 0x25f   : > { %21295 = vst [vmem:[#allocation180_spill] sm:$0xff] %v16025_v48  ;;  %21296 = vst [vmem:[#allocation181_spill] sm:$0xff] %v16028_v62  ;;  %v8563_v18 = vrot.slane %v8535_v14, %v14238_v10  ;;  %v8564_v56 = vcombine.high %v8542_v47, %v8542_v47  ;;  %v9948_v62 = vrot.slane %v9934_v26, %v14238_v10  ;;  %v16056_v14 = vpop.f32.mrb[112].mxu1 }
 0x260   : > { %21297 = vst [vmem:[#allocation182_spill] sm:$0xff] %v16032_v0  ;;  %21298 = vst [vmem:[#allocation183_spill] sm:$0xff] %v16035_v5  ;;  %v16045_v24 = vrot.slane %v9055_v44, %v14251_v15  ;;  %v8565_v49 = vcombine.high %v8549_v25, %v8549_v25  ;;  %v8566_v0 = vcombine.high %v8556_v43, %v8556_v43 }
 0x261   : > { %21299 = vst [vmem:[#allocation184_spill] sm:$0xff] %v16040_v30  ;;  %v16048_v41 = vrot.slane %v8542_v47, %v14251_v15  ;;  %v8567_v5 = vcombine.high %v8563_v18, %v8563_v18  ;;  %v16051_v3 = vrot.slane %v8556_v43, %v14251_v15  ;;  %v16054_v29 = vrot.slane %v8549_v25, %v14251_v15 }
 0x262   : > { %21300 = vst [vmem:[#allocation185_spill] sm:$0xff] %v16045_v24  ;;  %v9949_v7 = vcombine.high %v9941_v33, %v9941_v33  ;;  %v16059_v26 = vrot.slane %v8564_v56, %v14251_v15  ;;  %v16062_v44 = vrot.slane %v8563_v18, %v14251_v15  ;;  %v9950_v24 = vcombine.high %v9948_v62, %v9948_v62 }
 0x263   : > { %21301 = vst [vmem:[#allocation186_spill] sm:$0xff] %v16048_v41  ;;  %21302 = vst [vmem:[#allocation187_spill] sm:$0xff] %v16051_v3  ;;  %v9957_v47 = vrot.slane %v9941_v33, %v14238_v10  ;;  %v16066_v30 = vrot.slane %v8566_v0, %v14251_v15  ;;  %v9964_v43 = vrot.slane %v9948_v62, %v14238_v10 }
 0x264   : > { %21303 = vst [vmem:[#allocation188_spill] sm:$0xff] %v16054_v29  ;;  %21304 = vst [vmem:[#allocation189_spill] sm:$0xff] %v16059_v26  ;;  %v9971_v25 = vrot.slane %v9949_v7, %v14238_v10  ;;  %v9446_v29 = vcombine.high %v1691_v35, %v1691_v35  ;;  %v16071_v48 = vrot.slane %v8565_v49, %v14251_v15 }
 0x265   : > { %21305 = vst [vmem:[#allocation190_spill] sm:$0xff] %v16062_v44  ;;  %21306 = vst [vmem:[#allocation191_spill] sm:$0xff] %v16066_v30  ;;  %v9978_v56 = vrot.slane %v9950_v24, %v14238_v10  ;;  %v9979_v26 = vcombine.high %v9957_v47, %v9957_v47  ;;  %v9453_v18 = vrot.slane %v1691_v35, %v14238_v10  ;;  %v16075_v44 = vpop.f32.mrb[113].mxu1 }
 0x266   : > { %21307 = vst [vmem:[#allocation192_spill] sm:$0xff] %v16071_v48  ;;  %v16078_v33 = vrot.slane %v8567_v5, %v14251_v15  ;;  %v9980_v0 = vcombine.high %v9964_v43, %v9964_v43  ;;  %v9981_v30 = vcombine.high %v9971_v25, %v9971_v25  ;;  %v16081_v62 = vrot.slane %v9957_v47, %v14251_v15  ;;  %v16103_v41 = vpop.f32.mrb[114].mxu1 }
 0x267   : > { %v9982_v7 = vcombine.high %v9978_v56, %v9978_v56  ;;  %v16084_v3 = vrot.slane %v9971_v25, %v14251_v15  ;;  %v16087_v49 = vrot.slane %v9964_v43, %v14251_v15  ;;  %v9460_v24 = vrot.slane %v9446_v29, %v14238_v10 }
 0x268   : > { %21308 = vst [vmem:[#allocation193_spill] sm:$0xff] %v16078_v33  ;;  %21309 = vst [vmem:[#allocation194_spill] sm:$0xff] %v16081_v62  ;;  %v16091_v35 = vrot.slane %v9979_v26, %v14251_v15  ;;  %v16094_v5 = vrot.slane %v9978_v56, %v14251_v15  ;;  %v9461_v33 = vcombine.high %v9453_v18, %v9453_v18 }
 0x269   : > { %21310 = vst [vmem:[#allocation195_spill] sm:$0xff] %v16084_v3  ;;  %21311 = vst [vmem:[#allocation196_spill] sm:$0xff] %v16087_v49  ;;  %v9469_v48 = vrot.slane %v9453_v18, %v14238_v10  ;;  %v16098_v47 = vrot.slane %v9981_v30, %v14251_v15  ;;  %v9462_v34 = vcombine.high %v9460_v24, %v9460_v24 }
 0x26a   : > { %21312 = vst [vmem:[#allocation197_spill] sm:$0xff] %v16091_v35  ;;  %21313 = vst [vmem:[#allocation198_spill] sm:$0xff] %v16094_v5  ;;  %v9476_v25 = vrot.slane %v9460_v24, %v14238_v10  ;;  %v9983_v43 = vcombine.high %v16010_v55, %v16010_v55  ;;  %v16106_v29 = vrot.slane %v9980_v0, %v14251_v15 }
 0x26b   : > { %21314 = vst [vmem:[#allocation199_spill] sm:$0xff] %v16098_v47  ;;  %v9483_v26 = vrot.slane %v9461_v33, %v14238_v10  ;;  %v9491_v56 = vcombine.high %v9469_v48, %v9469_v48  ;;  %v9990_v18 = vrot.slane %v16010_v55, %v14238_v10  ;;  %v16112_v30 = vrot.slane %v9982_v7, %v14251_v15 }
 0x26c   : > { %21315 = vst [vmem:[#allocation200_spill] sm:$0xff] %v16106_v29  ;;  %v9490_v5 = vrot.slane %v9462_v34, %v14238_v10  ;;  %v9492_v24 = vcombine.high %v9476_v25, %v9476_v25  ;;  %v9997_v49 = vrot.slane %v9983_v43, %v14238_v10  ;;  %v16117_v35 = vrot.slane %v9469_v48, %v14251_v15 }
 0x26d   : > { %21316 = vst [vmem:[#allocation201_spill] sm:$0xff] %v16112_v30  ;;  %v9493_v47 = vcombine.high %v9483_v26, %v9483_v26  ;;  %v16120_v0 = vrot.slane %v9476_v25, %v14251_v15  ;;  %v9998_v33 = vcombine.high %v9990_v18, %v9990_v18  ;;  %v16123_v3 = vrot.slane %v9483_v26, %v14251_v15 }
 0x26e   : > { %21317 = vst [vmem:[#allocation202_spill] sm:$0xff] %v16117_v35  ;;  %v9494_v29 = vcombine.high %v9490_v5, %v9490_v5  ;;  %v16126_v55 = vrot.slane %v9491_v56, %v14251_v15  ;;  %v9999_v7 = vcombine.high %v9997_v49, %v9997_v49  ;;  %v16129_v34 = vrot.slane %v9490_v5, %v14251_v15 }
 0x26f   : > { %21318 = vst [vmem:[#allocation203_spill] sm:$0xff] %v16120_v0  ;;  %21319 = vst [vmem:[#allocation204_spill] sm:$0xff] %v16123_v3  ;;  %v10006_v43 = vrot.slane %v9990_v18, %v14238_v10  ;;  %v10013_v48 = vrot.slane %v9997_v49, %v14238_v10  ;;  %v10020_v30 = vrot.slane %v9998_v33, %v14238_v10  ;;  %v16145_v49 = vpop.f32.mrb[115].mxu1 }
 0x270   : > { %21320 = vst [vmem:[#allocation205_spill] sm:$0xff] %v16126_v55  ;;  %21321 = vst [vmem:[#allocation206_spill] sm:$0xff] %v16129_v34  ;;  %v16135_v25 = vrot.slane %v9492_v24, %v14251_v15  ;;  %v10027_v0 = vrot.slane %v9999_v7, %v14238_v10  ;;  %v1694_v26 = vadd.f32 %v15997_v6, %v15502_v23  ;;  %v16190_v3 = vpop.f32.mrb[116].mxu1 }
 0x271   : > { %v1715_v56 = vadd.f32 %v15997_v6, %v15535_v61  ;;  %v16143_v5 = vrot.slane %v9493_v47, %v14251_v15  ;;  %v10028_v34 = vcombine.high %v10006_v43, %v10006_v43  ;;  %v10029_v18 = vcombine.high %v10013_v48, %v10013_v48  ;;  %v16209_v51 = vpop.f32.mrb[117].mxu1 }
 0x272   : > { %21322 = vst [vmem:[#allocation207_spill] sm:$0xff] %v16135_v25  ;;  %v10030_v55 = vcombine.high %v10020_v30, %v10020_v30  ;;  %v16148_v33 = vrot.slane %v9494_v29, %v14251_v15  ;;  %v10031_v24 = vcombine.high %v10027_v0, %v10027_v0  ;;  %v16151_v7 = vrot.slane %v10006_v43, %v14251_v15 }
 0x273   : > { %21323 = vst [vmem:[#allocation208_spill] sm:$0xff] %v16143_v5  ;;  %v16154_v23 = vrot.slane %v10020_v30, %v14251_v15  ;;  %v16157_v61 = vrot.slane %v10028_v34, %v14251_v15  ;;  %v16160_v47 = vrot.slane %v10013_v48, %v14251_v15  ;;  %v16163_v25 = vrot.slane %v10027_v0, %v14251_v15 }
 0x274   : > { %21324 = vst [vmem:[#allocation209_spill] sm:$0xff] %v16148_v33  ;;  %21325 = vst [vmem:[#allocation210_spill] sm:$0xff] %v16151_v7  ;;  %v9495_v5 = vcombine.high %v1694_v26, %v1694_v26  ;;  %v16166_v29 = vrot.slane %v10030_v55, %v14251_v15  ;;  %v9502_v33 = vrot.slane %v1694_v26, %v14238_v10 }
 0x275   : > { %21326 = vst [vmem:[#allocation211_spill] sm:$0xff] %v16154_v23  ;;  %21327 = vst [vmem:[#allocation212_spill] sm:$0xff] %v16157_v61  ;;  %v10910_v43 = vcombine.high %v1715_v56, %v1715_v56  ;;  %v10917_v7 = vrot.slane %v1715_v56, %v14238_v10  ;;  %v16171_v30 = vrot.slane %v10029_v18, %v14251_v15 }
 0x276   : > { %21328 = vst [vmem:[#allocation213_spill] sm:$0xff] %v16160_v47  ;;  %21329 = vst [vmem:[#allocation214_spill] sm:$0xff] %v16163_v25  ;;  %v16174_v34 = vrot.slane %v10031_v24, %v14251_v15  ;;  %v9509_v48 = vrot.slane %v9495_v5, %v14238_v10  ;;  %v1707_v0 = vadd.f32 %v15997_v6, %v15543_v19 }
 0x277   : > { %21330 = vst [vmem:[#allocation215_spill] sm:$0xff] %v16166_v29  ;;  %21331 = vst [vmem:[#allocation216_spill] sm:$0xff] %v16171_v30  ;;  %v9510_v25 = vcombine.high %v9502_v33, %v9502_v33  ;;  %v9518_v55 = vrot.slane %v9502_v33, %v14238_v10  ;;  %v10924_v47 = vrot.slane %v10910_v43, %v14238_v10 }
 0x278   : > { %21332 = vst [vmem:[#allocation217_spill] sm:$0xff] %v16174_v34  ;;  %v10925_v26 = vcombine.high %v10917_v7, %v10917_v7  ;;  %v9511_v29 = vcombine.high %v9509_v48, %v9509_v48  ;;  %v9525_v56 = vrot.slane %v9509_v48, %v14238_v10  ;;  %v1718_v18 = vadd.f32 %v15997_v6, %v15551_v37 }
 0x279   : > { %v1710_v24 = vadd.f32 %v15997_v6, %v15559_v20  ;;  %v9532_v5 = vrot.slane %v9510_v25, %v14238_v10  ;;  %v9540_v34 = vcombine.high %v9518_v55, %v9518_v55  ;;  %v10926_v30 = vcombine.high %v10924_v47, %v10924_v47 }
 0x27a   : > { %v10933_v19 = vrot.slane %v10917_v7, %v14238_v10  ;;  %v9539_v33 = vrot.slane %v9511_v29, %v14238_v10  ;;  %v9541_v61 = vcombine.high %v9525_v56, %v9525_v56  ;;  %v10940_v43 = vrot.slane %v10924_v47, %v14238_v10 }
 0x27b   : > { %v10422_v23 = vcombine.high %v1707_v0, %v1707_v0  ;;  %v9542_v48 = vcombine.high %v9532_v5, %v9532_v5  ;;  %v16193_v37 = vrot.slane %v9518_v55, %v14251_v15  ;;  %v16196_v20 = vrot.slane %v9525_v56, %v14251_v15 }
 0x27c   : > { %v10947_v25 = vrot.slane %v10925_v26, %v14238_v10  ;;  %v9543_v36 = vcombine.high %v9539_v33, %v9539_v33  ;;  %v16200_v7 = vrot.slane %v9532_v5, %v14251_v15  ;;  %v16203_v29 = vrot.slane %v9540_v34, %v14251_v15 }
 0x27d   : > { %21333 = vst [vmem:[#allocation218_spill] sm:$0xff] %v16193_v37  ;;  %21334 = vst [vmem:[#allocation219_spill] sm:$0xff] %v16196_v20  ;;  %v10954_v47 = vrot.slane %v10926_v30, %v14238_v10  ;;  %v16207_v1 = vrot.slane %v9539_v33, %v14251_v15  ;;  %v10955_v21 = vcombine.high %v10933_v19, %v10933_v19 }
 0x27e   : > { %21335 = vst [vmem:[#allocation220_spill] sm:$0xff] %v16200_v7  ;;  %21336 = vst [vmem:[#allocation221_spill] sm:$0xff] %v16203_v29  ;;  %v10956_v55 = vcombine.high %v10940_v43, %v10940_v43  ;;  %v10957_v37 = vcombine.high %v10947_v25, %v10947_v25  ;;  %v16212_v56 = vrot.slane %v9542_v48, %v14251_v15 }
 0x27f   : > { %21337 = vst [vmem:[#allocation222_spill] sm:$0xff] %v16207_v1  ;;  %v16215_v26 = vrot.slane %v9541_v61, %v14251_v15  ;;  %v16218_v5 = vrot.slane %v9543_v36, %v14251_v15  ;;  %v10958_v34 = vcombine.high %v10954_v47, %v10954_v47  ;;  %v16221_v30 = vrot.slane %v10933_v19, %v14251_v15 }
 0x280   : > { %21338 = vst [vmem:[#allocation223_spill] sm:$0xff] %v16212_v56  ;;  %v16224_v33 = vrot.slane %v10947_v25, %v14251_v15  ;;  %v16227_v1 = vrot.slane %v10955_v21, %v14251_v15  ;;  %v16230_v20 = vrot.slane %v10957_v37, %v14251_v15  ;;  %v16233_v48 = vrot.slane %v10940_v43, %v14251_v15  ;;  %v16244_v56 = vpop.f32.mrb[118].mxu1 }
 0x281   : > { %21339 = vst [vmem:[#allocation224_spill] sm:$0xff] %v16215_v26  ;;  %21340 = vst [vmem:[#allocation225_spill] sm:$0xff] %v16218_v5  ;;  %v16236_v61 = vrot.slane %v10954_v47, %v14251_v15  ;;  %v10429_v36 = vrot.slane %v1707_v0, %v14238_v10  ;;  %v10436_v19 = vrot.slane %v10422_v23, %v14238_v10 }
 0x282   : > { %21341 = vst [vmem:[#allocation226_spill] sm:$0xff] %v16221_v30  ;;  %21342 = vst [vmem:[#allocation227_spill] sm:$0xff] %v16224_v33  ;;  %v16241_v5 = vrot.slane %v10956_v55, %v14251_v15  ;;  %v10959_v25 = vcombine.high %v1718_v18, %v1718_v18  ;;  %v10966_v21 = vrot.slane %v1718_v18, %v14238_v10 }
 0x283   : > { %21343 = vst [vmem:[#allocation228_spill] sm:$0xff] %v16227_v1  ;;  %21344 = vst [vmem:[#allocation229_spill] sm:$0xff] %v16230_v20  ;;  %v10471_v26 = vcombine.high %v1710_v24, %v1710_v24  ;;  %v10437_v37 = vcombine.high %v10429_v36, %v10429_v36  ;;  %v10438_v29 = vcombine.high %v10436_v19, %v10436_v19 }
 0x284   : > { %21345 = vst [vmem:[#allocation230_spill] sm:$0xff] %v16233_v48  ;;  %21346 = vst [vmem:[#allocation231_spill] sm:$0xff] %v16236_v61  ;;  %v10445_v43 = vrot.slane %v10429_v36, %v14238_v10  ;;  %v10452_v47 = vrot.slane %v10436_v19, %v14238_v10  ;;  %v16249_v7 = vrot.slane %v10958_v34, %v14251_v15 }
 0x285   : > { %21347 = vst [vmem:[#allocation232_spill] sm:$0xff] %v16241_v5  ;;  %v10973_v23 = vrot.slane %v10959_v25, %v14238_v10  ;;  %v10974_v0 = vcombine.high %v10966_v21, %v10966_v21  ;;  %v10982_v55 = vrot.slane %v10966_v21, %v14238_v10  ;;  %v10459_v5 = vrot.slane %v10437_v37, %v14238_v10 }
 0x286   : > { %21348 = vst [vmem:[#allocation233_spill] sm:$0xff] %v16249_v7  ;;  %v10466_v18 = vrot.slane %v10438_v29, %v14238_v10  ;;  %v10467_v61 = vcombine.high %v10445_v43, %v10445_v43  ;;  %v10468_v48 = vcombine.high %v10452_v47, %v10452_v47  ;;  %v10478_v36 = vrot.slane %v1710_v24, %v14238_v10 }
 0x287   : > { %v10975_v20 = vcombine.high %v10973_v23, %v10973_v23  ;;  %v10989_v1 = vrot.slane %v10973_v23, %v14238_v10  ;;  %v10485_v19 = vrot.slane %v10471_v26, %v14238_v10  ;;  %v10469_v34 = vcombine.high %v10459_v5, %v10459_v5 }
 0x288   : > { %v10470_v7 = vcombine.high %v10466_v18, %v10466_v18  ;;  %v16259_v25 = vrot.slane %v10445_v43, %v14251_v15  ;;  %v16262_v21 = vrot.slane %v10452_v47, %v14251_v15  ;;  %v16265_v37 = vrot.slane %v10459_v5, %v14251_v15 }
 0x289   : > { %v16268_v29 = vrot.slane %v10467_v61, %v14251_v15  ;;  %v10996_v23 = vrot.slane %v10974_v0, %v14238_v10  ;;  %v11003_v24 = vrot.slane %v10975_v20, %v14238_v10  ;;  %v16273_v26 = vrot.slane %v10466_v18, %v14251_v15 }
 0x28a   : > { %21349 = vst [vmem:[#allocation234_spill] sm:$0xff] %v16259_v25  ;;  %21350 = vst [vmem:[#allocation235_spill] sm:$0xff] %v16262_v21  ;;  %v16276_v33 = vrot.slane %v10468_v48, %v14251_v15  ;;  %v11004_v43 = vcombine.high %v10982_v55, %v10982_v55  ;;  %v11005_v30 = vcombine.high %v10989_v1, %v10989_v1 }
 0x28b   : > { %21351 = vst [vmem:[#allocation236_spill] sm:$0xff] %v16265_v37  ;;  %21352 = vst [vmem:[#allocation237_spill] sm:$0xff] %v16268_v29  ;;  %v16279_v47 = vrot.slane %v10469_v34, %v14251_v15  ;;  %v16282_v5 = vrot.slane %v10470_v7, %v14251_v15  ;;  %v11006_v61 = vcombine.high %v10996_v23, %v10996_v23  ;;  %v16284_v29 = vpop.f32.mrb[119].mxu1 }
 0x28c   : > { %21353 = vst [vmem:[#allocation238_spill] sm:$0xff] %v16273_v26  ;;  %21354 = vst [vmem:[#allocation239_spill] sm:$0xff] %v16276_v33  ;;  %v11007_v21 = vcombine.high %v11003_v24, %v11003_v24  ;;  %v16287_v20 = vrot.slane %v10982_v55, %v14251_v15  ;;  %v16290_v0 = vrot.slane %v10996_v23, %v14251_v15 }
 0x28d   : > { %21355 = vst [vmem:[#allocation240_spill] sm:$0xff] %v16279_v47  ;;  %21356 = vst [vmem:[#allocation241_spill] sm:$0xff] %v16282_v5  ;;  %v16293_v48 = vrot.slane %v11004_v43, %v14251_v15  ;;  %v16296_v18 = vrot.slane %v10989_v1, %v14251_v15  ;;  %v16299_v34 = vrot.slane %v11003_v24, %v14251_v15 }
 0x28e   : > { %21357 = vst [vmem:[#allocation242_spill] sm:$0xff] %v16287_v20  ;;  %21358 = vst [vmem:[#allocation243_spill] sm:$0xff] %v16290_v0  ;;  %v16302_v7 = vrot.slane %v11005_v30, %v14251_v15  ;;  %v10486_v5 = vcombine.high %v10478_v36, %v10478_v36  ;;  %v10487_v33 = vcombine.high %v10485_v19, %v10485_v19 }
 0x28f   : > { %21359 = vst [vmem:[#allocation244_spill] sm:$0xff] %v16293_v48  ;;  %21360 = vst [vmem:[#allocation245_spill] sm:$0xff] %v16296_v18  ;;  %v16305_v55 = vrot.slane %v11006_v61, %v14251_v15  ;;  %v10494_v23 = vrot.slane %v10478_v36, %v14238_v10  ;;  %v10501_v0 = vrot.slane %v10485_v19, %v14238_v10 }
 0x290   : > { %21361 = vst [vmem:[#allocation246_spill] sm:$0xff] %v16299_v34  ;;  %21362 = vst [vmem:[#allocation247_spill] sm:$0xff] %v16302_v7  ;;  %v1731_v43 = vadd.f32 %v15997_v6, %v15595_v46  ;;  %v16312_v1 = vrot.slane %v11007_v21, %v14251_v15  ;;  %v10508_v24 = vrot.slane %v10486_v5, %v14238_v10 }
 0x291   : > { %21363 = vst [vmem:[#allocation248_spill] sm:$0xff] %v16305_v55  ;;  %v10515_v30 = vrot.slane %v10487_v33, %v14238_v10  ;;  %v1723_v7 = vadd.f32 %v15997_v6, %v15606_v4  ;;  %v10516_v34 = vcombine.high %v10494_v23, %v10494_v23  ;;  %v10517_v61 = vcombine.high %v10501_v0, %v10501_v0  ;;  %v16337_v55 = vpop.f32.mrb[120].mxu1 }
 0x292   : > { %21364 = vst [vmem:[#allocation249_spill] sm:$0xff] %v16312_v1  ;;  %v1734_v36 = vadd.f32 %v15997_v6, %v15610_v28  ;;  %v16322_v19 = vadd.f32 %v15997_v6, %v15617_v16  ;;  %v10518_v46 = vcombine.high %v10508_v24, %v10508_v24  ;;  %v16325_v21 = vrot.slane %v10494_v23, %v14251_v15 }
 0x293   : > { %v10519_v18 = vcombine.high %v10515_v30, %v10515_v30  ;;  %v16328_v5 = vrot.slane %v10501_v0, %v14251_v15  ;;  %v16331_v33 = vrot.slane %v10508_v24, %v14251_v15  ;;  %v16334_v4 = vrot.slane %v10515_v30, %v14251_v15 }
 0x294   : > { %21365 = vst [vmem:[#allocation250_spill] sm:$0xff] %v16325_v21  ;;  %v4176_v1 = vcombine.high %v1731_v43, %v1731_v43  ;;  %v4183_v28 = vrot.slane %v1731_v43, %v14238_v10  ;;  %v16340_v16 = vrot.slane %v10516_v34, %v14251_v15  ;;  %v16343_v23 = vrot.slane %v10517_v61, %v14251_v15 }
 0x295   : > { %21366 = vst [vmem:[#allocation251_spill] sm:$0xff] %v16328_v5  ;;  %21367 = vst [vmem:[#allocation252_spill] sm:$0xff] %v16331_v33  ;;  %v3688_v48 = vcombine.high %v1723_v7, %v1723_v7  ;;  %v3695_v0 = vrot.slane %v1723_v7, %v14238_v10  ;;  %v16346_v5 = vpop.f32.mrb[121].mxu1  ;;  %v16349_v24 = vrot.slane %v10518_v46, %v14251_v15 }
 0x296   : > { %21368 = vst [vmem:[#allocation253_spill] sm:$0xff] %v16334_v4  ;;  %21369 = vst [vmem:[#allocation254_spill] sm:$0xff] %v16340_v16  ;;  %v4190_v30 = vrot.slane %v4176_v1, %v14238_v10  ;;  %v4191_v4 = vcombine.high %v4183_v28, %v4183_v28  ;;  %v4199_v43 = vrot.slane %v4183_v28, %v14238_v10  ;;  %v16364_v47 = vpop.f32.mrb[122].mxu1 }
 0x297   : > { %21370 = vst [vmem:[#allocation255_spill] sm:$0xff] %v16343_v23  ;;  %21371 = vst [vmem:[#allocation256_spill] sm:$0xff] %v16349_v24  ;;  %v16354_v33 = vrot.slane %v10519_v18, %v14251_v15  ;;  %v3702_v34 = vrot.slane %v3688_v48, %v14238_v10  ;;  %v3703_v61 = vcombine.high %v3695_v0, %v3695_v0 }
 0x298   : > { %v3711_v23 = vrot.slane %v3695_v0, %v14238_v10  ;;  %v4192_v16 = vcombine.high %v4190_v30, %v4190_v30  ;;  %v4206_v7 = vrot.slane %v4190_v30, %v14238_v10  ;;  %v4213_v20 = vrot.slane %v4191_v4, %v14238_v10 }
 0x299   : > { %21372 = vst [vmem:[#allocation257_spill] sm:$0xff] %v16354_v33  ;;  %v4221_v46 = vcombine.high %v4199_v43, %v4199_v43  ;;  %v3704_v24 = vcombine.high %v3702_v34, %v3702_v34  ;;  %v3718_v1 = vrot.slane %v3702_v34, %v14238_v10  ;;  %v3725_v21 = vrot.slane %v3703_v61, %v14238_v10 }
 0x29a   : > { %v4225_v28 = vcombine.high %v1734_v36, %v1734_v36  ;;  %v4220_v18 = vrot.slane %v4192_v16, %v14238_v10  ;;  %v4222_v33 = vcombine.high %v4206_v7, %v4206_v7  ;;  %v4223_v26 = vcombine.high %v4213_v20, %v4213_v20 }
 0x29b   : > { %v4232_v48 = vrot.slane %v1734_v36, %v14238_v10  ;;  %v16367_v0 = vrot.slane %v4199_v43, %v14251_v15  ;;  %v16370_v4 = vrot.slane %v4213_v20, %v14251_v15  ;;  %v3732_v30 = vrot.slane %v3704_v24, %v14238_v10 }
 0x29c   : > { %v3733_v34 = vcombine.high %v3711_v23, %v3711_v23  ;;  %v4224_v37 = vcombine.high %v4220_v18, %v4220_v18  ;;  %v16374_v61 = vrot.slane %v4221_v46, %v14251_v15  ;;  %v16377_v16 = vrot.slane %v4223_v26, %v14251_v15 }
 0x29d   : > { %21373 = vst [vmem:[#allocation258_spill] sm:$0xff] %v16367_v0  ;;  %21374 = vst [vmem:[#allocation259_spill] sm:$0xff] %v16370_v4  ;;  %v16380_v36 = vrot.slane %v4206_v7, %v14251_v15  ;;  %v16383_v59 = vrot.slane %v4220_v18, %v14251_v15  ;;  %v3734_v43 = vcombine.high %v3718_v1, %v3718_v1 }
 0x29e   : > { %21375 = vst [vmem:[#allocation260_spill] sm:$0xff] %v16374_v61  ;;  %21376 = vst [vmem:[#allocation261_spill] sm:$0xff] %v16377_v16  ;;  %v3735_v0 = vcombine.high %v3725_v21, %v3725_v21  ;;  %v3736_v20 = vcombine.high %v3732_v30, %v3732_v30  ;;  %v16386_v4 = vrot.slane %v4222_v33, %v14251_v15 }
 0x29f   : > { %21377 = vst [vmem:[#allocation262_spill] sm:$0xff] %v16380_v36  ;;  %21378 = vst [vmem:[#allocation263_spill] sm:$0xff] %v16383_v59  ;;  %v16389_v24 = vrot.slane %v4224_v37, %v14251_v15  ;;  %v16392_v46 = vrot.slane %v3711_v23, %v14251_v15  ;;  %v16395_v26 = vrot.slane %v3725_v21, %v14251_v15 }
 0x2a0   : > { %21379 = vst [vmem:[#allocation264_spill] sm:$0xff] %v16386_v4  ;;  %v16398_v7 = vrot.slane %v3733_v34, %v14251_v15  ;;  %v16401_v18 = vrot.slane %v3735_v0, %v14251_v15  ;;  %v16404_v59 = vrot.slane %v3718_v1, %v14251_v15  ;;  %v16407_v33 = vrot.slane %v3732_v30, %v14251_v15  ;;  %v16423_v4 = vpop.f32.mrb[123].mxu1 }
 0x2a1   : > { %21380 = vst [vmem:[#allocation265_spill] sm:$0xff] %v16389_v24  ;;  %21381 = vst [vmem:[#allocation266_spill] sm:$0xff] %v16392_v46  ;;  %v4239_v37 = vrot.slane %v4225_v28, %v14238_v10  ;;  %v4240_v24 = vcombine.high %v4232_v48, %v4232_v48  ;;  %v4248_v23 = vrot.slane %v4232_v48, %v14238_v10 }
 0x2a2   : > { %21382 = vst [vmem:[#allocation267_spill] sm:$0xff] %v16395_v26  ;;  %21383 = vst [vmem:[#allocation268_spill] sm:$0xff] %v16398_v7  ;;  %v3737_v21 = vcombine.high %v16322_v19, %v16322_v19  ;;  %v16414_v34 = vrot.slane %v3734_v43, %v14251_v15  ;;  %v16417_v0 = vrot.slane %v3736_v20, %v14251_v15 }
 0x2a3   : > { %21384 = vst [vmem:[#allocation269_spill] sm:$0xff] %v16401_v18  ;;  %21385 = vst [vmem:[#allocation270_spill] sm:$0xff] %v16404_v59  ;;  %v3744_v1 = vrot.slane %v16322_v19, %v14238_v10  ;;  %v1747_v30 = vadd.f32 %v15997_v6, %v15640_v57  ;;  %v4241_v28 = vcombine.high %v4239_v37, %v4239_v37 }
 0x2a4   : > { %21386 = vst [vmem:[#allocation271_spill] sm:$0xff] %v16407_v33  ;;  %21387 = vst [vmem:[#allocation272_spill] sm:$0xff] %v16414_v34  ;;  %v4255_v48 = vrot.slane %v4239_v37, %v14238_v10  ;;  %v4262_v33 = vrot.slane %v4240_v24, %v14238_v10  ;;  %v4270_v36 = vcombine.high %v4248_v23, %v4248_v23 }
 0x2a5   : > { %21388 = vst [vmem:[#allocation273_spill] sm:$0xff] %v16417_v0  ;;  %v3751_v43 = vrot.slane %v3737_v21, %v14238_v10  ;;  %v3752_v34 = vcombine.high %v3744_v1, %v3744_v1  ;;  %v3760_v20 = vrot.slane %v3744_v1, %v14238_v10  ;;  %v1739_v0 = vadd.f32 %v15997_v6, %v15651_v31 }
 0x2a6   : > { %v4269_v19 = vrot.slane %v4241_v28, %v14238_v10  ;;  %v4271_v59 = vcombine.high %v4255_v48, %v4255_v48  ;;  %v4272_v57 = vcombine.high %v4262_v33, %v4262_v33  ;;  %v16434_v16 = vadd.f32 %v15997_v6, %v15677_v52 }
 0x2a7   : > { %v16437_v37 = vrot.slane %v4248_v23, %v14251_v15  ;;  %v16440_v24 = vrot.slane %v4262_v33, %v14251_v15  ;;  %v3753_v21 = vcombine.high %v3751_v43, %v3751_v43  ;;  %v3767_v1 = vrot.slane %v3751_v43, %v14238_v10 }
 0x2a8   : > { %v4273_v18 = vcombine.high %v4269_v19, %v4269_v19  ;;  %v16444_v31 = vrot.slane %v4270_v36, %v14251_v15  ;;  %v16447_v28 = vrot.slane %v4272_v57, %v14251_v15  ;;  %v16450_v61 = vrot.slane %v4255_v48, %v14251_v15 }
 0x2a9   : > { %21389 = vst [vmem:[#allocation274_spill] sm:$0xff] %v16437_v37  ;;  %21390 = vst [vmem:[#allocation275_spill] sm:$0xff] %v16440_v24  ;;  %v3774_v52 = vrot.slane %v3752_v34, %v14238_v10  ;;  %v3781_v23 = vrot.slane %v3753_v21, %v14238_v10  ;;  %v3782_v37 = vcombine.high %v3760_v20, %v3760_v20 }
 0x2aa   : > { %21391 = vst [vmem:[#allocation276_spill] sm:$0xff] %v16444_v31  ;;  %21392 = vst [vmem:[#allocation277_spill] sm:$0xff] %v16447_v28  ;;  %v3783_v33 = vcombine.high %v3767_v1, %v3767_v1  ;;  %v16455_v24 = vrot.slane %v4269_v19, %v14251_v15  ;;  %v16458_v43 = vrot.slane %v4271_v59, %v14251_v15 }
 0x2ab   : > { %21393 = vst [vmem:[#allocation278_spill] sm:$0xff] %v16450_v61  ;;  %v16461_v36 = vrot.slane %v4273_v18, %v14251_v15  ;;  %v5152_v57 = vcombine.high %v1747_v30, %v1747_v30  ;;  %v3784_v28 = vcombine.high %v3774_v52, %v3774_v52  ;;  %v3785_v31 = vcombine.high %v3781_v23, %v3781_v23 }
 0x2ac   : > { %21394 = vst [vmem:[#allocation279_spill] sm:$0xff] %v16455_v24  ;;  %21395 = vst [vmem:[#allocation280_spill] sm:$0xff] %v16458_v43  ;;  %v16464_v48 = vrot.slane %v3760_v20, %v14251_v15  ;;  %v16467_v34 = vrot.slane %v3767_v1, %v14251_v15  ;;  %v16470_v21 = vrot.slane %v3774_v52, %v14251_v15  ;;  %v16484_v24 = vpop.f32.mrb[124].mxu1 }
 0x2ad   : > { %21396 = vst [vmem:[#allocation281_spill] sm:$0xff] %v16461_v36  ;;  %v16473_v19 = vrot.slane %v3782_v37, %v14251_v15  ;;  %v5159_v59 = vrot.slane %v1747_v30, %v14238_v10  ;;  %v5166_v18 = vrot.slane %v5152_v57, %v14238_v10  ;;  %v16478_v36 = vrot.slane %v3781_v23, %v14251_v15  ;;  %v16488_v30 = vpop.f32.mrb[125].mxu1 }
 0x2ae   : > { %21397 = vst [vmem:[#allocation282_spill] sm:$0xff] %v16464_v48  ;;  %21398 = vst [vmem:[#allocation283_spill] sm:$0xff] %v16467_v34  ;;  %v16481_v43 = vrot.slane %v3783_v33, %v14251_v15  ;;  %v4664_v20 = vcombine.high %v1739_v0, %v1739_v0  ;;  %v4671_v1 = vrot.slane %v1739_v0, %v14238_v10 }
 0x2af   : > { %21399 = vst [vmem:[#allocation284_spill] sm:$0xff] %v16470_v21  ;;  %21400 = vst [vmem:[#allocation285_spill] sm:$0xff] %v16473_v19  ;;  %v5167_v52 = vcombine.high %v5159_v59, %v5159_v59  ;;  %v5168_v61 = vcombine.high %v5166_v18, %v5166_v18  ;;  %v5175_v37 = vrot.slane %v5159_v59, %v14238_v10 }
 0x2b0   : > { %21401 = vst [vmem:[#allocation286_spill] sm:$0xff] %v16478_v36  ;;  %21402 = vst [vmem:[#allocation287_spill] sm:$0xff] %v16481_v43  ;;  %v5182_v34 = vrot.slane %v5166_v18, %v14238_v10  ;;  %v16491_v57 = vrot.slane %v3784_v28, %v14251_v15  ;;  %v4678_v23 = vrot.slane %v4664_v20, %v14238_v10 }
 0x2b1   : > { %v4679_v33 = vcombine.high %v4671_v1, %v4671_v1  ;;  %v4687_v43 = vrot.slane %v4671_v1, %v14238_v10  ;;  %v5189_v0 = vrot.slane %v5167_v52, %v14238_v10  ;;  %v5196_v36 = vrot.slane %v5168_v61, %v14238_v10 }
 0x2b2   : > { %21403 = vst [vmem:[#allocation288_spill] sm:$0xff] %v16491_v57  ;;  %v5197_v19 = vcombine.high %v5175_v37, %v5175_v37  ;;  %v5198_v21 = vcombine.high %v5182_v34, %v5182_v34  ;;  %v16498_v59 = vrot.slane %v3785_v31, %v14251_v15  ;;  %v4680_v18 = vcombine.high %v4678_v23, %v4678_v23 }
 0x2b3   : > { %v4694_v48 = vrot.slane %v4678_v23, %v14238_v10  ;;  %v5201_v28 = vcombine.high %v16434_v16, %v16434_v16  ;;  %v5199_v57 = vcombine.high %v5189_v0, %v5189_v0  ;;  %v5200_v20 = vcombine.high %v5196_v36, %v5196_v36 }
 0x2b4   : > { %21404 = vst [vmem:[#allocation289_spill] sm:$0xff] %v16498_v59  ;;  %v16504_v7 = vrot.slane %v5175_v37, %v14251_v15  ;;  %v16507_v1 = vrot.slane %v5182_v34, %v14251_v15  ;;  %v16510_v61 = vrot.slane %v5189_v0, %v14251_v15  ;;  %v16513_v31 = vrot.slane %v5197_v19, %v14251_v15 }
 0x2b5   : > { %v4701_v52 = vrot.slane %v4679_v33, %v14238_v10  ;;  %v4708_v23 = vrot.slane %v4680_v18, %v14238_v10  ;;  %v16518_v59 = vrot.slane %v5196_v36, %v14251_v15  ;;  %v16521_v26 = vrot.slane %v5198_v21, %v14251_v15 }
 0x2b6   : > { %21405 = vst [vmem:[#allocation290_spill] sm:$0xff] %v16504_v7  ;;  %21406 = vst [vmem:[#allocation291_spill] sm:$0xff] %v16507_v1  ;;  %v4709_v37 = vcombine.high %v4687_v43, %v4687_v43  ;;  %v4710_v7 = vcombine.high %v4694_v48, %v4694_v48  ;;  %v16524_v34 = vrot.slane %v5199_v57, %v14251_v15 }
 0x2b7   : > { %21407 = vst [vmem:[#allocation292_spill] sm:$0xff] %v16510_v61  ;;  %21408 = vst [vmem:[#allocation293_spill] sm:$0xff] %v16513_v31  ;;  %v16527_v0 = vrot.slane %v5200_v20, %v14251_v15  ;;  %v4711_v19 = vcombine.high %v4701_v52, %v4701_v52  ;;  %v4712_v1 = vcombine.high %v4708_v23, %v4708_v23  ;;  %v16529_v31 = vpop.f32.mrb[126].mxu1 }
 0x2b8   : > { %21409 = vst [vmem:[#allocation294_spill] sm:$0xff] %v16518_v59  ;;  %21410 = vst [vmem:[#allocation295_spill] sm:$0xff] %v16521_v26  ;;  %v16532_v33 = vrot.slane %v4687_v43, %v14251_v15  ;;  %v16535_v36 = vrot.slane %v4701_v52, %v14251_v15  ;;  %v16538_v21 = vrot.slane %v4709_v37, %v14251_v15 }
 0x2b9   : > { %21411 = vst [vmem:[#allocation296_spill] sm:$0xff] %v16524_v34  ;;  %21412 = vst [vmem:[#allocation297_spill] sm:$0xff] %v16527_v0  ;;  %v16541_v18 = vrot.slane %v4694_v48, %v14251_v15  ;;  %v16544_v57 = vrot.slane %v4708_v23, %v14251_v15  ;;  %v16547_v20 = vrot.slane %v4710_v7, %v14251_v15 }
 0x2ba   : > { %21413 = vst [vmem:[#allocation298_spill] sm:$0xff] %v16532_v33  ;;  %21414 = vst [vmem:[#allocation299_spill] sm:$0xff] %v16535_v36  ;;  %v5208_v0 = vrot.slane %v16434_v16, %v14238_v10  ;;  %v5215_v43 = vrot.slane %v5201_v28, %v14238_v10  ;;  %v16553_v52 = vrot.slane %v4711_v19, %v14251_v15 }
 0x2bb   : > { %21415 = vst [vmem:[#allocation300_spill] sm:$0xff] %v16538_v21  ;;  %21416 = vst [vmem:[#allocation301_spill] sm:$0xff] %v16541_v18  ;;  %v16556_v37 = vrot.slane %v4712_v1, %v14251_v15  ;;  %v1742_v48 = vadd.f32 %v15997_v6, %v15717_v40  ;;  %v1763_v23 = vadd.f32 %v15997_v6, %v15770_v13  ;;  %v16571_v40 = vpop.f32.mrb[127].mxu1 }
 0x2bc   : > { %21417 = vst [vmem:[#allocation302_spill] sm:$0xff] %v16544_v57  ;;  %21418 = vst [vmem:[#allocation303_spill] sm:$0xff] %v16547_v20  ;;  %v5216_v26 = vcombine.high %v5208_v0, %v5208_v0  ;;  %v5217_v7 = vcombine.high %v5215_v43, %v5215_v43  ;;  %v5224_v20 = vrot.slane %v5208_v0, %v14238_v10 }
 0x2bd   : > { %21419 = vst [vmem:[#allocation304_spill] sm:$0xff] %v16553_v52  ;;  %21420 = vst [vmem:[#allocation305_spill] sm:$0xff] %v16556_v37  ;;  %v5231_v16 = vrot.slane %v5215_v43, %v14238_v10  ;;  %v4713_v59 = vcombine.high %v1742_v48, %v1742_v48  ;;  %v4720_v28 = vrot.slane %v1742_v48, %v14238_v10 }
 0x2be   : > { %v1755_v19 = vadd.f32 %v15997_v6, %v15782_v17  ;;  %v16569_v1 = vadd.f32 %v15997_v6, %v15800_v27  ;;  %v5238_v13 = vrot.slane %v5216_v26, %v14238_v10  ;;  %v5245_v37 = vrot.slane %v5217_v7, %v14238_v10 }
 0x2bf   : > { %v5246_v57 = vcombine.high %v5224_v20, %v5224_v20  ;;  %v5247_v0 = vcombine.high %v5231_v16, %v5231_v16  ;;  %v4727_v43 = vrot.slane %v4713_v59, %v14238_v10  ;;  %v4728_v18 = vcombine.high %v4720_v28, %v4720_v28 }
 0x2c0   : > { %v6128_v34 = vcombine.high %v1763_v23, %v1763_v23  ;;  %v6135_v48 = vrot.slane %v1763_v23, %v14238_v10  ;;  %v5248_v52 = vcombine.high %v5238_v13, %v5238_v13  ;;  %v5249_v17 = vcombine.high %v5245_v37, %v5245_v37 }
 0x2c1   : > { %v16578_v21 = vrot.slane %v5224_v20, %v14251_v15  ;;  %v16581_v27 = vrot.slane %v5231_v16, %v14251_v15  ;;  %v16584_v26 = vrot.slane %v5238_v13, %v14251_v15  ;;  %v16587_v7 = vrot.slane %v5246_v57, %v14251_v15 }
 0x2c2   : > { %v4729_v61 = vcombine.high %v4727_v43, %v4727_v43  ;;  %v4736_v59 = vrot.slane %v4720_v28, %v14238_v10  ;;  %v16591_v36 = vrot.slane %v5245_v37, %v14251_v15  ;;  %v16594_v23 = vrot.slane %v5247_v0, %v14251_v15 }
 0x2c3   : > { %21421 = vst [vmem:[#allocation306_spill] sm:$0xff] %v16578_v21  ;;  %21422 = vst [vmem:[#allocation307_spill] sm:$0xff] %v16581_v27  ;;  %v4743_v20 = vrot.slane %v4727_v43, %v14238_v10  ;;  %v4750_v16 = vrot.slane %v4728_v18, %v14238_v10  ;;  %v16599_v27 = vrot.slane %v5248_v52, %v14251_v15 }
 0x2c4   : > { %21423 = vst [vmem:[#allocation308_spill] sm:$0xff] %v16584_v26  ;;  %21424 = vst [vmem:[#allocation309_spill] sm:$0xff] %v16587_v7  ;;  %v4757_v13 = vrot.slane %v4729_v61, %v14238_v10  ;;  %v4758_v57 = vcombine.high %v4736_v59, %v4736_v59  ;;  %v6142_v7 = vrot.slane %v6128_v34, %v14238_v10  ;;  %v16615_v61 = vpop.f32.mrb[128].mxu1 }
 0x2c5   : > { %21425 = vst [vmem:[#allocation310_spill] sm:$0xff] %v16591_v36  ;;  %21426 = vst [vmem:[#allocation311_spill] sm:$0xff] %v16594_v23  ;;  %v16604_v28 = vrot.slane %v5249_v17, %v14251_v15  ;;  %v4759_v37 = vcombine.high %v4743_v20, %v4743_v20  ;;  %v4760_v36 = vcombine.high %v4750_v16, %v4750_v16  ;;  %v16629_v26 = vpop.f32.mrb[129].mxu1 }
 0x2c6   : > { %21427 = vst [vmem:[#allocation312_spill] sm:$0xff] %v16599_v27  ;;  %v16607_v0 = vrot.slane %v4736_v59, %v14251_v15  ;;  %v4761_v23 = vcombine.high %v4757_v13, %v4757_v13  ;;  %v16610_v43 = vrot.slane %v4750_v16, %v14251_v15  ;;  %v16613_v18 = vrot.slane %v4743_v20, %v14251_v15 }
 0x2c7   : > { %21428 = vst [vmem:[#allocation313_spill] sm:$0xff] %v16604_v28  ;;  %v6143_v52 = vcombine.high %v6135_v48, %v6135_v48  ;;  %v16618_v34 = vrot.slane %v4758_v57, %v14251_v15  ;;  %v16621_v17 = vrot.slane %v4757_v13, %v14251_v15  ;;  %v6144_v28 = vcombine.high %v6142_v7, %v6142_v7 }
 0x2c8   : > { %21429 = vst [vmem:[#allocation314_spill] sm:$0xff] %v16607_v0  ;;  %21430 = vst [vmem:[#allocation315_spill] sm:$0xff] %v16610_v43  ;;  %v6151_v59 = vrot.slane %v6135_v48, %v14238_v10  ;;  %v16625_v27 = vrot.slane %v4760_v36, %v14251_v15  ;;  %v6158_v16 = vrot.slane %v6142_v7, %v14238_v10 }
 0x2c9   : > { %21431 = vst [vmem:[#allocation316_spill] sm:$0xff] %v16613_v18  ;;  %21432 = vst [vmem:[#allocation317_spill] sm:$0xff] %v16618_v34  ;;  %v6165_v20 = vrot.slane %v6143_v52, %v14238_v10  ;;  %v5640_v18 = vcombine.high %v1755_v19, %v1755_v19  ;;  %v16632_v43 = vrot.slane %v4759_v37, %v14251_v15  ;;  %v16636_v34 = vpop.f32.mrb[130].mxu1 }
 0x2ca   : > { %21433 = vst [vmem:[#allocation318_spill] sm:$0xff] %v16621_v17  ;;  %21434 = vst [vmem:[#allocation319_spill] sm:$0xff] %v16625_v27  ;;  %v6172_v57 = vrot.slane %v6144_v28, %v14238_v10  ;;  %v6173_v13 = vcombine.high %v6151_v59, %v6151_v59  ;;  %v5647_v17 = vrot.slane %v1755_v19, %v14238_v10  ;;  %v16651_v19 = vpop.f32.mrb[131].mxu1 }
 0x2cb   : > { %21435 = vst [vmem:[#allocation320_spill] sm:$0xff] %v16632_v43  ;;  %v16639_v36 = vrot.slane %v4761_v23, %v14251_v15  ;;  %v6174_v48 = vcombine.high %v6158_v16, %v6158_v16  ;;  %v6175_v7 = vcombine.high %v6165_v20, %v6165_v20  ;;  %v16642_v52 = vrot.slane %v6151_v59, %v14251_v15  ;;  %v16660_v0 = vpop.f32.mrb[132].mxu1 }
 0x2cc   : > { %v6176_v27 = vcombine.high %v6172_v57, %v6172_v57  ;;  %v16645_v21 = vrot.slane %v6165_v20, %v14251_v15  ;;  %v16648_v37 = vrot.slane %v6158_v16, %v14251_v15  ;;  %v5654_v28 = vrot.slane %v5640_v18, %v14238_v10 }
 0x2cd   : > { %21436 = vst [vmem:[#allocation321_spill] sm:$0xff] %v16639_v36  ;;  %21437 = vst [vmem:[#allocation322_spill] sm:$0xff] %v16642_v52  ;;  %v16654_v43 = vrot.slane %v6173_v13, %v14251_v15  ;;  %v16657_v23 = vrot.slane %v6172_v57, %v14251_v15  ;;  %v5655_v36 = vcombine.high %v5647_v17, %v5647_v17 }
 0x2ce   : > { %21438 = vst [vmem:[#allocation323_spill] sm:$0xff] %v16645_v21  ;;  %21439 = vst [vmem:[#allocation324_spill] sm:$0xff] %v16648_v37  ;;  %v5663_v59 = vrot.slane %v5647_v17, %v14238_v10  ;;  %v16663_v20 = vrot.slane %v6175_v7, %v14251_v15  ;;  %v5656_v16 = vcombine.high %v5654_v28, %v5654_v28  ;;  %v13913_v7 = vld [vmem:[%s20400_s11 + $0x8] sm:$0xff]  }
 0x2cf   : > { %21440 = vst [vmem:[#allocation325_spill] sm:$0xff] %v16654_v43  ;;  %21441 = vst [vmem:[#allocation326_spill] sm:$0xff] %v16657_v23  ;;  %v5670_v37 = vrot.slane %v5654_v28, %v14238_v10  ;;  %v6177_v18 = vcombine.high %v16569_v1, %v16569_v1  ;;  %v16669_v13 = vrot.slane %v6174_v48, %v14251_v15  ;;  %v16682_v48 = vpop.f32.mrb[133].mxu1  ;;  %13695 = vmatprep.subr.bf16.mxu0 %v13913_v7 }
 0x2d0   : > { %21442 = vst [vmem:[#allocation327_spill] sm:$0xff] %v16663_v20  ;;  %v5677_v57 = vrot.slane %v5655_v36, %v14238_v10  ;;  %v5685_v23 = vcombine.high %v5663_v59, %v5663_v59  ;;  %v6184_v17 = vrot.slane %v16569_v1, %v14238_v10  ;;  %v16678_v20 = vrot.slane %v6176_v27, %v14251_v15  ;;  %v16690_v33 = vpop.f32.mrb[134].mxu1 }
 0x2d1   : > { %21443 = vst [vmem:[#allocation328_spill] sm:$0xff] %v16669_v13  ;;  %v5684_v28 = vrot.slane %v5656_v16, %v14238_v10  ;;  %v5686_v43 = vcombine.high %v5670_v37, %v5670_v37  ;;  %v6191_v21 = vrot.slane %v6177_v18, %v14238_v10  ;;  %v16685_v36 = vrot.slane %v5663_v59, %v14251_v15  ;;  %v16698_v46 = vpop.f32.mrb[135].mxu1 }
 0x2d2   : > { %21444 = vst [vmem:[#allocation329_spill] sm:$0xff] %v16678_v20  ;;  %v5687_v13 = vcombine.high %v5677_v57, %v5677_v57  ;;  %v16688_v1 = vrot.slane %v5670_v37, %v14251_v15  ;;  %v6192_v52 = vcombine.high %v6184_v17, %v6184_v17  ;;  %v16693_v20 = vrot.slane %v5677_v57, %v14251_v15 }
 0x2d3   : > { %21445 = vst [vmem:[#allocation330_spill] sm:$0xff] %v16685_v36  ;;  %v5688_v27 = vcombine.high %v5684_v28, %v5684_v28  ;;  %v16696_v16 = vrot.slane %v5685_v23, %v14251_v15  ;;  %v6193_v18 = vcombine.high %v6191_v21, %v6191_v21  ;;  %13696 = vmatpush3.bf16.msra.mxu0 %v13913_v7 }
 0x2d4   : > { %21446 = vst [vmem:[#allocation331_spill] sm:$0xff] %v16688_v1  ;;  %21447 = vst [vmem:[#allocation332_spill] sm:$0xff] %v16693_v20  ;;  %v16701_v59 = vrot.slane %v5684_v28, %v14251_v15  ;;  %v6200_v37 = vrot.slane %v6184_v17, %v14238_v10  ;;  %v6207_v1 = vrot.slane %v6191_v21, %v14238_v10 }
 0x2d5   : > { %21448 = vst [vmem:[#allocation333_spill] sm:$0xff] %v16696_v16  ;;  %v6214_v36 = vrot.slane %v6192_v52, %v14238_v10  ;;  %v16707_v25 = vrot.slane %v5686_v43, %v14251_v15  ;;  %v6221_v57 = vrot.slane %v6193_v18, %v14238_v10  ;;  %v1758_v23 = vadd.f32 %v15997_v6, %v15859_v39  ;;  %v16714_v16 = vpop.f32.mrb[136].mxu1 }
 0x2d6   : > { %21449 = vst [vmem:[#allocation334_spill] sm:$0xff] %v16701_v59  ;;  %v1779_v7 = vadd.f32 %v15997_v6, %v15920_v32  ;;  %v16717_v28 = vrot.slane %v5687_v13, %v14251_v15  ;;  %v6222_v17 = vcombine.high %v6200_v37, %v6200_v37  ;;  %v6223_v21 = vcombine.high %v6207_v1, %v6207_v1  ;;  %v16719_v52 = vpop.f32.mrb[137].mxu1 }
 0x2d7   : > { %21450 = vst [vmem:[#allocation335_spill] sm:$0xff] %v16707_v25  ;;  %v6224_v59 = vcombine.high %v6214_v36, %v6214_v36  ;;  %v16722_v43 = vrot.slane %v5688_v27, %v14251_v15  ;;  %v6225_v18 = vcombine.high %v6221_v57, %v6221_v57  ;;  %v16725_v25 = vrot.slane %v6200_v37, %v14251_v15  ;;  %v16730_v32 = vpop.f32.mrb[138].mxu1 }
 0x2d8   : > { %21451 = vst [vmem:[#allocation336_spill] sm:$0xff] %v16717_v28  ;;  %v16728_v39 = vrot.slane %v6214_v36, %v14251_v15  ;;  %v16733_v13 = vrot.slane %v6222_v17, %v14251_v15  ;;  %v16736_v28 = vrot.slane %v6207_v1, %v14251_v15  ;;  %v16739_v20 = vrot.slane %v6221_v57, %v14251_v15 }
 0x2d9   : > { %21452 = vst [vmem:[#allocation337_spill] sm:$0xff] %v16722_v43  ;;  %21453 = vst [vmem:[#allocation338_spill] sm:$0xff] %v16725_v25  ;;  %v5689_v27 = vcombine.high %v1758_v23, %v1758_v23  ;;  %v16742_v43 = vrot.slane %v6224_v59, %v14251_v15  ;;  %v5696_v37 = vrot.slane %v1758_v23, %v14238_v10 }
 0x2da   : > { %21454 = vst [vmem:[#allocation339_spill] sm:$0xff] %v16728_v39  ;;  %21455 = vst [vmem:[#allocation340_spill] sm:$0xff] %v16733_v13  ;;  %v7104_v25 = vcombine.high %v1779_v7, %v1779_v7  ;;  %v7111_v36 = vrot.slane %v1779_v7, %v14238_v10  ;;  %v16746_v39 = vpop.f32.mrb[139].mxu1  ;;  %v16749_v17 = vrot.slane %v6223_v21, %v14251_v15 }
 0x2db   : > { %21456 = vst [vmem:[#allocation341_spill] sm:$0xff] %v16736_v28  ;;  %21457 = vst [vmem:[#allocation342_spill] sm:$0xff] %v16739_v20  ;;  %v16752_v1 = vrot.slane %v6225_v18, %v14251_v15  ;;  %v5703_v57 = vrot.slane %v5689_v27, %v14238_v10  ;;  %v1771_v20 = vadd.f32 %v15997_v6, %v15924_v60  ;;  %v16757_v59 = vpop.f32.mrb[140].mxu1 }
 0x2dc   : > { %21458 = vst [vmem:[#allocation343_spill] sm:$0xff] %v16742_v43  ;;  %21459 = vst [vmem:[#allocation344_spill] sm:$0xff] %v16749_v17  ;;  %v5704_v28 = vcombine.high %v5696_v37, %v5696_v37  ;;  %v5712_v23 = vrot.slane %v5696_v37, %v14238_v10  ;;  %v7118_v7 = vrot.slane %v7104_v25, %v14238_v10  ;;  %v16761_v13 = vpop.f32.mrb[141].mxu1 }
 0x2dd   : > { %21460 = vst [vmem:[#allocation345_spill] sm:$0xff] %v16752_v1  ;;  %v7119_v43 = vcombine.high %v7111_v36, %v7111_v36  ;;  %v5705_v21 = vcombine.high %v5703_v57, %v5703_v57  ;;  %v5719_v17 = vrot.slane %v5703_v57, %v14238_v10  ;;  %v1782_v18 = vadd.f32 %v15997_v6, %v15965_v54  ;;  %v16770_v35 = vpop.f32.mrb[142].mxu1 }
 0x2de   : > { %v1774_v27 = vadd.f32 %v15997_v6, %v16012_v50  ;;  %v5726_v60 = vrot.slane %v5704_v28, %v14238_v10  ;;  %v5734_v1 = vcombine.high %v5712_v23, %v5712_v23  ;;  %v7120_v62 = vcombine.high %v7118_v7, %v7118_v7  ;;  %v16774_v2 = vpop.f32.mrb[143].mxu1 }
 0x2df   : > { %v7127_v37 = vrot.slane %v7111_v36, %v14238_v10  ;;  %v5733_v25 = vrot.slane %v5705_v21, %v14238_v10  ;;  %v5735_v12 = vcombine.high %v5719_v17, %v5719_v17  ;;  %v7134_v38 = vrot.slane %v7118_v7, %v14238_v10  ;;  %v16783_v28 = vpop.f32.mrb[144].mxu1 }
 0x2e0   : > { %v6616_v57 = vcombine.high %v1771_v20, %v1771_v20  ;;  %v5736_v54 = vcombine.high %v5726_v60, %v5726_v60  ;;  %v16777_v22 = vrot.slane %v5712_v23, %v14251_v15  ;;  %v16780_v6 = vrot.slane %v5719_v17, %v14251_v15 }
 0x2e1   : > { %v7141_v50 = vrot.slane %v7119_v43, %v14238_v10  ;;  %v5737_v36 = vcombine.high %v5733_v25, %v5733_v25  ;;  %v16786_v21 = vrot.slane %v5726_v60, %v14251_v15  ;;  %v16789_v7 = vrot.slane %v5734_v1, %v14251_v15 }
 0x2e2   : > { %21461 = vst [vmem:[#allocation346_spill] sm:$0xff] %v16777_v22  ;;  %21462 = vst [vmem:[#allocation347_spill] sm:$0xff] %v16780_v6  ;;  %v7148_v58 = vrot.slane %v7120_v62, %v14238_v10  ;;  %v16793_v53 = vrot.slane %v5733_v25, %v14251_v15  ;;  %v7149_v23 = vcombine.high %v7127_v37, %v7127_v37  ;;  %v16795_v6 = vpop.f32.mrb[145].mxu1 }
 0x2e3   : > { %21463 = vst [vmem:[#allocation348_spill] sm:$0xff] %v16786_v21  ;;  %21464 = vst [vmem:[#allocation349_spill] sm:$0xff] %v16789_v7  ;;  %v7150_v22 = vcombine.high %v7134_v38, %v7134_v38  ;;  %v7151_v17 = vcombine.high %v7141_v50, %v7141_v50  ;;  %v16798_v43 = vrot.slane %v5736_v54, %v14251_v15  ;;  %v16806_v7 = vpop.f32.mrb[146].mxu1 }
 0x2e4   : > { %21465 = vst [vmem:[#allocation350_spill] sm:$0xff] %v16793_v53  ;;  %v16801_v8 = vrot.slane %v5735_v12, %v14251_v15  ;;  %v16804_v60 = vrot.slane %v5737_v36, %v14251_v15  ;;  %v7152_v1 = vcombine.high %v7148_v58, %v7148_v58  ;;  %v16809_v62 = vrot.slane %v7127_v37, %v14251_v15  ;;  %v16820_v12 = vpop.f32.mrb[147].mxu1 }
 0x2e5   : > { %21466 = vst [vmem:[#allocation351_spill] sm:$0xff] %v16798_v43  ;;  %v16812_v25 = vrot.slane %v7141_v50, %v14251_v15  ;;  %v16815_v53 = vrot.slane %v7149_v23, %v14251_v15  ;;  %v16818_v54 = vrot.slane %v7151_v17, %v14251_v15  ;;  %v16823_v36 = vrot.slane %v7134_v38, %v14251_v15  ;;  %v16834_v21 = vpop.f32.mrb[148].mxu1 }
 0x2e6   : > { %21467 = vst [vmem:[#allocation352_spill] sm:$0xff] %v16801_v8  ;;  %21468 = vst [vmem:[#allocation353_spill] sm:$0xff] %v16804_v60  ;;  %v16826_v60 = vrot.slane %v7148_v58, %v14251_v15  ;;  %v6623_v37 = vrot.slane %v1771_v20, %v14238_v10  ;;  %v6630_v8 = vrot.slane %v6616_v57, %v14238_v10 }
 0x2e7   : > { %21469 = vst [vmem:[#allocation354_spill] sm:$0xff] %v16809_v62  ;;  %21470 = vst [vmem:[#allocation355_spill] sm:$0xff] %v16812_v25  ;;  %v16831_v50 = vrot.slane %v7150_v22, %v14251_v15  ;;  %v7153_v23 = vcombine.high %v1782_v18, %v1782_v18  ;;  %v7160_v43 = vrot.slane %v1782_v18, %v14238_v10 }
 0x2e8   : > { %21471 = vst [vmem:[#allocation356_spill] sm:$0xff] %v16815_v53  ;;  %21472 = vst [vmem:[#allocation357_spill] sm:$0xff] %v16818_v54  ;;  %v6665_v17 = vcombine.high %v1774_v27, %v1774_v27  ;;  %v6631_v54 = vcombine.high %v6623_v37, %v6623_v37  ;;  %v6632_v53 = vcombine.high %v6630_v8, %v6630_v8 }
 0x2e9   : > { %21473 = vst [vmem:[#allocation358_spill] sm:$0xff] %v16823_v36  ;;  %21474 = vst [vmem:[#allocation359_spill] sm:$0xff] %v16826_v60  ;;  %v6639_v38 = vrot.slane %v6623_v37, %v14238_v10  ;;  %v6646_v58 = vrot.slane %v6630_v8, %v14238_v10  ;;  %v16838_v60 = vpop.f32.mrb[149].mxu1  ;;  %v16841_v20 = vrot.slane %v7152_v1, %v14251_v15 }
 0x2ea   : > { %21475 = vst [vmem:[#allocation360_spill] sm:$0xff] %v16831_v50  ;;  %v7167_v22 = vrot.slane %v7153_v23, %v14238_v10  ;;  %v7168_v57 = vcombine.high %v7160_v43, %v7160_v43  ;;  %v7176_v50 = vrot.slane %v7160_v43, %v14238_v10  ;;  %v16845_v18 = vpop.f32.mrb[150].mxu1  ;;  %v6653_v36 = vrot.slane %v6631_v54, %v14238_v10 }
 0x2eb   : > { %21476 = vst [vmem:[#allocation361_spill] sm:$0xff] %v16841_v20  ;;  %v6660_v25 = vrot.slane %v6632_v53, %v14238_v10  ;;  %v6661_v62 = vcombine.high %v6639_v38, %v6639_v38  ;;  %v6662_v37 = vcombine.high %v6646_v58, %v6646_v58  ;;  %v6672_v9 = vrot.slane %v1774_v27, %v14238_v10  ;;  %v16852_v20 = vpop.f32.mrb[151].mxu1 }
 0x2ec   : > { %v7169_v11 = vcombine.high %v7167_v22, %v7167_v22  ;;  %v7183_v8 = vrot.slane %v7167_v22, %v14238_v10  ;;  %v6679_v1 = vrot.slane %v6665_v17, %v14238_v10  ;;  %v6663_v23 = vcombine.high %v6653_v36, %v6653_v36  ;;  %v16860_v53 = vpop.f32.mrb[152].mxu1 }
 0x2ed   : > { %v6664_v42 = vcombine.high %v6660_v25, %v6660_v25  ;;  %v16855_v43 = vrot.slane %v6639_v38, %v14251_v15  ;;  %v16858_v54 = vrot.slane %v6646_v58, %v14251_v15  ;;  %21479 = vst [vmem:[#allocation364_spill] sm:$0xff] %v16860_v53  ;;  %v16863_v63 = vrot.slane %v6653_v36, %v14251_v15  ;;  %v16870_v45 = vpop.f32.mrb[153].mxu1 }
 0x2ee   : > { %v16866_v22 = vrot.slane %v6661_v62, %v14251_v15  ;;  %v7190_v27 = vrot.slane %v7168_v57, %v14238_v10  ;;  %v7197_v17 = vrot.slane %v7169_v11, %v14238_v10  ;;  %v16873_v38 = vrot.slane %v6660_v25, %v14251_v15  ;;  %v16878_v53 = vpop.f32.mrb[154].mxu1 }
 0x2ef   : > { %21477 = vst [vmem:[#allocation362_spill] sm:$0xff] %v16855_v43  ;;  %21478 = vst [vmem:[#allocation363_spill] sm:$0xff] %v16858_v54  ;;  %v16876_v58 = vrot.slane %v6662_v37, %v14251_v15  ;;  %v7198_v54 = vcombine.high %v7176_v50, %v7176_v50  ;;  %v7199_v43 = vcombine.high %v7183_v8, %v7183_v8 }
 0x2f0   : > { %21480 = vst [vmem:[#allocation365_spill] sm:$0xff] %v16863_v63  ;;  %21481 = vst [vmem:[#allocation366_spill] sm:$0xff] %v16866_v22  ;;  %v16881_v36 = vrot.slane %v6663_v23, %v14251_v15  ;;  %v16884_v62 = vrot.slane %v6664_v42, %v14251_v15  ;;  %v7200_v57 = vcombine.high %v7190_v27, %v7190_v27  ;;  %v16886_v22 = vpop.f32.mrb[155].mxu1 }
 0x2f1   : > { %21482 = vst [vmem:[#allocation367_spill] sm:$0xff] %v16873_v38  ;;  %21483 = vst [vmem:[#allocation368_spill] sm:$0xff] %v16876_v58  ;;  %v7201_v11 = vcombine.high %v7197_v17, %v7197_v17  ;;  %v16889_v25 = vrot.slane %v7176_v50, %v14251_v15  ;;  %v16892_v37 = vrot.slane %v7190_v27, %v14251_v15  ;;  %v16900_v23 = vpop.f32.mrb[156].mxu1 }
 0x2f2   : > { %21484 = vst [vmem:[#allocation369_spill] sm:$0xff] %v16881_v36  ;;  %21485 = vst [vmem:[#allocation370_spill] sm:$0xff] %v16884_v62  ;;  %v16895_v58 = vrot.slane %v7198_v54, %v14251_v15  ;;  %v16898_v38 = vrot.slane %v7183_v8, %v14251_v15  ;;  %v16903_v42 = vrot.slane %v7197_v17, %v14251_v15 }
 0x2f3   : > { %21486 = vst [vmem:[#allocation371_spill] sm:$0xff] %v16886_v22  ;;  %21487 = vst [vmem:[#allocation372_spill] sm:$0xff] %v16889_v25  ;;  %v16906_v62 = vrot.slane %v7199_v43, %v14251_v15  ;;  %v6680_v36 = vcombine.high %v6672_v9, %v6672_v9  ;;  %v6681_v50 = vcombine.high %v6679_v1, %v6679_v1  ;;  %v16908_v25 = vpop.f32.mrb[157].mxu1 }
 0x2f4   : > { %21488 = vst [vmem:[#allocation373_spill] sm:$0xff] %v16892_v37  ;;  %21489 = vst [vmem:[#allocation374_spill] sm:$0xff] %v16895_v58  ;;  %v16911_v27 = vrot.slane %v7200_v57, %v14251_v15  ;;  %v6688_v54 = vrot.slane %v6672_v9, %v14238_v10  ;;  %v6695_v8 = vrot.slane %v6679_v1, %v14238_v10  ;;  %v16922_v17 = vpop.f32.mrb[158].mxu1 }
 0x2f5   : > { %21490 = vst [vmem:[#allocation375_spill] sm:$0xff] %v16898_v38  ;;  %21491 = vst [vmem:[#allocation376_spill] sm:$0xff] %v16900_v23  ;;  %v16918_v38 = vld [vmem:[%s20395_s6] ss:$0 sm:$0xff]  ;;  %v6702_v57 = vrot.slane %v6680_v36, %v14238_v10  ;;  %v16931_v1 = vpop.f32.mrb[159].mxu1 }
 0x2f6   : > { %21492 = vst [vmem:[#allocation377_spill] sm:$0xff] %v16903_v42  ;;  %21493 = vst [vmem:[#allocation378_spill] sm:$0xff] %v16906_v62  ;;  %v1795_v43 = vadd.f32 %v16918_v38, %v16056_v14  ;;  %v16925_v62 = vrot.slane %v7201_v11, %v14251_v15  ;;  %v6709_v42 = vrot.slane %v6681_v50, %v14238_v10  ;;  %v16939_v11 = vpop.f32.mrb[160].mxu1 }
 0x2f7   : > { %21494 = vst [vmem:[#allocation379_spill] sm:$0xff] %v16908_v25  ;;  %21495 = vst [vmem:[#allocation380_spill] sm:$0xff] %v16911_v27  ;;  %v1787_v9 = vadd.f32 %v16918_v38, %v16075_v44  ;;  %v6710_v27 = vcombine.high %v6688_v54, %v6688_v54  ;;  %v6711_v58 = vcombine.high %v6695_v8, %v6695_v8  ;;  %v16947_v63 = vpop.f32.mrb[161].mxu1 }
 0x2f8   : > { %21496 = vst [vmem:[#allocation381_spill] sm:$0xff] %v16922_v17  ;;  %21497 = vst [vmem:[#allocation382_spill] sm:$0xff] %v16925_v62  ;;  %v1798_v37 = vadd.f32 %v16918_v38, %v16103_v41  ;;  %v16937_v14 = vadd.f32 %v16918_v38, %v16145_v49  ;;  %v6712_v62 = vcombine.high %v6702_v57, %v6702_v57 }
 0x2f9   : > { %21498 = vst [vmem:[#allocation383_spill] sm:$0xff] %v16931_v1  ;;  %21499 = vst [vmem:[#allocation384_spill] sm:$0xff] %v16939_v11  ;;  %v6713_v36 = vcombine.high %v6709_v42, %v6709_v42  ;;  %v16942_v50 = vrot.slane %v6688_v54, %v14251_v15  ;;  %v16945_v44 = vrot.slane %v6695_v8, %v14251_v15  ;;  %v16956_v11 = vpop.f32.mrb[162].mxu1 }
 0x2fa   : > { %21502 = vst [vmem:[#allocation387_spill] sm:$0xff] %v16947_v63  ;;  %v16950_v1 = vrot.slane %v6702_v57, %v14251_v15  ;;  %v16953_v41 = vrot.slane %v6709_v42, %v14251_v15  ;;  %v8080_v49 = vcombine.high %v1795_v43, %v1795_v43  ;;  %v8087_v17 = vrot.slane %v1795_v43, %v14238_v10 }
 0x2fb   : > { %21500 = vst [vmem:[#allocation385_spill] sm:$0xff] %v16942_v50  ;;  %21501 = vst [vmem:[#allocation386_spill] sm:$0xff] %v16945_v44  ;;  %v16959_v25 = vrot.slane %v6710_v27, %v14251_v15  ;;  %v16962_v54 = vrot.slane %v6711_v58, %v14251_v15  ;;  %v7592_v8 = vcombine.high %v1787_v9, %v1787_v9  ;;  %v16965_v50 = vpop.f32.mrb[163].mxu1 }
 0x2fc   : > { %21503 = vst [vmem:[#allocation388_spill] sm:$0xff] %v16950_v1  ;;  %21504 = vst [vmem:[#allocation389_spill] sm:$0xff] %v16953_v41  ;;  %v7599_v44 = vrot.slane %v1787_v9, %v14238_v10  ;;  %v16968_v57 = vrot.slane %v6712_v62, %v14251_v15  ;;  %v8094_v42 = vrot.slane %v8080_v49, %v14238_v10  ;;  %v16972_v1 = vpop.f32.mrb[164].mxu1 }
 0x2fd   : > { %21505 = vst [vmem:[#allocation390_spill] sm:$0xff] %v16956_v11  ;;  %21506 = vst [vmem:[#allocation391_spill] sm:$0xff] %v16959_v25  ;;  %v8095_v41 = vcombine.high %v8087_v17, %v8087_v17  ;;  %v8103_v43 = vrot.slane %v8087_v17, %v14238_v10  ;;  %v16975_v27 = vrot.slane %v6713_v36, %v14251_v15  ;;  %v16979_v25 = vpop.f32.mrb[165].mxu1 }
 0x2fe   : > { %21507 = vst [vmem:[#allocation392_spill] sm:$0xff] %v16962_v54  ;;  %21508 = vst [vmem:[#allocation393_spill] sm:$0xff] %v16965_v50  ;;  %v7606_v58 = vrot.slane %v7592_v8, %v14238_v10  ;;  %v7607_v54 = vcombine.high %v7599_v44, %v7599_v44  ;;  %v7615_v9 = vrot.slane %v7599_v44, %v14238_v10  ;;  %v16983_v11 = vpop.f32.mrb[166].mxu1 }
 0x2ff   : > { %21509 = vst [vmem:[#allocation394_spill] sm:$0xff] %v16968_v57  ;;  %21510 = vst [vmem:[#allocation395_spill] sm:$0xff] %v16972_v1  ;;  %v8096_v50 = vcombine.high %v8094_v42, %v8094_v42  ;;  %v8110_v62 = vrot.slane %v8094_v42, %v14238_v10  ;;  %v8117_v49 = vrot.slane %v8095_v41, %v14238_v10 }
 0x300   : > { %21511 = vst [vmem:[#allocation396_spill] sm:$0xff] %v16975_v27  ;;  %21512 = vst [vmem:[#allocation397_spill] sm:$0xff] %v16979_v25  ;;  %v8125_v57 = vcombine.high %v8103_v43, %v8103_v43  ;;  %v7608_v17 = vcombine.high %v7606_v58, %v7606_v58  ;;  %v7622_v1 = vrot.slane %v7606_v58, %v14238_v10 }
 0x301   : > { %21513 = vst [vmem:[#allocation398_spill] sm:$0xff] %v16983_v11  ;;  %v7629_v36 = vrot.slane %v7607_v54, %v14238_v10  ;;  %v8129_v27 = vcombine.high %v1798_v37, %v1798_v37  ;;  %v8124_v8 = vrot.slane %v8096_v50, %v14238_v10  ;;  %v8126_v63 = vcombine.high %v8110_v62, %v8110_v62 }
 0x302   : > { %v8127_v44 = vcombine.high %v8117_v49, %v8117_v49  ;;  %v8136_v25 = vrot.slane %v1798_v37, %v14238_v10  ;;  %v16990_v23 = vrot.slane %v8103_v43, %v14251_v15  ;;  %v16993_v41 = vrot.slane %v8117_v49, %v14251_v15 }
 0x303   : > { %v7636_v42 = vrot.slane %v7608_v17, %v14238_v10  ;;  %v7637_v11 = vcombine.high %v7615_v9, %v7615_v9  ;;  %v8128_v22 = vcombine.high %v8124_v8, %v8124_v8  ;;  %v16997_v58 = vrot.slane %v8125_v57, %v14251_v15 }
 0x304   : > { %21514 = vst [vmem:[#allocation399_spill] sm:$0xff] %v16990_v23  ;;  %21515 = vst [vmem:[#allocation400_spill] sm:$0xff] %v16993_v41  ;;  %v17000_v54 = vrot.slane %v8127_v44, %v14251_v15  ;;  %v17003_v50 = vrot.slane %v8110_v62, %v14251_v15  ;;  %v17006_v37 = vrot.slane %v8124_v8, %v14251_v15 }
 0x305   : > { %21516 = vst [vmem:[#allocation401_spill] sm:$0xff] %v16997_v58  ;;  %v7638_v43 = vcombine.high %v7622_v1, %v7622_v1  ;;  %v7639_v23 = vcombine.high %v7629_v36, %v7629_v36  ;;  %v7640_v49 = vcombine.high %v7636_v42, %v7636_v42  ;;  %v17009_v41 = vrot.slane %v8126_v63, %v14251_v15 }
 0x306   : > { %21517 = vst [vmem:[#allocation402_spill] sm:$0xff] %v17000_v54  ;;  %21518 = vst [vmem:[#allocation403_spill] sm:$0xff] %v17003_v50  ;;  %v17012_v17 = vrot.slane %v8128_v22, %v14251_v15  ;;  %v17015_v57 = vrot.slane %v7615_v9, %v14251_v15  ;;  %v17018_v44 = vrot.slane %v7629_v36, %v14251_v15 }
 0x307   : > { %21519 = vst [vmem:[#allocation404_spill] sm:$0xff] %v17006_v37  ;;  %21520 = vst [vmem:[#allocation405_spill] sm:$0xff] %v17009_v41  ;;  %v17021_v62 = vrot.slane %v7637_v11, %v14251_v15  ;;  %v17024_v8 = vrot.slane %v7639_v23, %v14251_v15  ;;  %v17027_v37 = vrot.slane %v7622_v1, %v14251_v15 }
 0x308   : > { %21521 = vst [vmem:[#allocation406_spill] sm:$0xff] %v17012_v17  ;;  %21522 = vst [vmem:[#allocation407_spill] sm:$0xff] %v17015_v57  ;;  %v17030_v63 = vrot.slane %v7636_v42, %v14251_v15  ;;  %v8143_v22 = vrot.slane %v8129_v27, %v14238_v10  ;;  %v8144_v17 = vcombine.high %v8136_v25, %v8136_v25 }
 0x309   : > { %21523 = vst [vmem:[#allocation408_spill] sm:$0xff] %v17018_v44  ;;  %21524 = vst [vmem:[#allocation409_spill] sm:$0xff] %v17021_v62  ;;  %v8152_v9 = vrot.slane %v8136_v25, %v14238_v10  ;;  %v7641_v36 = vcombine.high %v16937_v14, %v16937_v14  ;;  %v17037_v11 = vrot.slane %v7638_v43, %v14251_v15  ;;  %v17140_v62 = vpop.permute.xlu0 %3395 }
 0x30a   : > { %21525 = vst [vmem:[#allocation410_spill] sm:$0xff] %v17024_v8  ;;  %21526 = vst [vmem:[#allocation411_spill] sm:$0xff] %v17027_v37  ;;  %v17040_v23 = vrot.slane %v7640_v49, %v14251_v15  ;;  %v7648_v1 = vrot.slane %v16937_v14, %v14238_v10  ;;  %v1811_v42 = vadd.f32 %v16918_v38, %v16190_v3 }
 0x30b   : > { %21527 = vst [vmem:[#allocation412_spill] sm:$0xff] %v17030_v63  ;;  %21528 = vst [vmem:[#allocation413_spill] sm:$0xff] %v17037_v11  ;;  %v8145_v41 = vcombine.high %v8143_v22, %v8143_v22  ;;  %v8159_v27 = vrot.slane %v8143_v22, %v14238_v10  ;;  %v8166_v25 = vrot.slane %v8144_v17, %v14238_v10 }
 0x30c   : > { %21529 = vst [vmem:[#allocation414_spill] sm:$0xff] %v17040_v23  ;;  %v8174_v63 = vcombine.high %v8152_v9, %v8152_v9  ;;  %v7655_v50 = vrot.slane %v7641_v36, %v14238_v10  ;;  %v7656_v37 = vcombine.high %v7648_v1, %v7648_v1  ;;  %v7664_v43 = vrot.slane %v7648_v1, %v14238_v10  ;;  %v17052_v23 = vpop.f32.mrb[167].mxu1 }
 0x30d   : > { %v1803_v49 = vadd.f32 %v16918_v38, %v16209_v51  ;;  %21530 = vst [vmem:[#allocation415_spill] sm:$0xff] %v17052_v23  ;;  %v8173_v14 = vrot.slane %v8145_v41, %v14238_v10  ;;  %v8175_v11 = vcombine.high %v8159_v27, %v8159_v27  ;;  %v8176_v3 = vcombine.high %v8166_v25, %v8166_v25 }
 0x30e   : > { %v17057_v22 = vadd.f32 %v16918_v38, %v16244_v56  ;;  %v17060_v17 = vrot.slane %v8152_v9, %v14251_v15  ;;  %v17063_v36 = vrot.slane %v8166_v25, %v14251_v15  ;;  %v7657_v1 = vcombine.high %v7655_v50, %v7655_v50 }
 0x30f   : > { %v7671_v54 = vrot.slane %v7655_v50, %v14238_v10  ;;  %v8177_v51 = vcombine.high %v8173_v14, %v8173_v14  ;;  %v17067_v8 = vrot.slane %v8174_v63, %v14251_v15  ;;  %v17070_v41 = vrot.slane %v8176_v3, %v14251_v15 }
 0x310   : > { %21531 = vst [vmem:[#allocation416_spill] sm:$0xff] %v17060_v17  ;;  %21532 = vst [vmem:[#allocation417_spill] sm:$0xff] %v17063_v36  ;;  %v17073_v58 = vrot.slane %v8159_v27, %v14251_v15  ;;  %v7678_v56 = vrot.slane %v7656_v37, %v14238_v10  ;;  %v7685_v9 = vrot.slane %v7657_v1, %v14238_v10 }
 0x311   : > { %21533 = vst [vmem:[#allocation418_spill] sm:$0xff] %v17067_v8  ;;  %21534 = vst [vmem:[#allocation419_spill] sm:$0xff] %v17070_v41  ;;  %v7686_v17 = vcombine.high %v7664_v43, %v7664_v43  ;;  %v7687_v25 = vcombine.high %v7671_v54, %v7671_v54  ;;  %v17078_v36 = vrot.slane %v8173_v14, %v14251_v15 }
 0x312   : > { %21535 = vst [vmem:[#allocation420_spill] sm:$0xff] %v17073_v58  ;;  %v17081_v50 = vrot.slane %v8175_v11, %v14251_v15  ;;  %v17084_v63 = vrot.slane %v8177_v51, %v14251_v15  ;;  %v9056_v3 = vcombine.high %v1811_v42, %v1811_v42  ;;  %v7688_v41 = vcombine.high %v7678_v56, %v7678_v56 }
 0x313   : > { %21536 = vst [vmem:[#allocation421_spill] sm:$0xff] %v17078_v36  ;;  %v7689_v8 = vcombine.high %v7685_v9, %v7685_v9  ;;  %v17087_v27 = vrot.slane %v7664_v43, %v14251_v15  ;;  %v17090_v37 = vrot.slane %v7671_v54, %v14251_v15  ;;  %v17093_v1 = vrot.slane %v7678_v56, %v14251_v15 }
 0x314   : > { %21537 = vst [vmem:[#allocation422_spill] sm:$0xff] %v17081_v50  ;;  %21538 = vst [vmem:[#allocation423_spill] sm:$0xff] %v17084_v63  ;;  %v17096_v14 = vrot.slane %v7686_v17, %v14251_v15  ;;  %v9063_v11 = vrot.slane %v1811_v42, %v14238_v10  ;;  %v9070_v51 = vrot.slane %v9056_v3, %v14238_v10  ;;  %v17100_v63 = vpop.permute.xlu1 %3403 }
 0x315   : > { %21539 = vst [vmem:[#allocation424_spill] sm:$0xff] %v17087_v27  ;;  %21540 = vst [vmem:[#allocation425_spill] sm:$0xff] %v17090_v37  ;;  %v17103_v50 = vrot.slane %v7685_v9, %v14251_v15  ;;  %v17106_v43 = vrot.slane %v7687_v25, %v14251_v15  ;;  %v8568_v54 = vcombine.high %v1803_v49, %v1803_v49 }
 0x316   : > { %21541 = vst [vmem:[#allocation426_spill] sm:$0xff] %v17093_v1  ;;  %21542 = vst [vmem:[#allocation427_spill] sm:$0xff] %v17096_v14  ;;  %v8575_v36 = vrot.slane %v1803_v49, %v14238_v10  ;;  %v9071_v56 = vcombine.high %v9063_v11, %v9063_v11  ;;  %v9072_v58 = vcombine.high %v9070_v51, %v9070_v51 }
 0x317   : > { %21543 = vst [vmem:[#allocation428_spill] sm:$0xff] %v17103_v50  ;;  %21544 = vst [vmem:[#allocation429_spill] sm:$0xff] %v17106_v43  ;;  %v9079_v17 = vrot.slane %v9063_v11, %v14238_v10  ;;  %v9086_v37 = vrot.slane %v9070_v51, %v14238_v10  ;;  %v17112_v42 = vrot.slane %v7688_v41, %v14251_v15 }
 0x318   : > { %v8582_v3 = vrot.slane %v8568_v54, %v14238_v10  ;;  %v8583_v14 = vcombine.high %v8575_v36, %v8575_v36  ;;  %v8591_v9 = vrot.slane %v8575_v36, %v14238_v10  ;;  %v9093_v25 = vrot.slane %v9071_v56, %v14238_v10 }
 0x319   : > { %21545 = vst [vmem:[#allocation430_spill] sm:$0xff] %v17112_v42  ;;  %v9100_v43 = vrot.slane %v9072_v58, %v14238_v10  ;;  %v9101_v50 = vcombine.high %v9079_v17, %v9079_v17  ;;  %v9102_v49 = vcombine.high %v9086_v37, %v9086_v37  ;;  %v17119_v1 = vrot.slane %v7689_v8, %v14251_v15  ;;  %v17130_v58 = vpop.permute.xlu1 %3407 }
 0x31a   : > { %v8584_v11 = vcombine.high %v8582_v3, %v8582_v3  ;;  %v8598_v51 = vrot.slane %v8582_v3, %v14238_v10  ;;  %v9105_v41 = vcombine.high %v17057_v22, %v17057_v22  ;;  %v9103_v42 = vcombine.high %v9093_v25, %v9093_v25 }
 0x31b   : > { %21546 = vst [vmem:[#allocation431_spill] sm:$0xff] %v17119_v1  ;;  %v9104_v54 = vcombine.high %v9100_v43, %v9100_v43  ;;  %v17125_v27 = vrot.slane %v9079_v17, %v14251_v15  ;;  %v17128_v36 = vrot.slane %v9086_v37, %v14251_v15  ;;  %v17133_v56 = vrot.slane %v9093_v25, %v14251_v15 }
 0x31c   : > { %v17136_v8 = vrot.slane %v9101_v50, %v14251_v15  ;;  %v8605_v3 = vrot.slane %v8583_v14, %v14238_v10  ;;  %v8612_v1 = vrot.slane %v8584_v11, %v14238_v10  ;;  %v17143_v17 = vrot.slane %v9100_v43, %v14251_v15 }
 0x31d   : > { %21547 = vst [vmem:[#allocation432_spill] sm:$0xff] %v17125_v27  ;;  %21548 = vst [vmem:[#allocation433_spill] sm:$0xff] %v17128_v36  ;;  %v17146_v37 = vrot.slane %v9102_v49, %v14251_v15  ;;  %v8613_v36 = vcombine.high %v8591_v9, %v8591_v9  ;;  %v8614_v44 = vcombine.high %v8598_v51, %v8598_v51 }
 0x31e   : > { %21549 = vst [vmem:[#allocation434_spill] sm:$0xff] %v17133_v56  ;;  %21550 = vst [vmem:[#allocation435_spill] sm:$0xff] %v17136_v8  ;;  %v17149_v25 = vrot.slane %v9103_v42, %v14251_v15  ;;  %v17152_v50 = vrot.slane %v9104_v54, %v14251_v15  ;;  %v8615_v8 = vcombine.high %v8605_v3, %v8605_v3 }
 0x31f   : > { %21551 = vst [vmem:[#allocation436_spill] sm:$0xff] %v17143_v17  ;;  %21552 = vst [vmem:[#allocation437_spill] sm:$0xff] %v17146_v37  ;;  %v8616_v14 = vcombine.high %v8612_v1, %v8612_v1  ;;  %v17155_v11 = vrot.slane %v8591_v9, %v14251_v15  ;;  %v17158_v56 = vrot.slane %v8605_v3, %v14251_v15  ;;  %v17185_v37 = vpop.permute.xlu1 %3415  ;;  %v17189_v17 = vpop.permute.xlu0 %3399 }
 0x320   : > { %21553 = vst [vmem:[#allocation438_spill] sm:$0xff] %v17149_v25  ;;  %21554 = vst [vmem:[#allocation439_spill] sm:$0xff] %v17152_v50  ;;  %v17161_v43 = vrot.slane %v8613_v36, %v14251_v15  ;;  %v17164_v49 = vrot.slane %v8598_v51, %v14251_v15  ;;  %v17167_v42 = vrot.slane %v8612_v1, %v14251_v15 }
 0x321   : > { %21555 = vst [vmem:[#allocation440_spill] sm:$0xff] %v17155_v11  ;;  %21556 = vst [vmem:[#allocation441_spill] sm:$0xff] %v17158_v56  ;;  %v17170_v54 = vrot.slane %v8614_v44, %v14251_v15  ;;  %v9112_v50 = vrot.slane %v17057_v22, %v14238_v10  ;;  %v9119_v9 = vrot.slane %v9105_v41, %v14238_v10 }
 0x322   : > { %21557 = vst [vmem:[#allocation442_spill] sm:$0xff] %v17161_v43  ;;  %21558 = vst [vmem:[#allocation443_spill] sm:$0xff] %v17164_v49  ;;  %v17176_v3 = vrot.slane %v8615_v8, %v14251_v15  ;;  %v17179_v36 = vrot.slane %v8616_v14, %v14251_v15  ;;  %v1806_v51 = vadd.f32 %v16918_v38, %v16284_v29 }
 0x323   : > { %21559 = vst [vmem:[#allocation444_spill] sm:$0xff] %v17167_v42  ;;  %21560 = vst [vmem:[#allocation445_spill] sm:$0xff] %v17170_v54  ;;  %v1827_v1 = vadd.f32 %v16918_v38, %v16337_v55  ;;  %v9120_v44 = vcombine.high %v9112_v50, %v9112_v50  ;;  %v9121_v54 = vcombine.high %v9119_v9, %v9119_v9  ;;  %v17215_v11 = vpop.permute.xlu1 %3423 }
 0x324   : > { %21561 = vst [vmem:[#allocation446_spill] sm:$0xff] %v17176_v3  ;;  %21562 = vst [vmem:[#allocation447_spill] sm:$0xff] %v17179_v36  ;;  %v9128_v22 = vrot.slane %v9112_v50, %v14238_v10  ;;  %v9135_v41 = vrot.slane %v9119_v9, %v14238_v10  ;;  %v8617_v8 = vcombine.high %v1806_v51, %v1806_v51 }
 0x325   : > { %v8624_v14 = vrot.slane %v1806_v51, %v14238_v10  ;;  %v1819_v36 = vadd.f32 %v16918_v38, %v16346_v5  ;;  %v17196_v29 = vadd.f32 %v16918_v38, %v16364_v47  ;;  %v9142_v55 = vrot.slane %v9120_v44, %v14238_v10 }
 0x326   : > { %v9149_v42 = vrot.slane %v9121_v54, %v14238_v10  ;;  %v9150_v49 = vcombine.high %v9128_v22, %v9128_v22  ;;  %v9151_v50 = vcombine.high %v9135_v41, %v9135_v41  ;;  %v8631_v9 = vrot.slane %v8617_v8, %v14238_v10 }
 0x327   : > { %v8632_v25 = vcombine.high %v8624_v14, %v8624_v14  ;;  %v10032_v3 = vcombine.high %v1827_v1, %v1827_v1  ;;  %v10039_v43 = vrot.slane %v1827_v1, %v14238_v10  ;;  %v9152_v51 = vcombine.high %v9142_v55, %v9142_v55 }
 0x328   : > { %v9153_v56 = vcombine.high %v9149_v42, %v9149_v42  ;;  %v17203_v5 = vrot.slane %v9128_v22, %v14251_v15  ;;  %v17206_v47 = vrot.slane %v9135_v41, %v14251_v15  ;;  %v17209_v44 = vrot.slane %v9142_v55, %v14251_v15  ;;  %v17225_v55 = vpop.permute.xlu0 %3411 }
 0x329   : > { %v17212_v54 = vrot.slane %v9150_v49, %v14251_v15  ;;  %v8633_v27 = vcombine.high %v8631_v9, %v8631_v9  ;;  %v8640_v8 = vrot.slane %v8624_v14, %v14238_v10  ;;  %v17218_v1 = vrot.slane %v9149_v42, %v14251_v15 }
 0x32a   : > { %21563 = vst [vmem:[#allocation448_spill] sm:$0xff] %v17203_v5  ;;  %21564 = vst [vmem:[#allocation449_spill] sm:$0xff] %v17206_v47  ;;  %v17221_v22 = vrot.slane %v9151_v50, %v14251_v15  ;;  %v8647_v41 = vrot.slane %v8631_v9, %v14238_v10  ;;  %v8654_v47 = vrot.slane %v8632_v25, %v14238_v10  ;;  %v17238_v9 = vpop.f32.mrb[168].mxu1 }
 0x32b   : > { %21565 = vst [vmem:[#allocation450_spill] sm:$0xff] %v17209_v44  ;;  %21566 = vst [vmem:[#allocation451_spill] sm:$0xff] %v17212_v54  ;;  %v17228_v49 = vrot.slane %v9152_v51, %v14251_v15  ;;  %v8661_v54 = vrot.slane %v8633_v27, %v14238_v10  ;;  %v8662_v14 = vcombine.high %v8640_v8, %v8640_v8 }
 0x32c   : > { %21567 = vst [vmem:[#allocation452_spill] sm:$0xff] %v17218_v1  ;;  %21568 = vst [vmem:[#allocation453_spill] sm:$0xff] %v17221_v22  ;;  %v10046_v44 = vrot.slane %v10032_v3, %v14238_v10  ;;  %v17233_v42 = vrot.slane %v9153_v56, %v14251_v15  ;;  %v8663_v1 = vcombine.high %v8647_v41, %v8647_v41 }
 0x32d   : > { %21569 = vst [vmem:[#allocation454_spill] sm:$0xff] %v17228_v49  ;;  %v8664_v50 = vcombine.high %v8654_v47, %v8654_v47  ;;  %v17236_v22 = vrot.slane %v8640_v8, %v14251_v15  ;;  %21572 = vst [vmem:[#allocation457_spill] sm:$0xff] %v17238_v9  ;;  %v8665_v25 = vcombine.high %v8661_v54, %v8661_v54  ;;  %v17246_v49 = vpop.f32.mrb[169].mxu1 }
 0x32e   : > { %21570 = vst [vmem:[#allocation455_spill] sm:$0xff] %v17233_v42  ;;  %v17241_v5 = vrot.slane %v8654_v47, %v14251_v15  ;;  %v17244_v51 = vrot.slane %v8647_v41, %v14251_v15  ;;  %v10047_v27 = vcombine.high %v10039_v43, %v10039_v43  ;;  %21575 = vst [vmem:[#allocation460_spill] sm:$0xff] %v17246_v49 }
 0x32f   : > { %21571 = vst [vmem:[#allocation456_spill] sm:$0xff] %v17236_v22  ;;  %v17249_v56 = vrot.slane %v8662_v14, %v14251_v15  ;;  %v17252_v3 = vrot.slane %v8661_v54, %v14251_v15  ;;  %v10048_v8 = vcombine.high %v10046_v44, %v10046_v44  ;;  %v10055_v42 = vrot.slane %v10039_v43, %v14238_v10  ;;  %v17255_v22 = vpop.f32.mrb[170].mxu1  ;;  %v17264_v14 = vpop.permute.xlu1 %3431 }
 0x330   : > { %21573 = vst [vmem:[#allocation458_spill] sm:$0xff] %v17241_v5  ;;  %21574 = vst [vmem:[#allocation459_spill] sm:$0xff] %v17244_v51  ;;  %v17258_v47 = vrot.slane %v8664_v50, %v14251_v15  ;;  %v10062_v41 = vrot.slane %v10046_v44, %v14238_v10  ;;  %v10069_v51 = vrot.slane %v10047_v27, %v14238_v10  ;;  %v17262_v57 = vpop.f32.mrb[171].mxu1 }
 0x331   : > { %21576 = vst [vmem:[#allocation461_spill] sm:$0xff] %v17249_v56  ;;  %21577 = vst [vmem:[#allocation462_spill] sm:$0xff] %v17252_v3  ;;  %v9544_v5 = vcombine.high %v1819_v36, %v1819_v36  ;;  %v17267_v54 = vrot.slane %v8663_v1, %v14251_v15  ;;  %v10076_v3 = vrot.slane %v10048_v8, %v14238_v10 }
 0x332   : > { %21578 = vst [vmem:[#allocation463_spill] sm:$0xff] %v17255_v22  ;;  %21579 = vst [vmem:[#allocation464_spill] sm:$0xff] %v17258_v47  ;;  %v10077_v43 = vcombine.high %v10055_v42, %v10055_v42  ;;  %v9551_v56 = vrot.slane %v1819_v36, %v14238_v10  ;;  %v17271_v22 = vpop.permute.xlu0 %3419  ;;  %v17274_v50 = vrot.slane %v8665_v25, %v14251_v15 }
 0x333   : > { %21580 = vst [vmem:[#allocation465_spill] sm:$0xff] %v17262_v57  ;;  %21581 = vst [vmem:[#allocation466_spill] sm:$0xff] %v17267_v54  ;;  %v10078_v44 = vcombine.high %v10062_v41, %v10062_v41  ;;  %v10079_v27 = vcombine.high %v10069_v51, %v10069_v51  ;;  %v17277_v47 = vrot.slane %v10055_v42, %v14251_v15 }
 0x334   : > { %21582 = vst [vmem:[#allocation467_spill] sm:$0xff] %v17274_v50  ;;  %v10080_v57 = vcombine.high %v10076_v3, %v10076_v3  ;;  %v17280_v49 = vrot.slane %v10069_v51, %v14251_v15  ;;  %v17283_v1 = vrot.slane %v10062_v41, %v14251_v15  ;;  %v9558_v8 = vrot.slane %v9544_v5, %v14238_v10 }
 0x335   : > { %21583 = vst [vmem:[#allocation468_spill] sm:$0xff] %v17277_v47  ;;  %v17287_v36 = vrot.slane %v10077_v43, %v14251_v15  ;;  %v17290_v25 = vrot.slane %v10076_v3, %v14251_v15  ;;  %v9559_v50 = vcombine.high %v9551_v56, %v9551_v56  ;;  %v9567_v54 = vrot.slane %v9551_v56, %v14238_v10 }
 0x336   : > { %21584 = vst [vmem:[#allocation469_spill] sm:$0xff] %v17280_v49  ;;  %21585 = vst [vmem:[#allocation470_spill] sm:$0xff] %v17283_v1  ;;  %v17294_v42 = vrot.slane %v10079_v27, %v14251_v15  ;;  %v9560_v47 = vcombine.high %v9558_v8, %v9558_v8  ;;  %v9574_v51 = vrot.slane %v9558_v8, %v14238_v10 }
 0x337   : > { %21586 = vst [vmem:[#allocation471_spill] sm:$0xff] %v17287_v36  ;;  %21587 = vst [vmem:[#allocation472_spill] sm:$0xff] %v17290_v25  ;;  %v10081_v41 = vcombine.high %v17196_v29, %v17196_v29  ;;  %v17300_v5 = vrot.slane %v10078_v44, %v14251_v15  ;;  %v9581_v43 = vrot.slane %v9559_v50, %v14238_v10  ;;  %v17305_v25 = vpop.permute.xlu1 %3439  ;;  %v17312_v36 = vpop.permute.xlu0 %3427 }
 0x338   : > { %21588 = vst [vmem:[#allocation473_spill] sm:$0xff] %v17294_v42  ;;  %v9589_v1 = vcombine.high %v9567_v54, %v9567_v54  ;;  %v10088_v3 = vrot.slane %v17196_v29, %v14238_v10  ;;  %v17308_v56 = vrot.slane %v10080_v57, %v14251_v15  ;;  %v9588_v27 = vrot.slane %v9560_v47, %v14238_v10 }
 0x339   : > { %21589 = vst [vmem:[#allocation474_spill] sm:$0xff] %v17300_v5  ;;  %v9590_v8 = vcombine.high %v9574_v51, %v9574_v51  ;;  %v10095_v42 = vrot.slane %v10081_v41, %v14238_v10  ;;  %v9591_v44 = vcombine.high %v9581_v43, %v9581_v43  ;;  %v17315_v5 = vrot.slane %v9567_v54, %v14251_v15 }
 0x33a   : > { %21590 = vst [vmem:[#allocation475_spill] sm:$0xff] %v17308_v56  ;;  %v17318_v50 = vrot.slane %v9574_v51, %v14251_v15  ;;  %v10096_v29 = vcombine.high %v10088_v3, %v10088_v3  ;;  %v9592_v49 = vcombine.high %v9588_v27, %v9588_v27  ;;  %v17321_v9 = vrot.slane %v9581_v43, %v14251_v15 }
 0x33b   : > { %21591 = vst [vmem:[#allocation476_spill] sm:$0xff] %v17315_v5  ;;  %v17324_v57 = vrot.slane %v9589_v1, %v14251_v15  ;;  %v10097_v47 = vcombine.high %v10095_v42, %v10095_v42  ;;  %v17327_v41 = vrot.slane %v9588_v27, %v14251_v15  ;;  %v10104_v56 = vrot.slane %v10088_v3, %v14238_v10 }
 0x33c   : > { %21592 = vst [vmem:[#allocation477_spill] sm:$0xff] %v17318_v50  ;;  %21593 = vst [vmem:[#allocation478_spill] sm:$0xff] %v17321_v9  ;;  %v10111_v54 = vrot.slane %v10095_v42, %v14238_v10  ;;  %v10118_v5 = vrot.slane %v10096_v29, %v14238_v10  ;;  %v17333_v51 = vrot.slane %v9590_v8, %v14251_v15  ;;  %v17343_v42 = vpop.permute.xlu1 %3447 }
 0x33d   : > { %21594 = vst [vmem:[#allocation479_spill] sm:$0xff] %v17324_v57  ;;  %21595 = vst [vmem:[#allocation480_spill] sm:$0xff] %v17327_v41  ;;  %v10125_v50 = vrot.slane %v10097_v47, %v14238_v10  ;;  %v1822_v43 = vadd.f32 %v16918_v38, %v16423_v4  ;;  %v1843_v1 = vadd.f32 %v16918_v38, %v16484_v24 }
 0x33e   : > { %21596 = vst [vmem:[#allocation481_spill] sm:$0xff] %v17333_v51  ;;  %v17341_v27 = vrot.slane %v9591_v44, %v14251_v15  ;;  %v10126_v41 = vcombine.high %v10104_v56, %v10104_v56  ;;  %v10127_v3 = vcombine.high %v10111_v54, %v10111_v54  ;;  %v10128_v57 = vcombine.high %v10118_v5, %v10118_v5  ;;  %v17354_v51 = vpop.permute.xlu0 %3435 }
 0x33f   : > { %21598 = vst [vmem:[#allocation483_spill] sm:$0xff] %v17343_v42  ;;  %v17346_v29 = vrot.slane %v9592_v49, %v14251_v15  ;;  %v10129_v8 = vcombine.high %v10125_v50, %v10125_v50  ;;  %v17349_v47 = vrot.slane %v10104_v56, %v14251_v15  ;;  %v17352_v4 = vrot.slane %v10118_v5, %v14251_v15 }
 0x340   : > { %21597 = vst [vmem:[#allocation482_spill] sm:$0xff] %v17341_v27  ;;  %v17357_v24 = vrot.slane %v10126_v41, %v14251_v15  ;;  %v17360_v44 = vrot.slane %v10111_v54, %v14251_v15  ;;  %v17363_v27 = vrot.slane %v10125_v50, %v14251_v15  ;;  %v9593_v49 = vcombine.high %v1822_v43, %v1822_v43 }
 0x341   : > { %21599 = vst [vmem:[#allocation484_spill] sm:$0xff] %v17346_v29  ;;  %21600 = vst [vmem:[#allocation485_spill] sm:$0xff] %v17349_v47  ;;  %v17366_v29 = vrot.slane %v10128_v57, %v14251_v15  ;;  %v9600_v56 = vrot.slane %v1822_v43, %v14238_v10  ;;  %v11008_v47 = vcombine.high %v1843_v1, %v1843_v1 }
 0x342   : > { %21601 = vst [vmem:[#allocation486_spill] sm:$0xff] %v17352_v4  ;;  %21602 = vst [vmem:[#allocation487_spill] sm:$0xff] %v17357_v24  ;;  %v11015_v5 = vrot.slane %v1843_v1, %v14238_v10  ;;  %v17371_v4 = vrot.slane %v10127_v3, %v14251_v15  ;;  %v17374_v41 = vrot.slane %v10129_v8, %v14251_v15  ;;  %v17390_v24 = vpop.permute.xlu0 %3443 }
 0x343   : > { %21603 = vst [vmem:[#allocation488_spill] sm:$0xff] %v17360_v44  ;;  %21604 = vst [vmem:[#allocation489_spill] sm:$0xff] %v17363_v27  ;;  %v9607_v54 = vrot.slane %v9593_v49, %v14238_v10  ;;  %v1835_v50 = vadd.f32 %v16918_v38, %v16488_v30  ;;  %v9608_v27 = vcombine.high %v9600_v56, %v9600_v56 }
 0x344   : > { %21605 = vst [vmem:[#allocation490_spill] sm:$0xff] %v17366_v29  ;;  %21606 = vst [vmem:[#allocation491_spill] sm:$0xff] %v17371_v4  ;;  %v9616_v57 = vrot.slane %v9600_v56, %v14238_v10  ;;  %v11022_v44 = vrot.slane %v11008_v47, %v14238_v10  ;;  %v11023_v43 = vcombine.high %v11015_v5, %v11015_v5 }
 0x345   : > { %21607 = vst [vmem:[#allocation492_spill] sm:$0xff] %v17374_v41  ;;  %v9609_v29 = vcombine.high %v9607_v54, %v9607_v54  ;;  %v9623_v1 = vrot.slane %v9607_v54, %v14238_v10  ;;  %v1846_v3 = vadd.f32 %v16918_v38, %v16529_v31  ;;  %v1838_v8 = vadd.f32 %v16918_v38, %v16571_v40  ;;  %v17386_v41 = vpop.permute.xlu1 %3455 }
 0x346   : > { %21608 = vst [vmem:[#allocation493_spill] sm:$0xff] %v17386_v41  ;;  %v9630_v49 = vrot.slane %v9608_v27, %v14238_v10  ;;  %v9638_v30 = vcombine.high %v9616_v57, %v9616_v57  ;;  %v11024_v4 = vcombine.high %v11022_v44, %v11022_v44  ;;  %v11031_v56 = vrot.slane %v11015_v5, %v14238_v10 }
 0x347   : > { %21609 = vst [vmem:[#allocation494_spill] sm:$0xff] %v17390_v24  ;;  %v9637_v47 = vrot.slane %v9609_v29, %v14238_v10  ;;  %v9639_v9 = vcombine.high %v9623_v1, %v9623_v1  ;;  %v11038_v54 = vrot.slane %v11022_v44, %v14238_v10  ;;  %v10520_v23 = vcombine.high %v1835_v50, %v1835_v50 }
 0x348   : > { %v9640_v31 = vcombine.high %v9630_v49, %v9630_v49  ;;  %v17395_v42 = vrot.slane %v9616_v57, %v14251_v15  ;;  %v17398_v40 = vrot.slane %v9623_v1, %v14251_v15  ;;  %v11045_v38 = vrot.slane %v11023_v43, %v14238_v10 }
 0x349   : > { %v9641_v27 = vcombine.high %v9637_v47, %v9637_v47  ;;  %v17402_v5 = vrot.slane %v9630_v49, %v14251_v15  ;;  %v17405_v41 = vrot.slane %v9638_v30, %v14251_v15  ;;  %v11052_v29 = vrot.slane %v11024_v4, %v14238_v10  ;;  %v17420_v30 = vpop.permute.xlu1 %11731 }
 0x34a   : > { %21610 = vst [vmem:[#allocation495_spill] sm:$0xff] %v17395_v42  ;;  %21611 = vst [vmem:[#allocation496_spill] sm:$0xff] %v17398_v40  ;;  %v17409_v44 = vrot.slane %v9637_v47, %v14251_v15  ;;  %v11053_v24 = vcombine.high %v11031_v56, %v11031_v56  ;;  %v11054_v57 = vcombine.high %v11038_v54, %v11038_v54 }
 0x34b   : > { %21612 = vst [vmem:[#allocation497_spill] sm:$0xff] %v17402_v5  ;;  %21613 = vst [vmem:[#allocation498_spill] sm:$0xff] %v17405_v41  ;;  %v11055_v42 = vcombine.high %v11045_v38, %v11045_v38  ;;  %v17412_v1 = vrot.slane %v9640_v31, %v14251_v15  ;;  %v17415_v43 = vrot.slane %v9639_v9, %v14251_v15  ;;  %v17434_v9 = vpop.permute.xlu0 %3451 }
 0x34c   : > { %21614 = vst [vmem:[#allocation499_spill] sm:$0xff] %v17409_v44  ;;  %v17418_v49 = vrot.slane %v9641_v27, %v14251_v15  ;;  %v11056_v40 = vcombine.high %v11052_v29, %v11052_v29  ;;  %21618 = vst [vmem:[#allocation503_spill] sm:$0xff] %v17420_v30  ;;  %v17423_v4 = vrot.slane %v11031_v56, %v14251_v15 }
 0x34d   : > { %21615 = vst [vmem:[#allocation500_spill] sm:$0xff] %v17412_v1  ;;  %21616 = vst [vmem:[#allocation501_spill] sm:$0xff] %v17415_v43  ;;  %v17426_v47 = vrot.slane %v11045_v38, %v14251_v15  ;;  %v17429_v44 = vrot.slane %v11053_v24, %v14251_v15  ;;  %v17432_v31 = vrot.slane %v11055_v42, %v14251_v15 }
 0x34e   : > { %21617 = vst [vmem:[#allocation502_spill] sm:$0xff] %v17418_v49  ;;  %21619 = vst [vmem:[#allocation504_spill] sm:$0xff] %v17423_v4  ;;  %v17437_v27 = vrot.slane %v11038_v54, %v14251_v15  ;;  %v17440_v49 = vrot.slane %v11052_v29, %v14251_v15  ;;  %v10527_v56 = vrot.slane %v1835_v50, %v14238_v10 }
 0x34f   : > { %21620 = vst [vmem:[#allocation505_spill] sm:$0xff] %v17426_v47  ;;  %21621 = vst [vmem:[#allocation506_spill] sm:$0xff] %v17429_v44  ;;  %v10534_v43 = vrot.slane %v10520_v23, %v14238_v10  ;;  %v17445_v38 = vrot.slane %v11054_v57, %v14251_v15  ;;  %v11057_v24 = vcombine.high %v1846_v3, %v1846_v3  ;;  %v17457_v44 = vpop.permute.xlu1 %11739 }
 0x350   : > { %21622 = vst [vmem:[#allocation507_spill] sm:$0xff] %v17432_v31  ;;  %21623 = vst [vmem:[#allocation508_spill] sm:$0xff] %v17437_v27  ;;  %v11064_v1 = vrot.slane %v1846_v3, %v14238_v10  ;;  %v10569_v42 = vcombine.high %v1838_v8, %v1838_v8  ;;  %v10535_v41 = vcombine.high %v10527_v56, %v10527_v56 }
 0x351   : > { %21624 = vst [vmem:[#allocation509_spill] sm:$0xff] %v17440_v49  ;;  %21625 = vst [vmem:[#allocation510_spill] sm:$0xff] %v17445_v38  ;;  %v10536_v5 = vcombine.high %v10534_v43, %v10534_v43  ;;  %v10543_v31 = vrot.slane %v10527_v56, %v14238_v10  ;;  %v10550_v54 = vrot.slane %v10534_v43, %v14238_v10 }
 0x352   : > { %v17451_v29 = vrot.slane %v11056_v40, %v14251_v15  ;;  %v11071_v50 = vrot.slane %v11057_v24, %v14238_v10  ;;  %v11072_v49 = vcombine.high %v11064_v1, %v11064_v1  ;;  %v11080_v23 = vrot.slane %v11064_v1, %v14238_v10  ;;  %21627 = vst [vmem:[#allocation512_spill] sm:$0xff] %v17457_v44 }
 0x353   : > { %v10557_v57 = vrot.slane %v10535_v41, %v14238_v10  ;;  %v10564_v38 = vrot.slane %v10536_v5, %v14238_v10  ;;  %v10565_v3 = vcombine.high %v10543_v31, %v10543_v31  ;;  %v10566_v27 = vcombine.high %v10550_v54, %v10550_v54 }
 0x354   : > { %21626 = vst [vmem:[#allocation511_spill] sm:$0xff] %v17451_v29  ;;  %v11073_v47 = vcombine.high %v11071_v50, %v11071_v50  ;;  %v11087_v56 = vrot.slane %v11071_v50, %v14238_v10  ;;  %v10576_v43 = vrot.slane %v1838_v8, %v14238_v10  ;;  %v10583_v40 = vrot.slane %v10569_v42, %v14238_v10  ;;  %v17462_v29 = vpop.permute.xlu0 %11727  ;;  %v17478_v50 = vpop.f32.mrb[172].mxu1 }
 0x355   : > { %21628 = vst [vmem:[#allocation513_spill] sm:$0xff] %v17462_v29  ;;  %v10567_v24 = vcombine.high %v10557_v57, %v10557_v57  ;;  %v10568_v4 = vcombine.high %v10564_v38, %v10564_v38  ;;  %v17465_v1 = vrot.slane %v10543_v31, %v14251_v15  ;;  %v17468_v41 = vrot.slane %v10550_v54, %v14251_v15  ;;  %v21722_v29 = vld [vmem:[#allocation8_spill] sm:$0xff] }
 0x356   : > { %v17471_v5 = vrot.slane %v10557_v57, %v14251_v15  ;;  %v17474_v44 = vrot.slane %v10565_v3, %v14251_v15  ;;  %v11094_v8 = vrot.slane %v11072_v49, %v14238_v10  ;;  %v11101_v42 = vrot.slane %v11073_v47, %v14238_v10  ;;  %21633 = vst [vmem:[#allocation518_spill] sm:$0xff] %v17478_v50 }
 0x357   : > { %21629 = vst [vmem:[#allocation514_spill] sm:$0xff] %v17465_v1  ;;  %21630 = vst [vmem:[#allocation515_spill] sm:$0xff] %v17468_v41  ;;  %v17481_v30 = vrot.slane %v10564_v38, %v14251_v15  ;;  %v17484_v31 = vrot.slane %v10566_v27, %v14251_v15  ;;  %v11102_v54 = vcombine.high %v11080_v23, %v11080_v23  ;;  %v17486_v1 = vpop.f32.mrb[173].mxu1 }
 0x358   : > { %21631 = vst [vmem:[#allocation516_spill] sm:$0xff] %v17471_v5  ;;  %21632 = vst [vmem:[#allocation517_spill] sm:$0xff] %v17474_v44  ;;  %v11103_v41 = vcombine.high %v11087_v56, %v11087_v56  ;;  %v17489_v57 = vrot.slane %v10567_v24, %v14251_v15  ;;  %v17492_v3 = vrot.slane %v10568_v4, %v14251_v15  ;;  %v17494_v44 = vpop.f32.mrb[174].mxu1  ;;  %v17511_v4 = vld [vmem:[%s20399_s10] ss:$0 sm:$0xff] }
 0x359   : > { %21634 = vst [vmem:[#allocation519_spill] sm:$0xff] %v17481_v30  ;;  %21635 = vst [vmem:[#allocation520_spill] sm:$0xff] %v17484_v31  ;;  %v11104_v49 = vcombine.high %v11094_v8, %v11094_v8  ;;  %v11105_v47 = vcombine.high %v11101_v42, %v11101_v42  ;;  %v17497_v38 = vrot.slane %v11080_v23, %v14251_v15  ;;  %v17513_v24 = vpop.f32.mrb[175].mxu1 }
 0x35a   : > { %21636 = vst [vmem:[#allocation521_spill] sm:$0xff] %v17486_v1  ;;  %21637 = vst [vmem:[#allocation522_spill] sm:$0xff] %v17489_v57  ;;  %v17500_v27 = vrot.slane %v11094_v8, %v14251_v15  ;;  %v17503_v31 = vrot.slane %v11102_v54, %v14251_v15  ;;  %v17506_v30 = vrot.slane %v11087_v56, %v14251_v15 }
 0x35b   : > { %21638 = vst [vmem:[#allocation523_spill] sm:$0xff] %v17492_v3  ;;  %21639 = vst [vmem:[#allocation524_spill] sm:$0xff] %v17494_v44  ;;  %v17515_v3 = vpop.permute.xlu1 %11747  ;;  %v17518_v23 = vrot.slane %v11101_v42, %v14251_v15  ;;  %v17521_v8 = vrot.slane %v11103_v41, %v14251_v15  ;;  %v10584_v54 = vcombine.high %v10576_v43, %v10576_v43 }
 0x35c   : > { %21640 = vst [vmem:[#allocation525_spill] sm:$0xff] %v17497_v38  ;;  %21641 = vst [vmem:[#allocation526_spill] sm:$0xff] %v17500_v27  ;;  %v17523_v27 = vpop.permute.xlu0 %11735  ;;  %v17526_v56 = vrot.slane %v11104_v49, %v14251_v15  ;;  %v10592_v38 = vrot.slane %v10576_v43, %v14238_v10  ;;  %v10599_v57 = vrot.slane %v10583_v40, %v14238_v10 }
 0x35d   : > { %21642 = vst [vmem:[#allocation527_spill] sm:$0xff] %v17503_v31  ;;  %21643 = vst [vmem:[#allocation528_spill] sm:$0xff] %v17506_v30  ;;  %v10585_v31 = vcombine.high %v10583_v40, %v10583_v40  ;;  %v17529_v30 = vrot.slane %v11105_v47, %v14251_v15  ;;  %v10606_v42 = vrot.slane %v10584_v54, %v14238_v10 }
 0x35e   : > { %21644 = vst [vmem:[#allocation529_spill] sm:$0xff] %v17511_v4  ;;  %21645 = vst [vmem:[#allocation530_spill] sm:$0xff] %v17513_v24  ;;  %v2795_v41 = vadd.f32 %v16615_v61, %v17511_v4  ;;  %v10614_v5 = vcombine.high %v10592_v38, %v10592_v38  ;;  %v10615_v49 = vcombine.high %v10599_v57, %v10599_v57 }
 0x35f   : > { %21646 = vst [vmem:[#allocation531_spill] sm:$0xff] %v17515_v3  ;;  %21647 = vst [vmem:[#allocation532_spill] sm:$0xff] %v17518_v23  ;;  %v10613_v23 = vrot.slane %v10585_v31, %v14238_v10  ;;  %v2798_v47 = vadd.f32 %v16636_v34, %v17511_v4  ;;  %v2790_v43 = vadd.f32 %v17511_v4, %v16651_v19  ;;  %v17561_v19 = vpop.permute.xlu1 %3463  ;;  %v21702_v3 = vld [vmem:[#allocation34_spill] sm:$0xff] }
 0x360   : > { %21648 = vst [vmem:[#allocation533_spill] sm:$0xff] %v17521_v8  ;;  %21649 = vst [vmem:[#allocation534_spill] sm:$0xff] %v17523_v27  ;;  %v2787_v8 = vadd.f32 %v17511_v4, %v16629_v26  ;;  %v17544_v54 = vrot.slane %v10592_v38, %v14251_v15  ;;  %v17547_v10 = vrot.slane %v10599_v57, %v14251_v15 }
 0x361   : > { %21650 = vst [vmem:[#allocation535_spill] sm:$0xff] %v17526_v56  ;;  %21651 = vst [vmem:[#allocation536_spill] sm:$0xff] %v17529_v30  ;;  %v10616_v30 = vcombine.high %v10606_v42, %v10606_v42  ;;  %v10617_v40 = vcombine.high %v10613_v23, %v10613_v23  ;;  %v17550_v61 = vrot.slane %v10606_v42, %v14251_v15 }
 0x362   : > { %21652 = vst [vmem:[#allocation537_spill] sm:$0xff] %v17544_v54  ;;  %21653 = vst [vmem:[#allocation538_spill] sm:$0xff] %v17547_v10  ;;  %v17553_v26 = vrot.slane %v10614_v5, %v14251_v15  ;;  %v17556_v31 = vrot.slane %v10613_v23, %v14251_v15  ;;  %v17559_v34 = vrot.slane %v10615_v49, %v14251_v15  ;;  %v17575_v10 = vpop.permute.xlu0 %11743 }
 0x363   : > { %21654 = vst [vmem:[#allocation539_spill] sm:$0xff] %v17550_v61  ;;  %v17564_v38 = vrot.slane %v10616_v30, %v14251_v15  ;;  %v17567_v57 = vrot.slane %v10617_v40, %v14251_v15  ;;  %v17570_v42 = vmul.f32 %v17189_v17, %v2795_v41  ;;  %v17573_v5 = vmul.f32 %v17140_v62, %v2787_v8 }
 0x364   : > { %21655 = vst [vmem:[#allocation540_spill] sm:$0xff] %v17553_v26  ;;  %21656 = vst [vmem:[#allocation541_spill] sm:$0xff] %v17556_v31  ;;  %v2811_v23 = vadd.f32 %v16660_v0, %v17511_v4  ;;  %v2803_v49 = vadd.f32 %v17511_v4, %v16682_v48  ;;  %v2814_v30 = vadd.f32 %v16690_v33, %v17511_v4  ;;  %v21682_v31 = vld [vmem:[#allocation493_spill] sm:$0xff]  ;;  %v21693_v26 = vld [vmem:[#allocation398_spill] sm:$0xff] }
 0x365   : > { %21657 = vst [vmem:[#allocation542_spill] sm:$0xff] %v17559_v34  ;;  %21658 = vst [vmem:[#allocation543_spill] sm:$0xff] %v17564_v38  ;;  %v2806_v15 = vadd.f32 %v17511_v4, %v16698_v46  ;;  %v2827_v41 = vadd.f32 %v16714_v16, %v17511_v4  ;;  %v2819_v8 = vadd.f32 %v17511_v4, %v16719_v52  ;;  %v21681_v34 = vld [vmem:[#allocation387_spill] sm:$0xff]  ;;  %v21692_v38 = vld [vmem:[#allocation397_spill] sm:$0xff] }
 0x366   : > { %21659 = vst [vmem:[#allocation544_spill] sm:$0xff] %v17567_v57  ;;  %21660 = vst [vmem:[#allocation545_spill] sm:$0xff] %v17570_v42  ;;  %v2830_v40 = vadd.f32 %v16730_v32, %v17511_v4  ;;  %v2822_v0 = vadd.f32 %v17511_v4, %v16746_v39  ;;  %v17594_v48 = vmul.f32 %v17189_v17, %v2798_v47 }
 0x367   : > { %21661 = vst [vmem:[#allocation546_spill] sm:$0xff] %v17573_v5  ;;  %21662 = vst [vmem:[#allocation547_spill] sm:$0xff] %v17575_v10  ;;  %v17597_v33 = vmul.f32 %v17140_v62, %v2790_v43  ;;  %v17600_v46 = vmul.f32 %v17130_v58, %v2811_v23  ;;  %v17603_v16 = vmul.f32 %v17100_v63, %v2803_v49 }
 0x368   : > { %21663 = vst [vmem:[#allocation548_spill] sm:$0xff] %v17594_v48  ;;  %v17606_v52 = vmul.f32 %v17130_v58, %v2814_v30  ;;  %v17609_v32 = vmul.f32 %v17100_v63, %v2806_v15  ;;  %v17612_v39 = vmul.f32 %v17185_v37, %v2827_v41  ;;  %v17615_v17 = vmul.f32 %v17225_v55, %v2819_v8  ;;  %v17625_v63 = vpop.permute.xlu1 %11755  ;;  %v17637_v30 = vpop.permute.xlu0 %11751 }
 0x369   : > { %21664 = vst [vmem:[#allocation549_spill] sm:$0xff] %v17597_v33  ;;  %21665 = vst [vmem:[#allocation550_spill] sm:$0xff] %v17603_v16  ;;  %v2843_v62 = vadd.f32 %v16757_v59, %v17511_v4  ;;  %v2835_v47 = vadd.f32 %v17511_v4, %v16761_v13  ;;  %v2846_v43 = vadd.f32 %v16770_v35, %v17511_v4 }
 0x36a   : > { %21666 = vst [vmem:[#allocation551_spill] sm:$0xff] %v17609_v32  ;;  %v2838_v58 = vadd.f32 %v17511_v4, %v16774_v2  ;;  %21667 = vst [vmem:[#allocation552_spill] sm:$0xff] %v17625_v63  ;;  %v17628_v23 = vmul.f32 %v17185_v37, %v2830_v40  ;;  %v17631_v49 = vmul.f32 %v17225_v55, %v2822_v0 }
 0x36b   : > { %v2859_v59 = vadd.f32 %v16783_v28, %v17511_v4  ;;  %v2851_v13 = vadd.f32 %v17511_v4, %v16795_v6  ;;  %21668 = vst [vmem:[#allocation553_spill] sm:$0xff] %v17637_v30  ;;  %v17640_v35 = vmul.f32 %v17215_v11, %v2843_v62  ;;  %v17643_v2 = vmul.f32 %v17271_v22, %v2835_v47  ;;  %v21670_v47 = vld [vmem:[#allocation371_spill] sm:$0xff] }
 0x36c   : > { %v2862_v37 = vadd.f32 %v16806_v7, %v17511_v4  ;;  %v2854_v55 = vadd.f32 %v17511_v4, %v16820_v12  ;;  %v17650_v15 = vmul.f32 %v17215_v11, %v2846_v43  ;;  %v17653_v28 = vmul.f32 %v17271_v22, %v2838_v58  ;;  %v21669_v22 = vld [vmem:[#allocation364_spill] sm:$0xff]  ;;  %v17689_v58 = vpop.permute.xlu1 %11759 }
 0x36d   : > { %v17656_v6 = vmul.f32 %v17264_v14, %v2859_v59  ;;  %v17659_v41 = vmul.f32 %v17312_v36, %v2851_v13  ;;  %v2875_v8 = vadd.f32 %v16834_v21, %v17511_v4  ;;  %v2867_v7 = vadd.f32 %v17511_v4, %v16838_v60  ;;  %21671 = vst [vmem:[#allocation364_spill] sm:$0xff] %v17689_v58  ;;  %v21672_v59 = vld [vmem:[#allocation483_spill] sm:$0xff]  ;;  %v21674_v13 = vld [vmem:[#allocation494_spill] sm:$0xff] }
 0x36e   : > { %v2878_v12 = vadd.f32 %v16845_v18, %v17511_v4  ;;  %v2870_v11 = vadd.f32 %v17511_v4, %v16852_v20  ;;  %v2891_v40 = vadd.f32 %v21669_v22, %v17511_v4  ;;  %v2883_v0 = vadd.f32 %v17511_v4, %v16870_v45 }
 0x36f   : > { %v2894_v62 = vadd.f32 %v16878_v53, %v17511_v4  ;;  %v2886_v21 = vadd.f32 %v17511_v4, %v21670_v47  ;;  %v17678_v60 = vmul.f32 %v17264_v14, %v2862_v37  ;;  %v17681_v18 = vmul.f32 %v17312_v36, %v2854_v55  ;;  %v3460_v37 = vpop.permute.xlu0 %3459  ;;  %v21675_v55 = vld [vmem:[#allocation376_spill] sm:$0xff]  ;;  %v21677_v47 = vld [vmem:[#allocation381_spill] sm:$0xff] }
 0x370   : > { %v17684_v20 = vmul.f32 %v17305_v25, %v2875_v8  ;;  %v17687_v43 = vmul.f32 %v17354_v51, %v2867_v7  ;;  %v17692_v45 = vmul.f32 %v17305_v25, %v2878_v12  ;;  %v17695_v53 = vmul.f32 %v17354_v51, %v2870_v11  ;;  %v21676_v7 = vld [vmem:[#allocation379_spill] sm:$0xff]  ;;  %v3472_v61 = vpop.permute.xlu1 %3471 }
 0x371   : > { %v17698_v14 = vmul.f32 %v21672_v59, %v2891_v40  ;;  %v17701_v36 = vmul.f32 %v21674_v13, %v2883_v0  ;;  %v2907_v8 = vadd.f32 %v21675_v55, %v17511_v4  ;;  %v2899_v22 = vadd.f32 %v17511_v4, %v21676_v7  ;;  %v21678_v12 = vld [vmem:[#allocation383_spill] sm:$0xff]  ;;  %v21680_v0 = vld [vmem:[#allocation384_spill] sm:$0xff] }
 0x372   : > { %v2910_v25 = vadd.f32 %v21677_v47, %v17511_v4  ;;  %v2902_v51 = vadd.f32 %v17511_v4, %v21678_v12  ;;  %v17712_v11 = vmul.f32 %v21672_v59, %v2894_v62  ;;  %v17715_v40 = vmul.f32 %v21674_v13, %v2886_v21  ;;  %v21685_v12 = vld [vmem:[#allocation390_spill] sm:$0xff]  ;;  %v21686_v62 = vld [vmem:[#allocation393_spill] sm:$0xff] }
 0x373   : > { %21673 = vst [vmem:[#allocation371_spill] sm:$0xff] %v17698_v14  ;;  %v2923_v57 = vadd.f32 %v21680_v0, %v17511_v4  ;;  %v2915_v55 = vadd.f32 %v17511_v4, %v21681_v34  ;;  %v17722_v7 = vmul.f32 %v21682_v31, %v2907_v8  ;;  %v17725_v47 = vmul.f32 %v17434_v9, %v2899_v22  ;;  %v21691_v22 = vld [vmem:[#allocation395_spill] sm:$0xff] }
 0x374   : > { %21679 = vst [vmem:[#allocation483_spill] sm:$0xff] %v17712_v11  ;;  %v2926_v56 = vadd.f32 %v21685_v12, %v17511_v4  ;;  %v2918_v59 = vadd.f32 %v17511_v4, %v21686_v62  ;;  %v17732_v21 = vmul.f32 %v21682_v31, %v2910_v25  ;;  %v17735_v13 = vmul.f32 %v17434_v9, %v2902_v51  ;;  %v21694_v31 = vld [vmem:[#allocation10_spill] sm:$0xff] }
 0x375   : > { %21683 = vst [vmem:[#allocation494_spill] sm:$0xff] %v17722_v7  ;;  %21684 = vst [vmem:[#allocation376_spill] sm:$0xff] %v17725_v47  ;;  %v17738_v34 = vmul.f32 %v17561_v19, %v2923_v57  ;;  %v17740_v8 = vmul.f32 %v3460_v37, %v2915_v55  ;;  %v2939_v0 = vadd.f32 %v21691_v22, %v17511_v4  ;;  %v21695_v57 = vld [vmem:[#allocation3_spill] sm:$0xff]  ;;  %v21696_v22 = vld [vmem:[#allocation42_spill] sm:$0xff] }
 0x376   : > { %21687 = vst [vmem:[#allocation379_spill] sm:$0xff] %v17732_v21  ;;  %21688 = vst [vmem:[#allocation381_spill] sm:$0xff] %v17735_v13  ;;  %v2931_v12 = vadd.f32 %v17511_v4, %v21692_v38  ;;  %v2942_v62 = vadd.f32 %v21693_v26, %v17511_v4  ;;  %v3946_v25 = vmul.f32 %v21694_v31, %v17573_v5  ;;  %v3468_v38 = vpop.permute.xlu0 %3467 }
 0x377   : > { %21689 = vst [vmem:[#allocation383_spill] sm:$0xff] %v17738_v34  ;;  %21690 = vst [vmem:[#allocation384_spill] sm:$0xff] %v17740_v8  ;;  %v3947_v9 = vmul.f32 %v21694_v31, %v17597_v33  ;;  %v4434_v51 = vmul.f32 %v21695_v57, %v17570_v42  ;;  %v4435_v55 = vmul.f32 %v21695_v57, %v17594_v48 }
 0x378   : > { %v4922_v54 = vmul.f32 %v21696_v22, %v17603_v16  ;;  %v17759_v34 = vmul.f32 %v17561_v19, %v2926_v56  ;;  %v17761_v26 = vmul.f32 %v3460_v37, %v2918_v59  ;;  %v17763_v8 = vmul.f32 %v3472_v61, %v2939_v0  ;;  %v21703_v19 = vld [vmem:[#allocation74_spill] sm:$0xff] }
 0x379   : > { %v4923_v31 = vmul.f32 %v21696_v22, %v17609_v32  ;;  %v17767_v58 = vmul.f32 %v3468_v38, %v2931_v12  ;;  %v17769_v63 = vmul.f32 %v3472_v61, %v2942_v62  ;;  %v4498_v30 = vadd.f32 %v4434_v51, %v3946_v25  ;;  %v21704_v12 = vld [vmem:[#allocation66_spill] sm:$0xff] }
 0x37a   : > { %21697 = vst [vmem:[#allocation387_spill] sm:$0xff] %v17759_v34  ;;  %21698 = vst [vmem:[#allocation493_spill] sm:$0xff] %v17761_v26  ;;  %v4499_v57 = vadd.f32 %v4435_v55, %v3947_v9  ;;  %v5410_v10 = vmul.f32 %v21702_v3, %v17600_v46  ;;  %v5411_v56 = vmul.f32 %v21702_v3, %v17606_v52  ;;  %v21705_v25 = vld [vmem:[#allocation106_spill] sm:$0xff] }
 0x37b   : > { %21699 = vst [vmem:[#allocation390_spill] sm:$0xff] %v17763_v8  ;;  %21700 = vst [vmem:[#allocation393_spill] sm:$0xff] %v17767_v58  ;;  %v5898_v37 = vmul.f32 %v21703_v19, %v17615_v17  ;;  %v5899_v59 = vmul.f32 %v21703_v19, %v17631_v49  ;;  %v4986_v0 = vadd.f32 %v4922_v54, %v4498_v30  ;;  %v21706_v51 = vld [vmem:[#allocation98_spill] sm:$0xff] }
 0x37c   : > { %21701 = vst [vmem:[#allocation395_spill] sm:$0xff] %v17769_v63  ;;  %v4987_v22 = vadd.f32 %v4923_v31, %v4499_v57  ;;  %v6386_v61 = vmul.f32 %v21704_v12, %v17612_v39  ;;  %v6387_v62 = vmul.f32 %v21704_v12, %v17628_v23  ;;  %v6874_v9 = vmul.f32 %v21705_v25, %v17643_v2  ;;  %v21707_v31 = vld [vmem:[#allocation138_spill] sm:$0xff]  ;;  %v17795_v63 = vpop.f32.mrb[176].mxu1 }
 0x37d   : > { %v6875_v3 = vmul.f32 %v21705_v25, %v17653_v28  ;;  %v7362_v55 = vmul.f32 %v21706_v51, %v17640_v35  ;;  %v7363_v19 = vmul.f32 %v21706_v51, %v17650_v15  ;;  %v5474_v54 = vadd.f32 %v5410_v10, %v4986_v0  ;;  %21708 = vst [vmem:[#allocation397_spill] sm:$0xff] %v17795_v63  ;;  %v21709_v8 = vld [vmem:[#allocation130_spill] sm:$0xff] }
 0x37e   : > { %v5475_v30 = vadd.f32 %v5411_v56, %v4987_v22  ;;  %v7850_v57 = vmul.f32 %v21707_v31, %v17659_v41  ;;  %v7851_v12 = vmul.f32 %v21707_v31, %v17681_v18  ;;  %v8338_v58 = vmul.f32 %v21709_v8, %v17656_v6  ;;  %v21710_v34 = vld [vmem:[#allocation170_spill] sm:$0xff]  ;;  %v17805_v56 = vpop.f32.mrb[177].mxu1 }
 0x37f   : > { %v8339_v25 = vmul.f32 %v21709_v8, %v17678_v60  ;;  %v8826_v26 = vmul.f32 %v21710_v34, %v17687_v43  ;;  %v8827_v10 = vmul.f32 %v21710_v34, %v17695_v53  ;;  %21711 = vst [vmem:[#allocation398_spill] sm:$0xff] %v17805_v56  ;;  %v5962_v0 = vadd.f32 %v5898_v37, %v5474_v54  ;;  %v21712_v51 = vld [vmem:[#allocation162_spill] sm:$0xff]  ;;  %v17811_v24 = vpop.f32.mrb[178].mxu1 }
 0x380   : > { %v5963_v22 = vadd.f32 %v5899_v59, %v5475_v30  ;;  %v9314_v31 = vmul.f32 %v21712_v51, %v17684_v20  ;;  %v9315_v63 = vmul.f32 %v21712_v51, %v17692_v45  ;;  %21713 = vst [vmem:[#allocation10_spill] sm:$0xff] %v17811_v24  ;;  %v21714_v8 = vld [vmem:[#allocation202_spill] sm:$0xff]  ;;  %v17825_v59 = vpop.f32.mrb[179].mxu1 }
 0x381   : > { %v9802_v44 = vmul.f32 %v21714_v8, %v17701_v36  ;;  %v9803_v1 = vmul.f32 %v21714_v8, %v17715_v40  ;;  %v21715_v34 = vld [vmem:[#allocation194_spill] sm:$0xff]  ;;  %21717 = vst [vmem:[#allocation42_spill] sm:$0xff] %v17825_v59  ;;  %v6450_v54 = vadd.f32 %v6386_v61, %v5962_v0  ;;  %v21721_v8 = vld [vmem:[#allocation415_spill] sm:$0xff] }
 0x382   : > { %v17819_v50 = vmul.f32 %v21715_v34, %v17698_v14  ;;  %v17823_v37 = vmul.f32 %v21715_v34, %v17712_v11  ;;  %v6451_v30 = vadd.f32 %v6387_v62, %v5963_v22  ;;  %v21718_v51 = vld [vmem:[#allocation234_spill] sm:$0xff]  ;;  %v2934_v27 = vadd.f32 %v17511_v4, %v21721_v8 }
 0x383   : > { %v17829_v24 = vmul.f32 %v21718_v51, %v17725_v47  ;;  %v17833_v56 = vmul.f32 %v21718_v51, %v17735_v13  ;;  %v3949_v34 = vmul.f32 %v21722_v29, %v17597_v33  ;;  %v21723_v61 = vld [vmem:[#allocation2_spill] sm:$0xff]  ;;  %v6938_v0 = vadd.f32 %v6874_v9, %v6450_v54  ;;  %v21724_v51 = vld [vmem:[#allocation43_spill] sm:$0xff] }
 0x384   : > { %21716 = vst [vmem:[#allocation3_spill] sm:$0xff] %v17819_v50  ;;  %v3948_v50 = vmul.f32 %v21722_v29, %v17573_v5  ;;  %v4436_v62 = vmul.f32 %v21723_v61, %v17570_v42  ;;  %v6939_v22 = vadd.f32 %v6875_v3, %v6451_v30  ;;  %v4437_v59 = vmul.f32 %v21723_v61, %v17594_v48 }
 0x385   : > { %21719 = vst [vmem:[#allocation34_spill] sm:$0xff] %v17829_v24  ;;  %21720 = vst [vmem:[#allocation74_spill] sm:$0xff] %v17833_v56  ;;  %v4924_v56 = vmul.f32 %v21724_v51, %v17603_v16  ;;  %v21725_v24 = vld [vmem:[#allocation226_spill] sm:$0xff]  ;;  %v4925_v42 = vmul.f32 %v21724_v51, %v17609_v32  ;;  %v7426_v9 = vadd.f32 %v7362_v55, %v6938_v0  ;;  %v21728_v16 = vld [vmem:[#allocation36_spill] sm:$0xff] }
 0x386   : > { %v17849_v8 = vmul.f32 %v21725_v24, %v17722_v7  ;;  %v17853_v4 = vmul.f32 %v21725_v24, %v17732_v21  ;;  %v4500_v29 = vadd.f32 %v4436_v62, %v3948_v50  ;;  %v7427_v3 = vadd.f32 %v7363_v19, %v6939_v22 }
 0x387   : > { %v17857_v54 = vmul.f32 %v3468_v38, %v2934_v27  ;;  %v4501_v30 = vadd.f32 %v4437_v59, %v3949_v34  ;;  %v5412_v48 = vmul.f32 %v21728_v16, %v17600_v46  ;;  %v5413_v7 = vmul.f32 %v21728_v16, %v17606_v52  ;;  %v21730_v27 = vld [vmem:[#allocation67_spill] sm:$0xff]  ;;  %v21731_v59 = vld [vmem:[#allocation108_spill] sm:$0xff] }
 0x388   : > { %21726 = vst [vmem:[#allocation66_spill] sm:$0xff] %v17849_v8  ;;  %v4988_v61 = vadd.f32 %v4924_v56, %v4500_v29  ;;  %v21729_v8 = vld [vmem:[#allocation76_spill] sm:$0xff]  ;;  %v7914_v21 = vadd.f32 %v7850_v57, %v7426_v9  ;;  %v7915_v50 = vadd.f32 %v7851_v12, %v7427_v3  ;;  %v6388_v38 = vmul.f32 %v21730_v27, %v17612_v39  ;;  %v21732_v12 = vld [vmem:[#allocation99_spill] sm:$0xff] }
 0x389   : > { %21727 = vst [vmem:[#allocation106_spill] sm:$0xff] %v17857_v54  ;;  %v5900_v24 = vmul.f32 %v21729_v8, %v17615_v17  ;;  %v4989_v62 = vadd.f32 %v4925_v42, %v4501_v30  ;;  %v5901_v55 = vmul.f32 %v21729_v8, %v17631_v49  ;;  %v6389_v56 = vmul.f32 %v21730_v27, %v17628_v23  ;;  %v21733_v8 = vld [vmem:[#allocation139_spill] sm:$0xff] }
 0x38a   : > { %v5476_v19 = vadd.f32 %v5412_v48, %v4988_v61  ;;  %v6876_v34 = vmul.f32 %v21731_v59, %v17643_v2  ;;  %v8402_v16 = vadd.f32 %v8338_v58, %v7914_v21  ;;  %v8403_v0 = vadd.f32 %v8339_v25, %v7915_v50  ;;  %v21734_v21 = vld [vmem:[#allocation131_spill] sm:$0xff] }
 0x38b   : > { %v5477_v22 = vadd.f32 %v5413_v7, %v4989_v62  ;;  %v6877_v57 = vmul.f32 %v21731_v59, %v17653_v28  ;;  %v7364_v51 = vmul.f32 %v21732_v12, %v17640_v35  ;;  %v7365_v48 = vmul.f32 %v21732_v12, %v17650_v15 }
 0x38c   : > { %v5964_v42 = vadd.f32 %v5900_v24, %v5476_v19  ;;  %v7852_v29 = vmul.f32 %v21733_v8, %v17659_v41  ;;  %v8890_v9 = vadd.f32 %v8826_v26, %v8402_v16  ;;  %v8891_v3 = vadd.f32 %v8827_v10, %v8403_v0  ;;  %v21735_v24 = vld [vmem:[#allocation171_spill] sm:$0xff]  ;;  %v21737_v16 = vld [vmem:[#allocation204_spill] sm:$0xff] }
 0x38d   : > { %v5965_v30 = vadd.f32 %v5901_v55, %v5477_v22  ;;  %v7853_v58 = vmul.f32 %v21733_v8, %v17681_v18  ;;  %v8340_v25 = vmul.f32 %v21734_v21, %v17656_v6  ;;  %v8341_v61 = vmul.f32 %v21734_v21, %v17678_v60  ;;  %v21736_v55 = vld [vmem:[#allocation164_spill] sm:$0xff] }
 0x38e   : > { %v6452_v7 = vadd.f32 %v6388_v38, %v5964_v42  ;;  %v8828_v50 = vmul.f32 %v21735_v24, %v17687_v43  ;;  %v9378_v62 = vadd.f32 %v9314_v31, %v8890_v9  ;;  %v9379_v19 = vadd.f32 %v9315_v63, %v8891_v3  ;;  %v21739_v9 = vld [vmem:[#allocation236_spill] sm:$0xff] }
 0x38f   : > { %v6453_v27 = vadd.f32 %v6389_v56, %v5965_v30  ;;  %v8829_v26 = vmul.f32 %v21735_v24, %v17695_v53  ;;  %v9316_v59 = vmul.f32 %v21736_v55, %v17684_v20  ;;  %v9317_v38 = vmul.f32 %v21736_v55, %v17692_v45  ;;  %v21738_v56 = vld [vmem:[#allocation195_spill] sm:$0xff]  ;;  %v21744_v55 = vld [vmem:[#allocation34_spill] sm:$0xff] }
 0x390   : > { %v6940_v10 = vadd.f32 %v6876_v34, %v6452_v7  ;;  %v9804_v0 = vmul.f32 %v21737_v16, %v17701_v36  ;;  %v9866_v22 = vadd.f32 %v9802_v44, %v9378_v62  ;;  %v9867_v42 = vadd.f32 %v9803_v1, %v9379_v19  ;;  %v21740_v30 = vld [vmem:[#allocation3_spill] sm:$0xff]  ;;  %v21742_v19 = vld [vmem:[#allocation545_spill] sm:$0xff] }
 0x391   : > { %v6941_v12 = vadd.f32 %v6877_v57, %v6453_v27  ;;  %v9805_v63 = vmul.f32 %v21737_v16, %v17715_v40  ;;  %v10292_v8 = vmul.f32 %v21738_v56, %v17698_v14  ;;  %v10293_v34 = vmul.f32 %v21738_v56, %v17712_v11  ;;  %v21743_v27 = vld [vmem:[#allocation7_spill] sm:$0xff]  ;;  %v21745_v56 = vld [vmem:[#allocation74_spill] sm:$0xff] }
 0x392   : > { %v7428_v31 = vadd.f32 %v7364_v51, %v6940_v10  ;;  %v10780_v3 = vmul.f32 %v21739_v9, %v17725_v47  ;;  %v10354_v7 = vadd.f32 %v21740_v30, %v9866_v22  ;;  %v10355_v21 = vadd.f32 %v17823_v37, %v9867_v42  ;;  %v21741_v51 = vld [vmem:[#allocation12_spill] sm:$0xff] }
 0x393   : > { %v7429_v44 = vadd.f32 %v7365_v48, %v6941_v12  ;;  %v10781_v1 = vmul.f32 %v21739_v9, %v17735_v13  ;;  %v3950_v24 = vmul.f32 %v21741_v51, %v17573_v5  ;;  %v3951_v62 = vmul.f32 %v21741_v51, %v17597_v33  ;;  %v21746_v37 = vld [vmem:[#allocation548_spill] sm:$0xff]  ;;  %v21749_v51 = vld [vmem:[#allocation66_spill] sm:$0xff] }
 0x394   : > { %v7916_v57 = vadd.f32 %v7852_v29, %v7428_v31  ;;  %v4438_v10 = vmul.f32 %v21743_v27, %v21742_v19  ;;  %v10842_v16 = vadd.f32 %v21744_v55, %v10354_v7  ;;  %v10843_v22 = vadd.f32 %v21745_v56, %v10355_v21  ;;  %v21747_v29 = vld [vmem:[#allocation550_spill] sm:$0xff]  ;;  %v21748_v31 = vld [vmem:[#allocation44_spill] sm:$0xff] }
 0x395   : > { %v7917_v30 = vadd.f32 %v7853_v58, %v7429_v44  ;;  %v4439_v48 = vmul.f32 %v21743_v27, %v21746_v37  ;;  %v4926_v9 = vmul.f32 %v21748_v31, %v21747_v29  ;;  %v4927_v54 = vmul.f32 %v21748_v31, %v17609_v32  ;;  %v21750_v58 = vld [vmem:[#allocation37_spill] sm:$0xff] }
 0x396   : > { %v8404_v42 = vadd.f32 %v8340_v25, %v7916_v57  ;;  %v4502_v12 = vadd.f32 %v4438_v10, %v3950_v24  ;;  %v11330_v33 = vadd.f32 %v21749_v51, %v10842_v16  ;;  %v11331_v19 = vadd.f32 %v17853_v4, %v10843_v22  ;;  %v21751_v57 = vld [vmem:[#allocation513_spill] sm:$0xff] }
 0x397   : > { %v8405_v5 = vadd.f32 %v8341_v61, %v7917_v30  ;;  %v4503_v7 = vadd.f32 %v4439_v48, %v3951_v62  ;;  %v5414_v44 = vmul.f32 %v21750_v58, %v17600_v46  ;;  %v5415_v25 = vmul.f32 %v21750_v58, %v17606_v52  ;;  %v21752_v4 = vld [vmem:[#allocation77_spill] sm:$0xff]  ;;  %v21753_v30 = vld [vmem:[#allocation494_spill] sm:$0xff]  ;;  %v21754_v48 = vld [vmem:[#allocation227_spill] sm:$0xff] }
 0x398   : > { %v8892_v55 = vadd.f32 %v8828_v50, %v8404_v42  ;;  %v4990_v21 = vadd.f32 %v4926_v9, %v4502_v12  ;;  %v11854_v24 = vmul.f32 %v21751_v57, %v11330_v33  ;;  %v11855_v27 = vmul.f32 %v21751_v57, %v11331_v19  ;;  %v21755_v19 = vld [vmem:[#allocation69_spill] sm:$0xff] }
 0x399   : > { %v8893_v10 = vadd.f32 %v8829_v26, %v8405_v5  ;;  %v4991_v56 = vadd.f32 %v4927_v54, %v4503_v7  ;;  %v5902_v61 = vmul.f32 %v21752_v4, %v17615_v17  ;;  %v5903_v50 = vmul.f32 %v21752_v4, %v17631_v49  ;;  %v21756_v54 = vld [vmem:[#allocation109_spill] sm:$0xff] }
 0x39a   : > { %v9380_v31 = vadd.f32 %v9316_v59, %v8892_v55  ;;  %v5478_v16 = vadd.f32 %v5414_v44, %v4990_v21  ;;  %v11918_v62 = vpack.c.bf16 %v11855_v27, %v11854_v24  ;;  %v11268_v42 = vmul.f32 %v21754_v48, %v21753_v30  ;;  %v21757_v21 = vld [vmem:[#allocation379_spill] sm:$0xff]  ;;  %v21758_v44 = vld [vmem:[#allocation100_spill] sm:$0xff] }
 0x39b   : > { %v9381_v22 = vadd.f32 %v9317_v38, %v8893_v10  ;;  %v5479_v12 = vadd.f32 %v5415_v25, %v4991_v56  ;;  %v6390_v5 = vmul.f32 %v21755_v19, %v17612_v39  ;;  %v6878_v26 = vmul.f32 %v21756_v54, %v17643_v2  ;;  %v21759_v27 = vld [vmem:[#allocation140_spill] sm:$0xff] }
 0x39c   : > { %v9868_v9 = vadd.f32 %v9804_v0, %v9380_v31  ;;  %v5966_v33 = vadd.f32 %v5902_v61, %v5478_v16  ;;  %13697 = vmatprep.mubr.msk.bf16.mxu0 %vm1463_vm6, %v11918_v62  ;;  %v6391_v7 = vmul.f32 %v21755_v19, %v17628_v23  ;;  %v6879_v38 = vmul.f32 %v21756_v54, %v17653_v28  ;;  %v21760_v16 = vld [vmem:[#allocation132_spill] sm:$0xff] }
 0x39d   : > { %v9869_v59 = vadd.f32 %v9805_v63, %v9381_v22  ;;  %v5967_v51 = vadd.f32 %v5903_v50, %v5479_v12  ;;  %v11269_v0 = vmul.f32 %v21754_v48, %v21757_v21  ;;  %v7366_v25 = vmul.f32 %v21758_v44, %v17640_v35  ;;  %v21761_v62 = vld [vmem:[#allocation172_spill] sm:$0xff]  ;;  %v17962_v48 = vpop.permute.xlu0 %11763 }
 0x39e   : > { %v10356_v55 = vadd.f32 %v10292_v8, %v9868_v9  ;;  %v6454_v58 = vadd.f32 %v6390_v5, %v5966_v33  ;;  %v7367_v63 = vmul.f32 %v21758_v44, %v17650_v15  ;;  %v7854_v10 = vmul.f32 %v21759_v27, %v17659_v41  ;;  %21762 = vst [vmem:[#allocation98_spill] sm:$0xff] %v17962_v48  ;;  %v21763_v33 = vld [vmem:[#allocation165_spill] sm:$0xff]  ;;  %v17968_v5 = vpop.f32.mrb[180].mxu1  ;;  %v3480_v48 = vpop.permute.xlu1 %3479 }
 0x39f   : > { %v10357_v57 = vadd.f32 %v10293_v34, %v9869_v59  ;;  %v6455_v24 = vadd.f32 %v6391_v7, %v5967_v51  ;;  %v7855_v8 = vmul.f32 %v21759_v27, %v17681_v18  ;;  %v8342_v4 = vmul.f32 %v21760_v16, %v17656_v6  ;;  %21764 = vst [vmem:[#allocation138_spill] sm:$0xff] %v17968_v5  ;;  %v21765_v59 = vld [vmem:[#allocation205_spill] sm:$0xff]  ;;  %v17974_v7 = vpop.f32.mrb[181].mxu1  ;;  %v21785_v5 = vld [vmem:[#allocation48_spill] sm:$0xff] }
 0x3a0   : > { %v10844_v56 = vadd.f32 %v10780_v3, %v10356_v55  ;;  %v6942_v31 = vadd.f32 %v6878_v26, %v6454_v58  ;;  %v8343_v34 = vmul.f32 %v21760_v16, %v17678_v60  ;;  %v8830_v22 = vmul.f32 %v21761_v62, %v17687_v43  ;;  %21766 = vst [vmem:[#allocation130_spill] sm:$0xff] %v17974_v7  ;;  %v21768_v44 = vld [vmem:[#allocation197_spill] sm:$0xff] }
 0x3a1   : > { %v10845_v61 = vadd.f32 %v10781_v1, %v10357_v57  ;;  %v6943_v50 = vadd.f32 %v6879_v38, %v6455_v24  ;;  %v8831_v3 = vmul.f32 %v21761_v62, %v17695_v53  ;;  %v9318_v19 = vmul.f32 %v21763_v33, %v17684_v20  ;;  %v17981_v57 = vpop.f32.mrb[182].mxu1  ;;  %v21770_v27 = vld [vmem:[#allocation237_spill] sm:$0xff] }
 0x3a2   : > { %v11332_v12 = vadd.f32 %v11268_v42, %v10844_v56  ;;  %v7430_v9 = vadd.f32 %v7366_v25, %v6942_v31  ;;  %v9319_v26 = vmul.f32 %v21763_v33, %v17692_v45  ;;  %v9806_v51 = vmul.f32 %v21765_v59, %v17701_v36  ;;  %v21767_v42 = vld [vmem:[#allocation503_spill] sm:$0xff]  ;;  %21769 = vst [vmem:[#allocation170_spill] sm:$0xff] %v17981_v57  ;;  %v17988_v31 = vpop.f32.mrb[183].mxu1  ;;  %v21779_v57 = vld [vmem:[#allocation13_spill] sm:$0xff] }
 0x3a3   : > { %v11333_v1 = vadd.f32 %v11269_v0, %v10845_v61  ;;  %v7431_v54 = vadd.f32 %v7367_v63, %v6943_v50  ;;  %v9807_v58 = vmul.f32 %v21765_v59, %v17715_v40  ;;  %v10294_v25 = vmul.f32 %v21768_v44, %v17698_v14  ;;  %21771 = vst [vmem:[#allocation162_spill] sm:$0xff] %v17988_v31  ;;  %v21772_v61 = vld [vmem:[#allocation529_spill] sm:$0xff]  ;;  %v21778_v31 = vld [vmem:[#allocation546_spill] sm:$0xff] }
 0x3a4   : > { %v11856_v38 = vmul.f32 %v21767_v42, %v11332_v12  ;;  %v7918_v55 = vadd.f32 %v7854_v10, %v7430_v9  ;;  %v10295_v63 = vmul.f32 %v21768_v44, %v17712_v11  ;;  %v10782_v56 = vmul.f32 %v21770_v27, %v17725_v47  ;;  %v21773_v50 = vld [vmem:[#allocation457_spill] sm:$0xff]  ;;  %v21774_v12 = vld [vmem:[#allocation460_spill] sm:$0xff]  ;;  %v3476_v44 = vpop.permute.xlu0 %3475 }
 0x3a5   : > { %v11857_v0 = vmul.f32 %v21767_v42, %v11333_v1  ;;  %v7919_v24 = vadd.f32 %v7855_v8, %v7431_v54  ;;  %v10783_v16 = vmul.f32 %v21770_v27, %v17735_v13  ;;  %v2955_v62 = vadd.f32 %v21773_v50, %v21772_v61  ;;  %v21775_v1 = vld [vmem:[#allocation463_spill] sm:$0xff]  ;;  %v21776_v59 = vld [vmem:[#allocation465_spill] sm:$0xff] }
 0x3a6   : > { %v8406_v10 = vadd.f32 %v8342_v4, %v7918_v55  ;;  %v2947_v9 = vadd.f32 %v21772_v61, %v21774_v12  ;;  %v2958_v54 = vadd.f32 %v21775_v1, %v21772_v61  ;;  %v2950_v42 = vadd.f32 %v21772_v61, %v21776_v59  ;;  %v21777_v55 = vld [vmem:[#allocation228_spill] sm:$0xff]  ;;  %v21784_v59 = vld [vmem:[#allocation5_spill] sm:$0xff] }
 0x3a7   : > { %v11919_v33 = vpack.c.bf16 %v11857_v0, %v11856_v38  ;;  %v8407_v8 = vadd.f32 %v8343_v34, %v7919_v24  ;;  %v11270_v27 = vmul.f32 %v21777_v55, %v21753_v30  ;;  %v11271_v50 = vmul.f32 %v21777_v55, %v21757_v21  ;;  %v21782_v24 = vld [vmem:[#allocation549_spill] sm:$0xff] }
 0x3a8   : > { %v8894_v4 = vadd.f32 %v8830_v22, %v8406_v10  ;;  %v3952_v12 = vmul.f32 %v21779_v57, %v21778_v31  ;;  %v18007_v38 = vmul.f32 %v3480_v48, %v2955_v62  ;;  %v18009_v0 = vmul.f32 %v3476_v44, %v2947_v9  ;;  %v21783_v10 = vld [vmem:[#allocation545_spill] sm:$0xff] }
 0x3a9   : > { %13698 = vmatmul.mubr.msk.bf16.vlgmr.msra.gmra.mrb[64].mxu0 %vm1463_vm6, %v11919_v33  ;;  %v8895_v34 = vadd.f32 %v8831_v3, %v8407_v8  ;;  %v3953_v1 = vmul.f32 %v21779_v57, %v21782_v24  ;;  %v4440_v7 = vmul.f32 %v21784_v59, %v21783_v10  ;;  %v4441_v55 = vmul.f32 %v21784_v59, %v21746_v37  ;;  %v21788_v8 = vld [vmem:[#allocation40_spill] sm:$0xff] }
 0x3aa   : > { %21780 = vst [vmem:[#allocation202_spill] sm:$0xff] %v18007_v38  ;;  %21781 = vst [vmem:[#allocation194_spill] sm:$0xff] %v18009_v0  ;;  %v9382_v22 = vadd.f32 %v9318_v19, %v8894_v4  ;;  %v4928_v61 = vmul.f32 %v21785_v5, %v21747_v29  ;;  %v18019_v33 = vmul.f32 %v3480_v48, %v2958_v54  ;;  %v21789_v0 = vld [vmem:[#allocation80_spill] sm:$0xff] }
 0x3ab   : > { %v9383_v21 = vadd.f32 %v9319_v26, %v8895_v34  ;;  %v18021_v3 = vmul.f32 %v3476_v44, %v2950_v42  ;;  %v4929_v62 = vmul.f32 %v21785_v5, %v17609_v32  ;;  %v4504_v57 = vadd.f32 %v4440_v7, %v3952_v12  ;;  %v21790_v5 = vld [vmem:[#allocation71_spill] sm:$0xff] }
 0x3ac   : > { %21786 = vst [vmem:[#allocation234_spill] sm:$0xff] %v18019_v33  ;;  %v9870_v9 = vadd.f32 %v9806_v51, %v9382_v22  ;;  %v4505_v19 = vadd.f32 %v4441_v55, %v3953_v1  ;;  %v5416_v4 = vmul.f32 %v21788_v8, %v17600_v46  ;;  %v5417_v59 = vmul.f32 %v21788_v8, %v17606_v52 }
 0x3ad   : > { %21787 = vst [vmem:[#allocation415_spill] sm:$0xff] %v18021_v3  ;;  %v9871_v38 = vadd.f32 %v9807_v58, %v9383_v21  ;;  %v5904_v26 = vmul.f32 %v21789_v0, %v17615_v17  ;;  %v5905_v48 = vmul.f32 %v21789_v0, %v17631_v49  ;;  %v4992_v42 = vadd.f32 %v4928_v61, %v4504_v57  ;;  %v21791_v21 = vld [vmem:[#allocation112_spill] sm:$0xff]  ;;  %v21807_v3 = vld [vmem:[#allocation35_spill] sm:$0xff] }
 0x3ae   : > { %v10358_v54 = vadd.f32 %v10294_v25, %v9870_v9  ;;  %v4993_v44 = vadd.f32 %v4929_v62, %v4505_v19  ;;  %v6392_v51 = vmul.f32 %v21790_v5, %v17612_v39  ;;  %v6393_v12 = vmul.f32 %v21790_v5, %v17628_v23  ;;  %v21792_v25 = vld [vmem:[#allocation101_spill] sm:$0xff] }
 0x3af   : > { %v10359_v7 = vadd.f32 %v10295_v63, %v9871_v38  ;;  %v6880_v58 = vmul.f32 %v21791_v21, %v17643_v2  ;;  %v6881_v34 = vmul.f32 %v21791_v21, %v17653_v28  ;;  %v5480_v22 = vadd.f32 %v5416_v4, %v4992_v42  ;;  %v21793_v63 = vld [vmem:[#allocation141_spill] sm:$0xff]  ;;  %v21796_v21 = vld [vmem:[#allocation168_spill] sm:$0xff] }
 0x3b0   : > { %v10846_v1 = vadd.f32 %v10782_v56, %v10358_v54  ;;  %v5481_v55 = vadd.f32 %v5417_v59, %v4993_v44  ;;  %v7368_v61 = vmul.f32 %v21792_v25, %v17640_v35  ;;  %v7369_v62 = vmul.f32 %v21792_v25, %v17650_v15  ;;  %v21794_v56 = vld [vmem:[#allocation133_spill] sm:$0xff] }
 0x3b1   : > { %v10847_v0 = vadd.f32 %v10783_v16, %v10359_v7  ;;  %v7856_v38 = vmul.f32 %v21793_v63, %v17659_v41  ;;  %v7857_v9 = vmul.f32 %v21793_v63, %v17681_v18  ;;  %v5968_v19 = vadd.f32 %v5904_v26, %v5480_v22  ;;  %v21795_v16 = vld [vmem:[#allocation176_spill] sm:$0xff] }
 0x3b2   : > { %v11334_v57 = vadd.f32 %v11270_v27, %v10846_v1  ;;  %v5969_v8 = vadd.f32 %v5905_v48, %v5481_v55  ;;  %v8344_v4 = vmul.f32 %v21794_v56, %v17656_v6  ;;  %v8345_v54 = vmul.f32 %v21794_v56, %v17678_v60  ;;  %v21797_v48 = vld [vmem:[#allocation534_spill] sm:$0xff]  ;;  %v21798_v22 = vld [vmem:[#allocation208_spill] sm:$0xff] }
 0x3b3   : > { %v11335_v59 = vadd.f32 %v11271_v50, %v10847_v0  ;;  %v8832_v42 = vmul.f32 %v21795_v16, %v17687_v43  ;;  %v8833_v44 = vmul.f32 %v21795_v16, %v17695_v53  ;;  %v6456_v5 = vadd.f32 %v6392_v51, %v5968_v19  ;;  %v21799_v51 = vld [vmem:[#allocation199_spill] sm:$0xff]  ;;  %v21800_v56 = vld [vmem:[#allocation240_spill] sm:$0xff]  ;;  %v21801_v16 = vld [vmem:[#allocation14_spill] sm:$0xff] }
 0x3b4   : > { %v6457_v7 = vadd.f32 %v6393_v12, %v5969_v8  ;;  %v9320_v27 = vmul.f32 %v21796_v21, %v17684_v20  ;;  %v9321_v26 = vmul.f32 %v21796_v21, %v17692_v45  ;;  %v11858_v1 = vmul.f32 %v21797_v48, %v11334_v57 }
 0x3b5   : > { %v11859_v50 = vmul.f32 %v21797_v48, %v11335_v59  ;;  %v9808_v55 = vmul.f32 %v21798_v22, %v17701_v36  ;;  %v9809_v25 = vmul.f32 %v21798_v22, %v17715_v40  ;;  %v6944_v0 = vadd.f32 %v6880_v58, %v6456_v5 }
 0x3b6   : > { %v6945_v63 = vadd.f32 %v6881_v34, %v6457_v7  ;;  %v10296_v12 = vmul.f32 %v21799_v51, %v17698_v14  ;;  %v10297_v19 = vmul.f32 %v21799_v51, %v17712_v11  ;;  %v18073_v57 = vmul.f32 %v21800_v56, %v17725_v47  ;;  %v21802_v7 = vld [vmem:[#allocation6_spill] sm:$0xff]  ;;  %v21805_v51 = vld [vmem:[#allocation45_spill] sm:$0xff] }
 0x3b7   : > { %v11920_v8 = vpack.c.bf16 %v11859_v50, %v11858_v1  ;;  %v18077_v59 = vmul.f32 %v21800_v56, %v17735_v13  ;;  %v3954_v21 = vmul.f32 %v21801_v16, %v21778_v31  ;;  %v7432_v58 = vadd.f32 %v7368_v61, %v6944_v0  ;;  %v21803_v1 = vld [vmem:[#allocation229_spill] sm:$0xff] }
 0x3b8   : > { %v7433_v34 = vadd.f32 %v7369_v62, %v6945_v63  ;;  %v3955_v5 = vmul.f32 %v21801_v16, %v21782_v24  ;;  %v4442_v48 = vmul.f32 %v21802_v7, %v21783_v10  ;;  %v18088_v50 = vmul.f32 %v21803_v1, %v21753_v30  ;;  %v21806_v63 = vld [vmem:[#allocation379_spill] sm:$0xff] }
 0x3b9   : > { %13701 = vmatprep.mubr.msk.bf16.mxu0 %vm1463_vm6, %v11920_v8  ;;  %v4443_v22 = vmul.f32 %v21802_v7, %v21746_v37  ;;  %v4930_v56 = vmul.f32 %v21805_v51, %v21747_v29  ;;  %v4931_v61 = vmul.f32 %v21805_v51, %v17609_v32  ;;  %v7920_v62 = vadd.f32 %v7856_v38, %v7432_v58  ;;  %v21808_v7 = vld [vmem:[#allocation75_spill] sm:$0xff]  ;;  %v21809_v58 = vld [vmem:[#allocation68_spill] sm:$0xff] }
 0x3ba   : > { %21804 = vst [vmem:[#allocation8_spill] sm:$0xff] %v18088_v50  ;;  %v7921_v0 = vadd.f32 %v7857_v9, %v7433_v34  ;;  %v11273_v16 = vmul.f32 %v21803_v1, %v21806_v63  ;;  %v4506_v33 = vadd.f32 %v4442_v48, %v3954_v21  ;;  %v5418_v10 = vmul.f32 %v21807_v3, %v17600_v46 }
 0x3bb   : > { %v4507_v8 = vadd.f32 %v4443_v22, %v3955_v5  ;;  %v5419_v24 = vmul.f32 %v21807_v3, %v17606_v52  ;;  %v5906_v37 = vmul.f32 %v21808_v7, %v17615_v17  ;;  %v8408_v29 = vadd.f32 %v8344_v4, %v7920_v62  ;;  %v21810_v5 = vld [vmem:[#allocation107_spill] sm:$0xff] }
 0x3bc   : > { %v8409_v31 = vadd.f32 %v8345_v54, %v7921_v0  ;;  %v4994_v50 = vadd.f32 %v4930_v56, %v4506_v33  ;;  %v5907_v38 = vmul.f32 %v21808_v7, %v17631_v49  ;;  %v6394_v21 = vmul.f32 %v21809_v58, %v17612_v39  ;;  %v21811_v54 = vld [vmem:[#allocation102_spill] sm:$0xff] }
 0x3bd   : > { %v4995_v9 = vadd.f32 %v4931_v61, %v4507_v8  ;;  %v6395_v34 = vmul.f32 %v21809_v58, %v17628_v23  ;;  %v6882_v48 = vmul.f32 %v21810_v5, %v17643_v2  ;;  %v8896_v3 = vadd.f32 %v8832_v42, %v8408_v29  ;;  %v21812_v61 = vld [vmem:[#allocation142_spill] sm:$0xff] }
 0x3be   : > { %v8897_v1 = vadd.f32 %v8833_v44, %v8409_v31  ;;  %v5482_v22 = vadd.f32 %v5418_v10, %v4994_v50  ;;  %v6883_v4 = vmul.f32 %v21810_v5, %v17653_v28  ;;  %v7370_v51 = vmul.f32 %v21811_v54, %v17640_v35  ;;  %v21813_v10 = vld [vmem:[#allocation134_spill] sm:$0xff]  ;;  %v21814_v44 = vld [vmem:[#allocation173_spill] sm:$0xff] }
 0x3bf   : > { %v5483_v33 = vadd.f32 %v5419_v24, %v4995_v9  ;;  %v7371_v56 = vmul.f32 %v21811_v54, %v17650_v15  ;;  %v7858_v62 = vmul.f32 %v21812_v61, %v17659_v41  ;;  %v9384_v0 = vadd.f32 %v9320_v27, %v8896_v3  ;;  %v18128_v9 = vpop.permute.xlu1 %11767 }
 0x3c0   : > { %v9385_v8 = vadd.f32 %v9321_v26, %v8897_v1  ;;  %v5970_v7 = vadd.f32 %v5906_v37, %v5482_v22  ;;  %v7859_v29 = vmul.f32 %v21812_v61, %v17681_v18  ;;  %v8346_v42 = vmul.f32 %v21813_v10, %v17656_v6  ;;  %21815 = vst [vmem:[#allocation2_spill] sm:$0xff] %v18128_v9  ;;  %v21817_v22 = vld [vmem:[#allocation203_spill] sm:$0xff]  ;;  %v21826_v9 = vld [vmem:[#allocation521_spill] sm:$0xff] }
 0x3c1   : > { %v5971_v31 = vadd.f32 %v5907_v38, %v5483_v33  ;;  %v8347_v24 = vmul.f32 %v21813_v10, %v17678_v60  ;;  %v8834_v50 = vmul.f32 %v21814_v44, %v17687_v43  ;;  %v9872_v58 = vadd.f32 %v9808_v55, %v9384_v0  ;;  %v21816_v38 = vld [vmem:[#allocation163_spill] sm:$0xff] }
 0x3c2   : > { %v9873_v5 = vadd.f32 %v9809_v25, %v9385_v8  ;;  %v6458_v27 = vadd.f32 %v6394_v21, %v5970_v7  ;;  %v8835_v37 = vmul.f32 %v21814_v44, %v17695_v53  ;;  %v9322_v3 = vmul.f32 %v21816_v38, %v17684_v20  ;;  %v18140_v25 = vpop.f32.mrb[184].mxu1  ;;  %v21820_v7 = vld [vmem:[#allocation235_spill] sm:$0xff] }
 0x3c3   : > { %v6459_v26 = vadd.f32 %v6395_v34, %v5971_v31  ;;  %v9323_v1 = vmul.f32 %v21816_v38, %v17692_v45  ;;  %v9810_v33 = vmul.f32 %v21817_v22, %v17701_v36  ;;  %v10360_v54 = vadd.f32 %v10296_v12, %v9872_v58  ;;  %21818 = vst [vmem:[#allocation43_spill] sm:$0xff] %v18140_v25  ;;  %v21819_v34 = vld [vmem:[#allocation196_spill] sm:$0xff]  ;;  %v18150_v44 = vpop.f32.mrb[185].mxu1  ;;  %v21824_v38 = vld [vmem:[#allocation529_spill] sm:$0xff] }
 0x3c4   : > { %v10361_v61 = vadd.f32 %v10297_v19, %v9873_v5  ;;  %v6946_v10 = vadd.f32 %v6882_v48, %v6458_v27  ;;  %v9811_v55 = vmul.f32 %v21817_v22, %v17715_v40  ;;  %v10298_v0 = vmul.f32 %v21819_v34, %v17698_v14  ;;  %21821 = vst [vmem:[#allocation226_spill] sm:$0xff] %v18150_v44  ;;  %v18156_v58 = vpop.f32.mrb[186].mxu1  ;;  %v21823_v27 = vld [vmem:[#allocation230_spill] sm:$0xff]  ;;  %v21830_v25 = vld [vmem:[#allocation524_spill] sm:$0xff] }
 0x3c5   : > { %v6947_v21 = vadd.f32 %v6883_v4, %v6459_v26  ;;  %v10299_v8 = vmul.f32 %v21819_v34, %v17712_v11  ;;  %v18148_v31 = vmul.f32 %v21820_v7, %v17725_v47  ;;  %v10848_v12 = vadd.f32 %v18073_v57, %v10360_v54  ;;  %21822 = vst [vmem:[#allocation36_spill] sm:$0xff] %v18156_v58  ;;  %v21825_v22 = vld [vmem:[#allocation518_spill] sm:$0xff]  ;;  %v18166_v57 = vpop.f32.mrb[187].mxu1 }
 0x3c6   : > { %v10849_v19 = vadd.f32 %v18077_v59, %v10361_v61  ;;  %v7434_v48 = vadd.f32 %v7370_v51, %v6946_v10  ;;  %v10787_v4 = vmul.f32 %v21820_v7, %v17735_v13  ;;  %v18160_v26 = vmul.f32 %v21823_v27, %v21753_v30  ;;  %21827 = vst [vmem:[#allocation76_spill] sm:$0xff] %v18166_v57  ;;  %v3488_v59 = vpop.permute.xlu1 %3487  ;;  %v21828_v51 = vld [vmem:[#allocation8_spill] sm:$0xff]  ;;  %v21831_v30 = vld [vmem:[#allocation530_spill] sm:$0xff] }
 0x3c7   : > { %v7435_v5 = vadd.f32 %v7371_v56, %v6947_v21  ;;  %v2971_v34 = vadd.f32 %v21825_v22, %v21824_v38  ;;  %v2963_v44 = vadd.f32 %v21824_v38, %v21826_v9  ;;  %v11336_v54 = vadd.f32 %v21828_v51, %v10848_v12  ;;  %v3484_v21 = vpop.permute.xlu0 %3483  ;;  %v21832_v13 = vld [vmem:[#allocation512_spill] sm:$0xff] }
 0x3c8   : > { %v11337_v61 = vadd.f32 %v11273_v16, %v10849_v19  ;;  %v7922_v10 = vadd.f32 %v7858_v62, %v7434_v48  ;;  %v11275_v56 = vmul.f32 %v21823_v27, %v21806_v63  ;;  %v2974_v22 = vadd.f32 %v21830_v25, %v21824_v38  ;;  %v21834_v19 = vld [vmem:[#allocation546_spill] sm:$0xff]  ;;  %v21835_v48 = vld [vmem:[#allocation15_spill] sm:$0xff]  ;;  %v21838_v51 = vld [vmem:[#allocation4_spill] sm:$0xff] }
 0x3c9   : > { %v7923_v7 = vadd.f32 %v7859_v29, %v7435_v5  ;;  %v18171_v58 = vmul.f32 %v3488_v59, %v2971_v34  ;;  %v2966_v9 = vadd.f32 %v21824_v38, %v21831_v30  ;;  %v11860_v57 = vmul.f32 %v21832_v13, %v11336_v54  ;;  %v21836_v29 = vld [vmem:[#allocation549_spill] sm:$0xff]  ;;  %v21839_v30 = vld [vmem:[#allocation548_spill] sm:$0xff]  ;;  %v21840_v54 = vld [vmem:[#allocation550_spill] sm:$0xff] }
 0x3ca   : > { %v11861_v47 = vmul.f32 %v21832_v13, %v11337_v61  ;;  %v8410_v12 = vadd.f32 %v8346_v42, %v7922_v10  ;;  %v18179_v16 = vmul.f32 %v3484_v21, %v2963_v44  ;;  %v3956_v27 = vmul.f32 %v21835_v48, %v21834_v19  ;;  %v21837_v34 = vld [vmem:[#allocation545_spill] sm:$0xff]  ;;  %v21841_v13 = vld [vmem:[#allocation46_spill] sm:$0xff] }
 0x3cb   : > { %21829 = vst [vmem:[#allocation67_spill] sm:$0xff] %v18171_v58  ;;  %v8411_v62 = vadd.f32 %v8347_v24, %v7923_v7  ;;  %v3957_v5 = vmul.f32 %v21835_v48, %v21836_v29  ;;  %v4444_v25 = vmul.f32 %v21838_v51, %v21837_v34  ;;  %v4445_v38 = vmul.f32 %v21838_v51, %v21839_v30 }
 0x3cc   : > { %21833 = vst [vmem:[#allocation108_spill] sm:$0xff] %v18179_v16  ;;  %v11921_v58 = vpack.c.bf16 %v11861_v47, %v11860_v57  ;;  %v8898_v63 = vadd.f32 %v8834_v50, %v8410_v12  ;;  %v4932_v42 = vmul.f32 %v21841_v13, %v21840_v54  ;;  %v18191_v61 = vmul.f32 %v3488_v59, %v2974_v22  ;;  %v21844_v50 = vld [vmem:[#allocation38_spill] sm:$0xff] }
 0x3cd   : > { %v8899_v44 = vadd.f32 %v8835_v37, %v8411_v62  ;;  %v4508_v24 = vadd.f32 %v4444_v25, %v3956_v27  ;;  %v4933_v10 = vmul.f32 %v21841_v13, %v17609_v32  ;;  %v18196_v48 = vmul.f32 %v3484_v21, %v2966_v9  ;;  %v21845_v59 = vld [vmem:[#allocation78_spill] sm:$0xff] }
 0x3ce   : > { %21842 = vst [vmem:[#allocation99_spill] sm:$0xff] %v18191_v61  ;;  %13702 = vmatmul.mubr.msk.bf16.gmra.mrb[68].mxu0 %vm1463_vm6, %v11921_v58  ;;  %v9386_v7 = vadd.f32 %v9322_v3, %v8898_v63  ;;  %v4509_v47 = vadd.f32 %v4445_v38, %v3957_v5  ;;  %v5420_v57 = vmul.f32 %v21844_v50, %v17600_v46  ;;  %v21846_v63 = vld [vmem:[#allocation70_spill] sm:$0xff] }
 0x3cf   : > { %21843 = vst [vmem:[#allocation139_spill] sm:$0xff] %v18196_v48  ;;  %v9387_v12 = vadd.f32 %v9323_v1, %v8899_v44  ;;  %v4996_v51 = vadd.f32 %v4932_v42, %v4508_v24  ;;  %v5421_v37 = vmul.f32 %v21844_v50, %v17606_v52  ;;  %v5908_v22 = vmul.f32 %v21845_v59, %v17615_v17  ;;  %v21847_v5 = vld [vmem:[#allocation110_spill] sm:$0xff]  ;;  %v21848_v42 = vld [vmem:[#allocation103_spill] sm:$0xff] }
 0x3d0   : > { %v9874_v62 = vadd.f32 %v9810_v33, %v9386_v7  ;;  %v4997_v27 = vadd.f32 %v4933_v10, %v4509_v47  ;;  %v5909_v58 = vmul.f32 %v21845_v59, %v17631_v49  ;;  %v6396_v3 = vmul.f32 %v21846_v63, %v17612_v39  ;;  %v21849_v7 = vld [vmem:[#allocation143_spill] sm:$0xff] }
 0x3d1   : > { %v9875_v21 = vadd.f32 %v9811_v55, %v9387_v12  ;;  %v5484_v9 = vadd.f32 %v5420_v57, %v4996_v51  ;;  %v6397_v1 = vmul.f32 %v21846_v63, %v17628_v23  ;;  %v6884_v25 = vmul.f32 %v21847_v5, %v17643_v2  ;;  %v21850_v12 = vld [vmem:[#allocation135_spill] sm:$0xff] }
 0x3d2   : > { %v10362_v38 = vadd.f32 %v10298_v0, %v9874_v62  ;;  %v5485_v13 = vadd.f32 %v5421_v37, %v4997_v27  ;;  %v6885_v33 = vmul.f32 %v21847_v5, %v17653_v28  ;;  %v7372_v44 = vmul.f32 %v21848_v42, %v17640_v35 }
 0x3d3   : > { %v10363_v24 = vadd.f32 %v10299_v8, %v9875_v21  ;;  %v5972_v10 = vadd.f32 %v5908_v22, %v5484_v9  ;;  %v7373_v55 = vmul.f32 %v21848_v42, %v17650_v15  ;;  %v7860_v47 = vmul.f32 %v21849_v7, %v17659_v41  ;;  %v21851_v22 = vld [vmem:[#allocation174_spill] sm:$0xff] }
 0x3d4   : > { %v10850_v50 = vadd.f32 %v18148_v31, %v10362_v38  ;;  %v5973_v57 = vadd.f32 %v5909_v58, %v5485_v13  ;;  %v7861_v0 = vmul.f32 %v21849_v7, %v17681_v18  ;;  %v8348_v51 = vmul.f32 %v21850_v12, %v17656_v6  ;;  %v21852_v58 = vld [vmem:[#allocation166_spill] sm:$0xff]  ;;  %v21854_v13 = vld [vmem:[#allocation547_spill] sm:$0xff] }
 0x3d5   : > { %v10851_v37 = vadd.f32 %v10787_v4, %v10363_v24  ;;  %v6460_v59 = vadd.f32 %v6396_v3, %v5972_v10  ;;  %v8349_v8 = vmul.f32 %v21850_v12, %v17678_v60  ;;  %v8836_v62 = vmul.f32 %v21851_v22, %v17687_v43  ;;  %v21853_v3 = vld [vmem:[#allocation206_spill] sm:$0xff] }
 0x3d6   : > { %v11338_v27 = vadd.f32 %v18160_v26, %v10850_v50  ;;  %v6461_v63 = vadd.f32 %v6397_v1, %v5973_v57  ;;  %v8837_v31 = vmul.f32 %v21851_v22, %v17695_v53  ;;  %v9324_v21 = vmul.f32 %v21852_v58, %v17684_v20  ;;  %v21855_v1 = vld [vmem:[#allocation198_spill] sm:$0xff] }
 0x3d7   : > { %v11339_v9 = vadd.f32 %v11275_v56, %v10851_v37  ;;  %v6948_v5 = vadd.f32 %v6884_v25, %v6460_v59  ;;  %v9325_v4 = vmul.f32 %v21852_v58, %v17692_v45  ;;  %v9812_v38 = vmul.f32 %v21853_v3, %v17701_v36  ;;  %v21856_v25 = vld [vmem:[#allocation376_spill] sm:$0xff]  ;;  %v21857_v57 = vld [vmem:[#allocation238_spill] sm:$0xff]  ;;  %v21858_v59 = vld [vmem:[#allocation381_spill] sm:$0xff] }
 0x3d8   : > { %v11862_v42 = vmul.f32 %v21854_v13, %v11338_v27  ;;  %v6949_v24 = vadd.f32 %v6885_v33, %v6461_v63  ;;  %v9813_v26 = vmul.f32 %v21853_v3, %v17715_v40  ;;  %v10300_v10 = vmul.f32 %v21855_v1, %v17698_v14  ;;  %v21859_v33 = vld [vmem:[#allocation16_spill] sm:$0xff] }
 0x3d9   : > { %v11863_v7 = vmul.f32 %v21854_v13, %v11339_v9  ;;  %v7436_v50 = vadd.f32 %v7372_v44, %v6948_v5  ;;  %v10301_v56 = vmul.f32 %v21855_v1, %v17712_v11  ;;  %v10788_v12 = vmul.f32 %v21857_v57, %v21856_v25  ;;  %v21860_v44 = vld [vmem:[#allocation11_spill] sm:$0xff]  ;;  %v21861_v1 = vld [vmem:[#allocation494_spill] sm:$0xff] }
 0x3da   : > { %v7437_v37 = vadd.f32 %v7373_v55, %v6949_v24  ;;  %v10789_v22 = vmul.f32 %v21857_v57, %v21858_v59  ;;  %v3958_v27 = vmul.f32 %v21859_v33, %v21834_v19  ;;  %v3959_v63 = vmul.f32 %v21859_v33, %v21836_v29  ;;  %v21862_v55 = vld [vmem:[#allocation231_spill] sm:$0xff] }
 0x3db   : > { %v11922_v58 = vpack.c.bf16 %v11863_v7, %v11862_v42  ;;  %v7924_v3 = vadd.f32 %v7860_v47, %v7436_v50  ;;  %v4446_v9 = vmul.f32 %v21860_v44, %v21837_v34  ;;  %v4447_v5 = vmul.f32 %v21860_v44, %v21839_v30  ;;  %v21863_v57 = vld [vmem:[#allocation47_spill] sm:$0xff] }
 0x3dc   : > { %v7925_v13 = vadd.f32 %v7861_v0, %v7437_v37  ;;  %v11276_v24 = vmul.f32 %v21862_v55, %v21861_v1  ;;  %v4934_v61 = vmul.f32 %v21863_v57, %v21840_v54  ;;  %v4935_v48 = vmul.f32 %v21863_v57, %v17609_v32  ;;  %v21864_v47 = vld [vmem:[#allocation379_spill] sm:$0xff] }
 0x3dd   : > { %13705 = vmatprep.mubr.msk.bf16.mxu0 %vm1463_vm6, %v11922_v58  ;;  %v8412_v42 = vadd.f32 %v8348_v51, %v7924_v3  ;;  %v11277_v7 = vmul.f32 %v21862_v55, %v21864_v47  ;;  %v4510_v50 = vadd.f32 %v4446_v9, %v3958_v27  ;;  %v4511_v33 = vadd.f32 %v4447_v5, %v3959_v63  ;;  %v21865_v0 = vld [vmem:[#allocation39_spill] sm:$0xff]  ;;  %v21867_v27 = vld [vmem:[#allocation72_spill] sm:$0xff] }
 0x3de   : > { %v8413_v16 = vadd.f32 %v8349_v8, %v7925_v13  ;;  %v5422_v37 = vmul.f32 %v21865_v0, %v17600_v46  ;;  %v5423_v44 = vmul.f32 %v21865_v0, %v17606_v52  ;;  %v21866_v54 = vld [vmem:[#allocation79_spill] sm:$0xff]  ;;  %v6398_v63 = vmul.f32 %v21867_v27, %v17612_v39 }
 0x3df   : > { %v5910_v30 = vmul.f32 %v21866_v54, %v17615_v17  ;;  %v8900_v34 = vadd.f32 %v8836_v62, %v8412_v42  ;;  %v4998_v57 = vadd.f32 %v4934_v61, %v4510_v50  ;;  %v4999_v32 = vadd.f32 %v4935_v48, %v4511_v33  ;;  %v21868_v3 = vld [vmem:[#allocation111_spill] sm:$0xff]  ;;  %v21869_v62 = vld [vmem:[#allocation104_spill] sm:$0xff] }
 0x3e0   : > { %v5911_v51 = vmul.f32 %v21866_v54, %v17631_v49  ;;  %v8901_v58 = vadd.f32 %v8837_v31, %v8413_v16  ;;  %v6399_v8 = vmul.f32 %v21867_v27, %v17628_v23  ;;  %v6886_v9 = vmul.f32 %v21868_v3, %v17643_v2  ;;  %v21870_v31 = vld [vmem:[#allocation144_spill] sm:$0xff] }
 0x3e1   : > { %v9388_v5 = vadd.f32 %v9324_v21, %v8900_v34  ;;  %v5486_v13 = vadd.f32 %v5422_v37, %v4998_v57  ;;  %v5487_v55 = vadd.f32 %v5423_v44, %v4999_v32  ;;  %v6887_v61 = vmul.f32 %v21868_v3, %v17653_v28  ;;  %v21871_v21 = vld [vmem:[#allocation136_spill] sm:$0xff]  ;;  %v21872_v44 = vld [vmem:[#allocation175_spill] sm:$0xff] }
 0x3e2   : > { %v9389_v48 = vadd.f32 %v9325_v4, %v8901_v58  ;;  %v7374_v54 = vmul.f32 %v21869_v62, %v17640_v35  ;;  %v7375_v16 = vmul.f32 %v21869_v62, %v17650_v15  ;;  %v7862_v42 = vmul.f32 %v21870_v31, %v17659_v41 }
 0x3e3   : > { %v9876_v50 = vadd.f32 %v9812_v38, %v9388_v5  ;;  %v5974_v33 = vadd.f32 %v5910_v30, %v5486_v13  ;;  %v5975_v0 = vadd.f32 %v5911_v51, %v5487_v55  ;;  %v7863_v34 = vmul.f32 %v21870_v31, %v17681_v18  ;;  %v18299_v38 = vpop.permute.xlu0 %11771  ;;  %v21875_v55 = vld [vmem:[#allocation207_spill] sm:$0xff] }
 0x3e4   : > { %v9877_v32 = vadd.f32 %v9813_v26, %v9389_v48  ;;  %v8350_v37 = vmul.f32 %v21871_v21, %v17656_v6  ;;  %v8351_v4 = vmul.f32 %v21871_v21, %v17678_v60  ;;  %v8838_v57 = vmul.f32 %v21872_v44, %v17687_v43  ;;  %21873 = vst [vmem:[#allocation131_spill] sm:$0xff] %v18299_v38  ;;  %v21874_v26 = vld [vmem:[#allocation167_spill] sm:$0xff] }
 0x3e5   : > { %v10364_v58 = vadd.f32 %v10300_v10, %v9876_v50  ;;  %v6462_v27 = vadd.f32 %v6398_v63, %v5974_v33  ;;  %v6463_v3 = vadd.f32 %v6399_v8, %v5975_v0  ;;  %v8839_v30 = vmul.f32 %v21872_v44, %v17695_v53  ;;  %v18309_v8 = vpop.f32.mrb[188].mxu1 }
 0x3e6   : > { %v10365_v51 = vadd.f32 %v10301_v56, %v9877_v32  ;;  %v9326_v5 = vmul.f32 %v21874_v26, %v17684_v20  ;;  %v9327_v13 = vmul.f32 %v21874_v26, %v17692_v45  ;;  %v9814_v48 = vmul.f32 %v21875_v55, %v17701_v36  ;;  %21876 = vst [vmem:[#allocation171_spill] sm:$0xff] %v18309_v8  ;;  %v21877_v56 = vld [vmem:[#allocation200_spill] sm:$0xff]  ;;  %v21878_v32 = vld [vmem:[#allocation239_spill] sm:$0xff]  ;;  %v18319_v44 = vpop.f32.mrb[189].mxu1  ;;  %v18332_v26 = vld [vmem:[%s20399_s10] ss:$0 sm:$0xff] }
 0x3e7   : > { %v10852_v62 = vadd.f32 %v10788_v12, %v10364_v58  ;;  %v6950_v31 = vadd.f32 %v6886_v9, %v6462_v27  ;;  %v6951_v10 = vadd.f32 %v6887_v61, %v6463_v3  ;;  %v9815_v63 = vmul.f32 %v21875_v55, %v17715_v40  ;;  %21879 = vst [vmem:[#allocation164_spill] sm:$0xff] %v18319_v44  ;;  %v18323_v27 = vpop.f32.mrb[190].mxu1  ;;  %v21881_v3 = vld [vmem:[#allocation232_spill] sm:$0xff]  ;;  %v21883_v55 = vld [vmem:[#allocation397_spill] sm:$0xff]  ;;  %v3492_v38 = vpop.permute.xlu0 %3491 }
 0x3e8   : > { %v10853_v50 = vadd.f32 %v10789_v22, %v10365_v51  ;;  %v10302_v33 = vmul.f32 %v21877_v56, %v17698_v14  ;;  %v10303_v0 = vmul.f32 %v21877_v56, %v17712_v11  ;;  %v18317_v21 = vmul.f32 %v21878_v32, %v21856_v25  ;;  %21880 = vst [vmem:[#allocation204_spill] sm:$0xff] %v18323_v27  ;;  %v21886_v56 = vld [vmem:[#allocation10_spill] sm:$0xff]  ;;  %v21887_v27 = vld [vmem:[#allocation531_spill] sm:$0xff] }
 0x3e9   : > { %v11340_v12 = vadd.f32 %v11276_v24, %v10852_v62  ;;  %v7438_v9 = vadd.f32 %v7374_v54, %v6950_v31  ;;  %v7439_v61 = vadd.f32 %v7375_v16, %v6951_v10  ;;  %v10791_v58 = vmul.f32 %v21878_v32, %v21858_v59  ;;  %21882 = vst [vmem:[#allocation195_spill] sm:$0xff] %v18332_v26  ;;  %v21884_v54 = vld [vmem:[#allocation398_spill] sm:$0xff]  ;;  %v18338_v62 = vpop.f32.mrb[191].mxu1  ;;  %v3496_v31 = vpop.permute.xlu1 %3495 }
 0x3ea   : > { %v11341_v22 = vadd.f32 %v11277_v7, %v10853_v50  ;;  %v18327_v51 = vmul.f32 %v21881_v3, %v21861_v1  ;;  %v2987_v24 = vadd.f32 %v18332_v26, %v21883_v55  ;;  %v2979_v16 = vadd.f32 %v18332_v26, %v21884_v54  ;;  %21885 = vst [vmem:[#allocation236_spill] sm:$0xff] %v18338_v62  ;;  %v21889_v1 = vld [vmem:[#allocation42_spill] sm:$0xff] }
 0x3eb   : > { %v7926_v10 = vadd.f32 %v7862_v42, %v7438_v9  ;;  %v7927_v7 = vadd.f32 %v7863_v34, %v7439_v61  ;;  %v11279_v50 = vmul.f32 %v21881_v3, %v21864_v47  ;;  %v2990_v32 = vadd.f32 %v18332_v26, %v21886_v56  ;;  %v21891_v34 = vld [vmem:[#allocation17_spill] sm:$0xff] }
 0x3ec   : > { %v11864_v44 = vmul.f32 %v21887_v27, %v11340_v12  ;;  %v11865_v8 = vmul.f32 %v21887_v27, %v11341_v22  ;;  %v18346_v55 = vmul.f32 %v3496_v31, %v2987_v24  ;;  %v2982_v54 = vadd.f32 %v18332_v26, %v21889_v1  ;;  %v21892_v56 = vld [vmem:[#allocation545_spill] sm:$0xff]  ;;  %v21894_v27 = vld [vmem:[#allocation548_spill] sm:$0xff]  ;;  %v21895_v1 = vld [vmem:[#allocation550_spill] sm:$0xff] }
 0x3ed   : > { %v8414_v62 = vadd.f32 %v8350_v37, %v7926_v10  ;;  %v8415_v59 = vadd.f32 %v8351_v4, %v7927_v7  ;;  %v18350_v42 = vmul.f32 %v3492_v38, %v2979_v16  ;;  %v3960_v9 = vmul.f32 %v21891_v34, %v21834_v19  ;;  %v21893_v12 = vld [vmem:[#allocation9_spill] sm:$0xff]  ;;  %v21897_v16 = vld [vmem:[#allocation551_spill] sm:$0xff] }
 0x3ee   : > { %21888 = vst [vmem:[#allocation3_spill] sm:$0xff] %v18346_v55  ;;  %v11923_v61 = vpack.c.bf16 %v11865_v8, %v11864_v44  ;;  %v3961_v3 = vmul.f32 %v21891_v34, %v21836_v29  ;;  %v4448_v47 = vmul.f32 %v21893_v12, %v21892_v56  ;;  %v4449_v22 = vmul.f32 %v21893_v12, %v21894_v27  ;;  %v21896_v37 = vld [vmem:[#allocation49_spill] sm:$0xff] }
 0x3ef   : > { %21890 = vst [vmem:[#allocation12_spill] sm:$0xff] %v18350_v42  ;;  %v8902_v24 = vadd.f32 %v8838_v57, %v8414_v62  ;;  %v8903_v55 = vadd.f32 %v8839_v30, %v8415_v59  ;;  %v4936_v4 = vmul.f32 %v21896_v37, %v21895_v1  ;;  %v4937_v10 = vmul.f32 %v21896_v37, %v21897_v16  ;;  %v21900_v12 = vld [vmem:[#allocation41_spill] sm:$0xff] }
 0x3f0   : > { %13706 = vmatmul.mubr.msk.bf16.gmra.mrb[72].mxu0 %vm1463_vm6, %v11923_v61  ;;  %v18365_v8 = vmul.f32 %v3496_v31, %v2990_v32  ;;  %v18367_v44 = vmul.f32 %v3492_v38, %v2982_v54  ;;  %v4512_v7 = vadd.f32 %v4448_v47, %v3960_v9  ;;  %v4513_v34 = vadd.f32 %v4449_v22, %v3961_v3  ;;  %v21901_v37 = vld [vmem:[#allocation81_spill] sm:$0xff] }
 0x3f1   : > { %v9390_v42 = vadd.f32 %v9326_v5, %v8902_v24  ;;  %v9391_v26 = vadd.f32 %v9327_v13, %v8903_v55  ;;  %v5424_v57 = vmul.f32 %v21900_v12, %v17600_v46  ;;  %v5425_v59 = vmul.f32 %v21900_v12, %v17606_v52  ;;  %v21902_v47 = vld [vmem:[#allocation73_spill] sm:$0xff] }
 0x3f2   : > { %21898 = vst [vmem:[#allocation7_spill] sm:$0xff] %v18365_v8  ;;  %21899 = vst [vmem:[#allocation34_spill] sm:$0xff] %v18367_v44  ;;  %v5000_v30 = vadd.f32 %v4936_v4, %v4512_v7  ;;  %v5001_v62 = vadd.f32 %v4937_v10, %v4513_v34  ;;  %v5912_v16 = vmul.f32 %v21901_v37, %v17615_v17  ;;  %v21903_v9 = vld [vmem:[#allocation113_spill] sm:$0xff] }
 0x3f3   : > { %v5913_v31 = vmul.f32 %v21901_v37, %v17631_v49  ;;  %v9878_v38 = vadd.f32 %v9814_v48, %v9390_v42  ;;  %v9879_v32 = vadd.f32 %v9815_v63, %v9391_v26  ;;  %v6400_v5 = vmul.f32 %v21902_v47, %v17612_v39  ;;  %v21904_v4 = vld [vmem:[#allocation105_spill] sm:$0xff] }
 0x3f4   : > { %v6401_v13 = vmul.f32 %v21902_v47, %v17628_v23  ;;  %v5488_v55 = vadd.f32 %v5424_v57, %v5000_v30  ;;  %v5489_v54 = vadd.f32 %v5425_v59, %v5001_v62  ;;  %v6888_v61 = vmul.f32 %v21903_v9, %v17643_v2  ;;  %v21905_v10 = vld [vmem:[#allocation145_spill] sm:$0xff] }
 0x3f5   : > { %v6889_v3 = vmul.f32 %v21903_v9, %v17653_v28  ;;  %v10366_v22 = vadd.f32 %v10302_v33, %v9878_v38  ;;  %v10367_v24 = vadd.f32 %v10303_v0, %v9879_v32  ;;  %v7376_v48 = vmul.f32 %v21904_v4, %v17640_v35  ;;  %v21906_v33 = vld [vmem:[#allocation137_spill] sm:$0xff] }
 0x3f6   : > { %v7377_v63 = vmul.f32 %v21904_v4, %v17650_v15  ;;  %v5976_v26 = vadd.f32 %v5912_v16, %v5488_v55  ;;  %v5977_v42 = vadd.f32 %v5913_v31, %v5489_v54  ;;  %v7864_v7 = vmul.f32 %v21905_v10, %v17659_v41  ;;  %v21907_v16 = vld [vmem:[#allocation177_spill] sm:$0xff] }
 0x3f7   : > { %v7865_v34 = vmul.f32 %v21905_v10, %v17681_v18  ;;  %v10854_v12 = vadd.f32 %v18317_v21, %v10366_v22  ;;  %v10855_v57 = vadd.f32 %v10791_v58, %v10367_v24  ;;  %v8352_v0 = vmul.f32 %v21906_v33, %v17656_v6  ;;  %v21908_v21 = vld [vmem:[#allocation169_spill] sm:$0xff] }
 0x3f8   : > { %v8353_v59 = vmul.f32 %v21906_v33, %v17678_v60  ;;  %v6464_v30 = vadd.f32 %v6400_v5, %v5976_v26  ;;  %v6465_v62 = vadd.f32 %v6401_v13, %v5977_v42  ;;  %v8840_v37 = vmul.f32 %v21907_v16, %v17687_v43  ;;  %v21909_v5 = vld [vmem:[#allocation209_spill] sm:$0xff] }
 0x3f9   : > { %v8841_v31 = vmul.f32 %v21907_v16, %v17695_v53  ;;  %v11342_v38 = vadd.f32 %v18327_v51, %v10854_v12  ;;  %v11343_v32 = vadd.f32 %v11279_v50, %v10855_v57  ;;  %v9328_v58 = vmul.f32 %v21908_v21, %v17684_v20  ;;  %v21910_v22 = vld [vmem:[#allocation553_spill] sm:$0xff] }
 0x3fa   : > { %v9329_v47 = vmul.f32 %v21908_v21, %v17692_v45  ;;  %v6952_v55 = vadd.f32 %v6888_v61, %v6464_v30  ;;  %v6953_v54 = vadd.f32 %v6889_v3, %v6465_v62  ;;  %v9816_v13 = vmul.f32 %v21909_v5, %v17701_v36  ;;  %v21911_v51 = vld [vmem:[#allocation201_spill] sm:$0xff]  ;;  %v21914_v30 = vld [vmem:[#allocation26_spill] sm:$0xff] }
 0x3fb   : > { %v9817_v9 = vmul.f32 %v21909_v5, %v17715_v40  ;;  %v11866_v24 = vmul.f32 %v21910_v22, %v11342_v38  ;;  %v11867_v4 = vmul.f32 %v21910_v22, %v11343_v32  ;;  %v10304_v50 = vmul.f32 %v21911_v51, %v17698_v14  ;;  %v21912_v61 = vld [vmem:[#allocation241_spill] sm:$0xff]  ;;  %v21915_v38 = vld [vmem:[#allocation18_spill] sm:$0xff] }
 0x3fc   : > { %v10305_v26 = vmul.f32 %v21911_v51, %v17712_v11  ;;  %v7440_v42 = vadd.f32 %v7376_v48, %v6952_v55  ;;  %v7441_v10 = vadd.f32 %v7377_v63, %v6953_v54  ;;  %v10792_v3 = vmul.f32 %v21912_v61, %v21856_v25  ;;  %v21913_v12 = vld [vmem:[#allocation381_spill] sm:$0xff]  ;;  %v21916_v63 = vld [vmem:[#allocation58_spill] sm:$0xff] }
 0x3fd   : > { %v10793_v57 = vmul.f32 %v21912_v61, %v21913_v12  ;;  %v11924_v33 = vpack.c.bf16 %v11867_v4, %v11866_v24  ;;  %v3962_v62 = vmul.f32 %v21914_v30, %v21834_v19  ;;  %v3963_v16 = vmul.f32 %v21914_v30, %v21836_v29  ;;  %v21917_v54 = vld [vmem:[#allocation494_spill] sm:$0xff]  ;;  %v21918_v22 = vld [vmem:[#allocation233_spill] sm:$0xff]  ;;  %v21919_v4 = vld [vmem:[#allocation379_spill] sm:$0xff] }
 0x3fe   : > { %v4450_v32 = vmul.f32 %v21915_v38, %v21892_v56  ;;  %v7928_v21 = vadd.f32 %v7864_v7, %v7440_v42  ;;  %v7929_v5 = vadd.f32 %v7865_v34, %v7441_v10  ;;  %v4451_v48 = vmul.f32 %v21915_v38, %v21894_v27  ;;  %v21920_v30 = vld [vmem:[#allocation551_spill] sm:$0xff]  ;;  %v21921_v10 = vld [vmem:[#allocation50_spill] sm:$0xff] }
 0x3ff   : > { %v4938_v55 = vmul.f32 %v21916_v63, %v21895_v1  ;;  %13709 = vmatprep.mubr.msk.bf16.mxu0 %vm1463_vm6, %v11924_v33  ;;  %v11280_v24 = vmul.f32 %v21918_v22, %v21917_v54  ;;  %v11281_v51 = vmul.f32 %v21918_v22, %v21919_v4  ;;  %v4939_v8 = vmul.f32 %v21916_v63, %v21920_v30  ;;  %v21922_v1 = vld [vmem:[#allocation90_spill] sm:$0xff] }
 0x400   : > { %v4514_v61 = vadd.f32 %v4450_v32, %v3962_v62  ;;  %v8416_v7 = vadd.f32 %v8352_v0, %v7928_v21  ;;  %v8417_v34 = vadd.f32 %v8353_v59, %v7929_v5  ;;  %v4515_v42 = vadd.f32 %v4451_v48, %v3963_v16  ;;  %v21923_v0 = vld [vmem:[#allocation82_spill] sm:$0xff] }
 0x401   : > { %v5426_v38 = vmul.f32 %v21921_v10, %v17600_v46  ;;  %v5427_v33 = vmul.f32 %v21921_v10, %v17606_v52  ;;  %v5914_v27 = vmul.f32 %v21922_v1, %v17615_v17  ;;  %v5915_v22 = vmul.f32 %v21922_v1, %v17631_v49  ;;  %v21924_v5 = vld [vmem:[#allocation122_spill] sm:$0xff] }
 0x402   : > { %v5002_v44 = vadd.f32 %v4938_v55, %v4514_v61  ;;  %v8904_v62 = vadd.f32 %v8840_v37, %v8416_v7  ;;  %v8905_v32 = vadd.f32 %v8841_v31, %v8417_v34  ;;  %v5003_v56 = vadd.f32 %v4939_v8, %v4515_v42  ;;  %v21925_v1 = vld [vmem:[#allocation114_spill] sm:$0xff] }
 0x403   : > { %v6402_v59 = vmul.f32 %v21923_v0, %v17612_v39  ;;  %v6403_v21 = vmul.f32 %v21923_v0, %v17628_v23  ;;  %v6890_v48 = vmul.f32 %v21924_v5, %v17643_v2  ;;  %v6891_v63 = vmul.f32 %v21924_v5, %v17653_v28 }
 0x404   : > { %v5490_v16 = vadd.f32 %v5426_v38, %v5002_v44  ;;  %v9392_v55 = vadd.f32 %v9328_v58, %v8904_v62  ;;  %v9393_v61 = vadd.f32 %v9329_v47, %v8905_v32  ;;  %v5491_v10 = vadd.f32 %v5427_v33, %v5003_v56  ;;  %v21926_v44 = vld [vmem:[#allocation154_spill] sm:$0xff] }
 0x405   : > { %v7378_v37 = vmul.f32 %v21925_v1, %v17640_v35  ;;  %v7379_v31 = vmul.f32 %v21925_v1, %v17650_v15  ;;  %v7866_v7 = vmul.f32 %v21926_v44, %v17659_v41  ;;  %v7867_v34 = vmul.f32 %v21926_v44, %v17681_v18  ;;  %v21927_v58 = vld [vmem:[#allocation146_spill] sm:$0xff] }
 0x406   : > { %v5978_v8 = vadd.f32 %v5914_v27, %v5490_v16  ;;  %v9880_v42 = vadd.f32 %v9816_v13, %v9392_v55  ;;  %v9881_v38 = vadd.f32 %v9817_v9, %v9393_v61  ;;  %v5979_v0 = vadd.f32 %v5915_v22, %v5491_v10  ;;  %v21928_v27 = vld [vmem:[#allocation186_spill] sm:$0xff]  ;;  %v18470_v16 = vpop.permute.xlu1 %11775 }
 0x407   : > { %v8354_v47 = vmul.f32 %v21927_v58, %v17656_v6  ;;  %v8355_v33 = vmul.f32 %v21927_v58, %v17678_v60  ;;  %v8842_v62 = vmul.f32 %v21928_v27, %v17687_v43  ;;  %v8843_v32 = vmul.f32 %v21928_v27, %v17695_v53  ;;  %21929 = vst [vmem:[#allocation74_spill] sm:$0xff] %v18470_v16  ;;  %v21930_v9 = vld [vmem:[#allocation178_spill] sm:$0xff] }
 0x408   : > { %v6466_v56 = vadd.f32 %v6402_v59, %v5978_v8  ;;  %v10368_v5 = vadd.f32 %v10304_v50, %v9880_v42  ;;  %v10369_v1 = vadd.f32 %v10305_v26, %v9881_v38  ;;  %v6467_v13 = vadd.f32 %v6403_v21, %v5979_v0  ;;  %v21931_v61 = vld [vmem:[#allocation218_spill] sm:$0xff] }
 0x409   : > { %v9330_v22 = vmul.f32 %v21930_v9, %v17684_v20  ;;  %v9331_v59 = vmul.f32 %v21930_v9, %v17692_v45  ;;  %v9818_v10 = vmul.f32 %v21931_v61, %v17701_v36  ;;  %v9819_v8 = vmul.f32 %v21931_v61, %v17715_v40  ;;  %v21932_v50 = vld [vmem:[#allocation210_spill] sm:$0xff] }
 0x40a   : > { %v6954_v55 = vadd.f32 %v6890_v48, %v6466_v56  ;;  %v10856_v44 = vadd.f32 %v10792_v3, %v10368_v5  ;;  %v10857_v58 = vadd.f32 %v10793_v57, %v10369_v1  ;;  %v6955_v27 = vadd.f32 %v6891_v63, %v6467_v13  ;;  %v21933_v48 = vld [vmem:[#allocation250_spill] sm:$0xff]  ;;  %v21935_v3 = vld [vmem:[#allocation195_spill] sm:$0xff] }
 0x40b   : > { %v10306_v26 = vmul.f32 %v21932_v50, %v17698_v14  ;;  %v10307_v42 = vmul.f32 %v21932_v50, %v17712_v11  ;;  %v10794_v38 = vmul.f32 %v21933_v48, %v21856_v25  ;;  %v10795_v0 = vmul.f32 %v21933_v48, %v21913_v12  ;;  %v21934_v61 = vld [vmem:[#allocation138_spill] sm:$0xff]  ;;  %v3500_v25 = vpop.permute.xlu0 %3499  ;;  %v3504_v11 = vpop.permute.xlu1 %3503  ;;  %v21939_v14 = vld [vmem:[#allocation552_spill] sm:$0xff] }
 0x40c   : > { %v7442_v21 = vadd.f32 %v7378_v37, %v6954_v55  ;;  %v11344_v56 = vadd.f32 %v11280_v24, %v10856_v44  ;;  %v11345_v9 = vadd.f32 %v11281_v51, %v10857_v58  ;;  %v7443_v16 = vadd.f32 %v7379_v31, %v6955_v27  ;;  %v21936_v5 = vld [vmem:[#allocation242_spill] sm:$0xff] }
 0x40d   : > { %v3003_v57 = vadd.f32 %v21935_v3, %v21934_v61  ;;  %v11282_v1 = vmul.f32 %v21936_v5, %v21917_v54  ;;  %v21937_v37 = vld [vmem:[#allocation130_spill] sm:$0xff]  ;;  %v11283_v58 = vmul.f32 %v21936_v5, %v21919_v4 }
 0x40e   : > { %v7930_v63 = vadd.f32 %v7866_v7, %v7442_v21  ;;  %v2995_v13 = vadd.f32 %v21935_v3, %v21937_v37  ;;  %v21938_v55 = vld [vmem:[#allocation170_spill] sm:$0xff]  ;;  %v11868_v48 = vmul.f32 %v21939_v14, %v11344_v56  ;;  %v11869_v24 = vmul.f32 %v21939_v14, %v11345_v9  ;;  %v21945_v56 = vld [vmem:[#allocation19_spill] sm:$0xff] }
 0x40f   : > { %v3006_v50 = vadd.f32 %v21935_v3, %v21938_v55  ;;  %v7931_v51 = vadd.f32 %v7867_v34, %v7443_v16  ;;  %v21940_v31 = vld [vmem:[#allocation162_spill] sm:$0xff]  ;;  %v18502_v27 = vmul.f32 %v3504_v11, %v3003_v57  ;;  %v21943_v55 = vld [vmem:[#allocation28_spill] sm:$0xff]  ;;  %v21944_v16 = vld [vmem:[#allocation545_spill] sm:$0xff] }
 0x410   : > { %v2998_v44 = vadd.f32 %v21935_v3, %v21940_v31  ;;  %v8418_v7 = vadd.f32 %v8354_v47, %v7930_v63  ;;  %v18504_v21 = vmul.f32 %v3500_v25, %v2995_v13  ;;  %v11925_v61 = vpack.c.bf16 %v11869_v24, %v11868_v48  ;;  %v21946_v47 = vld [vmem:[#allocation548_spill] sm:$0xff]  ;;  %v21947_v5 = vld [vmem:[#allocation550_spill] sm:$0xff]  ;;  %v21948_v57 = vld [vmem:[#allocation59_spill] sm:$0xff] }
 0x411   : > { %21941 = vst [vmem:[#allocation44_spill] sm:$0xff] %v18502_v27  ;;  %v8419_v37 = vadd.f32 %v8355_v33, %v7931_v51  ;;  %v3964_v54 = vmul.f32 %v21943_v55, %v21834_v19  ;;  %v3965_v14 = vmul.f32 %v21943_v55, %v21836_v29  ;;  %v4452_v9 = vmul.f32 %v21945_v56, %v21944_v16  ;;  %v21951_v55 = vld [vmem:[#allocation52_spill] sm:$0xff] }
 0x412   : > { %21942 = vst [vmem:[#allocation66_spill] sm:$0xff] %v18504_v21  ;;  %v8906_v34 = vadd.f32 %v8842_v62, %v8418_v7  ;;  %v4453_v63 = vmul.f32 %v21945_v56, %v21946_v47  ;;  %v4940_v31 = vmul.f32 %v21948_v57, %v21947_v5  ;;  %13710 = vmatmul.mubr.msk.bf16.gmra.mrb[76].mxu0 %vm1463_vm6, %v11925_v61  ;;  %v21952_v61 = vld [vmem:[#allocation92_spill] sm:$0xff] }
 0x413   : > { %v8907_v13 = vadd.f32 %v8843_v32, %v8419_v37  ;;  %v18517_v33 = vmul.f32 %v3504_v11, %v3006_v50  ;;  %v18519_v48 = vmul.f32 %v3500_v25, %v2998_v44  ;;  %v4941_v24 = vmul.f32 %v21948_v57, %v21920_v30 }
 0x414   : > { %v9394_v62 = vadd.f32 %v9330_v22, %v8906_v34  ;;  %v4516_v51 = vadd.f32 %v4452_v9, %v3964_v54  ;;  %v4517_v7 = vadd.f32 %v4453_v63, %v3965_v14  ;;  %v5428_v27 = vmul.f32 %v21951_v55, %v17600_v46  ;;  %v21953_v22 = vld [vmem:[#allocation83_spill] sm:$0xff] }
 0x415   : > { %21949 = vst [vmem:[#allocation37_spill] sm:$0xff] %v18517_v33  ;;  %21950 = vst [vmem:[#allocation513_spill] sm:$0xff] %v18519_v48  ;;  %v9395_v56 = vadd.f32 %v9331_v59, %v8907_v13  ;;  %v5429_v21 = vmul.f32 %v21951_v55, %v17606_v52  ;;  %v5916_v32 = vmul.f32 %v21952_v61, %v17615_v17  ;;  %v21954_v59 = vld [vmem:[#allocation124_spill] sm:$0xff] }
 0x416   : > { %v5917_v11 = vmul.f32 %v21952_v61, %v17631_v49  ;;  %v9882_v25 = vadd.f32 %v9818_v10, %v9394_v62  ;;  %v5004_v50 = vadd.f32 %v4940_v31, %v4516_v51  ;;  %v5005_v44 = vadd.f32 %v4941_v24, %v4517_v7  ;;  %v21955_v10 = vld [vmem:[#allocation115_spill] sm:$0xff] }
 0x417   : > { %v6404_v54 = vmul.f32 %v21953_v22, %v17612_v39  ;;  %v9883_v37 = vadd.f32 %v9819_v8, %v9395_v56  ;;  %v6405_v14 = vmul.f32 %v21953_v22, %v17628_v23  ;;  %v6892_v34 = vmul.f32 %v21954_v59, %v17643_v2  ;;  %v21956_v8 = vld [vmem:[#allocation156_spill] sm:$0xff] }
 0x418   : > { %v6893_v9 = vmul.f32 %v21954_v59, %v17653_v28  ;;  %v10370_v63 = vadd.f32 %v10306_v26, %v9882_v25  ;;  %v5492_v57 = vadd.f32 %v5428_v27, %v5004_v50  ;;  %v5493_v13 = vadd.f32 %v5429_v21, %v5005_v44  ;;  %v21957_v26 = vld [vmem:[#allocation147_spill] sm:$0xff] }
 0x419   : > { %v7380_v31 = vmul.f32 %v21955_v10, %v17640_v35  ;;  %v10371_v24 = vadd.f32 %v10307_v42, %v9883_v37  ;;  %v7381_v62 = vmul.f32 %v21955_v10, %v17650_v15  ;;  %v7868_v51 = vmul.f32 %v21956_v8, %v17659_v41  ;;  %v21958_v42 = vld [vmem:[#allocation187_spill] sm:$0xff] }
 0x41a   : > { %v7869_v7 = vmul.f32 %v21956_v8, %v17681_v18  ;;  %v10858_v55 = vadd.f32 %v10794_v38, %v10370_v63  ;;  %v5980_v56 = vadd.f32 %v5916_v32, %v5492_v57  ;;  %v5981_v61 = vadd.f32 %v5917_v11, %v5493_v13  ;;  %v21959_v38 = vld [vmem:[#allocation180_spill] sm:$0xff]  ;;  %v21961_v8 = vld [vmem:[#allocation371_spill] sm:$0xff] }
 0x41b   : > { %v8356_v27 = vmul.f32 %v21957_v26, %v17656_v6  ;;  %v10859_v21 = vadd.f32 %v10795_v0, %v10371_v24  ;;  %v8357_v25 = vmul.f32 %v21957_v26, %v17678_v60  ;;  %v8844_v50 = vmul.f32 %v21958_v42, %v17687_v43  ;;  %v21960_v0 = vld [vmem:[#allocation220_spill] sm:$0xff]  ;;  %v21962_v26 = vld [vmem:[#allocation211_spill] sm:$0xff] }
 0x41c   : > { %v8845_v44 = vmul.f32 %v21958_v42, %v17695_v53  ;;  %v11346_v22 = vadd.f32 %v11282_v1, %v10858_v55  ;;  %v6468_v37 = vadd.f32 %v6404_v54, %v5980_v56  ;;  %v6469_v59 = vadd.f32 %v6405_v14, %v5981_v61  ;;  %v21963_v54 = vld [vmem:[#allocation483_spill] sm:$0xff]  ;;  %v21964_v55 = vld [vmem:[#allocation364_spill] sm:$0xff] }
 0x41d   : > { %v9332_v32 = vmul.f32 %v21959_v38, %v17684_v20  ;;  %v11347_v11 = vadd.f32 %v11283_v58, %v10859_v21  ;;  %v9333_v63 = vmul.f32 %v21959_v38, %v17692_v45  ;;  %v9820_v57 = vmul.f32 %v21960_v0, %v17701_v36  ;;  %v21965_v61 = vld [vmem:[#allocation376_spill] sm:$0xff] }
 0x41e   : > { %v9821_v13 = vmul.f32 %v21960_v0, %v17715_v40  ;;  %v6956_v10 = vadd.f32 %v6892_v34, %v6468_v37  ;;  %v6957_v24 = vadd.f32 %v6893_v9, %v6469_v59  ;;  %v10308_v1 = vmul.f32 %v21962_v26, %v21961_v8  ;;  %v21966_v21 = vld [vmem:[#allocation252_spill] sm:$0xff]  ;;  %v21967_v34 = vld [vmem:[#allocation29_spill] sm:$0xff] }
 0x41f   : > { %v10309_v14 = vmul.f32 %v21962_v26, %v21963_v54  ;;  %v11870_v56 = vmul.f32 %v21964_v55, %v11346_v22  ;;  %v11871_v58 = vmul.f32 %v21964_v55, %v11347_v11  ;;  %v10796_v42 = vmul.f32 %v21966_v21, %v21965_v61  ;;  %v21968_v26 = vld [vmem:[#allocation20_spill] sm:$0xff]  ;;  %v21969_v55 = vld [vmem:[#allocation61_spill] sm:$0xff] }
 0x420   : > { %v10797_v38 = vmul.f32 %v21966_v21, %v21913_v12  ;;  %v7444_v33 = vadd.f32 %v7380_v31, %v6956_v10  ;;  %v7445_v0 = vadd.f32 %v7381_v62, %v6957_v24  ;;  %v3966_v9 = vmul.f32 %v21967_v34, %v21834_v19  ;;  %v21970_v31 = vld [vmem:[#allocation494_spill] sm:$0xff]  ;;  %v21971_v62 = vld [vmem:[#allocation243_spill] sm:$0xff] }
 0x421   : > { %v3967_v37 = vmul.f32 %v21967_v34, %v21836_v29  ;;  %v11926_v59 = vpack.c.bf16 %v11871_v58, %v11870_v56  ;;  %v4454_v22 = vmul.f32 %v21968_v26, %v21944_v16  ;;  %v4455_v11 = vmul.f32 %v21968_v26, %v21946_v47  ;;  %v21972_v26 = vld [vmem:[#allocation53_spill] sm:$0xff] }
 0x422   : > { %v4942_v48 = vmul.f32 %v21969_v55, %v21947_v5  ;;  %v7932_v3 = vadd.f32 %v7868_v51, %v7444_v33  ;;  %v7933_v21 = vadd.f32 %v7869_v7, %v7445_v0  ;;  %v11284_v10 = vmul.f32 %v21971_v62, %v21970_v31  ;;  %v21973_v51 = vld [vmem:[#allocation93_spill] sm:$0xff] }
 0x423   : > { %v4943_v24 = vmul.f32 %v21969_v55, %v21920_v30  ;;  %13713 = vmatprep.mubr.msk.bf16.mxu0 %vm1463_vm6, %v11926_v59  ;;  %v11285_v56 = vmul.f32 %v21971_v62, %v21919_v4  ;;  %v4518_v58 = vadd.f32 %v4454_v22, %v3966_v9  ;;  %v4519_v34 = vadd.f32 %v4455_v11, %v3967_v37  ;;  %v21974_v62 = vld [vmem:[#allocation84_spill] sm:$0xff] }
 0x424   : > { %v5430_v47 = vmul.f32 %v21972_v26, %v17600_v46  ;;  %v8420_v16 = vadd.f32 %v8356_v27, %v7932_v3  ;;  %v8421_v5 = vadd.f32 %v8357_v25, %v7933_v21  ;;  %v5431_v33 = vmul.f32 %v21972_v26, %v17606_v52  ;;  %v21975_v27 = vld [vmem:[#allocation126_spill] sm:$0xff] }
 0x425   : > { %v5918_v7 = vmul.f32 %v21973_v51, %v17615_v17  ;;  %v5006_v0 = vadd.f32 %v4942_v48, %v4518_v58  ;;  %v5007_v55 = vadd.f32 %v4943_v24, %v4519_v34  ;;  %v5919_v59 = vmul.f32 %v21973_v51, %v17631_v49  ;;  %v21976_v24 = vld [vmem:[#allocation116_spill] sm:$0xff] }
 0x426   : > { %v6406_v9 = vmul.f32 %v21974_v62, %v17612_v39  ;;  %v8908_v37 = vadd.f32 %v8844_v50, %v8420_v16  ;;  %v8909_v22 = vadd.f32 %v8845_v44, %v8421_v5  ;;  %v6407_v3 = vmul.f32 %v21974_v62, %v17628_v23  ;;  %v21977_v5 = vld [vmem:[#allocation157_spill] sm:$0xff] }
 0x427   : > { %v6894_v25 = vmul.f32 %v21975_v27, %v17643_v2  ;;  %v5494_v11 = vadd.f32 %v5430_v47, %v5006_v0  ;;  %v5495_v21 = vadd.f32 %v5431_v33, %v5007_v55  ;;  %v6895_v48 = vmul.f32 %v21975_v27, %v17653_v28  ;;  %v21978_v33 = vld [vmem:[#allocation148_spill] sm:$0xff] }
 0x428   : > { %v7382_v58 = vmul.f32 %v21976_v24, %v17640_v35  ;;  %v9396_v34 = vadd.f32 %v9332_v32, %v8908_v37  ;;  %v9397_v26 = vadd.f32 %v9333_v63, %v8909_v22  ;;  %v7383_v16 = vmul.f32 %v21976_v24, %v17650_v15  ;;  %v21979_v63 = vld [vmem:[#allocation189_spill] sm:$0xff] }
 0x429   : > { %v7870_v50 = vmul.f32 %v21977_v5, %v17659_v41  ;;  %v5982_v44 = vadd.f32 %v5918_v7, %v5494_v11  ;;  %v5983_v51 = vadd.f32 %v5919_v59, %v5495_v21  ;;  %v7871_v47 = vmul.f32 %v21977_v5, %v17681_v18  ;;  %v21980_v59 = vld [vmem:[#allocation181_spill] sm:$0xff]  ;;  %v18624_v21 = vpop.permute.xlu0 %11779 }
 0x42a   : > { %v8358_v0 = vmul.f32 %v21978_v33, %v17656_v6  ;;  %v9884_v55 = vadd.f32 %v9820_v57, %v9396_v34  ;;  %v9885_v62 = vadd.f32 %v9821_v13, %v9397_v26  ;;  %v8359_v32 = vmul.f32 %v21978_v33, %v17678_v60  ;;  %21981 = vst [vmem:[#allocation77_spill] sm:$0xff] %v18624_v21  ;;  %v21982_v13 = vld [vmem:[#allocation221_spill] sm:$0xff] }
 0x42b   : > { %v8846_v37 = vmul.f32 %v21979_v63, %v17687_v43  ;;  %v6470_v22 = vadd.f32 %v6406_v9, %v5982_v44  ;;  %v6471_v27 = vadd.f32 %v6407_v3, %v5983_v51  ;;  %v8847_v7 = vmul.f32 %v21979_v63, %v17695_v53  ;;  %v21983_v3 = vld [vmem:[#allocation212_spill] sm:$0xff] }
 0x42c   : > { %v9334_v11 = vmul.f32 %v21980_v59, %v17684_v20  ;;  %v10372_v24 = vadd.f32 %v10308_v1, %v9884_v55  ;;  %v10373_v5 = vadd.f32 %v10309_v14, %v9885_v62  ;;  %v9335_v57 = vmul.f32 %v21980_v59, %v17692_v45  ;;  %v21984_v14 = vld [vmem:[#allocation254_spill] sm:$0xff] }
 0x42d   : > { %v9822_v34 = vmul.f32 %v21982_v13, %v17701_v36  ;;  %v6958_v26 = vadd.f32 %v6894_v25, %v6470_v22  ;;  %v6959_v33 = vadd.f32 %v6895_v48, %v6471_v27  ;;  %v9823_v9 = vmul.f32 %v21982_v13, %v17715_v40  ;;  %v21985_v48 = vld [vmem:[#allocation43_spill] sm:$0xff] }
 0x42e   : > { %v10310_v44 = vmul.f32 %v21983_v3, %v21961_v8  ;;  %v10860_v51 = vadd.f32 %v10796_v42, %v10372_v24  ;;  %v10861_v63 = vadd.f32 %v10797_v38, %v10373_v5  ;;  %v10311_v1 = vmul.f32 %v21983_v3, %v21963_v54  ;;  %v21986_v22 = vld [vmem:[#allocation195_spill] sm:$0xff]  ;;  %v21987_v8 = vld [vmem:[#allocation244_spill] sm:$0xff]  ;;  %v21988_v38 = vld [vmem:[#allocation226_spill] sm:$0xff]  ;;  %v3512_v5 = vpop.permute.xlu1 %3511 }
 0x42f   : > { %v10798_v55 = vmul.f32 %v21984_v14, %v21965_v61  ;;  %v7446_v62 = vadd.f32 %v7382_v58, %v6958_v26  ;;  %v7447_v59 = vadd.f32 %v7383_v16, %v6959_v33  ;;  %v10799_v25 = vmul.f32 %v21984_v14, %v21913_v12  ;;  %v21989_v16 = vld [vmem:[#allocation36_spill] sm:$0xff]  ;;  %v3508_v33 = vpop.permute.xlu0 %3507  ;;  %v21990_v14 = vld [vmem:[#allocation98_spill] sm:$0xff] }
 0x430   : > { %v3019_v27 = vadd.f32 %v21986_v22, %v21985_v48  ;;  %v11348_v13 = vadd.f32 %v11284_v10, %v10860_v51  ;;  %v11349_v21 = vadd.f32 %v11285_v56, %v10861_v63  ;;  %v11286_v42 = vmul.f32 %v21987_v8, %v21970_v31  ;;  %v21992_v51 = vld [vmem:[#allocation76_spill] sm:$0xff] }
 0x431   : > { %v3011_v24 = vadd.f32 %v21986_v22, %v21988_v38  ;;  %v7934_v3 = vadd.f32 %v7870_v50, %v7446_v62  ;;  %v7935_v54 = vadd.f32 %v7871_v47, %v7447_v59  ;;  %v11287_v58 = vmul.f32 %v21987_v8, %v21919_v4  ;;  %v21994_v47 = vld [vmem:[#allocation32_spill] sm:$0xff] }
 0x432   : > { %v3022_v26 = vadd.f32 %v21986_v22, %v21989_v16  ;;  %v11872_v48 = vmul.f32 %v21990_v14, %v11348_v13  ;;  %v11873_v10 = vmul.f32 %v21990_v14, %v11349_v21  ;;  %v18652_v56 = vmul.f32 %v3512_v5, %v3019_v27  ;;  %v21995_v16 = vld [vmem:[#allocation545_spill] sm:$0xff]  ;;  %v21997_v21 = vld [vmem:[#allocation548_spill] sm:$0xff] }
 0x433   : > { %v3014_v63 = vadd.f32 %v21986_v22, %v21992_v51  ;;  %v8422_v38 = vadd.f32 %v8358_v0, %v7934_v3  ;;  %v8423_v31 = vadd.f32 %v8359_v32, %v7935_v54  ;;  %v18656_v50 = vmul.f32 %v3508_v33, %v3011_v24  ;;  %v21996_v13 = vld [vmem:[#allocation21_spill] sm:$0xff]  ;;  %v21998_v51 = vld [vmem:[#allocation550_spill] sm:$0xff]  ;;  %v21999_v0 = vld [vmem:[#allocation63_spill] sm:$0xff] }
 0x434   : > { %21991 = vst [vmem:[#allocation227_spill] sm:$0xff] %v18652_v56  ;;  %v3968_v8 = vmul.f32 %v21994_v47, %v21834_v19  ;;  %v11927_v62 = vpack.c.bf16 %v11873_v10, %v11872_v48  ;;  %v3969_v59 = vmul.f32 %v21994_v47, %v21836_v29  ;;  %v4456_v4 = vmul.f32 %v21996_v13, %v21995_v16 }
 0x435   : > { %21993 = vst [vmem:[#allocation69_spill] sm:$0xff] %v18656_v50  ;;  %v4457_v27 = vmul.f32 %v21996_v13, %v21997_v21  ;;  %v8910_v14 = vadd.f32 %v8846_v37, %v8422_v38  ;;  %v8911_v56 = vadd.f32 %v8847_v7, %v8423_v31  ;;  %v4944_v54 = vmul.f32 %v21999_v0, %v21998_v51  ;;  %v22002_v13 = vld [vmem:[#allocation56_spill] sm:$0xff] }
 0x436   : > { %v4945_v32 = vmul.f32 %v21999_v0, %v21920_v30  ;;  %13714 = vmatmul.mubr.msk.bf16.gmra.mrb[80].mxu0 %vm1463_vm6, %v11927_v62  ;;  %v18671_v24 = vmul.f32 %v3512_v5, %v3022_v26  ;;  %v18673_v3 = vmul.f32 %v3508_v33, %v3014_v63  ;;  %v4520_v48 = vadd.f32 %v4456_v4, %v3968_v8  ;;  %v22003_v0 = vld [vmem:[#allocation95_spill] sm:$0xff]  ;;  %v22005_v8 = vld [vmem:[#allocation128_spill] sm:$0xff] }
 0x437   : > { %v4521_v10 = vadd.f32 %v4457_v27, %v3969_v59  ;;  %v9398_v47 = vadd.f32 %v9334_v11, %v8910_v14  ;;  %v9399_v50 = vadd.f32 %v9335_v57, %v8911_v56  ;;  %v5432_v37 = vmul.f32 %v22002_v13, %v17600_v46  ;;  %v22004_v4 = vld [vmem:[#allocation87_spill] sm:$0xff] }
 0x438   : > { %22000 = vst [vmem:[#allocation109_spill] sm:$0xff] %v18671_v24  ;;  %22001 = vst [vmem:[#allocation100_spill] sm:$0xff] %v18673_v3  ;;  %v5433_v31 = vmul.f32 %v22002_v13, %v17606_v52  ;;  %v5008_v7 = vadd.f32 %v4944_v54, %v4520_v48  ;;  %v5920_v22 = vmul.f32 %v22003_v0, %v17615_v17  ;;  %v22006_v54 = vld [vmem:[#allocation120_spill] sm:$0xff] }
 0x439   : > { %v5009_v38 = vadd.f32 %v4945_v32, %v4521_v10  ;;  %v5921_v5 = vmul.f32 %v22003_v0, %v17631_v49  ;;  %v9886_v26 = vadd.f32 %v9822_v34, %v9398_v47  ;;  %v9887_v33 = vadd.f32 %v9823_v9, %v9399_v50  ;;  %v22007_v48 = vld [vmem:[#allocation160_spill] sm:$0xff]  ;;  %v22009_v0 = vld [vmem:[#allocation191_spill] sm:$0xff] }
 0x43a   : > { %v6408_v11 = vmul.f32 %v22004_v4, %v17612_v39  ;;  %v6409_v57 = vmul.f32 %v22004_v4, %v17628_v23  ;;  %v5496_v56 = vadd.f32 %v5432_v37, %v5008_v7  ;;  %v6896_v62 = vmul.f32 %v22005_v8, %v17643_v2  ;;  %v22010_v4 = vld [vmem:[#allocation184_spill] sm:$0xff] }
 0x43b   : > { %v5497_v63 = vadd.f32 %v5433_v31, %v5009_v38  ;;  %v6897_v59 = vmul.f32 %v22005_v8, %v17653_v28  ;;  %v10374_v27 = vadd.f32 %v10310_v44, %v9886_v26  ;;  %v10375_v14 = vadd.f32 %v10311_v1, %v9887_v33  ;;  %v22008_v31 = vld [vmem:[#allocation149_spill] sm:$0xff]  ;;  %v22011_v8 = vld [vmem:[#allocation223_spill] sm:$0xff] }
 0x43c   : > { %v7384_v34 = vmul.f32 %v22006_v54, %v17640_v35  ;;  %v7385_v9 = vmul.f32 %v22006_v54, %v17650_v15  ;;  %v5984_v50 = vadd.f32 %v5920_v22, %v5496_v56  ;;  %v7872_v10 = vmul.f32 %v22007_v48, %v17659_v41 }
 0x43d   : > { %v5985_v32 = vadd.f32 %v5921_v5, %v5497_v63  ;;  %v7873_v47 = vmul.f32 %v22007_v48, %v17681_v18  ;;  %v10862_v13 = vadd.f32 %v10798_v55, %v10374_v27  ;;  %v10863_v37 = vadd.f32 %v10799_v25, %v10375_v14  ;;  %v22012_v27 = vld [vmem:[#allocation2_spill] sm:$0xff] }
 0x43e   : > { %v8360_v44 = vmul.f32 %v22008_v31, %v17656_v6  ;;  %v8361_v1 = vmul.f32 %v22008_v31, %v17678_v60  ;;  %v6472_v7 = vadd.f32 %v6408_v11, %v5984_v50  ;;  %v8848_v22 = vmul.f32 %v22009_v0, %v17687_v43 }
 0x43f   : > { %v6473_v38 = vadd.f32 %v6409_v57, %v5985_v32  ;;  %v8849_v5 = vmul.f32 %v22009_v0, %v17695_v53  ;;  %v11350_v26 = vadd.f32 %v11286_v42, %v10862_v13  ;;  %v11351_v33 = vadd.f32 %v11287_v58, %v10863_v37  ;;  %v22013_v42 = vld [vmem:[#allocation371_spill] sm:$0xff] }
 0x440   : > { %v9336_v55 = vmul.f32 %v22010_v4, %v17684_v20  ;;  %v9337_v25 = vmul.f32 %v22010_v4, %v17692_v45  ;;  %v6960_v56 = vadd.f32 %v6896_v62, %v6472_v7  ;;  %v9824_v11 = vmul.f32 %v22011_v8, %v17701_v36  ;;  %v22014_v58 = vld [vmem:[#allocation215_spill] sm:$0xff]  ;;  %v22016_v62 = vld [vmem:[#allocation256_spill] sm:$0xff] }
 0x441   : > { %v6961_v63 = vadd.f32 %v6897_v59, %v6473_v38  ;;  %v9825_v57 = vmul.f32 %v22011_v8, %v17715_v40  ;;  %v11874_v14 = vmul.f32 %v22012_v27, %v11350_v26  ;;  %v11875_v54 = vmul.f32 %v22012_v27, %v11351_v33  ;;  %v22015_v32 = vld [vmem:[#allocation483_spill] sm:$0xff]  ;;  %v22018_v33 = vld [vmem:[#allocation22_spill] sm:$0xff] }
 0x442   : > { %v10312_v50 = vmul.f32 %v22014_v58, %v22013_v42  ;;  %v10313_v48 = vmul.f32 %v22014_v58, %v22015_v32  ;;  %v7448_v13 = vadd.f32 %v7384_v34, %v6960_v56  ;;  %v10800_v59 = vmul.f32 %v22016_v62, %v21965_v61  ;;  %v22017_v38 = vld [vmem:[#allocation27_spill] sm:$0xff] }
 0x443   : > { %v7449_v37 = vadd.f32 %v7385_v9, %v6961_v63  ;;  %v10801_v31 = vmul.f32 %v22016_v62, %v21913_v12  ;;  %v11928_v7 = vpack.c.bf16 %v11875_v54, %v11874_v14  ;;  %v3970_v0 = vmul.f32 %v22017_v38, %v21834_v19  ;;  %v22019_v9 = vld [vmem:[#allocation60_spill] sm:$0xff]  ;;  %v22020_v63 = vld [vmem:[#allocation494_spill] sm:$0xff]  ;;  %v22022_v58 = vld [vmem:[#allocation379_spill] sm:$0xff] }
 0x444   : > { %v3971_v26 = vmul.f32 %v22017_v38, %v21836_v29  ;;  %v4458_v4 = vmul.f32 %v22018_v33, %v21995_v16  ;;  %v7936_v8 = vadd.f32 %v7872_v10, %v7448_v13  ;;  %v4459_v34 = vmul.f32 %v22018_v33, %v21997_v21  ;;  %v22021_v14 = vld [vmem:[#allocation248_spill] sm:$0xff] }
 0x445   : > { %v7937_v27 = vadd.f32 %v7873_v47, %v7449_v37  ;;  %v4946_v56 = vmul.f32 %v22019_v9, %v21998_v51  ;;  %13717 = vmatprep.mubr.msk.bf16.mxu0 %vm1463_vm6, %v11928_v7  ;;  %v11288_v54 = vmul.f32 %v22021_v14, %v22020_v63  ;;  %v11289_v62 = vmul.f32 %v22021_v14, %v22022_v58  ;;  %v22023_v37 = vld [vmem:[#allocation51_spill] sm:$0xff] }
 0x446   : > { %v4522_v38 = vadd.f32 %v4458_v4, %v3970_v0  ;;  %v4947_v24 = vmul.f32 %v22019_v9, %v21920_v30  ;;  %v8424_v10 = vadd.f32 %v8360_v44, %v7936_v8  ;;  %v4523_v13 = vadd.f32 %v4459_v34, %v3971_v26  ;;  %v22024_v51 = vld [vmem:[#allocation91_spill] sm:$0xff]  ;;  %v22025_v44 = vld [vmem:[#allocation85_spill] sm:$0xff] }
 0x447   : > { %v8425_v47 = vadd.f32 %v8361_v1, %v7937_v27  ;;  %v5434_v33 = vmul.f32 %v22023_v37, %v17600_v46  ;;  %v5435_v7 = vmul.f32 %v22023_v37, %v17606_v52  ;;  %v5922_v21 = vmul.f32 %v22024_v51, %v17615_v17  ;;  %v22026_v27 = vld [vmem:[#allocation123_spill] sm:$0xff] }
 0x448   : > { %v5010_v3 = vadd.f32 %v4946_v56, %v4522_v38  ;;  %v5923_v14 = vmul.f32 %v22024_v51, %v17631_v49  ;;  %v8912_v0 = vadd.f32 %v8848_v22, %v8424_v10  ;;  %v5011_v16 = vadd.f32 %v4947_v24, %v4523_v13  ;;  %v22027_v51 = vld [vmem:[#allocation117_spill] sm:$0xff] }
 0x449   : > { %v8913_v4 = vadd.f32 %v8849_v5, %v8425_v47  ;;  %v6410_v1 = vmul.f32 %v22025_v44, %v17612_v39  ;;  %v6411_v8 = vmul.f32 %v22025_v44, %v17628_v23  ;;  %v6898_v34 = vmul.f32 %v22026_v27, %v17643_v2 }
 0x44a   : > { %v5498_v26 = vadd.f32 %v5434_v33, %v5010_v3  ;;  %v6899_v9 = vmul.f32 %v22026_v27, %v17653_v28  ;;  %v9400_v56 = vadd.f32 %v9336_v55, %v8912_v0  ;;  %v5499_v37 = vadd.f32 %v5435_v7, %v5011_v16  ;;  %v22028_v3 = vld [vmem:[#allocation155_spill] sm:$0xff]  ;;  %v22029_v55 = vld [vmem:[#allocation150_spill] sm:$0xff] }
 0x44b   : > { %v9401_v38 = vadd.f32 %v9337_v25, %v8913_v4  ;;  %v7386_v22 = vmul.f32 %v22027_v51, %v17640_v35  ;;  %v7387_v5 = vmul.f32 %v22027_v51, %v17650_v15  ;;  %v7874_v10 = vmul.f32 %v22028_v3, %v17659_v41 }
 0x44c   : > { %v5986_v24 = vadd.f32 %v5922_v21, %v5498_v26  ;;  %v7875_v47 = vmul.f32 %v22028_v3, %v17681_v18  ;;  %v9888_v13 = vadd.f32 %v9824_v11, %v9400_v56  ;;  %v5987_v44 = vadd.f32 %v5923_v14, %v5499_v37  ;;  %v22030_v21 = vld [vmem:[#allocation188_spill] sm:$0xff]  ;;  %v18774_v26 = vpop.permute.xlu1 %11783 }
 0x44d   : > { %v9889_v33 = vadd.f32 %v9825_v57, %v9401_v38  ;;  %v8362_v25 = vmul.f32 %v22029_v55, %v17656_v6  ;;  %v8363_v7 = vmul.f32 %v22029_v55, %v17678_v60  ;;  %v8850_v0 = vmul.f32 %v22030_v21, %v17687_v43  ;;  %22031 = vst [vmem:[#allocation140_spill] sm:$0xff] %v18774_v26  ;;  %v22032_v57 = vld [vmem:[#allocation179_spill] sm:$0xff] }
 0x44e   : > { %v6474_v16 = vadd.f32 %v6410_v1, %v5986_v24  ;;  %v8851_v4 = vmul.f32 %v22030_v21, %v17695_v53  ;;  %v10376_v27 = vadd.f32 %v10312_v50, %v9888_v13  ;;  %v6475_v11 = vadd.f32 %v6411_v8, %v5987_v44  ;;  %v22033_v38 = vld [vmem:[#allocation219_spill] sm:$0xff]  ;;  %v22034_v50 = vld [vmem:[#allocation213_spill] sm:$0xff] }
 0x44f   : > { %v10377_v51 = vadd.f32 %v10313_v48, %v9889_v33  ;;  %v9338_v14 = vmul.f32 %v22032_v57, %v17684_v20  ;;  %v9339_v1 = vmul.f32 %v22032_v57, %v17692_v45  ;;  %v9826_v37 = vmul.f32 %v22033_v38, %v17701_v36 }
 0x450   : > { %v6962_v56 = vadd.f32 %v6898_v34, %v6474_v16  ;;  %v9827_v24 = vmul.f32 %v22033_v38, %v17715_v40  ;;  %v10864_v3 = vadd.f32 %v10800_v59, %v10376_v27  ;;  %v6963_v21 = vadd.f32 %v6899_v9, %v6475_v11  ;;  %v22035_v34 = vld [vmem:[#allocation251_spill] sm:$0xff]  ;;  %v22038_v27 = vld [vmem:[#allocation245_spill] sm:$0xff] }
 0x451   : > { %v10865_v55 = vadd.f32 %v10801_v31, %v10377_v51  ;;  %v10314_v48 = vmul.f32 %v22034_v50, %v22013_v42  ;;  %v10315_v13 = vmul.f32 %v22034_v50, %v22015_v32  ;;  %v10802_v33 = vmul.f32 %v22035_v34, %v21965_v61  ;;  %v22036_v38 = vld [vmem:[#allocation171_spill] sm:$0xff]  ;;  %v3516_v61 = vpop.permute.xlu0 %3515  ;;  %v3520_v32 = vpop.permute.xlu1 %3519 }
 0x452   : > { %v7450_v8 = vadd.f32 %v7386_v22, %v6962_v56  ;;  %v10803_v44 = vmul.f32 %v22035_v34, %v21913_v12  ;;  %v11352_v16 = vadd.f32 %v11288_v54, %v10864_v3  ;;  %v7451_v26 = vadd.f32 %v7387_v5, %v6963_v21  ;;  %v22037_v59 = vld [vmem:[#allocation195_spill] sm:$0xff]  ;;  %v22039_v22 = vld [vmem:[#allocation164_spill] sm:$0xff] }
 0x453   : > { %v11353_v57 = vadd.f32 %v11289_v62, %v10865_v55  ;;  %v3035_v31 = vadd.f32 %v22037_v59, %v22036_v38  ;;  %v11290_v51 = vmul.f32 %v22038_v27, %v22020_v63  ;;  %v3027_v11 = vadd.f32 %v22037_v59, %v22039_v22  ;;  %v22040_v56 = vld [vmem:[#allocation204_spill] sm:$0xff]  ;;  %v22041_v42 = vld [vmem:[#allocation131_spill] sm:$0xff] }
 0x454   : > { %v7938_v9 = vadd.f32 %v7874_v10, %v7450_v8  ;;  %v3038_v50 = vadd.f32 %v22037_v59, %v22040_v56  ;;  %v11876_v34 = vmul.f32 %v22041_v42, %v11352_v16  ;;  %v7939_v62 = vadd.f32 %v7875_v47, %v7451_v26  ;;  %v22042_v5 = vld [vmem:[#allocation236_spill] sm:$0xff]  ;;  %v22045_v56 = vld [vmem:[#allocation30_spill] sm:$0xff]  ;;  %v22046_v26 = vld [vmem:[#allocation545_spill] sm:$0xff] }
 0x455   : > { %v11877_v54 = vmul.f32 %v22041_v42, %v11353_v57  ;;  %v3030_v3 = vadd.f32 %v22037_v59, %v22042_v5  ;;  %v11291_v55 = vmul.f32 %v22038_v27, %v22022_v58  ;;  %v18806_v21 = vmul.f32 %v3520_v32, %v3035_v31  ;;  %v22047_v16 = vld [vmem:[#allocation23_spill] sm:$0xff]  ;;  %v22050_v31 = vld [vmem:[#allocation62_spill] sm:$0xff] }
 0x456   : > { %v8426_v10 = vadd.f32 %v8362_v25, %v7938_v9  ;;  %v18808_v8 = vmul.f32 %v3516_v61, %v3027_v11  ;;  %v8427_v22 = vadd.f32 %v8363_v7, %v7939_v62  ;;  %v3972_v63 = vmul.f32 %v22045_v56, %v21834_v19  ;;  %v22048_v25 = vld [vmem:[#allocation548_spill] sm:$0xff]  ;;  %v22049_v9 = vld [vmem:[#allocation550_spill] sm:$0xff] }
 0x457   : > { %22043 = vst [vmem:[#allocation132_spill] sm:$0xff] %v18806_v21  ;;  %v11929_v38 = vpack.c.bf16 %v11877_v54, %v11876_v34  ;;  %v3973_v42 = vmul.f32 %v22045_v56, %v21836_v29  ;;  %v4460_v57 = vmul.f32 %v22047_v16, %v22046_v26  ;;  %v4461_v59 = vmul.f32 %v22047_v16, %v22048_v25 }
 0x458   : > { %22044 = vst [vmem:[#allocation172_spill] sm:$0xff] %v18808_v8  ;;  %v8914_v47 = vadd.f32 %v8850_v0, %v8426_v10  ;;  %v4948_v27 = vmul.f32 %v22050_v31, %v22049_v9  ;;  %v8915_v11 = vadd.f32 %v8851_v4, %v8427_v22  ;;  %v18821_v7 = vmul.f32 %v3520_v32, %v3038_v50  ;;  %v22053_v10 = vld [vmem:[#allocation54_spill] sm:$0xff] }
 0x459   : > { %13718 = vmatmul.mubr.msk.bf16.gmra.mrb[84].mxu0 %vm1463_vm6, %v11929_v38  ;;  %v18823_v34 = vmul.f32 %v3516_v61, %v3030_v3  ;;  %v4949_v54 = vmul.f32 %v22050_v31, %v21920_v30  ;;  %v4524_v62 = vadd.f32 %v4460_v57, %v3972_v63  ;;  %v4525_v5 = vadd.f32 %v4461_v59, %v3973_v42  ;;  %v22054_v38 = vld [vmem:[#allocation94_spill] sm:$0xff] }
 0x45a   : > { %22051 = vst [vmem:[#allocation165_spill] sm:$0xff] %v18821_v7  ;;  %v9402_v0 = vadd.f32 %v9338_v14, %v8914_v47  ;;  %v5436_v56 = vmul.f32 %v22053_v10, %v17600_v46  ;;  %v9403_v16 = vadd.f32 %v9339_v1, %v8915_v11  ;;  %v5437_v21 = vmul.f32 %v22053_v10, %v17606_v52  ;;  %v22055_v14 = vld [vmem:[#allocation86_spill] sm:$0xff]  ;;  %v22056_v1 = vld [vmem:[#allocation125_spill] sm:$0xff] }
 0x45b   : > { %22052 = vst [vmem:[#allocation205_spill] sm:$0xff] %v18823_v34  ;;  %v5924_v4 = vmul.f32 %v22054_v38, %v17615_v17  ;;  %v5925_v61 = vmul.f32 %v22054_v38, %v17631_v49  ;;  %v5012_v50 = vadd.f32 %v4948_v27, %v4524_v62  ;;  %v5013_v3 = vadd.f32 %v4949_v54, %v4525_v5 }
 0x45c   : > { %v9890_v32 = vadd.f32 %v9826_v37, %v9402_v0  ;;  %v6412_v63 = vmul.f32 %v22055_v14, %v17612_v39  ;;  %v9891_v22 = vadd.f32 %v9827_v24, %v9403_v16  ;;  %v6413_v42 = vmul.f32 %v22055_v14, %v17628_v23  ;;  %v22057_v37 = vld [vmem:[#allocation118_spill] sm:$0xff] }
 0x45d   : > { %v6900_v47 = vmul.f32 %v22056_v1, %v17643_v2  ;;  %v6901_v57 = vmul.f32 %v22056_v1, %v17653_v28  ;;  %v5500_v31 = vadd.f32 %v5436_v56, %v5012_v50  ;;  %v5501_v11 = vadd.f32 %v5437_v21, %v5013_v3  ;;  %v22058_v24 = vld [vmem:[#allocation158_spill] sm:$0xff] }
 0x45e   : > { %v10378_v59 = vadd.f32 %v10314_v48, %v9890_v32  ;;  %v7388_v27 = vmul.f32 %v22057_v37, %v17640_v35  ;;  %v10379_v54 = vadd.f32 %v10315_v13, %v9891_v22  ;;  %v7389_v0 = vmul.f32 %v22057_v37, %v17650_v15  ;;  %v22059_v48 = vld [vmem:[#allocation151_spill] sm:$0xff]  ;;  %v22060_v13 = vld [vmem:[#allocation190_spill] sm:$0xff] }
 0x45f   : > { %v7876_v62 = vmul.f32 %v22058_v24, %v17659_v41  ;;  %v7877_v5 = vmul.f32 %v22058_v24, %v17681_v18  ;;  %v5988_v16 = vadd.f32 %v5924_v4, %v5500_v31  ;;  %v5989_v38 = vadd.f32 %v5925_v61, %v5501_v11  ;;  %v22063_v24 = vld [vmem:[#allocation371_spill] sm:$0xff] }
 0x460   : > { %v10866_v10 = vadd.f32 %v10802_v33, %v10378_v59  ;;  %v8364_v56 = vmul.f32 %v22059_v48, %v17656_v6  ;;  %v10867_v21 = vadd.f32 %v10803_v44, %v10379_v54  ;;  %v8365_v32 = vmul.f32 %v22059_v48, %v17678_v60  ;;  %v22061_v33 = vld [vmem:[#allocation182_spill] sm:$0xff] }
 0x461   : > { %v8852_v50 = vmul.f32 %v22060_v13, %v17687_v43  ;;  %v8853_v3 = vmul.f32 %v22060_v13, %v17695_v53  ;;  %v6476_v22 = vadd.f32 %v6412_v63, %v5988_v16  ;;  %v6477_v1 = vadd.f32 %v6413_v42, %v5989_v38  ;;  %v22062_v44 = vld [vmem:[#allocation222_spill] sm:$0xff]  ;;  %v22065_v63 = vld [vmem:[#allocation483_spill] sm:$0xff]  ;;  %v22067_v38 = vld [vmem:[#allocation376_spill] sm:$0xff] }
 0x462   : > { %v11354_v14 = vadd.f32 %v11290_v51, %v10866_v10  ;;  %v9340_v4 = vmul.f32 %v22061_v33, %v17684_v20  ;;  %v11355_v61 = vadd.f32 %v11291_v55, %v10867_v21  ;;  %v9341_v59 = vmul.f32 %v22061_v33, %v17692_v45  ;;  %v22064_v48 = vld [vmem:[#allocation214_spill] sm:$0xff]  ;;  %v22068_v21 = vld [vmem:[#allocation253_spill] sm:$0xff] }
 0x463   : > { %v9828_v31 = vmul.f32 %v22062_v44, %v17701_v36  ;;  %v9829_v11 = vmul.f32 %v22062_v44, %v17715_v40  ;;  %v6964_v37 = vadd.f32 %v6900_v47, %v6476_v22  ;;  %v6965_v54 = vadd.f32 %v6901_v57, %v6477_v1  ;;  %v22066_v10 = vld [vmem:[#allocation74_spill] sm:$0xff]  ;;  %v22069_v47 = vld [vmem:[#allocation31_spill] sm:$0xff] }
 0x464   : > { %v10316_v51 = vmul.f32 %v22064_v48, %v22063_v24  ;;  %v10317_v42 = vmul.f32 %v22064_v48, %v22065_v63  ;;  %v11878_v16 = vmul.f32 %v22066_v10, %v11354_v14  ;;  %v11879_v55 = vmul.f32 %v22066_v10, %v11355_v61  ;;  %v22070_v48 = vld [vmem:[#allocation24_spill] sm:$0xff] }
 0x465   : > { %v10804_v13 = vmul.f32 %v22068_v21, %v22067_v38  ;;  %v10805_v33 = vmul.f32 %v22068_v21, %v21913_v12  ;;  %v7452_v7 = vadd.f32 %v7388_v27, %v6964_v37  ;;  %v7453_v44 = vadd.f32 %v7389_v0, %v6965_v54  ;;  %v22071_v10 = vld [vmem:[#allocation64_spill] sm:$0xff]  ;;  %v22072_v27 = vld [vmem:[#allocation494_spill] sm:$0xff] }
 0x466   : > { %v3974_v57 = vmul.f32 %v22069_v47, %v21834_v19  ;;  %v3975_v22 = vmul.f32 %v22069_v47, %v21836_v29  ;;  %v11930_v1 = vpack.c.bf16 %v11879_v55, %v11878_v16  ;;  %v4462_v14 = vmul.f32 %v22070_v48, %v22046_v26  ;;  %v22073_v0 = vld [vmem:[#allocation246_spill] sm:$0xff] }
 0x467   : > { %v4463_v61 = vmul.f32 %v22070_v48, %v22048_v25  ;;  %v4950_v34 = vmul.f32 %v22071_v10, %v22049_v9  ;;  %v7940_v8 = vadd.f32 %v7876_v62, %v7452_v7  ;;  %v7941_v21 = vadd.f32 %v7877_v5, %v7453_v44  ;;  %v22074_v48 = vld [vmem:[#allocation55_spill] sm:$0xff]  ;;  %v22075_v62 = vld [vmem:[#allocation96_spill] sm:$0xff] }
 0x468   : > { %v11292_v37 = vmul.f32 %v22073_v0, %v22072_v27  ;;  %v4951_v54 = vmul.f32 %v22071_v10, %v21920_v30  ;;  %13721 = vmatprep.mubr.msk.bf16.mxu0 %vm1463_vm6, %v11930_v1  ;;  %v11293_v16 = vmul.f32 %v22073_v0, %v22022_v58  ;;  %v4526_v55 = vadd.f32 %v4462_v14, %v3974_v57  ;;  %v22076_v0 = vld [vmem:[#allocation88_spill] sm:$0xff] }
 0x469   : > { %v4527_v47 = vadd.f32 %v4463_v61, %v3975_v22  ;;  %v5438_v25 = vmul.f32 %v22074_v48, %v17600_v46  ;;  %v8428_v26 = vadd.f32 %v8364_v56, %v7940_v8  ;;  %v8429_v9 = vadd.f32 %v8365_v32, %v7941_v21  ;;  %v22077_v56 = vld [vmem:[#allocation127_spill] sm:$0xff] }
 0x46a   : > { %v5439_v7 = vmul.f32 %v22074_v48, %v17606_v52  ;;  %v5926_v5 = vmul.f32 %v22075_v62, %v17615_v17  ;;  %v5014_v44 = vadd.f32 %v4950_v34, %v4526_v55  ;;  %v5927_v1 = vmul.f32 %v22075_v62, %v17631_v49 }
 0x46b   : > { %v5015_v10 = vadd.f32 %v4951_v54, %v4527_v47  ;;  %v6414_v57 = vmul.f32 %v22076_v0, %v17612_v39  ;;  %v8916_v22 = vadd.f32 %v8852_v50, %v8428_v26  ;;  %v8917_v14 = vadd.f32 %v8853_v3, %v8429_v9  ;;  %v22078_v54 = vld [vmem:[#allocation119_spill] sm:$0xff] }
 0x46c   : > { %v6415_v8 = vmul.f32 %v22076_v0, %v17628_v23  ;;  %v6902_v32 = vmul.f32 %v22077_v56, %v17643_v2  ;;  %v5502_v61 = vadd.f32 %v5438_v25, %v5014_v44  ;;  %v6903_v34 = vmul.f32 %v22077_v56, %v17653_v28  ;;  %v22079_v9 = vld [vmem:[#allocation159_spill] sm:$0xff] }
 0x46d   : > { %v5503_v21 = vadd.f32 %v5439_v7, %v5015_v10  ;;  %v7390_v55 = vmul.f32 %v22078_v54, %v17640_v35  ;;  %v9404_v47 = vadd.f32 %v9340_v4, %v8916_v22  ;;  %v9405_v48 = vadd.f32 %v9341_v59, %v8917_v14  ;;  %v22080_v7 = vld [vmem:[#allocation152_spill] sm:$0xff] }
 0x46e   : > { %v7391_v26 = vmul.f32 %v22078_v54, %v17650_v15  ;;  %v7878_v50 = vmul.f32 %v22079_v9, %v17659_v41  ;;  %v5990_v3 = vadd.f32 %v5926_v5, %v5502_v61  ;;  %v7879_v25 = vmul.f32 %v22079_v9, %v17681_v18  ;;  %v22081_v59 = vld [vmem:[#allocation192_spill] sm:$0xff] }
 0x46f   : > { %v5991_v62 = vadd.f32 %v5927_v1, %v5503_v21  ;;  %v8366_v44 = vmul.f32 %v22080_v7, %v17656_v6  ;;  %v9892_v10 = vadd.f32 %v9828_v31, %v9404_v47  ;;  %v9893_v0 = vadd.f32 %v9829_v11, %v9405_v48  ;;  %v22082_v1 = vld [vmem:[#allocation183_spill] sm:$0xff]  ;;  %v22083_v11 = vld [vmem:[#allocation224_spill] sm:$0xff] }
 0x470   : > { %v8367_v4 = vmul.f32 %v22080_v7, %v17678_v60  ;;  %v8854_v22 = vmul.f32 %v22081_v59, %v17687_v43  ;;  %v6478_v14 = vadd.f32 %v6414_v57, %v5990_v3  ;;  %v8855_v5 = vmul.f32 %v22081_v59, %v17695_v53 }
 0x471   : > { %v6479_v56 = vadd.f32 %v6415_v8, %v5991_v62  ;;  %v9342_v61 = vmul.f32 %v22082_v1, %v17684_v20  ;;  %v10380_v21 = vadd.f32 %v10316_v51, %v9892_v10  ;;  %v10381_v54 = vadd.f32 %v10317_v42, %v9893_v0  ;;  %v22084_v8 = vld [vmem:[#allocation216_spill] sm:$0xff]  ;;  %v22085_v42 = vld [vmem:[#allocation255_spill] sm:$0xff] }
 0x472   : > { %v9343_v31 = vmul.f32 %v22082_v1, %v17692_v45  ;;  %v9830_v47 = vmul.f32 %v22083_v11, %v17701_v36  ;;  %v6966_v48 = vadd.f32 %v6902_v32, %v6478_v14  ;;  %v9831_v57 = vmul.f32 %v22083_v11, %v17715_v40 }
 0x473   : > { %v6967_v9 = vadd.f32 %v6903_v34, %v6479_v56  ;;  %v10318_v3 = vmul.f32 %v22084_v8, %v22063_v24  ;;  %v10868_v62 = vadd.f32 %v10804_v13, %v10380_v21  ;;  %v10869_v7 = vadd.f32 %v10805_v33, %v10381_v54  ;;  %v22086_v34 = vld [vmem:[#allocation33_spill] sm:$0xff] }
 0x474   : > { %v10319_v51 = vmul.f32 %v22084_v8, %v22065_v63  ;;  %v10806_v10 = vmul.f32 %v22085_v42, %v22067_v38  ;;  %v7454_v0 = vadd.f32 %v7390_v55, %v6966_v48  ;;  %v10807_v32 = vmul.f32 %v22085_v42, %v21913_v12  ;;  %v22087_v33 = vld [vmem:[#allocation545_spill] sm:$0xff]  ;;  %v22089_v63 = vld [vmem:[#allocation548_spill] sm:$0xff] }
 0x475   : > { %v7455_v59 = vadd.f32 %v7391_v26, %v6967_v9  ;;  %v3976_v14 = vmul.f32 %v22086_v34, %v21834_v19  ;;  %v11356_v56 = vadd.f32 %v11292_v37, %v10868_v62  ;;  %v11357_v1 = vadd.f32 %v11293_v16, %v10869_v7  ;;  %v22088_v21 = vld [vmem:[#allocation25_spill] sm:$0xff]  ;;  %v22090_v26 = vld [vmem:[#allocation550_spill] sm:$0xff] }
 0x476   : > { %v3977_v13 = vmul.f32 %v22086_v34, %v21836_v29  ;;  %v4464_v54 = vmul.f32 %v22088_v21, %v22087_v33  ;;  %v7942_v11 = vadd.f32 %v7878_v50, %v7454_v0  ;;  %v4465_v55 = vmul.f32 %v22088_v21, %v22089_v63  ;;  %v22091_v48 = vld [vmem:[#allocation65_spill] sm:$0xff] }
 0x477   : > { %v7943_v8 = vadd.f32 %v7879_v25, %v7455_v59  ;;  %v4952_v9 = vmul.f32 %v22091_v48, %v22090_v26  ;;  %v22092_v42 = vld [vmem:[#allocation77_spill] sm:$0xff]  ;;  %v4953_v16 = vmul.f32 %v22091_v48, %v21920_v30 }
 0x478   : > { %v11880_v12 = vmul.f32 %v22092_v42, %v11356_v56  ;;  %v11881_v19 = vmul.f32 %v22092_v42, %v11357_v1  ;;  %v4528_v37 = vadd.f32 %v4464_v54, %v3976_v14  ;;  %v8430_v29 = vadd.f32 %v8366_v44, %v7942_v11  ;;  %v22093_v50 = vld [vmem:[#allocation57_spill] sm:$0xff]  ;;  %v22095_v44 = vld [vmem:[#allocation247_spill] sm:$0xff] }
 0x479   : > { %v8431_v62 = vadd.f32 %v8367_v4, %v7943_v8  ;;  %v4529_v7 = vadd.f32 %v4465_v55, %v3977_v13  ;;  %v5440_v25 = vmul.f32 %v22093_v50, %v17600_v46  ;;  %v5441_v63 = vmul.f32 %v22093_v50, %v17606_v52  ;;  %v22094_v34 = vld [vmem:[#allocation97_spill] sm:$0xff] }
 0x47a   : > { %v11931_v0 = vpack.c.bf16 %v11881_v19, %v11880_v12  ;;  %v5016_v59 = vadd.f32 %v4952_v9, %v4528_v37  ;;  %v5928_v56 = vmul.f32 %v22094_v34, %v17615_v17  ;;  %v8918_v33 = vadd.f32 %v8854_v22, %v8430_v29  ;;  %v22096_v52 = vld [vmem:[#allocation89_spill] sm:$0xff] }
 0x47b   : > { %v8919_v1 = vadd.f32 %v8855_v5, %v8431_v62  ;;  %v5017_v14 = vadd.f32 %v4953_v16, %v4529_v7  ;;  %v5929_v30 = vmul.f32 %v22094_v34, %v17631_v49  ;;  %v11294_v4 = vmul.f32 %v22095_v44, %v22072_v27  ;;  %v22097_v49 = vld [vmem:[#allocation129_spill] sm:$0xff] }
 0x47c   : > { %13722 = vmatmul.mubr.msk.bf16.gmra.mrb[88].mxu0 %vm1463_vm6, %v11931_v0  ;;  %v11295_v46 = vmul.f32 %v22095_v44, %v22022_v58  ;;  %v5504_v12 = vadd.f32 %v5440_v25, %v5016_v59  ;;  %v6416_v13 = vmul.f32 %v22096_v52, %v17612_v39  ;;  %v9406_v21 = vadd.f32 %v9342_v61, %v8918_v33  ;;  %v22098_v55 = vld [vmem:[#allocation121_spill] sm:$0xff] }
 0x47d   : > { %v9407_v17 = vadd.f32 %v9343_v31, %v8919_v1  ;;  %v5505_v22 = vadd.f32 %v5441_v63, %v5017_v14  ;;  %v6417_v5 = vmul.f32 %v22096_v52, %v17628_v23  ;;  %v6904_v11 = vmul.f32 %v22097_v49, %v17643_v2  ;;  %v22099_v31 = vld [vmem:[#allocation161_spill] sm:$0xff]  ;;  %v22109_v14 = vld [vmem:[#allocation266_spill] sm:$0xff] }
 0x47e   : > { %v5992_v54 = vadd.f32 %v5928_v56, %v5504_v12  ;;  %v6905_v8 = vmul.f32 %v22097_v49, %v17653_v28  ;;  %v7392_v26 = vmul.f32 %v22098_v55, %v17640_v35  ;;  %v9894_v48 = vadd.f32 %v9830_v47, %v9406_v21  ;;  %v22100_v2 = vld [vmem:[#allocation153_spill] sm:$0xff]  ;;  %v22113_v21 = vld [vmem:[#allocation258_spill] sm:$0xff] }
 0x47f   : > { %v9895_v9 = vadd.f32 %v9831_v57, %v9407_v17  ;;  %v5993_v42 = vadd.f32 %v5929_v30, %v5505_v22  ;;  %v7393_v39 = vmul.f32 %v22098_v55, %v17650_v15  ;;  %v7880_v23 = vmul.f32 %v22099_v31, %v17659_v41  ;;  %v22101_v57 = vld [vmem:[#allocation193_spill] sm:$0xff]  ;;  %v22114_v22 = vld [vmem:[#allocation387_spill] sm:$0xff] }
 0x480   : > { %v6480_v61 = vadd.f32 %v6416_v13, %v5992_v54  ;;  %v7881_v19 = vmul.f32 %v22099_v31, %v17681_v18  ;;  %v8368_v37 = vmul.f32 %v22100_v2, %v17656_v6  ;;  %v10382_v28 = vadd.f32 %v10318_v3, %v9894_v48  ;;  %v22102_v41 = vld [vmem:[#allocation185_spill] sm:$0xff]  ;;  %v22112_v13 = vld [vmem:[#allocation383_spill] sm:$0xff]  ;;  %v22116_v54 = vld [vmem:[#allocation298_spill] sm:$0xff] }
 0x481   : > { %v10383_v16 = vadd.f32 %v10319_v51, %v9895_v9  ;;  %v6481_v29 = vadd.f32 %v6417_v5, %v5993_v42  ;;  %v8369_v35 = vmul.f32 %v22100_v2, %v17678_v60  ;;  %v8856_v15 = vmul.f32 %v22101_v57, %v17687_v43  ;;  %v22103_v51 = vld [vmem:[#allocation225_spill] sm:$0xff]  ;;  %v22118_v48 = vld [vmem:[#allocation106_spill] sm:$0xff] }
 0x482   : > { %v6968_v47 = vadd.f32 %v6904_v11, %v6480_v61  ;;  %v8857_v62 = vmul.f32 %v22101_v57, %v17695_v53  ;;  %v9344_v7 = vmul.f32 %v22102_v41, %v17684_v20  ;;  %v10870_v18 = vadd.f32 %v10806_v10, %v10382_v28  ;;  %v22104_v43 = vld [vmem:[#allocation217_spill] sm:$0xff]  ;;  %v22105_v20 = vld [vmem:[#allocation483_spill] sm:$0xff]  ;;  %v22120_v2 = vld [vmem:[#allocation290_spill] sm:$0xff] }
 0x483   : > { %v10871_v50 = vadd.f32 %v10807_v32, %v10383_v16  ;;  %v6969_v25 = vadd.f32 %v6905_v8, %v6481_v29  ;;  %v9345_v6 = vmul.f32 %v22102_v41, %v17692_v45  ;;  %v9832_v60 = vmul.f32 %v22103_v51, %v17701_v36  ;;  %v22106_v56 = vld [vmem:[#allocation257_spill] sm:$0xff]  ;;  %v22108_v36 = vld [vmem:[#allocation384_spill] sm:$0xff]  ;;  %v22121_v28 = vld [vmem:[#allocation395_spill] sm:$0xff] }
 0x484   : > { %v7456_v3 = vadd.f32 %v7392_v26, %v6968_v47  ;;  %v9833_v0 = vmul.f32 %v22103_v51, %v17715_v40  ;;  %v10320_v59 = vmul.f32 %v22104_v43, %v22063_v24  ;;  %v11358_v53 = vadd.f32 %v11294_v4, %v10870_v18  ;;  %v22107_v33 = vld [vmem:[#allocation381_spill] sm:$0xff]  ;;  %v22110_v40 = vld [vmem:[#allocation140_spill] sm:$0xff]  ;;  %v22122_v29 = vld [vmem:[#allocation194_spill] sm:$0xff] }
 0x485   : > { %v11359_v63 = vadd.f32 %v11295_v46, %v10871_v50  ;;  %v7457_v34 = vadd.f32 %v7393_v39, %v6969_v25  ;;  %v10321_v10 = vmul.f32 %v22104_v43, %v22105_v20  ;;  %v10808_v45 = vmul.f32 %v22106_v56, %v22067_v38  ;;  %v22111_v46 = vld [vmem:[#allocation493_spill] sm:$0xff]  ;;  %v22124_v41 = vld [vmem:[#allocation415_spill] sm:$0xff]  ;;  %v22125_v50 = vld [vmem:[#allocation202_spill] sm:$0xff] }
 0x486   : > { %v7944_v32 = vadd.f32 %v7880_v23, %v7456_v3  ;;  %v10809_v1 = vmul.f32 %v22106_v56, %v22107_v33  ;;  %v3978_v30 = vmul.f32 %v22109_v14, %v22108_v36  ;;  %v11882_v44 = vmul.f32 %v22110_v40, %v11358_v53  ;;  %v22115_v5 = vld [vmem:[#allocation393_spill] sm:$0xff]  ;;  %v22126_v25 = vld [vmem:[#allocation322_spill] sm:$0xff]  ;;  %v22128_v43 = vld [vmem:[#allocation108_spill] sm:$0xff] }
 0x487   : > { %v11883_v24 = vmul.f32 %v22110_v40, %v11359_v63  ;;  %v7945_v4 = vadd.f32 %v7881_v19, %v7457_v34  ;;  %v3979_v12 = vmul.f32 %v22109_v14, %v22111_v46  ;;  %v4466_v17 = vmul.f32 %v22113_v21, %v22112_v13  ;;  %v22117_v55 = vld [vmem:[#allocation249_spill] sm:$0xff]  ;;  %v22119_v19 = vld [vmem:[#allocation390_spill] sm:$0xff]  ;;  %v22130_v56 = vld [vmem:[#allocation139_spill] sm:$0xff] }
 0x488   : > { %v8432_v52 = vadd.f32 %v8368_v37, %v7944_v32  ;;  %v4467_v38 = vmul.f32 %v22113_v21, %v22114_v22  ;;  %v4954_v49 = vmul.f32 %v22116_v54, %v22115_v5  ;;  %v11296_v26 = vmul.f32 %v22117_v55, %v22072_v27  ;;  %v22123_v27 = vld [vmem:[#allocation330_spill] sm:$0xff]  ;;  %v22131_v14 = vld [vmem:[#allocation67_spill] sm:$0xff] }
 0x489   : > { %v11932_v11 = vpack.c.bf16 %v11883_v24, %v11882_v44  ;;  %v8433_v8 = vadd.f32 %v8369_v35, %v7945_v4  ;;  %v4955_v9 = vmul.f32 %v22116_v54, %v22118_v48  ;;  %v11297_v39 = vmul.f32 %v22117_v55, %v22022_v58  ;;  %v22129_v53 = vld [vmem:[#allocation362_spill] sm:$0xff]  ;;  %v22134_v24 = vld [vmem:[#allocation12_spill] sm:$0xff]  ;;  %v22135_v4 = vld [vmem:[#allocation407_spill] sm:$0xff] }
 0x48a   : > { %v8920_v42 = vadd.f32 %v8856_v15, %v8432_v52  ;;  %v4530_v61 = vadd.f32 %v4466_v17, %v3978_v30  ;;  %v4531_v31 = vadd.f32 %v4467_v38, %v3979_v12  ;;  %v5442_v37 = vmul.f32 %v22120_v2, %v22119_v19  ;;  %v22132_v30 = vld [vmem:[#allocation354_spill] sm:$0xff] }
 0x48b   : > { %13725 = vmatprep.mubr.msk.bf16.mxu0 %vm1463_vm6, %v11932_v11  ;;  %v8921_v23 = vadd.f32 %v8857_v62, %v8433_v8  ;;  %v5443_v16 = vmul.f32 %v22120_v2, %v22121_v28  ;;  %v5930_v35 = vmul.f32 %v22123_v27, %v22122_v29  ;;  %v5931_v58 = vmul.f32 %v22123_v27, %v22124_v41  ;;  %v22127_v62 = vld [vmem:[#allocation234_spill] sm:$0xff]  ;;  %v22138_v11 = vld [vmem:[#allocation399_spill] sm:$0xff]  ;;  %v22143_v27 = vld [vmem:[#allocation44_spill] sm:$0xff] }
 0x48c   : > { %v9408_v47 = vadd.f32 %v9344_v7, %v8920_v42  ;;  %v5018_v57 = vadd.f32 %v4954_v49, %v4530_v61  ;;  %v5019_v15 = vadd.f32 %v4955_v9, %v4531_v31  ;;  %v6418_v3 = vmul.f32 %v22126_v25, %v22125_v50  ;;  %v22136_v38 = vld [vmem:[#allocation34_spill] sm:$0xff]  ;;  %v22137_v49 = vld [vmem:[#allocation3_spill] sm:$0xff]  ;;  %v22141_v42 = vld [vmem:[#allocation440_spill] sm:$0xff] }
 0x48d   : > { %v9409_v18 = vadd.f32 %v9345_v6, %v8921_v23  ;;  %v6419_v51 = vmul.f32 %v22126_v25, %v22127_v62  ;;  %v6906_v63 = vmul.f32 %v22129_v53, %v22128_v43  ;;  %v6907_v7 = vmul.f32 %v22129_v53, %v22130_v56  ;;  %v22133_v6 = vld [vmem:[#allocation99_spill] sm:$0xff]  ;;  %v22140_v9 = vld [vmem:[#allocation66_spill] sm:$0xff] }
 0x48e   : > { %v9896_v34 = vadd.f32 %v9832_v60, %v9408_v47  ;;  %v5506_v20 = vadd.f32 %v5442_v37, %v5018_v57  ;;  %v5507_v32 = vadd.f32 %v5443_v16, %v5019_v15  ;;  %v7394_v40 = vmul.f32 %v22132_v30, %v22131_v14  ;;  %v22142_v37 = vld [vmem:[#allocation513_spill] sm:$0xff] }
 0x48f   : > { %v9897_v33 = vadd.f32 %v9833_v0, %v9409_v18  ;;  %v7395_v44 = vmul.f32 %v22132_v30, %v22133_v6  ;;  %v7882_v12 = vmul.f32 %v22135_v4, %v22134_v24  ;;  %v7883_v60 = vmul.f32 %v22135_v4, %v22136_v38  ;;  %v22139_v0 = vld [vmem:[#allocation7_spill] sm:$0xff]  ;;  %v22146_v15 = vld [vmem:[#allocation69_spill] sm:$0xff] }
 0x490   : > { %v10384_v52 = vadd.f32 %v10320_v59, %v9896_v34  ;;  %v5994_v21 = vadd.f32 %v5930_v35, %v5506_v20  ;;  %v5995_v17 = vadd.f32 %v5931_v58, %v5507_v32  ;;  %v8370_v8 = vmul.f32 %v22138_v11, %v22137_v49  ;;  %v22144_v35 = vld [vmem:[#allocation432_spill] sm:$0xff]  ;;  %v22149_v32 = vld [vmem:[#allocation227_spill] sm:$0xff]  ;;  %v22151_v30 = vld [vmem:[#allocation109_spill] sm:$0xff] }
 0x491   : > { %v10385_v54 = vadd.f32 %v10321_v10, %v9897_v33  ;;  %v8371_v55 = vmul.f32 %v22138_v11, %v22139_v0  ;;  %v8858_v61 = vmul.f32 %v22141_v42, %v22140_v9  ;;  %v8859_v59 = vmul.f32 %v22141_v42, %v22142_v37  ;;  %v22145_v10 = vld [vmem:[#allocation37_spill] sm:$0xff]  ;;  %v22147_v58 = vld [vmem:[#allocation476_spill] sm:$0xff] }
 0x492   : > { %v10872_v31 = vadd.f32 %v10808_v45, %v10384_v52  ;;  %v6482_v23 = vadd.f32 %v6418_v3, %v5994_v21  ;;  %v6483_v2 = vadd.f32 %v6419_v51, %v5995_v17  ;;  %v9346_v47 = vmul.f32 %v22144_v35, %v22143_v27  ;;  %v22148_v20 = vld [vmem:[#allocation100_spill] sm:$0xff]  ;;  %v11788_v3 = vpop.permute.xlu0 %11787  ;;  %v22153_v21 = vld [vmem:[#allocation514_spill] sm:$0xff] }
 0x493   : > { %v10873_v16 = vadd.f32 %v10809_v1, %v10385_v54  ;;  %v9347_v57 = vmul.f32 %v22144_v35, %v22145_v10  ;;  %v9834_v18 = vmul.f32 %v22147_v58, %v22146_v15  ;;  %v9835_v45 = vmul.f32 %v22147_v58, %v22148_v20  ;;  %v22150_v33 = vld [vmem:[#allocation468_spill] sm:$0xff] }
 0x494   : > { %v11360_v25 = vadd.f32 %v11296_v26, %v10872_v31  ;;  %v6970_v53 = vadd.f32 %v6906_v63, %v6482_v23  ;;  %v6971_v34 = vadd.f32 %v6907_v7, %v6483_v2  ;;  %v10322_v1 = vmul.f32 %v22150_v33, %v22149_v32  ;;  %v22152_v52 = vld [vmem:[#allocation172_spill] sm:$0xff]  ;;  %v22154_v26 = vld [vmem:[#allocation205_spill] sm:$0xff]  ;;  %v22155_v31 = vld [vmem:[#allocation267_spill] sm:$0xff] }
 0x495   : > { %v11361_v51 = vadd.f32 %v11297_v39, %v10873_v16  ;;  %v10323_v4 = vmul.f32 %v22150_v33, %v22151_v30  ;;  %v10810_v17 = vmul.f32 %v22153_v21, %v22152_v52  ;;  %v10811_v63 = vmul.f32 %v22153_v21, %v22154_v26  ;;  %v22156_v2 = vld [vmem:[#allocation259_spill] sm:$0xff] }
 0x496   : > { %v11884_v54 = vmul.f32 %v11788_v3, %v11360_v25  ;;  %v7458_v11 = vadd.f32 %v7394_v40, %v6970_v53  ;;  %v7459_v42 = vadd.f32 %v7395_v44, %v6971_v34  ;;  %v3980_v23 = vmul.f32 %v22155_v31, %v22108_v36  ;;  %v22157_v40 = vld [vmem:[#allocation299_spill] sm:$0xff]  ;;  %v22158_v34 = vld [vmem:[#allocation132_spill] sm:$0xff]  ;;  %v22160_v36 = vld [vmem:[#allocation165_spill] sm:$0xff] }
 0x497   : > { %v11885_v7 = vmul.f32 %v11788_v3, %v11361_v51  ;;  %v3981_v39 = vmul.f32 %v22155_v31, %v22111_v46  ;;  %v4468_v16 = vmul.f32 %v22156_v2, %v22112_v13  ;;  %v4469_v25 = vmul.f32 %v22156_v2, %v22114_v22  ;;  %v22159_v3 = vld [vmem:[#allocation504_spill] sm:$0xff] }
 0x498   : > { %v7946_v35 = vadd.f32 %v7882_v12, %v7458_v11  ;;  %v7947_v58 = vadd.f32 %v7883_v60, %v7459_v42  ;;  %v4956_v44 = vmul.f32 %v22157_v40, %v22115_v5  ;;  %v11298_v51 = vmul.f32 %v22159_v3, %v22158_v34  ;;  %v22161_v42 = vld [vmem:[#allocation292_spill] sm:$0xff] }
 0x499   : > { %v11933_v53 = vpack.c.bf16 %v11885_v7, %v11884_v54  ;;  %v4532_v33 = vadd.f32 %v4468_v16, %v3980_v23  ;;  %v4957_v21 = vmul.f32 %v22157_v40, %v22118_v48  ;;  %v11299_v12 = vmul.f32 %v22159_v3, %v22160_v36  ;;  %v22162_v7 = vld [vmem:[#allocation332_spill] sm:$0xff] }
 0x49a   : > { %v8434_v31 = vadd.f32 %v8370_v8, %v7946_v35  ;;  %v8435_v46 = vadd.f32 %v8371_v55, %v7947_v58  ;;  %v4533_v60 = vadd.f32 %v4469_v25, %v3981_v39  ;;  %v5444_v2 = vmul.f32 %v22161_v42, %v22119_v19  ;;  %v22163_v39 = vld [vmem:[#allocation323_spill] sm:$0xff] }
 0x49b   : > { %13726 = vmatmul.mubr.msk.bf16.gmra.mrb[92].mxu0 %vm1463_vm6, %v11933_v53  ;;  %v5020_v11 = vadd.f32 %v4956_v44, %v4532_v33  ;;  %v5445_v54 = vmul.f32 %v22161_v42, %v22121_v28  ;;  %v5932_v23 = vmul.f32 %v22162_v7, %v22122_v29  ;;  %v5933_v55 = vmul.f32 %v22162_v7, %v22124_v41  ;;  %v22164_v44 = vld [vmem:[#allocation365_spill] sm:$0xff] }
 0x49c   : > { %v8922_v16 = vadd.f32 %v8858_v61, %v8434_v31  ;;  %v8923_v40 = vadd.f32 %v8859_v59, %v8435_v46  ;;  %v5021_v8 = vadd.f32 %v4957_v21, %v4533_v60  ;;  %v6420_v58 = vmul.f32 %v22163_v39, %v22125_v50  ;;  %v22165_v59 = vld [vmem:[#allocation355_spill] sm:$0xff]  ;;  %v22166_v60 = vld [vmem:[#allocation408_spill] sm:$0xff] }
 0x49d   : > { %v5508_v35 = vadd.f32 %v5444_v2, %v5020_v11  ;;  %v6421_v25 = vmul.f32 %v22163_v39, %v22127_v62  ;;  %v6908_v53 = vmul.f32 %v22164_v44, %v22128_v43  ;;  %v6909_v46 = vmul.f32 %v22164_v44, %v22130_v56 }
 0x49e   : > { %v9410_v3 = vadd.f32 %v9346_v47, %v8922_v16  ;;  %v9411_v33 = vadd.f32 %v9347_v57, %v8923_v40  ;;  %v5509_v42 = vadd.f32 %v5445_v54, %v5021_v8  ;;  %v7396_v21 = vmul.f32 %v22165_v59, %v22131_v14  ;;  %v22167_v54 = vld [vmem:[#allocation400_spill] sm:$0xff]  ;;  %v22168_v40 = vld [vmem:[#allocation441_spill] sm:$0xff] }
 0x49f   : > { %v5996_v61 = vadd.f32 %v5932_v23, %v5508_v35  ;;  %v7397_v31 = vmul.f32 %v22165_v59, %v22133_v6  ;;  %v7884_v11 = vmul.f32 %v22166_v60, %v22134_v24  ;;  %v7885_v47 = vmul.f32 %v22166_v60, %v22136_v38 }
 0x4a0   : > { %v9898_v2 = vadd.f32 %v9834_v18, %v9410_v3  ;;  %v9899_v7 = vadd.f32 %v9835_v45, %v9411_v33  ;;  %v5997_v39 = vadd.f32 %v5933_v55, %v5509_v42  ;;  %v8372_v16 = vmul.f32 %v22167_v54, %v22137_v49  ;;  %v22169_v55 = vld [vmem:[#allocation434_spill] sm:$0xff] }
 0x4a1   : > { %v6484_v57 = vadd.f32 %v6420_v58, %v5996_v61  ;;  %v8373_v23 = vmul.f32 %v22167_v54, %v22139_v0  ;;  %v8860_v8 = vmul.f32 %v22168_v40, %v22140_v9  ;;  %v8861_v18 = vmul.f32 %v22168_v40, %v22142_v37  ;;  %v22170_v33 = vld [vmem:[#allocation478_spill] sm:$0xff] }
 0x4a2   : > { %v10386_v35 = vadd.f32 %v10322_v1, %v9898_v2  ;;  %v10387_v44 = vadd.f32 %v10323_v4, %v9899_v7  ;;  %v6485_v59 = vadd.f32 %v6421_v25, %v5997_v39  ;;  %v9348_v3 = vmul.f32 %v22169_v55, %v22143_v27  ;;  %v22171_v25 = vld [vmem:[#allocation469_spill] sm:$0xff]  ;;  %v22172_v7 = vld [vmem:[#allocation516_spill] sm:$0xff] }
 0x4a3   : > { %v6972_v45 = vadd.f32 %v6908_v53, %v6484_v57  ;;  %v9349_v58 = vmul.f32 %v22169_v55, %v22145_v10  ;;  %v9836_v42 = vmul.f32 %v22170_v33, %v22146_v15  ;;  %v9837_v1 = vmul.f32 %v22170_v33, %v22148_v20  ;;  %v22176_v33 = vld [vmem:[#allocation260_spill] sm:$0xff] }
 0x4a4   : > { %v10874_v61 = vadd.f32 %v10810_v17, %v10386_v35  ;;  %v10875_v60 = vadd.f32 %v10811_v63, %v10387_v44  ;;  %v6973_v54 = vadd.f32 %v6909_v46, %v6485_v59  ;;  %v10324_v2 = vmul.f32 %v22171_v25, %v22149_v32  ;;  %v11792_v63 = vpop.permute.xlu0 %11791  ;;  %v22173_v35 = vld [vmem:[#allocation384_spill] sm:$0xff]  ;;  %v22175_v59 = vld [vmem:[#allocation493_spill] sm:$0xff] }
 0x4a5   : > { %v7460_v4 = vadd.f32 %v7396_v21, %v6972_v45  ;;  %v10325_v53 = vmul.f32 %v22171_v25, %v22151_v30  ;;  %v10812_v39 = vmul.f32 %v22172_v7, %v22152_v52  ;;  %v10813_v17 = vmul.f32 %v22172_v7, %v22154_v26  ;;  %v22174_v44 = vld [vmem:[#allocation268_spill] sm:$0xff]  ;;  %v22178_v7 = vld [vmem:[#allocation505_spill] sm:$0xff] }
 0x4a6   : > { %v11362_v57 = vadd.f32 %v11298_v51, %v10874_v61  ;;  %v11363_v40 = vadd.f32 %v11299_v12, %v10875_v60  ;;  %v7461_v55 = vadd.f32 %v7397_v31, %v6973_v54  ;;  %v3982_v21 = vmul.f32 %v22174_v44, %v22173_v35  ;;  %v22177_v61 = vld [vmem:[#allocation300_spill] sm:$0xff] }
 0x4a7   : > { %v7948_v46 = vadd.f32 %v7884_v11, %v7460_v4  ;;  %v3983_v45 = vmul.f32 %v22174_v44, %v22175_v59  ;;  %v4470_v25 = vmul.f32 %v22176_v33, %v22112_v13  ;;  %v4471_v51 = vmul.f32 %v22176_v33, %v22114_v22 }
 0x4a8   : > { %v11886_v30 = vmul.f32 %v11792_v63, %v11362_v57  ;;  %v11887_v32 = vmul.f32 %v11792_v63, %v11363_v40  ;;  %v7949_v52 = vadd.f32 %v7885_v47, %v7461_v55  ;;  %v4958_v11 = vmul.f32 %v22177_v61, %v22115_v5  ;;  %v22179_v47 = vld [vmem:[#allocation293_spill] sm:$0xff] }
 0x4a9   : > { %v8436_v12 = vadd.f32 %v8372_v16, %v7948_v46  ;;  %v4534_v31 = vadd.f32 %v4470_v25, %v3982_v21  ;;  %v4959_v60 = vmul.f32 %v22177_v61, %v22118_v48  ;;  %v11300_v44 = vmul.f32 %v22178_v7, %v22158_v34  ;;  %v22180_v16 = vld [vmem:[#allocation333_spill] sm:$0xff] }
 0x4aa   : > { %v11934_v54 = vpack.c.bf16 %v11887_v32, %v11886_v30  ;;  %v8437_v4 = vadd.f32 %v8373_v23, %v7949_v52  ;;  %v4535_v13 = vadd.f32 %v4471_v51, %v3983_v45  ;;  %v5446_v55 = vmul.f32 %v22179_v47, %v22119_v19  ;;  %v22181_v45 = vld [vmem:[#allocation325_spill] sm:$0xff] }
 0x4ab   : > { %v8924_v57 = vadd.f32 %v8860_v8, %v8436_v12  ;;  %v5022_v40 = vadd.f32 %v4958_v11, %v4534_v31  ;;  %v5934_v63 = vmul.f32 %v22180_v16, %v22122_v29  ;;  %v5447_v32 = vmul.f32 %v22179_v47, %v22121_v28  ;;  %v22183_v11 = vld [vmem:[#allocation356_spill] sm:$0xff] }
 0x4ac   : > { %13729 = vmatprep.mubr.msk.bf16.mxu0 %vm1463_vm6, %v11934_v54  ;;  %v8925_v46 = vadd.f32 %v8861_v18, %v8437_v4  ;;  %v5023_v21 = vadd.f32 %v4959_v60, %v4535_v13  ;;  %v5935_v30 = vmul.f32 %v22180_v16, %v22124_v41  ;;  %v11301_v23 = vmul.f32 %v22178_v7, %v22160_v36  ;;  %v22182_v13 = vld [vmem:[#allocation366_spill] sm:$0xff]  ;;  %v22184_v7 = vld [vmem:[#allocation409_spill] sm:$0xff] }
 0x4ad   : > { %v9412_v52 = vadd.f32 %v9348_v3, %v8924_v57  ;;  %v5510_v8 = vadd.f32 %v5446_v55, %v5022_v40  ;;  %v6422_v33 = vmul.f32 %v22181_v45, %v22125_v50  ;;  %v6423_v18 = vmul.f32 %v22181_v45, %v22127_v62  ;;  %v22185_v55 = vld [vmem:[#allocation401_spill] sm:$0xff] }
 0x4ae   : > { %v9413_v25 = vadd.f32 %v9349_v58, %v8925_v46  ;;  %v5511_v51 = vadd.f32 %v5447_v32, %v5023_v21  ;;  %v6910_v12 = vmul.f32 %v22182_v13, %v22128_v43  ;;  %v6911_v3 = vmul.f32 %v22182_v13, %v22130_v56  ;;  %v22186_v21 = vld [vmem:[#allocation442_spill] sm:$0xff] }
 0x4af   : > { %v9900_v31 = vadd.f32 %v9836_v42, %v9412_v52  ;;  %v5998_v61 = vadd.f32 %v5934_v63, %v5510_v8  ;;  %v7398_v60 = vmul.f32 %v22183_v11, %v22131_v14  ;;  %v7399_v58 = vmul.f32 %v22183_v11, %v22133_v6  ;;  %v22187_v8 = vld [vmem:[#allocation435_spill] sm:$0xff] }
 0x4b0   : > { %v9901_v54 = vadd.f32 %v9837_v1, %v9413_v25  ;;  %v5999_v4 = vadd.f32 %v5935_v30, %v5511_v51  ;;  %v7886_v57 = vmul.f32 %v22184_v7, %v22134_v24  ;;  %v7887_v42 = vmul.f32 %v22184_v7, %v22136_v38  ;;  %v22188_v51 = vld [vmem:[#allocation479_spill] sm:$0xff] }
 0x4b1   : > { %v10388_v40 = vadd.f32 %v10324_v2, %v9900_v31  ;;  %v6486_v47 = vadd.f32 %v6422_v33, %v5998_v61  ;;  %v8374_v16 = vmul.f32 %v22185_v55, %v22137_v49  ;;  %v8375_v1 = vmul.f32 %v22185_v55, %v22139_v0  ;;  %v22190_v61 = vld [vmem:[#allocation471_spill] sm:$0xff] }
 0x4b2   : > { %v10389_v63 = vadd.f32 %v10325_v53, %v9901_v54  ;;  %v6487_v46 = vadd.f32 %v6423_v18, %v5999_v4  ;;  %v8862_v32 = vmul.f32 %v22186_v21, %v22140_v9  ;;  %v8863_v2 = vmul.f32 %v22186_v21, %v22142_v37  ;;  %v11796_v54 = vpop.permute.xlu1 %11795 }
 0x4b3   : > { %v10876_v30 = vadd.f32 %v10812_v39, %v10388_v40  ;;  %v6974_v52 = vadd.f32 %v6910_v12, %v6486_v47  ;;  %v9350_v45 = vmul.f32 %v22187_v8, %v22143_v27  ;;  %v9351_v53 = vmul.f32 %v22187_v8, %v22145_v10  ;;  %v22189_v12 = vld [vmem:[#allocation227_spill] sm:$0xff]  ;;  %v22191_v40 = vld [vmem:[#allocation109_spill] sm:$0xff] }
 0x4b4   : > { %v10877_v33 = vadd.f32 %v10813_v17, %v10389_v63  ;;  %v6975_v25 = vadd.f32 %v6911_v3, %v6487_v46  ;;  %v9838_v18 = vmul.f32 %v22188_v51, %v22146_v15  ;;  %v9839_v39 = vmul.f32 %v22188_v51, %v22148_v20  ;;  %v22192_v3 = vld [vmem:[#allocation172_spill] sm:$0xff]  ;;  %v22193_v47 = vld [vmem:[#allocation517_spill] sm:$0xff] }
 0x4b5   : > { %v11364_v13 = vadd.f32 %v11300_v44, %v10876_v30  ;;  %v7462_v31 = vadd.f32 %v7398_v60, %v6974_v52  ;;  %v10326_v11 = vmul.f32 %v22190_v61, %v22189_v12  ;;  %v10327_v17 = vmul.f32 %v22190_v61, %v22191_v40  ;;  %v22194_v60 = vld [vmem:[#allocation269_spill] sm:$0xff] }
 0x4b6   : > { %v11365_v4 = vadd.f32 %v11301_v23, %v10877_v33  ;;  %v7463_v7 = vadd.f32 %v7399_v58, %v6975_v25  ;;  %v10814_v55 = vmul.f32 %v22193_v47, %v22192_v3  ;;  %v10815_v44 = vmul.f32 %v22193_v47, %v22154_v26  ;;  %v22195_v58 = vld [vmem:[#allocation383_spill] sm:$0xff]  ;;  %v22196_v8 = vld [vmem:[#allocation261_spill] sm:$0xff] }
 0x4b7   : > { %v11888_v63 = vmul.f32 %v11796_v54, %v11364_v13  ;;  %v7950_v46 = vadd.f32 %v7886_v57, %v7462_v31  ;;  %v3984_v21 = vmul.f32 %v22194_v60, %v22173_v35  ;;  %v3985_v23 = vmul.f32 %v22194_v60, %v22175_v59  ;;  %v22197_v57 = vld [vmem:[#allocation304_spill] sm:$0xff] }
 0x4b8   : > { %v11889_v30 = vmul.f32 %v11796_v54, %v11365_v4  ;;  %v7951_v52 = vadd.f32 %v7887_v42, %v7463_v7  ;;  %v4472_v33 = vmul.f32 %v22196_v8, %v22195_v58  ;;  %v4473_v51 = vmul.f32 %v22196_v8, %v22114_v22  ;;  %v22198_v42 = vld [vmem:[#allocation506_spill] sm:$0xff] }
 0x4b9   : > { %v8438_v25 = vadd.f32 %v8374_v16, %v7950_v46  ;;  %v4960_v13 = vmul.f32 %v22197_v57, %v22115_v5  ;;  %v4961_v31 = vmul.f32 %v22197_v57, %v22118_v48  ;;  %v11302_v54 = vmul.f32 %v22198_v42, %v22158_v34  ;;  %v22199_v46 = vld [vmem:[#allocation296_spill] sm:$0xff]  ;;  %v22202_v57 = vld [vmem:[#allocation369_spill] sm:$0xff] }
 0x4ba   : > { %v11935_v61 = vpack.c.bf16 %v11889_v30, %v11888_v63  ;;  %v8439_v47 = vadd.f32 %v8375_v1, %v7951_v52  ;;  %v4536_v4 = vadd.f32 %v4472_v33, %v3984_v21  ;;  %v11303_v60 = vmul.f32 %v22198_v42, %v22160_v36  ;;  %v22200_v1 = vld [vmem:[#allocation336_spill] sm:$0xff] }
 0x4bb   : > { %v8926_v7 = vadd.f32 %v8862_v32, %v8438_v25  ;;  %v4537_v16 = vadd.f32 %v4473_v51, %v3985_v23  ;;  %v5448_v8 = vmul.f32 %v22199_v46, %v22119_v19  ;;  %v5449_v63 = vmul.f32 %v22199_v46, %v22121_v28  ;;  %v22201_v23 = vld [vmem:[#allocation327_spill] sm:$0xff] }
 0x4bc   : > { %13730 = vmatmul.mubr.msk.bf16.gmra.mrb[96].mxu0 %vm1463_vm6, %v11935_v61  ;;  %v8927_v5 = vadd.f32 %v8863_v2, %v8439_v47  ;;  %v5024_v22 = vadd.f32 %v4960_v13, %v4536_v4  ;;  %v5936_v30 = vmul.f32 %v22200_v1, %v22122_v29  ;;  %v5937_v32 = vmul.f32 %v22200_v1, %v22124_v41 }
 0x4bd   : > { %v9414_v52 = vadd.f32 %v9350_v45, %v8926_v7  ;;  %v5025_v21 = vadd.f32 %v4961_v31, %v4537_v16  ;;  %v6424_v33 = vmul.f32 %v22201_v23, %v22125_v50  ;;  %v6425_v2 = vmul.f32 %v22201_v23, %v22127_v62  ;;  %v22203_v31 = vld [vmem:[#allocation357_spill] sm:$0xff] }
 0x4be   : > { %v9415_v25 = vadd.f32 %v9351_v53, %v8927_v5  ;;  %v5512_v51 = vadd.f32 %v5448_v8, %v5024_v22  ;;  %v6912_v13 = vmul.f32 %v22202_v57, %v22128_v43  ;;  %v6913_v45 = vmul.f32 %v22202_v57, %v22130_v56  ;;  %v22204_v22 = vld [vmem:[#allocation410_spill] sm:$0xff] }
 0x4bf   : > { %v9902_v61 = vadd.f32 %v9838_v18, %v9414_v52  ;;  %v5513_v47 = vadd.f32 %v5449_v63, %v5025_v21  ;;  %v7400_v42 = vmul.f32 %v22203_v31, %v22131_v14  ;;  %v7401_v5 = vmul.f32 %v22203_v31, %v22133_v6  ;;  %v22205_v8 = vld [vmem:[#allocation402_spill] sm:$0xff] }
 0x4c0   : > { %v9903_v4 = vadd.f32 %v9839_v39, %v9415_v25  ;;  %v6000_v7 = vadd.f32 %v5936_v30, %v5512_v51  ;;  %v7888_v53 = vmul.f32 %v22204_v22, %v22134_v24  ;;  %v7889_v18 = vmul.f32 %v22204_v22, %v22136_v38  ;;  %v22206_v30 = vld [vmem:[#allocation446_spill] sm:$0xff]  ;;  %v11800_v22 = vpop.permute.xlu0 %11799 }
 0x4c1   : > { %v10390_v16 = vadd.f32 %v10326_v11, %v9902_v61  ;;  %v6001_v46 = vadd.f32 %v5937_v32, %v5513_v47  ;;  %v8376_v63 = vmul.f32 %v22205_v8, %v22137_v49  ;;  %v8377_v39 = vmul.f32 %v22205_v8, %v22139_v0  ;;  %v22207_v32 = vld [vmem:[#allocation438_spill] sm:$0xff] }
 0x4c2   : > { %v10391_v1 = vadd.f32 %v10327_v17, %v9903_v4  ;;  %v6488_v52 = vadd.f32 %v6424_v33, %v6000_v7  ;;  %v8864_v21 = vmul.f32 %v22206_v30, %v22140_v9  ;;  %v8865_v11 = vmul.f32 %v22206_v30, %v22142_v37  ;;  %v22208_v33 = vld [vmem:[#allocation482_spill] sm:$0xff] }
 0x4c3   : > { %v10878_v23 = vadd.f32 %v10814_v55, %v10390_v16  ;;  %v6489_v25 = vadd.f32 %v6425_v2, %v6001_v46  ;;  %v9352_v51 = vmul.f32 %v22207_v32, %v22143_v27  ;;  %v9353_v17 = vmul.f32 %v22207_v32, %v22145_v10  ;;  %v22209_v2 = vld [vmem:[#allocation473_spill] sm:$0xff] }
 0x4c4   : > { %v10879_v57 = vadd.f32 %v10815_v44, %v10391_v1  ;;  %v6976_v61 = vadd.f32 %v6912_v13, %v6488_v52  ;;  %v9840_v47 = vmul.f32 %v22208_v33, %v22146_v15  ;;  %v9841_v55 = vmul.f32 %v22208_v33, %v22148_v20  ;;  %v22210_v13 = vld [vmem:[#allocation522_spill] sm:$0xff] }
 0x4c5   : > { %v11366_v31 = vadd.f32 %v11302_v54, %v10878_v23  ;;  %v6977_v4 = vadd.f32 %v6913_v45, %v6489_v25  ;;  %v10328_v7 = vmul.f32 %v22209_v2, %v22189_v12  ;;  %v10329_v44 = vmul.f32 %v22209_v2, %v22191_v40  ;;  %v22211_v45 = vld [vmem:[#allocation270_spill] sm:$0xff] }
 0x4c6   : > { %v11367_v16 = vadd.f32 %v11303_v60, %v10879_v57  ;;  %v7464_v46 = vadd.f32 %v7400_v42, %v6976_v61  ;;  %v10816_v8 = vmul.f32 %v22210_v13, %v22192_v3  ;;  %v10817_v54 = vmul.f32 %v22210_v13, %v22154_v26  ;;  %v22212_v42 = vld [vmem:[#allocation262_spill] sm:$0xff]  ;;  %v22213_v61 = vld [vmem:[#allocation387_spill] sm:$0xff] }
 0x4c7   : > { %v11890_v1 = vmul.f32 %v11800_v22, %v11366_v31  ;;  %v7465_v52 = vadd.f32 %v7401_v5, %v6977_v4  ;;  %v3986_v30 = vmul.f32 %v22211_v45, %v22173_v35  ;;  %v3987_v60 = vmul.f32 %v22211_v45, %v22175_v59  ;;  %v22214_v31 = vld [vmem:[#allocation393_spill] sm:$0xff] }
 0x4c8   : > { %v11891_v23 = vmul.f32 %v11800_v22, %v11367_v16  ;;  %v7952_v25 = vadd.f32 %v7888_v53, %v7464_v46  ;;  %v4474_v32 = vmul.f32 %v22212_v42, %v22195_v58  ;;  %v4475_v33 = vmul.f32 %v22212_v42, %v22213_v61  ;;  %v22215_v5 = vld [vmem:[#allocation301_spill] sm:$0xff]  ;;  %v22216_v53 = vld [vmem:[#allocation507_spill] sm:$0xff] }
 0x4c9   : > { %v7953_v57 = vadd.f32 %v7889_v18, %v7465_v52  ;;  %v4962_v4 = vmul.f32 %v22215_v5, %v22214_v31  ;;  %v4963_v2 = vmul.f32 %v22215_v5, %v22118_v48  ;;  %v11304_v22 = vmul.f32 %v22216_v53, %v22158_v34  ;;  %v22217_v52 = vld [vmem:[#allocation291_spill] sm:$0xff] }
 0x4ca   : > { %v11936_v13 = vpack.c.bf16 %v11891_v23, %v11890_v1  ;;  %v8440_v35 = vadd.f32 %v8376_v63, %v7952_v25  ;;  %v4538_v16 = vadd.f32 %v4474_v32, %v3986_v30  ;;  %v11305_v45 = vmul.f32 %v22216_v53, %v22160_v36  ;;  %v22218_v63 = vld [vmem:[#allocation331_spill] sm:$0xff] }
 0x4cb   : > { %v8441_v46 = vadd.f32 %v8377_v39, %v7953_v57  ;;  %v4539_v18 = vadd.f32 %v4475_v33, %v3987_v60  ;;  %v5450_v42 = vmul.f32 %v22217_v52, %v22119_v19  ;;  %v5451_v1 = vmul.f32 %v22217_v52, %v22121_v28  ;;  %v22219_v60 = vld [vmem:[#allocation324_spill] sm:$0xff] }
 0x4cc   : > { %13733 = vmatprep.mubr.msk.bf16.mxu0 %vm1463_vm6, %v11936_v13  ;;  %v8928_v31 = vadd.f32 %v8864_v21, %v8440_v35  ;;  %v5026_v61 = vadd.f32 %v4962_v4, %v4538_v16  ;;  %v5938_v23 = vmul.f32 %v22218_v63, %v22122_v29  ;;  %v5939_v39 = vmul.f32 %v22218_v63, %v22124_v41  ;;  %v22220_v21 = vld [vmem:[#allocation363_spill] sm:$0xff] }
 0x4cd   : > { %v8929_v25 = vadd.f32 %v8865_v11, %v8441_v46  ;;  %v5027_v30 = vadd.f32 %v4963_v2, %v4539_v18  ;;  %v6426_v32 = vmul.f32 %v22219_v60, %v22125_v50  ;;  %v6427_v35 = vmul.f32 %v22219_v60, %v22127_v62  ;;  %v22221_v2 = vld [vmem:[#allocation358_spill] sm:$0xff] }
 0x4ce   : > { %v9416_v57 = vadd.f32 %v9352_v51, %v8928_v31  ;;  %v5514_v33 = vadd.f32 %v5450_v42, %v5026_v61  ;;  %v6914_v5 = vmul.f32 %v22220_v21, %v22128_v43  ;;  %v6915_v11 = vmul.f32 %v22220_v21, %v22130_v56  ;;  %v22222_v61 = vld [vmem:[#allocation411_spill] sm:$0xff] }
 0x4cf   : > { %v9417_v4 = vadd.f32 %v9353_v17, %v8929_v25  ;;  %v5515_v13 = vadd.f32 %v5451_v1, %v5027_v30  ;;  %v7402_v53 = vmul.f32 %v22221_v2, %v22131_v14  ;;  %v7403_v51 = vmul.f32 %v22221_v2, %v22133_v6  ;;  %v22223_v42 = vld [vmem:[#allocation403_spill] sm:$0xff] }
 0x4d0   : > { %v9904_v16 = vadd.f32 %v9840_v47, %v9416_v57  ;;  %v6002_v46 = vadd.f32 %v5938_v23, %v5514_v33  ;;  %v7890_v31 = vmul.f32 %v22222_v61, %v22134_v24  ;;  %v7891_v17 = vmul.f32 %v22222_v61, %v22136_v38  ;;  %v22224_v23 = vld [vmem:[#allocation443_spill] sm:$0xff] }
 0x4d1   : > { %v9905_v18 = vadd.f32 %v9841_v55, %v9417_v4  ;;  %v6003_v52 = vadd.f32 %v5939_v39, %v5515_v13  ;;  %v8378_v1 = vmul.f32 %v22223_v42, %v22137_v49  ;;  %v8379_v47 = vmul.f32 %v22223_v42, %v22139_v0  ;;  %v22225_v39 = vld [vmem:[#allocation433_spill] sm:$0xff]  ;;  %v11804_v42 = vpop.permute.xlu1 %11803 }
 0x4d2   : > { %v10392_v63 = vadd.f32 %v10328_v7, %v9904_v16  ;;  %v6490_v25 = vadd.f32 %v6426_v32, %v6002_v46  ;;  %v8866_v30 = vmul.f32 %v22224_v23, %v22140_v9  ;;  %v8867_v55 = vmul.f32 %v22224_v23, %v22142_v37  ;;  %v22226_v32 = vld [vmem:[#allocation477_spill] sm:$0xff]  ;;  %v22230_v23 = vld [vmem:[#allocation271_spill] sm:$0xff] }
 0x4d3   : > { %v10393_v60 = vadd.f32 %v10329_v44, %v9905_v18  ;;  %v6491_v57 = vadd.f32 %v6427_v35, %v6003_v52  ;;  %v9354_v33 = vmul.f32 %v22225_v39, %v22143_v27  ;;  %v9355_v7 = vmul.f32 %v22225_v39, %v22145_v10  ;;  %v22227_v35 = vld [vmem:[#allocation470_spill] sm:$0xff] }
 0x4d4   : > { %v10880_v21 = vadd.f32 %v10816_v8, %v10392_v63  ;;  %v6978_v4 = vadd.f32 %v6914_v5, %v6490_v25  ;;  %v9842_v13 = vmul.f32 %v22226_v32, %v22146_v15  ;;  %v9843_v44 = vmul.f32 %v22226_v32, %v22148_v20  ;;  %v22228_v5 = vld [vmem:[#allocation515_spill] sm:$0xff] }
 0x4d5   : > { %v10881_v2 = vadd.f32 %v10817_v54, %v10393_v60  ;;  %v6979_v16 = vadd.f32 %v6915_v11, %v6491_v57  ;;  %v10330_v46 = vmul.f32 %v22227_v35, %v22189_v12  ;;  %v10331_v8 = vmul.f32 %v22227_v35, %v22191_v40  ;;  %v22229_v11 = vld [vmem:[#allocation384_spill] sm:$0xff]  ;;  %v22232_v35 = vld [vmem:[#allocation387_spill] sm:$0xff] }
 0x4d6   : > { %v11368_v61 = vadd.f32 %v11304_v22, %v10880_v21  ;;  %v7466_v18 = vadd.f32 %v7402_v53, %v6978_v4  ;;  %v10818_v52 = vmul.f32 %v22228_v5, %v22192_v3  ;;  %v10819_v54 = vmul.f32 %v22228_v5, %v22154_v26  ;;  %v22231_v53 = vld [vmem:[#allocation263_spill] sm:$0xff]  ;;  %v22235_v26 = vld [vmem:[#allocation508_spill] sm:$0xff] }
 0x4d7   : > { %v11369_v63 = vadd.f32 %v11305_v45, %v10881_v2  ;;  %v7467_v25 = vadd.f32 %v7403_v51, %v6979_v16  ;;  %v3988_v60 = vmul.f32 %v22230_v23, %v22229_v11  ;;  %v3989_v22 = vmul.f32 %v22230_v23, %v22175_v59  ;;  %v22233_v51 = vld [vmem:[#allocation393_spill] sm:$0xff]  ;;  %v22234_v2 = vld [vmem:[#allocation302_spill] sm:$0xff] }
 0x4d8   : > { %v11892_v57 = vmul.f32 %v11804_v42, %v11368_v61  ;;  %v7954_v39 = vadd.f32 %v7890_v31, %v7466_v18  ;;  %v4476_v21 = vmul.f32 %v22231_v53, %v22195_v58  ;;  %v4477_v45 = vmul.f32 %v22231_v53, %v22232_v35  ;;  %v22236_v53 = vld [vmem:[#allocation294_spill] sm:$0xff] }
 0x4d9   : > { %v11893_v4 = vmul.f32 %v11804_v42, %v11369_v63  ;;  %v7955_v32 = vadd.f32 %v7891_v17, %v7467_v25  ;;  %v4964_v16 = vmul.f32 %v22234_v2, %v22233_v51  ;;  %v11306_v11 = vmul.f32 %v22235_v26, %v22158_v34 }
 0x4da   : > { %v8442_v5 = vadd.f32 %v8378_v1, %v7954_v39  ;;  %v4540_v61 = vadd.f32 %v4476_v21, %v3988_v60  ;;  %v4965_v31 = vmul.f32 %v22234_v2, %v22118_v48  ;;  %v11307_v42 = vmul.f32 %v22235_v26, %v22160_v36  ;;  %v22237_v1 = vld [vmem:[#allocation334_spill] sm:$0xff] }
 0x4db   : > { %v11937_v18 = vpack.c.bf16 %v11893_v4, %v11892_v57  ;;  %v8443_v23 = vadd.f32 %v8379_v47, %v7955_v32  ;;  %v4541_v17 = vadd.f32 %v4477_v45, %v3989_v22  ;;  %v5452_v35 = vmul.f32 %v22236_v53, %v22119_v19 }
 0x4dc   : > { %v8930_v63 = vadd.f32 %v8866_v30, %v8442_v5  ;;  %v5028_v25 = vadd.f32 %v4964_v16, %v4540_v61  ;;  %v5940_v39 = vmul.f32 %v22237_v1, %v22122_v29  ;;  %v5453_v57 = vmul.f32 %v22236_v53, %v22121_v28  ;;  %v22238_v30 = vld [vmem:[#allocation326_spill] sm:$0xff]  ;;  %v22239_v16 = vld [vmem:[#allocation367_spill] sm:$0xff] }
 0x4dd   : > { %13734 = vmatmul.mubr.msk.bf16.gmra.mrb[100].mxu0 %vm1463_vm6, %v11937_v18  ;;  %v8931_v60 = vadd.f32 %v8867_v55, %v8443_v23  ;;  %v5029_v21 = vadd.f32 %v4965_v31, %v4541_v17  ;;  %v5941_v47 = vmul.f32 %v22237_v1, %v22124_v41  ;;  %v6428_v4 = vmul.f32 %v22238_v30, %v22125_v50  ;;  %v22240_v18 = vld [vmem:[#allocation359_spill] sm:$0xff] }
 0x4de   : > { %v9418_v26 = vadd.f32 %v9354_v33, %v8930_v63  ;;  %v5516_v22 = vadd.f32 %v5452_v35, %v5028_v25  ;;  %v6429_v32 = vmul.f32 %v22238_v30, %v22127_v62  ;;  %v6916_v55 = vmul.f32 %v22239_v16, %v22128_v43  ;;  %v22241_v63 = vld [vmem:[#allocation412_spill] sm:$0xff] }
 0x4df   : > { %v9419_v45 = vadd.f32 %v9355_v7, %v8931_v60  ;;  %v5517_v2 = vadd.f32 %v5453_v57, %v5029_v21  ;;  %v6917_v5 = vmul.f32 %v22239_v16, %v22130_v56  ;;  %v7404_v33 = vmul.f32 %v22240_v18, %v22131_v14  ;;  %v22242_v60 = vld [vmem:[#allocation404_spill] sm:$0xff] }
 0x4e0   : > { %v9906_v61 = vadd.f32 %v9842_v13, %v9418_v26  ;;  %v6004_v31 = vadd.f32 %v5940_v39, %v5516_v22  ;;  %v7405_v35 = vmul.f32 %v22240_v18, %v22133_v6  ;;  %v7892_v7 = vmul.f32 %v22241_v63, %v22134_v24  ;;  %v22243_v26 = vld [vmem:[#allocation444_spill] sm:$0xff] }
 0x4e1   : > { %v9907_v23 = vadd.f32 %v9843_v44, %v9419_v45  ;;  %v6005_v17 = vadd.f32 %v5941_v47, %v5517_v2  ;;  %v7893_v25 = vmul.f32 %v22241_v63, %v22136_v38  ;;  %v8380_v13 = vmul.f32 %v22242_v60, %v22137_v49  ;;  %v22244_v45 = vld [vmem:[#allocation436_spill] sm:$0xff] }
 0x4e2   : > { %v10394_v53 = vadd.f32 %v10330_v46, %v9906_v61  ;;  %v6492_v1 = vadd.f32 %v6428_v4, %v6004_v31  ;;  %v8381_v39 = vmul.f32 %v22242_v60, %v22139_v0  ;;  %v8868_v44 = vmul.f32 %v22243_v26, %v22140_v9  ;;  %v22245_v61 = vld [vmem:[#allocation480_spill] sm:$0xff] }
 0x4e3   : > { %v10395_v21 = vadd.f32 %v10331_v8, %v9907_v23  ;;  %v6493_v57 = vadd.f32 %v6429_v32, %v6005_v17  ;;  %v8869_v47 = vmul.f32 %v22243_v26, %v22142_v37  ;;  %v9356_v46 = vmul.f32 %v22244_v45, %v22143_v27  ;;  %v22246_v23 = vld [vmem:[#allocation472_spill] sm:$0xff]  ;;  %v11808_v17 = vpop.permute.xlu0 %11807 }
 0x4e4   : > { %v10882_v22 = vadd.f32 %v10818_v52, %v10394_v53  ;;  %v6980_v30 = vadd.f32 %v6916_v55, %v6492_v1  ;;  %v9357_v4 = vmul.f32 %v22244_v45, %v22145_v10  ;;  %v9844_v8 = vmul.f32 %v22245_v61, %v22146_v15  ;;  %v22248_v1 = vld [vmem:[#allocation205_spill] sm:$0xff]  ;;  %v22249_v26 = vld [vmem:[#allocation384_spill] sm:$0xff] }
 0x4e5   : > { %v10883_v2 = vadd.f32 %v10819_v54, %v10395_v21  ;;  %v6981_v16 = vadd.f32 %v6917_v5, %v6493_v57  ;;  %v9845_v32 = vmul.f32 %v22245_v61, %v22148_v20  ;;  %v10332_v52 = vmul.f32 %v22246_v23, %v22189_v12  ;;  %v22247_v54 = vld [vmem:[#allocation519_spill] sm:$0xff]  ;;  %v22251_v61 = vld [vmem:[#allocation264_spill] sm:$0xff] }
 0x4e6   : > { %v11370_v31 = vadd.f32 %v11306_v11, %v10882_v22  ;;  %v7468_v18 = vadd.f32 %v7404_v33, %v6980_v30  ;;  %v10333_v55 = vmul.f32 %v22246_v23, %v22191_v40  ;;  %v10820_v5 = vmul.f32 %v22247_v54, %v22192_v3  ;;  %v22250_v11 = vld [vmem:[#allocation272_spill] sm:$0xff]  ;;  %v22253_v23 = vld [vmem:[#allocation509_spill] sm:$0xff] }
 0x4e7   : > { %v11371_v63 = vadd.f32 %v11307_v42, %v10883_v2  ;;  %v7469_v53 = vadd.f32 %v7405_v35, %v6981_v16  ;;  %v10821_v60 = vmul.f32 %v22247_v54, %v22248_v1  ;;  %v3990_v33 = vmul.f32 %v22250_v11, %v22249_v26  ;;  %v22252_v35 = vld [vmem:[#allocation387_spill] sm:$0xff] }
 0x4e8   : > { %v11894_v21 = vmul.f32 %v11808_v17, %v11370_v31  ;;  %v7956_v57 = vadd.f32 %v7892_v7, %v7468_v18  ;;  %v3991_v22 = vmul.f32 %v22250_v11, %v22175_v59  ;;  %v4478_v42 = vmul.f32 %v22251_v61, %v22195_v58  ;;  %v22254_v7 = vld [vmem:[#allocation303_spill] sm:$0xff] }
 0x4e9   : > { %v11895_v30 = vmul.f32 %v11808_v17, %v11371_v63  ;;  %v7957_v45 = vadd.f32 %v7893_v25, %v7469_v53  ;;  %v4479_v2 = vmul.f32 %v22251_v61, %v22252_v35  ;;  %v11308_v54 = vmul.f32 %v22253_v23, %v22158_v34  ;;  %v22255_v53 = vld [vmem:[#allocation295_spill] sm:$0xff] }
 0x4ea   : > { %v8444_v16 = vadd.f32 %v8380_v13, %v7956_v57  ;;  %v4966_v31 = vmul.f32 %v22254_v7, %v22233_v51  ;;  %v4967_v18 = vmul.f32 %v22254_v7, %v22118_v48  ;;  %v4542_v17 = vadd.f32 %v4478_v42, %v3990_v33  ;;  %v22256_v57 = vld [vmem:[#allocation335_spill] sm:$0xff]  ;;  %v22257_v33 = vld [vmem:[#allocation328_spill] sm:$0xff] }
 0x4eb   : > { %v11938_v26 = vpack.c.bf16 %v11895_v30, %v11894_v21  ;;  %v8445_v11 = vadd.f32 %v8381_v39, %v7957_v45  ;;  %v4543_v25 = vadd.f32 %v4479_v2, %v3991_v22  ;;  %v5454_v58 = vmul.f32 %v22255_v53, %v22119_v19 }
 0x4ec   : > { %v8932_v63 = vadd.f32 %v8868_v44, %v8444_v16  ;;  %v5455_v13 = vmul.f32 %v22255_v53, %v22121_v28  ;;  %v5942_v61 = vmul.f32 %v22256_v57, %v22122_v29  ;;  %v5030_v35 = vadd.f32 %v4966_v31, %v4542_v17 }
 0x4ed   : > { %13737 = vmatprep.mubr.msk.bf16.mxu0 %vm1463_vm6, %v11938_v26  ;;  %v8933_v51 = vadd.f32 %v8869_v47, %v8445_v11  ;;  %v5031_v34 = vadd.f32 %v4967_v18, %v4543_v25  ;;  %v5943_v39 = vmul.f32 %v22256_v57, %v22124_v41  ;;  %v11309_v44 = vmul.f32 %v22253_v23, %v22160_v36  ;;  %v22258_v47 = vld [vmem:[#allocation368_spill] sm:$0xff] }
 0x4ee   : > { %v9420_v21 = vadd.f32 %v9356_v46, %v8932_v63  ;;  %v6430_v22 = vmul.f32 %v22257_v33, %v22125_v50  ;;  %v6431_v30 = vmul.f32 %v22257_v33, %v22127_v62  ;;  %v5518_v42 = vadd.f32 %v5454_v58, %v5030_v35  ;;  %v22259_v46 = vld [vmem:[#allocation360_spill] sm:$0xff] }
 0x4ef   : > { %v9421_v45 = vadd.f32 %v9357_v4, %v8933_v51  ;;  %v5519_v2 = vadd.f32 %v5455_v13, %v5031_v34  ;;  %v6918_v26 = vmul.f32 %v22258_v47, %v22128_v43  ;;  %v6919_v7 = vmul.f32 %v22258_v47, %v22130_v56  ;;  %v22260_v51 = vld [vmem:[#allocation413_spill] sm:$0xff] }
 0x4f0   : > { %v9908_v16 = vadd.f32 %v9844_v8, %v9420_v21  ;;  %v7406_v31 = vmul.f32 %v22259_v46, %v22131_v14  ;;  %v7407_v23 = vmul.f32 %v22259_v46, %v22133_v6  ;;  %v6006_v11 = vadd.f32 %v5942_v61, %v5518_v42  ;;  %v22261_v8 = vld [vmem:[#allocation405_spill] sm:$0xff] }
 0x4f1   : > { %v9909_v18 = vadd.f32 %v9845_v32, %v9421_v45  ;;  %v6007_v17 = vadd.f32 %v5943_v39, %v5519_v2  ;;  %v7894_v58 = vmul.f32 %v22260_v51, %v22134_v24  ;;  %v7895_v4 = vmul.f32 %v22260_v51, %v22136_v38  ;;  %v22262_v32 = vld [vmem:[#allocation445_spill] sm:$0xff] }
 0x4f2   : > { %v10396_v34 = vadd.f32 %v10332_v52, %v9908_v16  ;;  %v8382_v35 = vmul.f32 %v22261_v8, %v22137_v49  ;;  %v8383_v25 = vmul.f32 %v22261_v8, %v22139_v0  ;;  %v6494_v53 = vadd.f32 %v6430_v22, %v6006_v11  ;;  %v22263_v52 = vld [vmem:[#allocation437_spill] sm:$0xff] }
 0x4f3   : > { %v10397_v63 = vadd.f32 %v10333_v55, %v9909_v18  ;;  %v6495_v13 = vadd.f32 %v6431_v30, %v6007_v17  ;;  %v8870_v57 = vmul.f32 %v22262_v32, %v22140_v9  ;;  %v8871_v39 = vmul.f32 %v22262_v32, %v22142_v37  ;;  %v22264_v55 = vld [vmem:[#allocation481_spill] sm:$0xff]  ;;  %v11812_v18 = vpop.permute.xlu1 %11811 }
 0x4f4   : > { %v10884_v61 = vadd.f32 %v10820_v5, %v10396_v34  ;;  %v9358_v21 = vmul.f32 %v22263_v52, %v22143_v27  ;;  %v9359_v33 = vmul.f32 %v22263_v52, %v22145_v10  ;;  %v6982_v42 = vadd.f32 %v6918_v26, %v6494_v53  ;;  %v22265_v5 = vld [vmem:[#allocation474_spill] sm:$0xff]  ;;  %v22267_v34 = vld [vmem:[#allocation384_spill] sm:$0xff]  ;;  %v22268_v8 = vld [vmem:[#allocation273_spill] sm:$0xff] }
 0x4f5   : > { %v10885_v45 = vadd.f32 %v10821_v60, %v10397_v63  ;;  %v6983_v2 = vadd.f32 %v6919_v7, %v6495_v13  ;;  %v9846_v22 = vmul.f32 %v22264_v55, %v22146_v15  ;;  %v9847_v47 = vmul.f32 %v22264_v55, %v22148_v20  ;;  %v22266_v60 = vld [vmem:[#allocation520_spill] sm:$0xff]  ;;  %v22269_v52 = vld [vmem:[#allocation383_spill] sm:$0xff] }
 0x4f6   : > { %v11372_v30 = vadd.f32 %v11308_v54, %v10884_v61  ;;  %v10334_v16 = vmul.f32 %v22265_v5, %v22189_v12  ;;  %v10335_v46 = vmul.f32 %v22265_v5, %v22191_v40  ;;  %v7470_v17 = vadd.f32 %v7406_v31, %v6982_v42  ;;  %v22275_v5 = vld [vmem:[#allocation305_spill] sm:$0xff] }
 0x4f7   : > { %v11373_v11 = vadd.f32 %v11309_v44, %v10885_v45  ;;  %v7471_v51 = vadd.f32 %v7407_v23, %v6983_v2  ;;  %v10822_v26 = vmul.f32 %v22266_v60, %v22192_v3  ;;  %v10823_v54 = vmul.f32 %v22266_v60, %v22248_v1  ;;  %v22270_v44 = vld [vmem:[#allocation265_spill] sm:$0xff]  ;;  %v22271_v23 = vld [vmem:[#allocation132_spill] sm:$0xff]  ;;  %v22272_v45 = vld [vmem:[#allocation510_spill] sm:$0xff] }
 0x4f8   : > { %v11896_v7 = vmul.f32 %v11812_v18, %v11372_v30  ;;  %v3992_v63 = vmul.f32 %v22268_v8, %v22267_v34  ;;  %v3993_v53 = vmul.f32 %v22268_v8, %v22175_v59  ;;  %v7958_v32 = vadd.f32 %v7894_v58, %v7470_v17  ;;  %v22273_v2 = vld [vmem:[#allocation387_spill] sm:$0xff]  ;;  %v22274_v30 = vld [vmem:[#allocation393_spill] sm:$0xff] }
 0x4f9   : > { %v11897_v13 = vmul.f32 %v11812_v18, %v11373_v11  ;;  %v7959_v61 = vadd.f32 %v7895_v4, %v7471_v51  ;;  %v4480_v31 = vmul.f32 %v22270_v44, %v22269_v52  ;;  %v11310_v42 = vmul.f32 %v22272_v45, %v22271_v23  ;;  %v22276_v17 = vld [vmem:[#allocation297_spill] sm:$0xff] }
 0x4fa   : > { %v4481_v55 = vmul.f32 %v22270_v44, %v22273_v2  ;;  %v4968_v60 = vmul.f32 %v22275_v5, %v22274_v30  ;;  %v4969_v34 = vmul.f32 %v22275_v5, %v22118_v48  ;;  %v8446_v8 = vadd.f32 %v8382_v35, %v7958_v32 }
 0x4fb   : > { %v11939_v1 = vpack.c.bf16 %v11897_v13, %v11896_v7  ;;  %v8447_v18 = vadd.f32 %v8383_v25, %v7959_v61  ;;  %v4544_v58 = vadd.f32 %v4480_v31, %v3992_v63  ;;  %v11311_v4 = vmul.f32 %v22272_v45, %v22160_v36  ;;  %v22277_v7 = vld [vmem:[#allocation337_spill] sm:$0xff] }
 0x4fc   : > { %v4545_v11 = vadd.f32 %v4481_v55, %v3993_v53  ;;  %v5456_v51 = vmul.f32 %v22276_v17, %v22119_v19  ;;  %v5457_v44 = vmul.f32 %v22276_v17, %v22121_v28  ;;  %v8934_v23 = vadd.f32 %v8870_v57, %v8446_v8  ;;  %v22278_v53 = vld [vmem:[#allocation329_spill] sm:$0xff] }
 0x4fd   : > { %13738 = vmatmul.mubr.msk.bf16.gmra.mrb[104].mxu0 %vm1463_vm6, %v11939_v1  ;;  %v8935_v30 = vadd.f32 %v8871_v39, %v8447_v18  ;;  %v5032_v2 = vadd.f32 %v4968_v60, %v4544_v58  ;;  %v5944_v35 = vmul.f32 %v22277_v7, %v22122_v29  ;;  %v5945_v63 = vmul.f32 %v22277_v7, %v22124_v41  ;;  %v22279_v1 = vld [vmem:[#allocation370_spill] sm:$0xff] }
 0x4fe   : > { %v5033_v25 = vadd.f32 %v4969_v34, %v4545_v11  ;;  %v6432_v13 = vmul.f32 %v22278_v53, %v22125_v50  ;;  %v6433_v32 = vmul.f32 %v22278_v53, %v22127_v62  ;;  %v9422_v61 = vadd.f32 %v9358_v21, %v8934_v23  ;;  %v22280_v34 = vld [vmem:[#allocation361_spill] sm:$0xff]  ;;  %v22281_v21 = vld [vmem:[#allocation414_spill] sm:$0xff] }
 0x4ff   : > { %v9423_v31 = vadd.f32 %v9359_v33, %v8935_v30  ;;  %v5520_v45 = vadd.f32 %v5456_v51, %v5032_v2  ;;  %v6920_v57 = vmul.f32 %v22279_v1, %v22128_v43  ;;  %v6921_v55 = vmul.f32 %v22279_v1, %v22130_v56  ;;  %v22282_v30 = vld [vmem:[#allocation406_spill] sm:$0xff] }
 0x500   : > { %v5521_v39 = vadd.f32 %v5457_v44, %v5033_v25  ;;  %v7408_v5 = vmul.f32 %v22280_v34, %v22131_v14  ;;  %v7409_v60 = vmul.f32 %v22280_v34, %v22133_v6  ;;  %v9910_v8 = vadd.f32 %v9846_v22, %v9422_v61  ;;  %v22283_v22 = vld [vmem:[#allocation447_spill] sm:$0xff] }
 0x501   : > { %v9911_v18 = vadd.f32 %v9847_v47, %v9423_v31  ;;  %v6008_v58 = vadd.f32 %v5944_v35, %v5520_v45  ;;  %v7896_v33 = vmul.f32 %v22281_v21, %v22134_v24  ;;  %v7897_v2 = vmul.f32 %v22281_v21, %v22136_v38 }
 0x502   : > { %v6009_v23 = vadd.f32 %v5945_v63, %v5521_v39  ;;  %v8384_v11 = vmul.f32 %v22282_v30, %v22137_v49  ;;  %v8385_v17 = vmul.f32 %v22282_v30, %v22139_v0  ;;  %v10398_v51 = vadd.f32 %v10334_v16, %v9910_v8  ;;  %v22284_v63 = vld [vmem:[#allocation439_spill] sm:$0xff]  ;;  %v22285_v16 = vld [vmem:[#allocation484_spill] sm:$0xff]  ;;  %v22288_v30 = vld [vmem:[#allocation205_spill] sm:$0xff] }
 0x503   : > { %v10399_v44 = vadd.f32 %v10335_v46, %v9911_v18  ;;  %v6496_v7 = vadd.f32 %v6432_v13, %v6008_v58  ;;  %v8872_v47 = vmul.f32 %v22283_v22, %v22140_v9  ;;  %v8873_v25 = vmul.f32 %v22283_v22, %v22142_v37 }
 0x504   : > { %v6497_v35 = vadd.f32 %v6433_v32, %v6009_v23  ;;  %v9360_v53 = vmul.f32 %v22284_v63, %v22143_v27  ;;  %v9361_v61 = vmul.f32 %v22284_v63, %v22145_v10  ;;  %v10886_v31 = vadd.f32 %v10822_v26, %v10398_v51  ;;  %v22286_v32 = vld [vmem:[#allocation475_spill] sm:$0xff]  ;;  %v22289_v51 = vld [vmem:[#allocation384_spill] sm:$0xff] }
 0x505   : > { %v10887_v45 = vadd.f32 %v10823_v54, %v10399_v44  ;;  %v6984_v1 = vadd.f32 %v6920_v57, %v6496_v7  ;;  %v9848_v46 = vmul.f32 %v22285_v16, %v22146_v15  ;;  %v9849_v39 = vmul.f32 %v22285_v16, %v22148_v20  ;;  %v22287_v26 = vld [vmem:[#allocation523_spill] sm:$0xff]  ;;  %v11816_v57 = vpop.permute.xlu0 %11815  ;;  %v22290_v44 = vld [vmem:[#allocation282_spill] sm:$0xff] }
 0x506   : > { %v6985_v13 = vadd.f32 %v6921_v55, %v6497_v35  ;;  %v10336_v34 = vmul.f32 %v22286_v32, %v22189_v12  ;;  %v10337_v8 = vmul.f32 %v22286_v32, %v22191_v40  ;;  %v11374_v18 = vadd.f32 %v11310_v42, %v10886_v31  ;;  %v22291_v42 = vld [vmem:[#allocation274_spill] sm:$0xff]  ;;  %v22292_v31 = vld [vmem:[#allocation387_spill] sm:$0xff] }
 0x507   : > { %v11375_v58 = vadd.f32 %v11311_v4, %v10887_v45  ;;  %v7472_v21 = vadd.f32 %v7408_v5, %v6984_v1  ;;  %v10824_v54 = vmul.f32 %v22287_v26, %v22192_v3  ;;  %v10825_v55 = vmul.f32 %v22287_v26, %v22288_v30  ;;  %v22294_v1 = vld [vmem:[#allocation314_spill] sm:$0xff]  ;;  %v22295_v30 = vld [vmem:[#allocation132_spill] sm:$0xff] }
 0x508   : > { %v7473_v23 = vadd.f32 %v7409_v60, %v6985_v13  ;;  %v3994_v7 = vmul.f32 %v22290_v44, %v22289_v51  ;;  %v3995_v22 = vmul.f32 %v22290_v44, %v22175_v59  ;;  %v11898_v35 = vmul.f32 %v11816_v57, %v11374_v18  ;;  %v22293_v60 = vld [vmem:[#allocation393_spill] sm:$0xff]  ;;  %v22296_v44 = vld [vmem:[#allocation511_spill] sm:$0xff] }
 0x509   : > { %v11899_v63 = vmul.f32 %v11816_v57, %v11375_v58  ;;  %v7960_v16 = vadd.f32 %v7896_v33, %v7472_v21  ;;  %v4482_v4 = vmul.f32 %v22291_v42, %v22269_v52  ;;  %v4483_v45 = vmul.f32 %v22291_v42, %v22292_v31  ;;  %v22297_v57 = vld [vmem:[#allocation306_spill] sm:$0xff] }
 0x50a   : > { %v7961_v5 = vadd.f32 %v7897_v2, %v7473_v23  ;;  %v4970_v13 = vmul.f32 %v22294_v1, %v22293_v60  ;;  %v4971_v32 = vmul.f32 %v22294_v1, %v22118_v48  ;;  %v11312_v18 = vmul.f32 %v22296_v44, %v22295_v30 }
 0x50b   : > { %v11940_v26 = vpack.c.bf16 %v11899_v63, %v11898_v35  ;;  %v8448_v51 = vadd.f32 %v8384_v11, %v7960_v16  ;;  %v4546_v58 = vadd.f32 %v4482_v4, %v3994_v7  ;;  %v11313_v21 = vmul.f32 %v22296_v44, %v22160_v36  ;;  %v22298_v11 = vld [vmem:[#allocation346_spill] sm:$0xff] }
 0x50c   : > { %v8449_v33 = vadd.f32 %v8385_v17, %v7961_v5  ;;  %v4547_v2 = vadd.f32 %v4483_v45, %v3995_v22  ;;  %v5458_v23 = vmul.f32 %v22297_v57, %v22119_v19  ;;  %v5459_v35 = vmul.f32 %v22297_v57, %v22121_v28  ;;  %v22299_v22 = vld [vmem:[#allocation338_spill] sm:$0xff] }
 0x50d   : > { %13741 = vmatprep.mubr.msk.bf16.mxu0 %vm1463_vm6, %v11940_v26  ;;  %v8936_v42 = vadd.f32 %v8872_v47, %v8448_v51  ;;  %v5034_v60 = vadd.f32 %v4970_v13, %v4546_v58  ;;  %v5946_v63 = vmul.f32 %v22298_v11, %v22122_v29  ;;  %v5947_v17 = vmul.f32 %v22298_v11, %v22124_v41  ;;  %v22300_v51 = vld [vmem:[#allocation385_spill] sm:$0xff] }
 0x50e   : > { %v8937_v16 = vadd.f32 %v8873_v25, %v8449_v33  ;;  %v5035_v7 = vadd.f32 %v4971_v32, %v4547_v2  ;;  %v6434_v4 = vmul.f32 %v22299_v22, %v22125_v50  ;;  %v6435_v47 = vmul.f32 %v22299_v22, %v22127_v62  ;;  %v22301_v32 = vld [vmem:[#allocation372_spill] sm:$0xff] }
 0x50f   : > { %v9424_v5 = vadd.f32 %v9360_v53, %v8936_v42  ;;  %v5522_v45 = vadd.f32 %v5458_v23, %v5034_v60  ;;  %v6922_v1 = vmul.f32 %v22300_v51, %v22128_v43  ;;  %v6923_v25 = vmul.f32 %v22300_v51, %v22130_v56  ;;  %v22302_v60 = vld [vmem:[#allocation424_spill] sm:$0xff] }
 0x510   : > { %v9425_v13 = vadd.f32 %v9361_v61, %v8937_v16  ;;  %v5523_v26 = vadd.f32 %v5459_v35, %v5035_v7  ;;  %v7410_v44 = vmul.f32 %v22301_v32, %v22131_v14  ;;  %v7411_v53 = vmul.f32 %v22301_v32, %v22133_v6  ;;  %v22303_v42 = vld [vmem:[#allocation416_spill] sm:$0xff] }
 0x511   : > { %v9912_v58 = vadd.f32 %v9848_v46, %v9424_v5  ;;  %v6010_v33 = vadd.f32 %v5946_v63, %v5522_v45  ;;  %v7898_v2 = vmul.f32 %v22302_v60, %v22134_v24  ;;  %v7899_v61 = vmul.f32 %v22302_v60, %v22136_v38  ;;  %v22304_v63 = vld [vmem:[#allocation456_spill] sm:$0xff] }
 0x512   : > { %v9913_v57 = vadd.f32 %v9849_v39, %v9425_v13  ;;  %v6011_v23 = vadd.f32 %v5947_v17, %v5523_v26  ;;  %v8386_v35 = vmul.f32 %v22303_v42, %v22137_v49  ;;  %v8387_v46 = vmul.f32 %v22303_v42, %v22139_v0  ;;  %v22305_v17 = vld [vmem:[#allocation448_spill] sm:$0xff]  ;;  %v11820_v42 = vpop.permute.xlu1 %11819 }
 0x513   : > { %v10400_v11 = vadd.f32 %v10336_v34, %v9912_v58  ;;  %v6498_v16 = vadd.f32 %v6434_v4, %v6010_v33  ;;  %v8874_v7 = vmul.f32 %v22304_v63, %v22140_v9  ;;  %v8875_v39 = vmul.f32 %v22304_v63, %v22142_v37  ;;  %v22306_v4 = vld [vmem:[#allocation495_spill] sm:$0xff]  ;;  %v22309_v63 = vld [vmem:[#allocation205_spill] sm:$0xff] }
 0x514   : > { %v10401_v22 = vadd.f32 %v10337_v8, %v9913_v57  ;;  %v6499_v5 = vadd.f32 %v6435_v47, %v6011_v23  ;;  %v9362_v45 = vmul.f32 %v22305_v17, %v22143_v27  ;;  %v9363_v34 = vmul.f32 %v22305_v17, %v22145_v10  ;;  %v22307_v47 = vld [vmem:[#allocation485_spill] sm:$0xff] }
 0x515   : > { %v10888_v51 = vadd.f32 %v10824_v54, %v10400_v11  ;;  %v6986_v13 = vadd.f32 %v6922_v1, %v6498_v16  ;;  %v9850_v26 = vmul.f32 %v22306_v4, %v22146_v15  ;;  %v9851_v8 = vmul.f32 %v22306_v4, %v22148_v20  ;;  %v22308_v1 = vld [vmem:[#allocation537_spill] sm:$0xff] }
 0x516   : > { %v10889_v32 = vadd.f32 %v10825_v55, %v10401_v22  ;;  %v6987_v58 = vadd.f32 %v6923_v25, %v6499_v5  ;;  %v10338_v33 = vmul.f32 %v22307_v47, %v22189_v12  ;;  %v10339_v54 = vmul.f32 %v22307_v47, %v22191_v40  ;;  %v22310_v25 = vld [vmem:[#allocation384_spill] sm:$0xff] }
 0x517   : > { %v11376_v60 = vadd.f32 %v11312_v18, %v10888_v51  ;;  %v7474_v57 = vadd.f32 %v7410_v44, %v6986_v13  ;;  %v10826_v23 = vmul.f32 %v22308_v1, %v22192_v3  ;;  %v10827_v55 = vmul.f32 %v22308_v1, %v22309_v63  ;;  %v22311_v22 = vld [vmem:[#allocation284_spill] sm:$0xff]  ;;  %v22312_v44 = vld [vmem:[#allocation275_spill] sm:$0xff]  ;;  %v22315_v63 = vld [vmem:[#allocation525_spill] sm:$0xff] }
 0x518   : > { %v11377_v11 = vadd.f32 %v11313_v21, %v10889_v32  ;;  %v7475_v16 = vadd.f32 %v7411_v53, %v6987_v58  ;;  %v3996_v5 = vmul.f32 %v22311_v22, %v22310_v25  ;;  %v3997_v18 = vmul.f32 %v22311_v22, %v22175_v59  ;;  %v22313_v53 = vld [vmem:[#allocation393_spill] sm:$0xff]  ;;  %v22314_v32 = vld [vmem:[#allocation315_spill] sm:$0xff] }
 0x519   : > { %v11900_v17 = vmul.f32 %v11820_v42, %v11376_v60  ;;  %v7962_v4 = vadd.f32 %v7898_v2, %v7474_v57  ;;  %v4484_v51 = vmul.f32 %v22312_v44, %v22269_v52  ;;  %v4485_v21 = vmul.f32 %v22312_v44, %v22292_v31  ;;  %v22316_v44 = vld [vmem:[#allocation308_spill] sm:$0xff] }
 0x51a   : > { %v11901_v13 = vmul.f32 %v11820_v42, %v11377_v11  ;;  %v7963_v47 = vadd.f32 %v7899_v61, %v7475_v16  ;;  %v4972_v58 = vmul.f32 %v22314_v32, %v22313_v53  ;;  %v11314_v25 = vmul.f32 %v22315_v63, %v22295_v30 }
 0x51b   : > { %v8450_v1 = vadd.f32 %v8386_v35, %v7962_v4  ;;  %v4548_v60 = vadd.f32 %v4484_v51, %v3996_v5  ;;  %v4973_v2 = vmul.f32 %v22314_v32, %v22118_v48  ;;  %v11315_v42 = vmul.f32 %v22315_v63, %v22160_v36  ;;  %v22317_v35 = vld [vmem:[#allocation348_spill] sm:$0xff] }
 0x51c   : > { %v11941_v57 = vpack.c.bf16 %v11901_v13, %v11900_v17  ;;  %v8451_v22 = vadd.f32 %v8387_v46, %v7963_v47  ;;  %v4549_v61 = vadd.f32 %v4485_v21, %v3997_v18  ;;  %v5460_v31 = vmul.f32 %v22316_v44, %v22119_v19 }
 0x51d   : > { %v8938_v11 = vadd.f32 %v8874_v7, %v8450_v1  ;;  %v5036_v16 = vadd.f32 %v4972_v58, %v4548_v60  ;;  %v5948_v4 = vmul.f32 %v22317_v35, %v22122_v29  ;;  %v5461_v17 = vmul.f32 %v22316_v44, %v22121_v28  ;;  %v22318_v7 = vld [vmem:[#allocation339_spill] sm:$0xff]  ;;  %v22319_v58 = vld [vmem:[#allocation388_spill] sm:$0xff]  ;;  %v19629_v60 = vpop.f32.mrb[64].mxu0 }
 0x51e   : > { %13742 = vmatmul.mubr.msk.bf16.gmra.mrb[108].mxu0 %vm1463_vm6, %v11941_v57  ;;  %v8939_v5 = vadd.f32 %v8875_v39, %v8451_v22  ;;  %v5037_v51 = vadd.f32 %v4973_v2, %v4549_v61  ;;  %v5949_v46 = vmul.f32 %v22317_v35, %v22124_v41  ;;  %v6436_v13 = vmul.f32 %v22318_v7, %v22125_v50  ;;  %v19635_v61 = vpop.f32.mrb[65].mxu0 }
 0x51f   : > { %v9426_v63 = vadd.f32 %v9362_v45, %v8938_v11  ;;  %v5524_v18 = vadd.f32 %v5460_v31, %v5036_v16  ;;  %v6437_v47 = vmul.f32 %v22318_v7, %v22127_v62  ;;  %v6924_v39 = vmul.f32 %v22319_v58, %v22128_v43  ;;  %22320 = vst [vmem:[#allocation503_spill] sm:$0xff] %v19629_v60  ;;  %v22321_v31 = vld [vmem:[#allocation373_spill] sm:$0xff]  ;;  %v22323_v16 = vld [vmem:[#allocation426_spill] sm:$0xff] }
 0x520   : > { %v9427_v21 = vadd.f32 %v9363_v34, %v8939_v5  ;;  %v5525_v32 = vadd.f32 %v5461_v17, %v5037_v51  ;;  %v6925_v1 = vmul.f32 %v22319_v58, %v22130_v56  ;;  %v7412_v45 = vmul.f32 %v22321_v31, %v22131_v14  ;;  %22322 = vst [vmem:[#allocation197_spill] sm:$0xff] %v19635_v61  ;;  %v19641_v5 = vpop.f32.mrb[66].mxu0  ;;  %v22325_v51 = vld [vmem:[#allocation417_spill] sm:$0xff]  ;;  %v22327_v7 = vld [vmem:[#allocation458_spill] sm:$0xff]  ;;  %v22342_v61 = vld [vmem:[#allocation387_spill] sm:$0xff] }
 0x521   : > { %v9914_v2 = vadd.f32 %v9850_v26, %v9426_v63  ;;  %v6012_v57 = vadd.f32 %v5948_v4, %v5524_v18  ;;  %v7413_v22 = vmul.f32 %v22321_v31, %v22133_v6  ;;  %v7900_v44 = vmul.f32 %v22323_v16, %v22134_v24  ;;  %22324 = vst [vmem:[#allocation237_spill] sm:$0xff] %v19641_v5  ;;  %v19647_v18 = vpop.f32.mrb[67].mxu0 }
 0x522   : > { %v9915_v34 = vadd.f32 %v9851_v8, %v9427_v21  ;;  %v6013_v11 = vadd.f32 %v5949_v46, %v5525_v32  ;;  %v7901_v35 = vmul.f32 %v22323_v16, %v22136_v38  ;;  %v8388_v17 = vmul.f32 %v22325_v51, %v22137_v49  ;;  %22326 = vst [vmem:[#allocation457_spill] sm:$0xff] %v19647_v18  ;;  %v19653_v58 = vpop.f32.mrb[68].mxu0 }
 0x523   : > { %v10402_v26 = vadd.f32 %v10338_v33, %v9914_v2  ;;  %v6500_v4 = vadd.f32 %v6436_v13, %v6012_v57  ;;  %v8389_v63 = vmul.f32 %v22325_v51, %v22139_v0  ;;  %v8876_v21 = vmul.f32 %v22327_v7, %v22140_v9  ;;  %22328 = vst [vmem:[#allocation460_spill] sm:$0xff] %v19653_v58  ;;  %v22329_v2 = vld [vmem:[#allocation450_spill] sm:$0xff]  ;;  %v19659_v16 = vpop.f32.mrb[69].mxu0 }
 0x524   : > { %v10403_v8 = vadd.f32 %v10339_v54, %v9915_v34  ;;  %v6501_v46 = vadd.f32 %v6437_v47, %v6013_v11  ;;  %v8877_v32 = vmul.f32 %v22327_v7, %v22142_v37  ;;  %v9364_v57 = vmul.f32 %v22329_v2, %v22143_v27  ;;  %22330 = vst [vmem:[#allocation463_spill] sm:$0xff] %v19659_v16  ;;  %v22331_v34 = vld [vmem:[#allocation497_spill] sm:$0xff]  ;;  %v19665_v7 = vpop.f32.mrb[70].mxu0 }
 0x525   : > { %v10890_v33 = vadd.f32 %v10826_v23, %v10402_v26  ;;  %v6988_v13 = vadd.f32 %v6924_v39, %v6500_v4  ;;  %v9365_v31 = vmul.f32 %v22329_v2, %v22145_v10  ;;  %v9852_v11 = vmul.f32 %v22331_v34, %v22146_v15  ;;  %22332 = vst [vmem:[#allocation465_spill] sm:$0xff] %v19665_v7  ;;  %v22333_v26 = vld [vmem:[#allocation486_spill] sm:$0xff]  ;;  %v19673_v16 = vpop.f32.mrb[71].mxu0  ;;  %v22338_v7 = vld [vmem:[#allocation384_spill] sm:$0xff] }
 0x526   : > { %v10891_v54 = vadd.f32 %v10827_v55, %v10403_v8  ;;  %v6989_v47 = vadd.f32 %v6925_v1, %v6501_v46  ;;  %v9853_v51 = vmul.f32 %v22331_v34, %v22148_v20  ;;  %v10340_v4 = vmul.f32 %v22333_v26, %v22189_v12  ;;  %22334 = vst [vmem:[#allocation228_spill] sm:$0xff] %v19673_v16  ;;  %v11824_v55 = vpop.permute.xlu0 %11823  ;;  %v22335_v46 = vld [vmem:[#allocation539_spill] sm:$0xff]  ;;  %v22336_v34 = vld [vmem:[#allocation205_spill] sm:$0xff] }
 0x527   : > { %v11378_v23 = vadd.f32 %v11314_v25, %v10890_v33  ;;  %v7476_v39 = vadd.f32 %v7412_v45, %v6988_v13  ;;  %v19671_v2 = vmul.f32 %v22333_v26, %v22191_v40  ;;  %v19677_v58 = vmul.f32 %v22335_v46, %v22192_v3  ;;  %v19683_v45 = vpop.f32.mrb[72].mxu0  ;;  %v22339_v26 = vld [vmem:[#allocation285_spill] sm:$0xff] }
 0x528   : > { %v11379_v1 = vadd.f32 %v11315_v42, %v10891_v54  ;;  %v7477_v8 = vadd.f32 %v7413_v22, %v6989_v47  ;;  %v19681_v25 = vmul.f32 %v22335_v46, %v22336_v34  ;;  %22337 = vst [vmem:[#allocation13_spill] sm:$0xff] %v19683_v45  ;;  %v3998_v18 = vmul.f32 %v22339_v26, %v22338_v7  ;;  %v19689_v42 = vpop.f32.mrb[73].mxu0  ;;  %v22341_v47 = vld [vmem:[#allocation276_spill] sm:$0xff]  ;;  %v22345_v45 = vld [vmem:[#allocation317_spill] sm:$0xff] }
 0x529   : > { %v11902_v33 = vmul.f32 %v11824_v55, %v11378_v23  ;;  %v7964_v13 = vadd.f32 %v7900_v44, %v7476_v39  ;;  %v3999_v16 = vmul.f32 %v22339_v26, %v22175_v59  ;;  %22340 = vst [vmem:[#allocation5_spill] sm:$0xff] %v19689_v42  ;;  %v4486_v5 = vmul.f32 %v22341_v47, %v22269_v52  ;;  %v19695_v60 = vpop.f32.mrb[74].mxu0  ;;  %v22344_v44 = vld [vmem:[#allocation526_spill] sm:$0xff] }
 0x52a   : > { %v11903_v22 = vmul.f32 %v11824_v55, %v11379_v1  ;;  %v7965_v54 = vadd.f32 %v7901_v35, %v7477_v8  ;;  %v4487_v46 = vmul.f32 %v22341_v47, %v22342_v61  ;;  %22343 = vst [vmem:[#allocation48_spill] sm:$0xff] %v19695_v60  ;;  %v11316_v39 = vmul.f32 %v22344_v44, %v22295_v30  ;;  %v19703_v55 = vpop.f32.mrb[75].mxu0 }
 0x52b   : > { %v8452_v23 = vadd.f32 %v8388_v17, %v7964_v13  ;;  %v4974_v7 = vmul.f32 %v22345_v45, %v22313_v53  ;;  %v4975_v26 = vmul.f32 %v22345_v45, %v22118_v48  ;;  %22346 = vst [vmem:[#allocation40_spill] sm:$0xff] %v19703_v55  ;;  %v4550_v8 = vadd.f32 %v4486_v5, %v3998_v18  ;;  %v19705_v52 = vpop.f32.mrb[76].mxu0  ;;  %v22348_v17 = vld [vmem:[#allocation309_spill] sm:$0xff] }
 0x52c   : > { %v11942_v35 = vpack.c.bf16 %v11903_v22, %v11902_v33  ;;  %v8453_v1 = vadd.f32 %v8389_v63, %v7965_v54  ;;  %v4551_v42 = vadd.f32 %v4487_v46, %v3999_v16  ;;  %22347 = vst [vmem:[#allocation80_spill] sm:$0xff] %v19705_v52  ;;  %v5462_v13 = vmul.f32 %v22348_v17, %v22119_v19  ;;  %v22349_v53 = vld [vmem:[#allocation349_spill] sm:$0xff]  ;;  %v19713_v30 = vpop.f32.mrb[77].mxu0  ;;  %v22352_v22 = vld [vmem:[#allocation340_spill] sm:$0xff] }
 0x52d   : > { %v8940_v47 = vadd.f32 %v8876_v21, %v8452_v23  ;;  %v5463_v60 = vmul.f32 %v22348_v17, %v22121_v28  ;;  %v5950_v61 = vmul.f32 %v22349_v53, %v22122_v29  ;;  %22350 = vst [vmem:[#allocation71_spill] sm:$0xff] %v19713_v30  ;;  %v5038_v63 = vadd.f32 %v4974_v7, %v4550_v8  ;;  %v19718_v21 = vpop.f32.mrb[78].mxu0  ;;  %v22373_v30 = vld [vmem:[#allocation383_spill] sm:$0xff]  ;;  %v22378_v52 = vld [vmem:[#allocation393_spill] sm:$0xff] }
 0x52e   : > { %13745 = vmatprep.mubr.msk.bf16.mxu0 %vm1463_vm6, %v11942_v35  ;;  %v8941_v45 = vadd.f32 %v8877_v32, %v8453_v1  ;;  %v5039_v5 = vadd.f32 %v4975_v26, %v4551_v42  ;;  %v5951_v18 = vmul.f32 %v22349_v53, %v22124_v41  ;;  %22351 = vst [vmem:[#allocation112_spill] sm:$0xff] %v19718_v21  ;;  %v19726_v23 = vpop.f32.mrb[79].mxu0  ;;  %v22354_v26 = vld [vmem:[#allocation391_spill] sm:$0xff]  ;;  %v22356_v1 = vld [vmem:[#allocation374_spill] sm:$0xff] }
 0x52f   : > { %v9428_v16 = vadd.f32 %v9364_v57, %v8940_v47  ;;  %v11317_v33 = vmul.f32 %v22344_v44, %v22160_v36  ;;  %v6438_v54 = vmul.f32 %v22352_v22, %v22125_v50  ;;  %v6439_v46 = vmul.f32 %v22352_v22, %v22127_v62  ;;  %22353 = vst [vmem:[#allocation101_spill] sm:$0xff] %v19726_v23  ;;  %v19730_v35 = vpop.f32.mrb[80].mxu0  ;;  %v22360_v22 = vld [vmem:[#allocation418_spill] sm:$0xff] }
 0x530   : > { %v9429_v32 = vadd.f32 %v9365_v31, %v8941_v45  ;;  %v5526_v7 = vadd.f32 %v5462_v13, %v5038_v63  ;;  %v5527_v42 = vadd.f32 %v5463_v60, %v5039_v5  ;;  %v6926_v53 = vmul.f32 %v22354_v26, %v22128_v43  ;;  %22355 = vst [vmem:[#allocation141_spill] sm:$0xff] %v19730_v35  ;;  %v19738_v17 = vpop.f32.mrb[81].mxu0  ;;  %v22358_v45 = vld [vmem:[#allocation427_spill] sm:$0xff] }
 0x531   : > { %v9916_v57 = vadd.f32 %v9852_v11, %v9428_v16  ;;  %v6927_v44 = vmul.f32 %v22354_v26, %v22130_v56  ;;  %v7414_v8 = vmul.f32 %v22356_v1, %v22131_v14  ;;  %v7415_v47 = vmul.f32 %v22356_v1, %v22133_v6  ;;  %22357 = vst [vmem:[#allocation133_spill] sm:$0xff] %v19738_v17  ;;  %v19742_v5 = vpop.f32.mrb[82].mxu0 }
 0x532   : > { %v9917_v31 = vadd.f32 %v9853_v51, %v9429_v32  ;;  %v6014_v13 = vadd.f32 %v5950_v61, %v5526_v7  ;;  %v6015_v60 = vadd.f32 %v5951_v18, %v5527_v42  ;;  %v7902_v63 = vmul.f32 %v22358_v45, %v22134_v24  ;;  %22359 = vst [vmem:[#allocation176_spill] sm:$0xff] %v19742_v5  ;;  %v19750_v35 = vpop.f32.mrb[83].mxu0  ;;  %v22362_v32 = vld [vmem:[#allocation461_spill] sm:$0xff] }
 0x533   : > { %v10404_v11 = vadd.f32 %v10340_v4, %v9916_v57  ;;  %v7903_v16 = vmul.f32 %v22358_v45, %v22136_v38  ;;  %v8390_v26 = vmul.f32 %v22360_v22, %v22137_v49  ;;  %v8391_v1 = vmul.f32 %v22360_v22, %v22139_v0  ;;  %22361 = vst [vmem:[#allocation168_spill] sm:$0xff] %v19750_v35  ;;  %v19755_v42 = vpop.f32.mrb[84].mxu0  ;;  %v22364_v45 = vld [vmem:[#allocation451_spill] sm:$0xff] }
 0x534   : > { %v10405_v61 = vadd.f32 %v19671_v2, %v9917_v31  ;;  %v6502_v51 = vadd.f32 %v6438_v54, %v6014_v13  ;;  %v6503_v18 = vadd.f32 %v6439_v46, %v6015_v60  ;;  %v8878_v7 = vmul.f32 %v22362_v32, %v22140_v9  ;;  %22363 = vst [vmem:[#allocation534_spill] sm:$0xff] %v19755_v42  ;;  %v19764_v35 = vpop.f32.mrb[85].mxu0  ;;  %v22366_v31 = vld [vmem:[#allocation498_spill] sm:$0xff] }
 0x535   : > { %v10892_v4 = vadd.f32 %v19677_v58, %v10404_v11  ;;  %v8879_v57 = vmul.f32 %v22362_v32, %v22142_v37  ;;  %v9366_v5 = vmul.f32 %v22364_v45, %v22143_v27  ;;  %v9367_v22 = vmul.f32 %v22364_v45, %v22145_v10  ;;  %22365 = vst [vmem:[#allocation208_spill] sm:$0xff] %v19764_v35  ;;  %v19769_v60 = vpop.f32.mrb[86].mxu0  ;;  %v22368_v32 = vld [vmem:[#allocation487_spill] sm:$0xff] }
 0x536   : > { %v10893_v2 = vadd.f32 %v19681_v25, %v10405_v61  ;;  %v6990_v54 = vadd.f32 %v6926_v53, %v6502_v51  ;;  %v6991_v46 = vadd.f32 %v6927_v44, %v6503_v18  ;;  %v9854_v13 = vmul.f32 %v22366_v31, %v22146_v15  ;;  %22367 = vst [vmem:[#allocation199_spill] sm:$0xff] %v19769_v60  ;;  %v19777_v35 = vpop.f32.mrb[87].mxu0  ;;  %v11828_v25 = vpop.permute.xlu1 %11827  ;;  %v22370_v51 = vld [vmem:[#allocation540_spill] sm:$0xff] }
 0x537   : > { %v11380_v58 = vadd.f32 %v11316_v39, %v10892_v4  ;;  %v9855_v11 = vmul.f32 %v22366_v31, %v22148_v20  ;;  %v10342_v42 = vmul.f32 %v22368_v32, %v22189_v12  ;;  %v10343_v45 = vmul.f32 %v22368_v32, %v22191_v40  ;;  %22369 = vst [vmem:[#allocation240_spill] sm:$0xff] %v19777_v35  ;;  %v22371_v4 = vld [vmem:[#allocation384_spill] sm:$0xff] }
 0x538   : > { %v11381_v53 = vadd.f32 %v11317_v33, %v10893_v2  ;;  %v7478_v44 = vadd.f32 %v7414_v8, %v6990_v54  ;;  %v7479_v61 = vadd.f32 %v7415_v47, %v6991_v46  ;;  %v10830_v18 = vmul.f32 %v22370_v51, %v22192_v3  ;;  %v22372_v31 = vld [vmem:[#allocation288_spill] sm:$0xff]  ;;  %v22374_v33 = vld [vmem:[#allocation277_spill] sm:$0xff]  ;;  %v22376_v2 = vld [vmem:[#allocation527_spill] sm:$0xff] }
 0x539   : > { %v11904_v60 = vmul.f32 %v11828_v25, %v11380_v58  ;;  %v10831_v39 = vmul.f32 %v22370_v51, %v22336_v34  ;;  %v4000_v17 = vmul.f32 %v22372_v31, %v22371_v4  ;;  %v4001_v23 = vmul.f32 %v22372_v31, %v22175_v59  ;;  %v22375_v47 = vld [vmem:[#allocation132_spill] sm:$0xff]  ;;  %v22377_v46 = vld [vmem:[#allocation387_spill] sm:$0xff] }
 0x53a   : > { %v11905_v32 = vmul.f32 %v11828_v25, %v11381_v53  ;;  %v7966_v21 = vadd.f32 %v7902_v63, %v7478_v44  ;;  %v7967_v35 = vadd.f32 %v7903_v16, %v7479_v61  ;;  %v4488_v8 = vmul.f32 %v22374_v33, %v22373_v30  ;;  %v22379_v51 = vld [vmem:[#allocation319_spill] sm:$0xff]  ;;  %v22380_v44 = vld [vmem:[#allocation312_spill] sm:$0xff] }
 0x53b   : > { %v11318_v54 = vmul.f32 %v22376_v2, %v22375_v47  ;;  %v4489_v58 = vmul.f32 %v22374_v33, %v22377_v46  ;;  %v4976_v55 = vmul.f32 %v22379_v51, %v22378_v52  ;;  %v4977_v4 = vmul.f32 %v22379_v51, %v22118_v48 }
 0x53c   : > { %v11943_v34 = vpack.c.bf16 %v11905_v32, %v11904_v60  ;;  %v8454_v31 = vadd.f32 %v8390_v26, %v7966_v21  ;;  %v8455_v25 = vadd.f32 %v8391_v1, %v7967_v35  ;;  %v4552_v63 = vadd.f32 %v4488_v8, %v4000_v17  ;;  %v22381_v60 = vld [vmem:[#allocation351_spill] sm:$0xff] }
 0x53d   : > { %v11319_v16 = vmul.f32 %v22376_v2, %v22160_v36  ;;  %v4553_v53 = vadd.f32 %v4489_v58, %v4001_v23  ;;  %v5464_v61 = vmul.f32 %v22380_v44, %v22119_v19  ;;  %v5465_v33 = vmul.f32 %v22380_v44, %v22121_v28  ;;  %v22382_v23 = vld [vmem:[#allocation343_spill] sm:$0xff] }
 0x53e   : > { %13746 = vmatmul.mubr.msk.bf16.gmra.mrb[112].mxu0 %vm1463_vm6, %v11943_v34  ;;  %v8942_v47 = vadd.f32 %v8878_v7, %v8454_v31  ;;  %v8943_v52 = vadd.f32 %v8879_v57, %v8455_v25  ;;  %v5040_v46 = vadd.f32 %v4976_v55, %v4552_v63  ;;  %v5952_v21 = vmul.f32 %v22381_v60, %v22122_v29  ;;  %v22383_v34 = vld [vmem:[#allocation394_spill] sm:$0xff] }
 0x53f   : > { %v5041_v35 = vadd.f32 %v4977_v4, %v4553_v53  ;;  %v5953_v17 = vmul.f32 %v22381_v60, %v22124_v41  ;;  %v6440_v26 = vmul.f32 %v22382_v23, %v22125_v50  ;;  %v6441_v1 = vmul.f32 %v22382_v23, %v22127_v62  ;;  %v22384_v4 = vld [vmem:[#allocation380_spill] sm:$0xff] }
 0x540   : > { %v9430_v32 = vadd.f32 %v9366_v5, %v8942_v47  ;;  %v9431_v8 = vadd.f32 %v9367_v22, %v8943_v52  ;;  %v5528_v2 = vadd.f32 %v5464_v61, %v5040_v46  ;;  %v6928_v7 = vmul.f32 %v22383_v34, %v22128_v43  ;;  %v22385_v5 = vld [vmem:[#allocation430_spill] sm:$0xff]  ;;  %v22386_v46 = vld [vmem:[#allocation419_spill] sm:$0xff] }
 0x541   : > { %v5529_v55 = vadd.f32 %v5465_v33, %v5041_v35  ;;  %v6929_v57 = vmul.f32 %v22383_v34, %v22130_v56  ;;  %v7416_v58 = vmul.f32 %v22384_v4, %v22131_v14  ;;  %v7417_v51 = vmul.f32 %v22384_v4, %v22133_v6 }
 0x542   : > { %v9918_v31 = vadd.f32 %v9854_v13, %v9430_v32  ;;  %v9919_v25 = vadd.f32 %v9855_v11, %v9431_v8  ;;  %v6016_v63 = vadd.f32 %v5952_v21, %v5528_v2  ;;  %v7904_v52 = vmul.f32 %v22385_v5, %v22134_v24  ;;  %v22387_v13 = vld [vmem:[#allocation464_spill] sm:$0xff] }
 0x543   : > { %v6017_v22 = vadd.f32 %v5953_v17, %v5529_v55  ;;  %v7905_v47 = vmul.f32 %v22385_v5, %v22136_v38  ;;  %v8392_v53 = vmul.f32 %v22386_v46, %v22137_v49  ;;  %v8393_v44 = vmul.f32 %v22386_v46, %v22139_v0  ;;  %v22388_v17 = vld [vmem:[#allocation454_spill] sm:$0xff]  ;;  %v22392_v46 = vld [vmem:[#allocation205_spill] sm:$0xff] }
 0x544   : > { %v10406_v61 = vadd.f32 %v10342_v42, %v9918_v31  ;;  %v10407_v33 = vadd.f32 %v10343_v45, %v9919_v25  ;;  %v6504_v60 = vadd.f32 %v6440_v26, %v6016_v63  ;;  %v8880_v11 = vmul.f32 %v22387_v13, %v22140_v9  ;;  %v22389_v42 = vld [vmem:[#allocation500_spill] sm:$0xff] }
 0x545   : > { %v6505_v21 = vadd.f32 %v6441_v1, %v6017_v22  ;;  %v8881_v35 = vmul.f32 %v22387_v13, %v22142_v37  ;;  %v9368_v23 = vmul.f32 %v22388_v17, %v22143_v27  ;;  %v9369_v32 = vmul.f32 %v22388_v17, %v22145_v10  ;;  %v22390_v1 = vld [vmem:[#allocation490_spill] sm:$0xff] }
 0x546   : > { %v10894_v8 = vadd.f32 %v10830_v18, %v10406_v61  ;;  %v10895_v2 = vadd.f32 %v10831_v39, %v10407_v33  ;;  %v6992_v34 = vadd.f32 %v6928_v7, %v6504_v60  ;;  %v9856_v45 = vmul.f32 %v22389_v42, %v22146_v15  ;;  %v22391_v18 = vld [vmem:[#allocation543_spill] sm:$0xff]  ;;  %v11832_v7 = vpop.permute.xlu0 %11831  ;;  %v22393_v61 = vld [vmem:[#allocation384_spill] sm:$0xff] }
 0x547   : > { %v6993_v26 = vadd.f32 %v6929_v57, %v6505_v21  ;;  %v9857_v55 = vmul.f32 %v22389_v42, %v22148_v20  ;;  %v10344_v4 = vmul.f32 %v22390_v1, %v22189_v12  ;;  %v10345_v31 = vmul.f32 %v22390_v1, %v22191_v40  ;;  %v22394_v33 = vld [vmem:[#allocation283_spill] sm:$0xff] }
 0x548   : > { %v11382_v25 = vadd.f32 %v11318_v54, %v10894_v8  ;;  %v11383_v63 = vadd.f32 %v11319_v16, %v10895_v2  ;;  %v7480_v5 = vadd.f32 %v7416_v58, %v6992_v34  ;;  %v10832_v39 = vmul.f32 %v22391_v18, %v22192_v3  ;;  %v22395_v54 = vld [vmem:[#allocation278_spill] sm:$0xff]  ;;  %v22396_v8 = vld [vmem:[#allocation387_spill] sm:$0xff]  ;;  %v22398_v34 = vld [vmem:[#allocation316_spill] sm:$0xff] }
 0x549   : > { %v7481_v22 = vadd.f32 %v7417_v51, %v6993_v26  ;;  %v10833_v57 = vmul.f32 %v22391_v18, %v22392_v46  ;;  %v4002_v60 = vmul.f32 %v22394_v33, %v22393_v61  ;;  %v4003_v13 = vmul.f32 %v22394_v33, %v22175_v59  ;;  %v22397_v51 = vld [vmem:[#allocation393_spill] sm:$0xff]  ;;  %v22399_v46 = vld [vmem:[#allocation132_spill] sm:$0xff]  ;;  %v22400_v33 = vld [vmem:[#allocation535_spill] sm:$0xff] }
 0x54a   : > { %v11906_v21 = vmul.f32 %v11832_v7, %v11382_v25  ;;  %v11907_v17 = vmul.f32 %v11832_v7, %v11383_v63  ;;  %v7968_v42 = vadd.f32 %v7904_v52, %v7480_v5  ;;  %v4490_v16 = vmul.f32 %v22395_v54, %v22373_v30  ;;  %v22401_v7 = vld [vmem:[#allocation307_spill] sm:$0xff] }
 0x54b   : > { %v7969_v58 = vadd.f32 %v7905_v47, %v7481_v22  ;;  %v4491_v2 = vmul.f32 %v22395_v54, %v22396_v8  ;;  %v4978_v26 = vmul.f32 %v22398_v34, %v22397_v51  ;;  %v4979_v1 = vmul.f32 %v22398_v34, %v22118_v48 }
 0x54c   : > { %v11944_v18 = vpack.c.bf16 %v11907_v17, %v11906_v21  ;;  %v8456_v61 = vadd.f32 %v8392_v53, %v7968_v42  ;;  %v11320_v25 = vmul.f32 %v22400_v33, %v22399_v46  ;;  %v4554_v63 = vadd.f32 %v4490_v16, %v4002_v60  ;;  %v22402_v53 = vld [vmem:[#allocation347_spill] sm:$0xff] }
 0x54d   : > { %v8457_v52 = vadd.f32 %v8393_v44, %v7969_v58  ;;  %v11321_v5 = vmul.f32 %v22400_v33, %v22160_v36  ;;  %v4555_v47 = vadd.f32 %v4491_v2, %v4003_v13  ;;  %v5466_v22 = vmul.f32 %v22401_v7, %v22119_v19  ;;  %v22403_v13 = vld [vmem:[#allocation341_spill] sm:$0xff] }
 0x54e   : > { %13749 = vmatprep.mubr.msk.bf16.mxu0 %vm1463_vm6, %v11944_v18  ;;  %v8944_v54 = vadd.f32 %v8880_v11, %v8456_v61  ;;  %v5042_v51 = vadd.f32 %v4978_v26, %v4554_v63  ;;  %v5467_v21 = vmul.f32 %v22401_v7, %v22121_v28  ;;  %v5954_v17 = vmul.f32 %v22402_v53, %v22122_v29  ;;  %v22405_v61 = vld [vmem:[#allocation386_spill] sm:$0xff]  ;;  %v22407_v63 = vld [vmem:[#allocation375_spill] sm:$0xff] }
 0x54f   : > { %v8945_v42 = vadd.f32 %v8881_v35, %v8457_v52  ;;  %v5043_v60 = vadd.f32 %v4979_v1, %v4555_v47  ;;  %v5955_v44 = vmul.f32 %v22402_v53, %v22124_v41  ;;  %v6442_v16 = vmul.f32 %v22403_v13, %v22125_v50  ;;  %v19875_v58 = vpop.f32.mrb[88].mxu0 }
 0x550   : > { %22404 = vst [vmem:[#allocation14_spill] sm:$0xff] %v19875_v58  ;;  %v9432_v2 = vadd.f32 %v9368_v23, %v8944_v54  ;;  %v5530_v34 = vadd.f32 %v5466_v22, %v5042_v51  ;;  %v6443_v11 = vmul.f32 %v22403_v13, %v22127_v62  ;;  %v6930_v26 = vmul.f32 %v22405_v61, %v22128_v43  ;;  %v19881_v18 = vpop.f32.mrb[89].mxu0  ;;  %v22409_v22 = vld [vmem:[#allocation425_spill] sm:$0xff] }
 0x551   : > { %22406 = vst [vmem:[#allocation6_spill] sm:$0xff] %v19881_v18  ;;  %v9433_v35 = vadd.f32 %v9369_v32, %v8945_v42  ;;  %v5531_v1 = vadd.f32 %v5467_v21, %v5043_v60  ;;  %v6931_v33 = vmul.f32 %v22405_v61, %v22130_v56  ;;  %v7418_v52 = vmul.f32 %v22407_v63, %v22131_v14  ;;  %v19887_v47 = vpop.f32.mrb[90].mxu0  ;;  %v22411_v60 = vld [vmem:[#allocation420_spill] sm:$0xff]  ;;  %v22417_v18 = vld [vmem:[#allocation205_spill] sm:$0xff] }
 0x552   : > { %22408 = vst [vmem:[#allocation229_spill] sm:$0xff] %v19887_v47  ;;  %v9920_v23 = vadd.f32 %v9856_v45, %v9432_v2  ;;  %v6018_v51 = vadd.f32 %v5954_v17, %v5530_v34  ;;  %v7419_v7 = vmul.f32 %v22407_v63, %v22133_v6  ;;  %v7906_v54 = vmul.f32 %v22409_v22, %v22134_v24  ;;  %v19893_v53 = vpop.f32.mrb[91].mxu0  ;;  %v22412_v17 = vld [vmem:[#allocation459_spill] sm:$0xff] }
 0x553   : > { %22410 = vst [vmem:[#allocation45_spill] sm:$0xff] %v19893_v53  ;;  %v9921_v32 = vadd.f32 %v9857_v55, %v9433_v35  ;;  %v6019_v21 = vadd.f32 %v5955_v44, %v5531_v1  ;;  %v7907_v42 = vmul.f32 %v22409_v22, %v22136_v38  ;;  %v8394_v13 = vmul.f32 %v22411_v60, %v22137_v49  ;;  %v22413_v44 = vld [vmem:[#allocation449_spill] sm:$0xff] }
 0x554   : > { %v10408_v61 = vadd.f32 %v10344_v4, %v9920_v23  ;;  %v6506_v47 = vadd.f32 %v6442_v16, %v6018_v51  ;;  %v8395_v45 = vmul.f32 %v22411_v60, %v22139_v0  ;;  %v8882_v2 = vmul.f32 %v22412_v17, %v22140_v9  ;;  %v22414_v16 = vld [vmem:[#allocation496_spill] sm:$0xff] }
 0x555   : > { %v10409_v34 = vadd.f32 %v10345_v31, %v9921_v32  ;;  %v6507_v63 = vadd.f32 %v6443_v11, %v6019_v21  ;;  %v8883_v55 = vmul.f32 %v22412_v17, %v22142_v37  ;;  %v9370_v35 = vmul.f32 %v22413_v44, %v22143_v27  ;;  %v22415_v11 = vld [vmem:[#allocation488_spill] sm:$0xff] }
 0x556   : > { %v10896_v1 = vadd.f32 %v10832_v39, %v10408_v61  ;;  %v6994_v22 = vadd.f32 %v6930_v26, %v6506_v47  ;;  %v9371_v4 = vmul.f32 %v22413_v44, %v22145_v10  ;;  %v9858_v23 = vmul.f32 %v22414_v16, %v22146_v15  ;;  %v22416_v26 = vld [vmem:[#allocation538_spill] sm:$0xff]  ;;  %v11836_v61 = vpop.permute.xlu1 %11835 }
 0x557   : > { %v10897_v51 = vadd.f32 %v10833_v57, %v10409_v34  ;;  %v6995_v60 = vadd.f32 %v6931_v33, %v6507_v63  ;;  %v9859_v31 = vmul.f32 %v22414_v16, %v22148_v20  ;;  %v10346_v32 = vmul.f32 %v22415_v11, %v22189_v12  ;;  %v22418_v33 = vld [vmem:[#allocation384_spill] sm:$0xff]  ;;  %v22419_v34 = vld [vmem:[#allocation286_spill] sm:$0xff] }
 0x558   : > { %v11384_v21 = vadd.f32 %v11320_v25, %v10896_v1  ;;  %v7482_v17 = vadd.f32 %v7418_v52, %v6994_v22  ;;  %v10347_v39 = vmul.f32 %v22415_v11, %v22191_v40  ;;  %v10834_v47 = vmul.f32 %v22416_v26, %v22192_v3  ;;  %v22420_v52 = vld [vmem:[#allocation279_spill] sm:$0xff] }
 0x559   : > { %v11385_v44 = vadd.f32 %v11321_v5, %v10897_v51  ;;  %v7483_v53 = vadd.f32 %v7419_v7, %v6995_v60  ;;  %v10835_v57 = vmul.f32 %v22416_v26, %v22417_v18  ;;  %v4004_v63 = vmul.f32 %v22419_v34, %v22418_v33  ;;  %v22421_v7 = vld [vmem:[#allocation393_spill] sm:$0xff]  ;;  %v22422_v51 = vld [vmem:[#allocation318_spill] sm:$0xff]  ;;  %v22423_v18 = vld [vmem:[#allocation528_spill] sm:$0xff] }
 0x55a   : > { %v11908_v16 = vmul.f32 %v11836_v61, %v11384_v21  ;;  %v7970_v58 = vadd.f32 %v7906_v54, %v7482_v17  ;;  %v4005_v25 = vmul.f32 %v22419_v34, %v22175_v59  ;;  %v4492_v1 = vmul.f32 %v22420_v52, %v22373_v30 }
 0x55b   : > { %v11909_v22 = vmul.f32 %v11836_v61, %v11385_v44  ;;  %v7971_v11 = vadd.f32 %v7907_v42, %v7483_v53  ;;  %v4493_v5 = vmul.f32 %v22420_v52, %v22396_v8  ;;  %v4980_v60 = vmul.f32 %v22422_v51, %v22421_v7  ;;  %v22424_v52 = vld [vmem:[#allocation310_spill] sm:$0xff] }
 0x55c   : > { %v8458_v26 = vadd.f32 %v8394_v13, %v7970_v58  ;;  %v11322_v33 = vmul.f32 %v22423_v18, %v22399_v46  ;;  %v4556_v21 = vadd.f32 %v4492_v1, %v4004_v63  ;;  %v4981_v54 = vmul.f32 %v22422_v51, %v22118_v48  ;;  %v22425_v58 = vld [vmem:[#allocation350_spill] sm:$0xff] }
 0x55d   : > { %v11945_v17 = vpack.c.bf16 %v11909_v22, %v11908_v16  ;;  %v8459_v34 = vadd.f32 %v8395_v45, %v7971_v11  ;;  %v11323_v61 = vmul.f32 %v22423_v18, %v22160_v36  ;;  %v4557_v53 = vadd.f32 %v4493_v5, %v4005_v25 }
 0x55e   : > { %v8946_v42 = vadd.f32 %v8882_v2, %v8458_v26  ;;  %v5044_v44 = vadd.f32 %v4980_v60, %v4556_v21  ;;  %v5468_v8 = vmul.f32 %v22424_v52, %v22119_v19  ;;  %v5956_v13 = vmul.f32 %v22425_v58, %v22122_v29  ;;  %v22426_v2 = vld [vmem:[#allocation342_spill] sm:$0xff]  ;;  %v22427_v60 = vld [vmem:[#allocation389_spill] sm:$0xff] }
 0x55f   : > { %13750 = vmatmul.mubr.msk.bf16.gmra.mrb[116].mxu0 %vm1463_vm6, %v11945_v17  ;;  %v8947_v63 = vadd.f32 %v8883_v55, %v8459_v34  ;;  %v5045_v1 = vadd.f32 %v4981_v54, %v4557_v53  ;;  %v5469_v16 = vmul.f32 %v22424_v52, %v22121_v28  ;;  %v5957_v45 = vmul.f32 %v22425_v58, %v22124_v41  ;;  %v22428_v17 = vld [vmem:[#allocation377_spill] sm:$0xff] }
 0x560   : > { %v9434_v18 = vadd.f32 %v9370_v35, %v8946_v42  ;;  %v5532_v25 = vadd.f32 %v5468_v8, %v5044_v44  ;;  %v6444_v22 = vmul.f32 %v22426_v2, %v22125_v50  ;;  %v6445_v11 = vmul.f32 %v22426_v2, %v22127_v62  ;;  %v22429_v42 = vld [vmem:[#allocation428_spill] sm:$0xff] }
 0x561   : > { %v9435_v5 = vadd.f32 %v9371_v4, %v8947_v63  ;;  %v5533_v51 = vadd.f32 %v5469_v16, %v5045_v1  ;;  %v6932_v55 = vmul.f32 %v22427_v60, %v22128_v43  ;;  %v6933_v26 = vmul.f32 %v22427_v60, %v22130_v56  ;;  %v22430_v63 = vld [vmem:[#allocation421_spill] sm:$0xff] }
 0x562   : > { %v9922_v21 = vadd.f32 %v9858_v23, %v9434_v18  ;;  %v6020_v54 = vadd.f32 %v5956_v13, %v5532_v25  ;;  %v7420_v35 = vmul.f32 %v22428_v17, %v22131_v14  ;;  %v7421_v8 = vmul.f32 %v22428_v17, %v22133_v6  ;;  %v22431_v18 = vld [vmem:[#allocation462_spill] sm:$0xff] }
 0x563   : > { %v9923_v34 = vadd.f32 %v9859_v31, %v9435_v5  ;;  %v6021_v53 = vadd.f32 %v5957_v45, %v5533_v51  ;;  %v7908_v4 = vmul.f32 %v22429_v42, %v22134_v24  ;;  %v7909_v44 = vmul.f32 %v22429_v42, %v22136_v38  ;;  %v22432_v5 = vld [vmem:[#allocation452_spill] sm:$0xff] }
 0x564   : > { %v10410_v52 = vadd.f32 %v10346_v32, %v9922_v21  ;;  %v6508_v58 = vadd.f32 %v6444_v22, %v6020_v54  ;;  %v8396_v23 = vmul.f32 %v22430_v63, %v22137_v49  ;;  %v8397_v13 = vmul.f32 %v22430_v63, %v22139_v0  ;;  %v22433_v21 = vld [vmem:[#allocation499_spill] sm:$0xff] }
 0x565   : > { %v10411_v1 = vadd.f32 %v10347_v39, %v9923_v34  ;;  %v6509_v16 = vadd.f32 %v6445_v11, %v6021_v53  ;;  %v8884_v31 = vmul.f32 %v22431_v18, %v22140_v9  ;;  %v8885_v45 = vmul.f32 %v22431_v18, %v22142_v37  ;;  %v22434_v34 = vld [vmem:[#allocation489_spill] sm:$0xff]  ;;  %v11840_v53 = vpop.permute.xlu0 %11839  ;;  %v22437_v18 = vld [vmem:[#allocation384_spill] sm:$0xff] }
 0x566   : > { %v10898_v25 = vadd.f32 %v10834_v47, %v10410_v52  ;;  %v6996_v2 = vadd.f32 %v6932_v55, %v6508_v58  ;;  %v9372_v32 = vmul.f32 %v22432_v5, %v22143_v27  ;;  %v9373_v22 = vmul.f32 %v22432_v5, %v22145_v10  ;;  %v22436_v58 = vld [vmem:[#allocation205_spill] sm:$0xff] }
 0x567   : > { %v10899_v51 = vadd.f32 %v10835_v57, %v10411_v1  ;;  %v6997_v60 = vadd.f32 %v6933_v26, %v6509_v16  ;;  %v9860_v39 = vmul.f32 %v22433_v21, %v22146_v15  ;;  %v9861_v11 = vmul.f32 %v22433_v21, %v22148_v20  ;;  %v22435_v57 = vld [vmem:[#allocation541_spill] sm:$0xff]  ;;  %v22439_v21 = vld [vmem:[#allocation280_spill] sm:$0xff] }
 0x568   : > { %v11386_v54 = vadd.f32 %v11322_v33, %v10898_v25  ;;  %v7484_v17 = vadd.f32 %v7420_v35, %v6996_v2  ;;  %v10348_v47 = vmul.f32 %v22434_v34, %v22189_v12  ;;  %v10349_v55 = vmul.f32 %v22434_v34, %v22191_v40  ;;  %v22438_v33 = vld [vmem:[#allocation287_spill] sm:$0xff]  ;;  %v22441_v34 = vld [vmem:[#allocation532_spill] sm:$0xff] }
 0x569   : > { %v11387_v42 = vadd.f32 %v11323_v61, %v10899_v51  ;;  %v7485_v52 = vadd.f32 %v7421_v8, %v6997_v60  ;;  %v10836_v26 = vmul.f32 %v22435_v57, %v22192_v3  ;;  %v10837_v63 = vmul.f32 %v22435_v57, %v22436_v58  ;;  %v22440_v8 = vld [vmem:[#allocation387_spill] sm:$0xff] }
 0x56a   : > { %v11910_v1 = vmul.f32 %v11840_v53, %v11386_v54  ;;  %v7972_v16 = vadd.f32 %v7908_v4, %v7484_v17  ;;  %v4006_v35 = vmul.f32 %v22438_v33, %v22437_v18  ;;  %v4007_v25 = vmul.f32 %v22438_v33, %v22175_v59  ;;  %v22442_v4 = vld [vmem:[#allocation320_spill] sm:$0xff] }
 0x56b   : > { %v11911_v2 = vmul.f32 %v11840_v53, %v11387_v42  ;;  %v7973_v5 = vadd.f32 %v7909_v44, %v7485_v52  ;;  %v4494_v61 = vmul.f32 %v22439_v21, %v22373_v30  ;;  %v4495_v51 = vmul.f32 %v22439_v21, %v22440_v8  ;;  %v22443_v52 = vld [vmem:[#allocation311_spill] sm:$0xff] }
 0x56c   : > { %v8460_v60 = vadd.f32 %v8396_v23, %v7972_v16  ;;  %v11324_v57 = vmul.f32 %v22441_v34, %v22399_v46  ;;  %v4982_v54 = vmul.f32 %v22442_v4, %v22421_v7  ;;  %v4983_v17 = vmul.f32 %v22442_v4, %v22118_v48  ;;  %v22444_v16 = vld [vmem:[#allocation352_spill] sm:$0xff] }
 0x56d   : > { %v11946_v18 = vpack.c.bf16 %v11911_v2, %v11910_v1  ;;  %v8461_v33 = vadd.f32 %v8397_v13, %v7973_v5  ;;  %v4558_v53 = vadd.f32 %v4494_v61, %v4006_v35  ;;  %v4559_v44 = vadd.f32 %v4495_v51, %v4007_v25  ;;  %v22447_v2 = vld [vmem:[#allocation344_spill] sm:$0xff] }
 0x56e   : > { %v8948_v42 = vadd.f32 %v8884_v31, %v8460_v60  ;;  %v5470_v30 = vmul.f32 %v22443_v52, %v22119_v19  ;;  %v5471_v23 = vmul.f32 %v22443_v52, %v22121_v28  ;;  %v5958_v21 = vmul.f32 %v22444_v16, %v22122_v29  ;;  %v20006_v8 = vpop.f32.mrb[92].mxu0 }
 0x56f   : > { %22445 = vst [vmem:[#allocation35_spill] sm:$0xff] %v20006_v8  ;;  %13753 = vmatprep.mubr.msk.bf16.mxu0 %vm1463_vm6, %v11946_v18  ;;  %v8949_v7 = vadd.f32 %v8885_v45, %v8461_v33  ;;  %v5046_v4 = vadd.f32 %v4982_v54, %v4558_v53  ;;  %v5047_v1 = vadd.f32 %v4983_v17, %v4559_v44  ;;  %v20011_v31 = vpop.f32.mrb[93].mxu0  ;;  %v22449_v54 = vld [vmem:[#allocation392_spill] sm:$0xff]  ;;  %v22451_v53 = vld [vmem:[#allocation378_spill] sm:$0xff] }
 0x570   : > { %v5959_v13 = vmul.f32 %v22444_v16, %v22124_v41  ;;  %22446 = vst [vmem:[#allocation75_spill] sm:$0xff] %v20011_v31  ;;  %v9436_v35 = vadd.f32 %v9372_v32, %v8948_v42  ;;  %v11325_v25 = vmul.f32 %v22441_v34, %v22160_v36  ;;  %v6446_v5 = vmul.f32 %v22447_v2, %v22125_v50  ;;  %v20019_v51 = vpop.f32.mrb[94].mxu0  ;;  %v22461_v31 = vld [vmem:[#allocation383_spill] sm:$0xff] }
 0x571   : > { %v6447_v61 = vmul.f32 %v22447_v2, %v22127_v62  ;;  %22448 = vst [vmem:[#allocation68_spill] sm:$0xff] %v20019_v51  ;;  %v9437_v45 = vadd.f32 %v9373_v22, %v8949_v7  ;;  %v5534_v18 = vadd.f32 %v5470_v30, %v5046_v4  ;;  %v5535_v60 = vadd.f32 %v5471_v23, %v5047_v1  ;;  %v20023_v33 = vpop.f32.mrb[95].mxu0  ;;  %v22452_v30 = vld [vmem:[#allocation429_spill] sm:$0xff] }
 0x572   : > { %v6934_v17 = vmul.f32 %v22449_v54, %v22128_v43  ;;  %22450 = vst [vmem:[#allocation107_spill] sm:$0xff] %v20023_v33  ;;  %v9924_v32 = vadd.f32 %v9860_v39, %v9436_v35  ;;  %v6935_v34 = vmul.f32 %v22449_v54, %v22130_v56  ;;  %v7422_v44 = vmul.f32 %v22451_v53, %v22131_v14  ;;  %v22453_v39 = vld [vmem:[#allocation422_spill] sm:$0xff] }
 0x573   : > { %v7423_v42 = vmul.f32 %v22451_v53, %v22133_v6  ;;  %v9925_v52 = vadd.f32 %v9861_v11, %v9437_v45  ;;  %v6022_v16 = vadd.f32 %v5958_v21, %v5534_v18  ;;  %v6023_v7 = vadd.f32 %v5959_v13, %v5535_v60  ;;  %v22454_v11 = vld [vmem:[#allocation466_spill] sm:$0xff] }
 0x574   : > { %v7910_v22 = vmul.f32 %v22452_v30, %v22134_v24  ;;  %v10412_v23 = vadd.f32 %v10348_v47, %v9924_v32  ;;  %v7911_v4 = vmul.f32 %v22452_v30, %v22136_v38  ;;  %v8398_v1 = vmul.f32 %v22453_v39, %v22137_v49  ;;  %v22455_v47 = vld [vmem:[#allocation453_spill] sm:$0xff] }
 0x575   : > { %v8399_v35 = vmul.f32 %v22453_v39, %v22139_v0  ;;  %v10413_v2 = vadd.f32 %v10349_v55, %v9925_v52  ;;  %v6510_v54 = vadd.f32 %v6446_v5, %v6022_v16  ;;  %v6511_v33 = vadd.f32 %v6447_v61, %v6023_v7  ;;  %v22456_v55 = vld [vmem:[#allocation501_spill] sm:$0xff] }
 0x576   : > { %v8886_v21 = vmul.f32 %v22454_v11, %v22140_v9  ;;  %v10900_v13 = vadd.f32 %v10836_v26, %v10412_v23  ;;  %v8887_v45 = vmul.f32 %v22454_v11, %v22142_v37  ;;  %v9374_v18 = vmul.f32 %v22455_v47, %v22143_v27  ;;  %v22457_v26 = vld [vmem:[#allocation491_spill] sm:$0xff]  ;;  %v11844_v23 = vpop.permute.xlu1 %11843 }
 0x577   : > { %v9375_v60 = vmul.f32 %v22455_v47, %v22145_v10  ;;  %v10901_v32 = vadd.f32 %v10837_v63, %v10413_v2  ;;  %v6998_v53 = vadd.f32 %v6934_v17, %v6510_v54  ;;  %v6999_v30 = vadd.f32 %v6935_v34, %v6511_v33  ;;  %v22458_v63 = vld [vmem:[#allocation542_spill] sm:$0xff]  ;;  %v22459_v34 = vld [vmem:[#allocation384_spill] sm:$0xff]  ;;  %v22460_v2 = vld [vmem:[#allocation289_spill] sm:$0xff] }
 0x578   : > { %v9862_v5 = vmul.f32 %v22456_v55, %v22146_v15  ;;  %v11388_v61 = vadd.f32 %v11324_v57, %v10900_v13  ;;  %v9863_v52 = vmul.f32 %v22456_v55, %v22148_v20  ;;  %v10350_v16 = vmul.f32 %v22457_v26, %v22189_v12 }
 0x579   : > { %v10351_v7 = vmul.f32 %v22457_v26, %v22191_v40  ;;  %v11389_v39 = vadd.f32 %v11325_v25, %v10901_v32  ;;  %v7486_v11 = vadd.f32 %v7422_v44, %v6998_v53  ;;  %v7487_v47 = vadd.f32 %v7423_v42, %v6999_v30  ;;  %v22462_v25 = vld [vmem:[#allocation281_spill] sm:$0xff]  ;;  %v22464_v53 = vld [vmem:[#allocation387_spill] sm:$0xff] }
 0x57a   : > { %v10838_v17 = vmul.f32 %v22458_v63, %v22192_v3  ;;  %v11912_v33 = vmul.f32 %v11844_v23, %v11388_v61  ;;  %v10839_v57 = vmul.f32 %v22458_v63, %v22436_v58  ;;  %v4008_v54 = vmul.f32 %v22460_v2, %v22459_v34  ;;  %v22463_v42 = vld [vmem:[#allocation533_spill] sm:$0xff] }
 0x57b   : > { %v4009_v13 = vmul.f32 %v22460_v2, %v22175_v59  ;;  %v11913_v55 = vmul.f32 %v11844_v23, %v11389_v39  ;;  %v7974_v51 = vadd.f32 %v7910_v22, %v7486_v11  ;;  %v7975_v26 = vadd.f32 %v7911_v4, %v7487_v47  ;;  %v22465_v61 = vld [vmem:[#allocation393_spill] sm:$0xff] }
 0x57c   : > { %v4496_v44 = vmul.f32 %v22462_v25, %v22461_v31  ;;  %v11326_v32 = vmul.f32 %v22463_v42, %v22399_v46  ;;  %v4497_v30 = vmul.f32 %v22462_v25, %v22464_v53  ;;  %v22466_v63 = vld [vmem:[#allocation321_spill] sm:$0xff]  ;;  %v11327_v4 = vmul.f32 %v22463_v42, %v22160_v36 }
 0x57d   : > { %v4984_v8 = vmul.f32 %v22466_v63, %v22465_v61  ;;  %v4985_v34 = vmul.f32 %v22466_v63, %v22118_v48  ;;  %v11947_v58 = vpack.c.bf16 %v11913_v55, %v11912_v33  ;;  %v8462_v59 = vadd.f32 %v8398_v1, %v7974_v51  ;;  %v22467_v39 = vld [vmem:[#allocation313_spill] sm:$0xff] }
 0x57e   : > { %v8463_v23 = vadd.f32 %v8399_v35, %v7975_v26  ;;  %v4560_v22 = vadd.f32 %v4496_v44, %v4008_v54  ;;  %v4561_v31 = vadd.f32 %v4497_v30, %v4009_v13  ;;  %v5472_v11 = vmul.f32 %v22467_v39, %v22119_v19  ;;  %v22468_v48 = vld [vmem:[#allocation353_spill] sm:$0xff]  ;;  %v22473_v30 = vld [vmem:[#allocation423_spill] sm:$0xff] }
 0x57f   : > { %v5473_v47 = vmul.f32 %v22467_v39, %v22121_v28  ;;  %13754 = vmatmul.mubr.msk.bf16.gmra.mrb[120].mxu0 %vm1463_vm6, %v11947_v58  ;;  %v8950_v2 = vadd.f32 %v8886_v21, %v8462_v59  ;;  %v5960_v51 = vmul.f32 %v22468_v48, %v22122_v29  ;;  %v5961_v35 = vmul.f32 %v22468_v48, %v22124_v41  ;;  %v22469_v33 = vld [vmem:[#allocation345_spill] sm:$0xff]  ;;  %v22470_v58 = vld [vmem:[#allocation396_spill] sm:$0xff]  ;;  %v22475_v59 = vld [vmem:[#allocation455_spill] sm:$0xff] }
 0x580   : > { %v8951_v25 = vadd.f32 %v8887_v45, %v8463_v23  ;;  %v5048_v53 = vadd.f32 %v4984_v8, %v4560_v22  ;;  %v5049_v1 = vadd.f32 %v4985_v34, %v4561_v31  ;;  %v6448_v54 = vmul.f32 %v22469_v33, %v22125_v50  ;;  %v22471_v45 = vld [vmem:[#allocation382_spill] sm:$0xff] }
 0x581   : > { %v6449_v19 = vmul.f32 %v22469_v33, %v22127_v62  ;;  %v9438_v13 = vadd.f32 %v9374_v18, %v8950_v2  ;;  %v6936_v21 = vmul.f32 %v22470_v58, %v22128_v43  ;;  %v6937_v29 = vmul.f32 %v22470_v58, %v22130_v56  ;;  %v22472_v18 = vld [vmem:[#allocation431_spill] sm:$0xff]  ;;  %v22479_v2 = vld [vmem:[#allocation205_spill] sm:$0xff] }
 0x582   : > { %v9439_v28 = vadd.f32 %v9375_v60, %v8951_v25  ;;  %v5536_v55 = vadd.f32 %v5472_v11, %v5048_v53  ;;  %v5537_v8 = vadd.f32 %v5473_v47, %v5049_v1  ;;  %v7424_v26 = vmul.f32 %v22471_v45, %v22131_v14  ;;  %v22478_v11 = vld [vmem:[#allocation544_spill] sm:$0xff]  ;;  %v22481_v25 = vld [vmem:[#allocation197_spill] sm:$0xff] }
 0x583   : > { %v7425_v41 = vmul.f32 %v22471_v45, %v22133_v6  ;;  %v9926_v50 = vadd.f32 %v9862_v5, %v9438_v13  ;;  %v7912_v60 = vmul.f32 %v22472_v18, %v22134_v24  ;;  %v7913_v43 = vmul.f32 %v22472_v18, %v22136_v38  ;;  %v22474_v5 = vld [vmem:[#allocation467_spill] sm:$0xff]  ;;  %v22482_v1 = vld [vmem:[#allocation237_spill] sm:$0xff]  ;;  %v22484_v13 = vld [vmem:[#allocation460_spill] sm:$0xff] }
 0x584   : > { %v9927_v44 = vadd.f32 %v9863_v52, %v9439_v28  ;;  %v6024_v62 = vadd.f32 %v5960_v51, %v5536_v55  ;;  %v6025_v42 = vadd.f32 %v5961_v35, %v5537_v8  ;;  %v8400_v56 = vmul.f32 %v22473_v30, %v22137_v49  ;;  %v22485_v55 = vld [vmem:[#allocation463_spill] sm:$0xff]  ;;  %v22489_v18 = vld [vmem:[#allocation5_spill] sm:$0xff] }
 0x585   : > { %v8401_v14 = vmul.f32 %v22473_v30, %v22139_v0  ;;  %v10414_v61 = vadd.f32 %v10350_v16, %v9926_v50  ;;  %v8888_v52 = vmul.f32 %v22474_v5, %v22140_v9  ;;  %v8889_v24 = vmul.f32 %v22474_v5, %v22142_v37  ;;  %v20122_v9 = vld [vmem:[%s20402_s13] ss:$0 sm:$0xff] }
 0x586   : > { %v10415_v63 = vadd.f32 %v10351_v7, %v9927_v44  ;;  %v6512_v6 = vadd.f32 %v6448_v54, %v6024_v62  ;;  %v6513_v34 = vadd.f32 %v6449_v19, %v6025_v42  ;;  %v9376_v23 = vmul.f32 %v22475_v59, %v22143_v27  ;;  %v22476_v7 = vld [vmem:[#allocation502_spill] sm:$0xff]  ;;  %v22483_v54 = vld [vmem:[#allocation457_spill] sm:$0xff]  ;;  %v22490_v42 = vld [vmem:[#allocation48_spill] sm:$0xff] }
 0x587   : > { %v20112_v38 = vmul.f32 %v22475_v59, %v22145_v10  ;;  %v10902_v49 = vadd.f32 %v10838_v17, %v10414_v61  ;;  %v20117_v22 = vmul.f32 %v22476_v7, %v22146_v15  ;;  %v20126_v27 = vmul.f32 %v22476_v7, %v22148_v20  ;;  %v22477_v10 = vld [vmem:[#allocation492_spill] sm:$0xff]  ;;  %v11848_v20 = vpop.permute.xlu0 %11847  ;;  %v22488_v44 = vld [vmem:[#allocation13_spill] sm:$0xff] }
 0x588   : > { %v10903_v0 = vadd.f32 %v10839_v57, %v10415_v63  ;;  %v7000_v16 = vadd.f32 %v6936_v21, %v6512_v6  ;;  %v7001_v37 = vadd.f32 %v6937_v29, %v6513_v34  ;;  %v20130_v31 = vmul.f32 %v22477_v10, %v22189_v12  ;;  %v22486_v29 = vld [vmem:[#allocation465_spill] sm:$0xff]  ;;  %v22492_v61 = vld [vmem:[#allocation80_spill] sm:$0xff]  ;;  %v22493_v6 = vld [vmem:[#allocation71_spill] sm:$0xff] }
 0x589   : > { %v20134_v17 = vmul.f32 %v22477_v10, %v22191_v40  ;;  %v11390_v15 = vadd.f32 %v11326_v32, %v10902_v49  ;;  %v20138_v47 = vmul.f32 %v22478_v11, %v22192_v3  ;;  %v20147_v40 = vmul.f32 %v22478_v11, %v22479_v2  ;;  %v22480_v32 = vld [vmem:[#allocation503_spill] sm:$0xff]  ;;  %v22496_v7 = vld [vmem:[#allocation141_spill] sm:$0xff] }
 0x58a   : > { %v11391_v57 = vadd.f32 %v11327_v4, %v10903_v0  ;;  %v7488_v39 = vadd.f32 %v7424_v26, %v7000_v16  ;;  %v7489_v12 = vadd.f32 %v7425_v41, %v7001_v37  ;;  %v12657_v4 = vadd.f32 %v22480_v32, %v20122_v9  ;;  %v22487_v26 = vld [vmem:[#allocation228_spill] sm:$0xff]  ;;  %v22495_v0 = vld [vmem:[#allocation101_spill] sm:$0xff]  ;;  %v22500_v32 = vld [vmem:[#allocation534_spill] sm:$0xff] }
 0x58b   : > { %v12655_v3 = vadd.f32 %v20122_v9, %v22481_v25  ;;  %v11914_v53 = vmul.f32 %v11848_v20, %v11390_v15  ;;  %v12658_v35 = vadd.f32 %v22482_v1, %v20122_v9  ;;  %v12656_v19 = vadd.f32 %v20122_v9, %v22483_v54  ;;  %v22497_v15 = vld [vmem:[#allocation133_spill] sm:$0xff]  ;;  %v22501_v25 = vld [vmem:[#allocation208_spill] sm:$0xff] }
 0x58c   : > { %v11915_v48 = vmul.f32 %v11848_v20, %v11391_v57  ;;  %v7976_v51 = vadd.f32 %v7912_v60, %v7488_v39  ;;  %v7977_v33 = vadd.f32 %v7913_v43, %v7489_v12  ;;  %12721 = vst.msk [vmem:[%s20143_s25 + $0x10] sm:$0xff] %vm1463_vm6, %v12657_v4  ;;  %v12661_v28 = vadd.f32 %v22484_v13, %v20122_v9  ;;  %v22498_v39 = vld [vmem:[#allocation176_spill] sm:$0xff] }
 0x58d   : > { %12719 = vst.msk [vmem:[%s20143_s25] sm:$0xff] %vm1463_vm6, %v12655_v3  ;;  %v12659_v58 = vadd.f32 %v20122_v9, %v22485_v55  ;;  %12722 = vst.msk [vmem:[%s20143_s25 + $0x18] sm:$0xff] %vm1463_vm6, %v12658_v35  ;;  %v12662_v45 = vadd.f32 %v22486_v29, %v20122_v9  ;;  %v12660_v41 = vadd.f32 %v20122_v9, %v22487_v26  ;;  %v22499_v20 = vld [vmem:[#allocation168_spill] sm:$0xff] }
 0x58e   : > { %v11948_v21 = vpack.c.bf16 %v11915_v48, %v11914_v53  ;;  %v8464_v8 = vadd.f32 %v8400_v56, %v7976_v51  ;;  %v8465_v50 = vadd.f32 %v8401_v14, %v7977_v33  ;;  %12720 = vst.msk [vmem:[%s20143_s25 + $0x8] sm:$0xff] %vm1463_vm6, %v12656_v19  ;;  %12725 = vst.msk [vmem:[%s20143_s25 + $0x30] sm:$0xff] %vm1463_vm6, %v12661_v28  ;;  %v22491_v56 = vld [vmem:[#allocation40_spill] sm:$0xff]  ;;  %v22502_v53 = vld [vmem:[#allocation199_spill] sm:$0xff] }
 0x58f   : > { %12723 = vst.msk [vmem:[%s20143_s25 + $0x20] sm:$0xff] %vm1463_vm6, %v12659_v58  ;;  %v12665_v62 = vadd.f32 %v22488_v44, %v20122_v9  ;;  %v12663_v60 = vadd.f32 %v20122_v9, %v22489_v18  ;;  %v12666_v43 = vadd.f32 %v22490_v42, %v20122_v9  ;;  %12726 = vst.msk [vmem:[%s20143_s25 + $0x38] sm:$0xff] %vm1463_vm6, %v12662_v45  ;;  %v13731_v34 = vpop.f32.mrb[96].mxu0  ;;  %v22503_v1 = vld [vmem:[#allocation240_spill] sm:$0xff]  ;;  %v22504_v33 = vld [vmem:[#allocation14_spill] sm:$0xff] }
 0x590   : > { %13757 = vmatprep.mubr.msk.bf16.mxu0 %vm1463_vm6, %v11948_v21  ;;  %v8952_v30 = vadd.f32 %v8888_v52, %v8464_v8  ;;  %12724 = vst.msk [vmem:[%s20143_s25 + $0x28] sm:$0xff] %vm1463_vm6, %v12660_v41  ;;  %v12664_v14 = vadd.f32 %v20122_v9, %v22491_v56  ;;  %v12669_v63 = vadd.f32 %v22492_v61, %v20122_v9  ;;  %v22494_v52 = vld [vmem:[#allocation112_spill] sm:$0xff]  ;;  %v12521_v10 = vpop.f32.mrb[97].mxu0  ;;  %v22505_v19 = vld [vmem:[#allocation6_spill] sm:$0xff]  ;;  %v22506_v28 = vld [vmem:[#allocation229_spill] sm:$0xff] }
 0x591   : > { %v12667_v5 = vadd.f32 %v20122_v9, %v22493_v6  ;;  %v8953_v59 = vadd.f32 %v8889_v24, %v8465_v50  ;;  %12729 = vst.msk [vmem:[%s20143_s25 + $0x50] sm:$0xff] %vm1463_vm6, %v12665_v62  ;;  %12727 = vst.msk [vmem:[%s20143_s25 + $0x40] sm:$0xff] %vm1463_vm6, %v12663_v60  ;;  %v12670_v49 = vadd.f32 %v22494_v52, %v20122_v9  ;;  %v13732_v2 = vpop.f32.mrb[98].mxu0  ;;  %v22507_v58 = vld [vmem:[#allocation45_spill] sm:$0xff]  ;;  %v22508_v8 = vld [vmem:[#allocation35_spill] sm:$0xff] }
 0x592   : > { %12730 = vst.msk [vmem:[%s20143_s25 + $0x58] sm:$0xff] %vm1463_vm6, %v12666_v43  ;;  %v12668_v16 = vadd.f32 %v20122_v9, %v22495_v0  ;;  %v12673_v37 = vadd.f32 %v22496_v7, %v20122_v9  ;;  %v9440_v24 = vadd.f32 %v9376_v23, %v8952_v30  ;;  %12728 = vst.msk [vmem:[%s20143_s25 + $0x48] sm:$0xff] %vm1463_vm6, %v12664_v14  ;;  %v12524_v51 = vpop.f32.mrb[99].mxu0  ;;  %v22510_v41 = vld [vmem:[#allocation68_spill] sm:$0xff]  ;;  %v22511_v44 = vld [vmem:[#allocation107_spill] sm:$0xff] }
 0x593   : > { %12733 = vst.msk [vmem:[%s20143_s25 + $0x70] sm:$0xff] %vm1463_vm6, %v12669_v63  ;;  %12731 = vst.msk [vmem:[%s20143_s25 + $0x60] sm:$0xff] %vm1463_vm6, %v12667_v5  ;;  %v12671_v57 = vadd.f32 %v20122_v9, %v22497_v15  ;;  %v12674_v11 = vadd.f32 %v22498_v39, %v20122_v9  ;;  %v12672_v12 = vadd.f32 %v20122_v9, %v22499_v20  ;;  %v22512_v30 = vld [vmem:[#allocation536_spill] sm:$0xff]  ;;  %v11852_v63 = vpop.permute.xlu1 %11851 }
 0x594   : > { %v9441_v23 = vadd.f32 %v20112_v38, %v8953_v59  ;;  %12734 = vst.msk [vmem:[%s20143_s25 + $0x78] sm:$0xff] %vm1463_vm6, %v12670_v49  ;;  %12732 = vst.msk [vmem:[%s20143_s25 + $0x68] sm:$0xff] %vm1463_vm6, %v12668_v16  ;;  %v12677_v4 = vadd.f32 %v22500_v32, %v20122_v9  ;;  %v12675_v3 = vadd.f32 %v20122_v9, %v22501_v25 }
 0x595   : > { %12737 = vst.msk [vmem:[%s20143_s25 + $0x90] sm:$0xff] %vm1463_vm6, %v12673_v37  ;;  %v12678_v48 = vadd.f32 %v22502_v53, %v20122_v9  ;;  %v9928_v38 = vadd.f32 %v20117_v22, %v9440_v24  ;;  %12735 = vst.msk [vmem:[%s20143_s25 + $0x80] sm:$0xff] %vm1463_vm6, %v12671_v57  ;;  %v12676_v35 = vadd.f32 %v20122_v9, %v22503_v1 }
 0x596   : > { %12738 = vst.msk [vmem:[%s20143_s25 + $0x98] sm:$0xff] %vm1463_vm6, %v12674_v11  ;;  %12736 = vst.msk [vmem:[%s20143_s25 + $0x88] sm:$0xff] %vm1463_vm6, %v12672_v12  ;;  %v12681_v54 = vadd.f32 %v22504_v33, %v20122_v9  ;;  %v12679_v13 = vadd.f32 %v20122_v9, %v22505_v19  ;;  %v9929_v22 = vadd.f32 %v20126_v27, %v9441_v23  ;;  %v22509_v27 = vld [vmem:[#allocation75_spill] sm:$0xff] }
 0x597   : > { %12741 = vst.msk [vmem:[%s20143_s25 + $0xb0] sm:$0xff] %vm1463_vm6, %v12677_v4  ;;  %12739 = vst.msk [vmem:[%s20143_s25 + $0xa0] sm:$0xff] %vm1463_vm6, %v12675_v3  ;;  %v12682_v55 = vadd.f32 %v22506_v28, %v20122_v9  ;;  %v12680_v21 = vadd.f32 %v20122_v9, %v22507_v58  ;;  %v12685_v29 = vadd.f32 %v22508_v8, %v20122_v9 }
 0x598   : > { %12742 = vst.msk [vmem:[%s20143_s25 + $0xb8] sm:$0xff] %vm1463_vm6, %v12678_v48  ;;  %v10416_v45 = vadd.f32 %v20130_v31, %v9928_v38  ;;  %12740 = vst.msk [vmem:[%s20143_s25 + $0xa8] sm:$0xff] %vm1463_vm6, %v12676_v35  ;;  %v12683_v26 = vadd.f32 %v20122_v9, %v22509_v27  ;;  %v12686_v50 = vadd.f32 %v22510_v41, %v20122_v9 }
 0x599   : > { %12745 = vst.msk [vmem:[%s20143_s25 + $0xd0] sm:$0xff] %vm1463_vm6, %v12681_v54  ;;  %12743 = vst.msk [vmem:[%s20143_s25 + $0xc0] sm:$0xff] %vm1463_vm6, %v12679_v13  ;;  %v12684_v62 = vadd.f32 %v20122_v9, %v22511_v44  ;;  %v10417_v31 = vadd.f32 %v20134_v17, %v9929_v22  ;;  %v12689_v18 = vadd.f32 %v13731_v34, %v20122_v9 }
 0x59a   : > { %12746 = vst.msk [vmem:[%s20143_s25 + $0xd8] sm:$0xff] %vm1463_vm6, %v12682_v55  ;;  %12744 = vst.msk [vmem:[%s20143_s25 + $0xc8] sm:$0xff] %vm1463_vm6, %v12680_v21  ;;  %v12687_v60 = vadd.f32 %v20122_v9, %v12521_v10  ;;  %v12690_v42 = vadd.f32 %v13732_v2, %v20122_v9  ;;  %v10904_v43 = vadd.f32 %v20138_v47, %v10416_v45 }
 0x59b   : > { %12749 = vst.msk [vmem:[%s20143_s25 + $0xf0] sm:$0xff] %vm1463_vm6, %v12685_v29  ;;  %v11328_v17 = vmul.f32 %v22512_v30, %v22399_v46  ;;  %12747 = vst.msk [vmem:[%s20143_s25 + $0xe0] sm:$0xff] %vm1463_vm6, %v12683_v26  ;;  %v12688_v56 = vadd.f32 %v20122_v9, %v12524_v51  ;;  %v10905_v14 = vadd.f32 %v20147_v40, %v10417_v31 }
 0x59c   : > { %12750 = vst.msk [vmem:[%s20143_s25 + $0xf8] sm:$0xff] %vm1463_vm6, %v12686_v50  ;;  %12748 = vst.msk [vmem:[%s20143_s25 + $0xe8] sm:$0xff] %vm1463_vm6, %v12684_v62  ;;  %v11329_v61 = vmul.f32 %v22512_v30, %v22160_v36 }
 0x59d   : > { %12753 = vst.msk [vmem:[%s20143_s25 + $0x110] sm:$0xff] %vm1463_vm6, %v12689_v18  ;;  %12751 = vst.msk [vmem:[%s20143_s25 + $0x100] sm:$0xff] %vm1463_vm6, %v12687_v60  ;;  %v11392_v46 = vadd.f32 %v11328_v17, %v10904_v43 }
 0x59e   : > { %12754 = vst.msk [vmem:[%s20143_s25 + $0x118] sm:$0xff] %vm1463_vm6, %v12690_v42  ;;  %12752 = vst.msk [vmem:[%s20143_s25 + $0x108] sm:$0xff] %vm1463_vm6, %v12688_v56  ;;  %v11393_v47 = vadd.f32 %v11329_v61, %v10905_v14 }
 0x59f   : > { %v11916_v6 = vmul.f32 %v11852_v63, %v11392_v46 }
 0x5a0   : > { %v11917_v40 = vmul.f32 %v11852_v63, %v11393_v47 }
 0x5a2   : > { %v11949_v5 = vpack.c.bf16 %v11917_v40, %v11916_v6 }
 0x5a4   : > { %13758 = vmatmul.mubr.msk.bf16.gmra.mrb[124].mxu0 %vm1463_vm6, %v11949_v5 }
 0x5b0   : > { %v13735_v36 = vpop.f32.mrb[100].mxu0 }
 0x5b1   : > { %v12693_v34 = vadd.f32 %v13735_v36, %v20122_v9  ;;  %v12537_v59 = vpop.f32.mrb[101].mxu0 }
 0x5b2   : > { %v12691_v52 = vadd.f32 %v20122_v9, %v12537_v59  ;;  %v13736_v49 = vpop.f32.mrb[102].mxu0 }
 0x5b3   : > { %12757 = vst.msk [vmem:[%s20143_s25 + $0x130] sm:$0xff] %vm1463_vm6, %v12693_v34  ;;  %v12694_v0 = vadd.f32 %v13736_v49, %v20122_v9  ;;  %v12540_v16 = vpop.f32.mrb[103].mxu0 }
 0x5b4   : > { %12755 = vst.msk [vmem:[%s20143_s25 + $0x120] sm:$0xff] %vm1463_vm6, %v12691_v52  ;;  %v12692_v7 = vadd.f32 %v20122_v9, %v12540_v16 }
 0x5b5   : > { %12758 = vst.msk [vmem:[%s20143_s25 + $0x138] sm:$0xff] %vm1463_vm6, %v12694_v0 }
 0x5b6   : > { %12756 = vst.msk [vmem:[%s20143_s25 + $0x128] sm:$0xff] %vm1463_vm6, %v12692_v7 }
 0x5d0   : > { %v13739_v37 = vpop.f32.mrb[104].mxu0 }
 0x5d1   : > { %v12697_v10 = vadd.f32 %v13739_v37, %v20122_v9  ;;  %v12553_v24 = vpop.f32.mrb[105].mxu0 }
 0x5d2   : > { %v12695_v15 = vadd.f32 %v20122_v9, %v12553_v24  ;;  %v13740_v57 = vpop.f32.mrb[106].mxu0 }
 0x5d3   : > { %12761 = vst.msk [vmem:[%s20143_s25 + $0x150] sm:$0xff] %vm1463_vm6, %v12697_v10  ;;  %v12698_v39 = vadd.f32 %v13740_v57, %v20122_v9  ;;  %v12556_v11 = vpop.f32.mrb[107].mxu0 }
 0x5d4   : > { %12759 = vst.msk [vmem:[%s20143_s25 + $0x140] sm:$0xff] %vm1463_vm6, %v12695_v15  ;;  %v12696_v20 = vadd.f32 %v20122_v9, %v12556_v11 }
 0x5d5   : > { %12762 = vst.msk [vmem:[%s20143_s25 + $0x158] sm:$0xff] %vm1463_vm6, %v12698_v39 }
 0x5d6   : > { %12760 = vst.msk [vmem:[%s20143_s25 + $0x148] sm:$0xff] %vm1463_vm6, %v12696_v20 }
 0x5f1   : > { %v13743_v12 = vpop.f32.mrb[108].mxu0 }
 0x5f2   : > { %v12701_v2 = vadd.f32 %v13743_v12, %v20122_v9  ;;  %v12569_v23 = vpop.f32.mrb[109].mxu0 }
 0x5f3   : > { %v12699_v32 = vadd.f32 %v20122_v9, %v12569_v23  ;;  %v13744_v4 = vpop.f32.mrb[110].mxu0 }
 0x5f4   : > { %12765 = vst.msk [vmem:[%s20143_s25 + $0x170] sm:$0xff] %vm1463_vm6, %v12701_v2  ;;  %v12702_v25 = vadd.f32 %v13744_v4, %v20122_v9  ;;  %v12572_v3 = vpop.f32.mrb[111].mxu0 }
 0x5f5   : > { %12763 = vst.msk [vmem:[%s20143_s25 + $0x160] sm:$0xff] %vm1463_vm6, %v12699_v32  ;;  %v12700_v53 = vadd.f32 %v20122_v9, %v12572_v3 }
 0x5f6   : > { %12766 = vst.msk [vmem:[%s20143_s25 + $0x178] sm:$0xff] %vm1463_vm6, %v12702_v25 }
 0x5f7   : > { %12764 = vst.msk [vmem:[%s20143_s25 + $0x168] sm:$0xff] %vm1463_vm6, %v12700_v53 }
 0x611   : > { %v13747_v48 = vpop.f32.mrb[112].mxu0 }
 0x612   : > { %v12705_v51 = vadd.f32 %v13747_v48, %v20122_v9  ;;  %v12585_v38 = vpop.f32.mrb[113].mxu0 }
 0x613   : > { %v12703_v1 = vadd.f32 %v20122_v9, %v12585_v38  ;;  %v13748_v35 = vpop.f32.mrb[114].mxu0 }
 0x614   : > { %12769 = vst.msk [vmem:[%s20143_s25 + $0x190] sm:$0xff] %vm1463_vm6, %v12705_v51  ;;  %v12706_v33 = vadd.f32 %v13748_v35, %v20122_v9  ;;  %v12588_v54 = vpop.f32.mrb[115].mxu0 }
 0x615   : > { %12767 = vst.msk [vmem:[%s20143_s25 + $0x180] sm:$0xff] %vm1463_vm6, %v12703_v1  ;;  %v12704_v19 = vadd.f32 %v20122_v9, %v12588_v54 }
 0x616   : > { %12770 = vst.msk [vmem:[%s20143_s25 + $0x198] sm:$0xff] %vm1463_vm6, %v12706_v33 }
 0x617   : > { %12768 = vst.msk [vmem:[%s20143_s25 + $0x188] sm:$0xff] %vm1463_vm6, %v12704_v19 }
 0x632   : > { %v13751_v13 = vpop.f32.mrb[116].mxu0 }
 0x633   : > { %v12709_v22 = vadd.f32 %v13751_v13, %v20122_v9  ;;  %v12601_v28 = vpop.f32.mrb[117].mxu0 }
 0x634   : > { %v12707_v55 = vadd.f32 %v20122_v9, %v12601_v28  ;;  %v13752_v58 = vpop.f32.mrb[118].mxu0 }
 0x635   : > { %12773 = vst.msk [vmem:[%s20143_s25 + $0x1b0] sm:$0xff] %vm1463_vm6, %v12709_v22  ;;  %v12710_v21 = vadd.f32 %v13752_v58, %v20122_v9  ;;  %v12604_v8 = vpop.f32.mrb[119].mxu0 }
 0x636   : > { %12771 = vst.msk [vmem:[%s20143_s25 + $0x1a0] sm:$0xff] %vm1463_vm6, %v12707_v55  ;;  %v12708_v29 = vadd.f32 %v20122_v9, %v12604_v8 }
 0x637   : > { %12774 = vst.msk [vmem:[%s20143_s25 + $0x1b8] sm:$0xff] %vm1463_vm6, %v12710_v21 }
 0x638   : > { %12772 = vst.msk [vmem:[%s20143_s25 + $0x1a8] sm:$0xff] %vm1463_vm6, %v12708_v29 }
 0x652   : > { %v13755_v45 = vpop.f32.mrb[120].mxu0 }
 0x653   : > { %v12713_v27 = vadd.f32 %v13755_v45, %v20122_v9  ;;  %v12617_v26 = vpop.f32.mrb[121].mxu0 }
 0x654   : > { %v12711_v41 = vadd.f32 %v20122_v9, %v12617_v26  ;;  %v13756_v50 = vpop.f32.mrb[122].mxu0 }
 0x655   : > { %12777 = vst.msk [vmem:[%s20143_s25 + $0x1d0] sm:$0xff] %vm1463_vm6, %v12713_v27  ;;  %v12714_v44 = vadd.f32 %v13756_v50, %v20122_v9  ;;  %v12620_v62 = vpop.f32.mrb[123].mxu0 }
 0x656   : > { %12775 = vst.msk [vmem:[%s20143_s25 + $0x1c0] sm:$0xff] %vm1463_vm6, %v12711_v41  ;;  %v12712_v31 = vadd.f32 %v20122_v9, %v12620_v62 }
 0x657   : > { %12778 = vst.msk [vmem:[%s20143_s25 + $0x1d8] sm:$0xff] %vm1463_vm6, %v12714_v44 }
 0x658   : > { %12776 = vst.msk [vmem:[%s20143_s25 + $0x1c8] sm:$0xff] %vm1463_vm6, %v12712_v31 }
 0x677   : > { %v13759_v18 = vpop.f32.mrb[124].mxu0 }
 0x678   : > { %v12717_v60 = vadd.f32 %v13759_v18, %v20122_v9  ;;  %v12633_v42 = vpop.f32.mrb[125].mxu0 }
 0x679   : > { %v12715_v43 = vadd.f32 %v20122_v9, %v12633_v42  ;;  %v13760_v30 = vpop.f32.mrb[126].mxu0 }
 0x67a   : > { %12781 = vst.msk [vmem:[%s20143_s25 + $0x1f0] sm:$0xff] %vm1463_vm6, %v12717_v60  ;;  %v12718_v17 = vadd.f32 %v13760_v30, %v20122_v9  ;;  %v12636_v56 = vpop.f32.mrb[127].mxu0 }
 0x67b   : > { %12779 = vst.msk [vmem:[%s20143_s25 + $0x1e0] sm:$0xff] %vm1463_vm6, %v12715_v43  ;;  %v12716_v14 = vadd.f32 %v20122_v9, %v12636_v56 }
 0x67c   : > { %12782 = vst.msk [vmem:[%s20143_s25 + $0x1f8] sm:$0xff] %vm1463_vm6, %v12718_v17 }
 0x67d   : > { %12780 = vst.msk [vmem:[%s20143_s25 + $0x1e8] sm:$0xff] %vm1463_vm6, %v12716_v14 }
 0x67e PF: > { %s24_s29 = sadd.s32 1, %s13951_s29  }
 0x67f   : > { %p21_p4 = scmp.ge.s32.totalorder %s24_s29, 4  }
 0x681   :  { %23 = sbr.rel (!%p21_p4) target bundleno = 1 (0x1), region = 112 }

</bundles_post_ra>
